<compile_context>
chip_gen: v6e
topology: v6e:2x2x1
jax: 0.10.0
libtpu: 0.0.40
codegen_flags: <defaults>
</compile_context>

<pallas_src>
import functools

import jax
import jax.numpy as jnp
from jax import lax
from jax.experimental import pallas as pl
from jax.experimental.pallas import tpu as pltpu

LN_EPS = 1e-5
INV_SQRT2 = 0.7071067811865476
SQRT_2_OVER_PI = 0.7978845608028654


def _adapter_kernel(x_ref, pos_ref, g_ref, beta_ref,
                    w1_ref, b1_ref, w2_ref, b2_ref,
                    o_ref, h_ref, *, approximate):
    """One (row-tile, column-tile) grid step.

    x_ref/pos_ref: (TM, D_in) f32; w1: (D_in, D_out) bf16; w2: (D_out, TN) bf16.
    h_ref: (TM, D_out) bf16 VMEM scratch holding GELU(Linear1(LN(x)+pos)),
    computed once per row tile (n == 0) and reused for every column tile.
    """
    n = pl.program_id(2)

    @pl.when(n == 0)
    def _():
        x = x_ref[...].astype(jnp.float32)

        # LayerNorm over the feature axis (PyTorch eps = 1e-5), all f32.
        mean = jnp.mean(x, axis=-1, keepdims=True)
        xc = x - mean
        var = jnp.mean(xc * xc, axis=-1, keepdims=True)
        xn = xc * lax.rsqrt(var + LN_EPS)
        # affine + positional embedding add
        xn = xn * g_ref[...] + beta_ref[...] + pos_ref[...]

        # Linear1: bf16 MXU inputs, f32 accumulation.
        h = jnp.dot(xn.astype(jnp.bfloat16), w1_ref[...],
                    preferred_element_type=jnp.float32) + b1_ref[...]

        if approximate:
            # tanh GELU (EUP slot) — opt-in; only if tolerance budget allows.
            h = 0.5 * h * (1.0 + jnp.tanh(SQRT_2_OVER_PI * (h + 0.044715 * h * h * h)))
        else:
            # exact erf GELU (nn.GELU default).
            h = 0.5 * h * (1.0 + lax.erf(h * INV_SQRT2))

        # Stage in bf16 VMEM for the second matmul.
        h_ref[...] = h.astype(jnp.bfloat16)

    # Linear2 (column tile): bf16 MXU inputs, f32 accumulation.
    y = jnp.dot(h_ref[...], w2_ref[...],
                preferred_element_type=jnp.float32) + b2_ref[...]
    o_ref[...] = y.astype(o_ref.dtype)


def _round_up(n, m):
    return (n + m - 1) // m * m


def _vmem_limit_bytes(tile_m, d_in, d_out, tile_n, out_itemsize):
    f32, bf16 = 4, 2
    act_in = 2 * (2 * tile_m * d_in * f32)                 # x + pos tiles, double-buffered
    act_out = 2 * tile_m * tile_n * out_itemsize           # output tile, double-buffered
    w1_res = d_in * d_out * bf16                           # resident (single-buffered)
    w2_bufs = (1 if tile_n == d_out else 2) * d_out * tile_n * bf16
    vectors = (2 * d_in + d_out + 2 * tile_n) * f32        # gamma, beta, b1, b2
    scratch = tile_m * d_out * bf16                        # GELU staging buffer
    need = act_in + act_out + w1_res + w2_bufs + vectors + scratch
    need = int(need * 1.25) + (4 << 20)                    # compiler-temp headroom
    try:
        cap = int(pltpu.get_tpu_info().vmem_capacity_bytes)
    except Exception:
        cap = 128 << 20
    return int(min(max(need, 32 << 20), int(cap * 0.8)))


def image_adapter_forward(vision_outputs, params, *, tm=512, tn=2048,
                          approximate_gelu=False, out_dtype=jnp.float32):
    """vision_outputs: (L, B, T, D_in) stack of hidden states (float32).
    Returns (B, T + 2, D_out): [other_tok0, adapter(x), other_tok1]."""
    x = vision_outputs[-2]                              # (B, T, D_in)  -- glue
    B, T, D_in = x.shape
    D_out = params["w1"].shape[1]
    assert params["pos_emb"].shape == (T, D_in)

    # Row (token) tiling.  pos_emb stays at its native (T, D_in) — no batch broadcast.
    tile_m = min(tm, T)
    T_pad = _round_up(T, tile_m)
    pos = params["pos_emb"]
    if T_pad != T:
        # TODO(synk): for non-divisible T (e.g. 729 tokens) a masked tail tile would
        # avoid this small pad-along-T copy; padded rows are sliced off below.
        x = jnp.pad(x, ((0, 0), (0, T_pad - T), (0, 0)))
        pos = jnp.pad(pos, ((0, T_pad - T), (0, 0)))
    nt = T_pad // tile_m

    # Optional w2 column tiling (caps the resident w2 block for production D_out~4096).
    tile_n = min(tn, D_out)
    if D_out % tile_n != 0:
        tile_n = D_out          # TODO(synk): pad D_out instead if this ever binds VMEM
    nn = D_out // tile_n

    # bf16 weights halve weight DMA / VMEM; matmuls still accumulate in f32.
    w1 = params["w1"].astype(jnp.bfloat16)
    w2 = params["w2"].astype(jnp.bfloat16)

    resident = dict(pipeline_mode=pl.Buffered(1))       # constant index_map operands
    w2_mode = resident if nn == 1 else {}                # keep double-buffer when n-tiled

    kernel = functools.partial(_adapter_kernel, approximate=approximate_gelu)

    core = pl.pallas_call(
        kernel,
        out_shape=jax.ShapeDtypeStruct((B, T_pad, D_out), out_dtype),
        grid_spec=pltpu.PrefetchScalarGridSpec(
            num_scalar_prefetch=0,
            grid=(B, nt, nn),
            in_specs=[
                pl.BlockSpec((None, tile_m, D_in), lambda b, t, n: (b, t, 0)),   # x rows
                pl.BlockSpec((tile_m, D_in), lambda b, t, n: (t, 0)),            # pos rows
                pl.BlockSpec((1, D_in), lambda b, t, n: (0, 0), **resident),     # ln gamma
                pl.BlockSpec((1, D_in), lambda b, t, n: (0, 0), **resident),     # ln beta
                pl.BlockSpec((D_in, D_out), lambda b, t, n: (0, 0), **resident), # w1 (bf16)
                pl.BlockSpec((1, D_out), lambda b, t, n: (0, 0), **resident),    # b1
                pl.BlockSpec((D_out, tile_n), lambda b, t, n: (0, n), **w2_mode),# w2 (bf16)
                pl.BlockSpec((1, tile_n), lambda b, t, n: (0, n), **w2_mode),    # b2
            ],
            out_specs=pl.BlockSpec((None, tile_m, tile_n), lambda b, t, n: (b, t, n)),
            scratch_shapes=[pltpu.VMEM((tile_m, D_out), jnp.bfloat16)],          # GELU(h)
        ),
        compiler_params=pltpu.CompilerParams(
            dimension_semantics=("parallel", "parallel", "arbitrary"),
            vmem_limit_bytes=_vmem_limit_bytes(
                tile_m, D_in, D_out, tile_n, jnp.dtype(out_dtype).itemsize)),
    )(x, pos, params["ln_g"], params["ln_b"], w1, params["b1"], w2, params["b2"])

    core = core[:, :T, :]

    # other_tokens embedding lookup for indices [0, 1], expanded over batch (glue).
    # TODO(synk): fusing this concat into the kernel output needs a +1-row (unaligned
    # sublane) store offset; kept as a single XLA concat.
    tok0 = jnp.broadcast_to(params["other_tokens"][0].astype(out_dtype)[None, None, :],
                            (B, 1, D_out))
    tok1 = jnp.broadcast_to(params["other_tokens"][1].astype(out_dtype)[None, None, :],
                            (B, 1, D_out))
    return jnp.concatenate((tok0, core, tok1), axis=1)


def _reference_forward(vision_outputs, params):
    """Pure-JAX f32 reference mirroring the PyTorch module semantics."""
    x = vision_outputs[-2]
    mean = jnp.mean(x, axis=-1, keepdims=True)
    var = jnp.mean((x - mean) ** 2, axis=-1, keepdims=True)
    xn = (x - mean) / jnp.sqrt(var + LN_EPS)
    xn = xn * params["ln_g"][0] + params["ln_b"][0]
    xn = xn + params["pos_emb"]
    h = xn @ params["w1"] + params["b1"][0]
    h = 0.5 * h * (1.0 + lax.erf(h * INV_SQRT2))
    y = h @ params["w2"] + params["b2"][0]
    B = x.shape[0]
    D_out = params["w1"].shape[1]
    tok0 = jnp.broadcast_to(params["other_tokens"][0][None, None, :], (B, 1, D_out))
    tok1 = jnp.broadcast_to(params["other_tokens"][1][None, None, :], (B, 1, D_out))
    return jnp.concatenate((tok0, y, tok1), axis=1)


def make_params(key, input_features, output_features, num_image_tokens):
    ks = jax.random.split(key, 8)
    # linear weights stored as (in, out); equivalent to PyTorch W.T
    w1 = jax.random.normal(ks[0], (input_features, output_features), jnp.float32) * 0.02
    b1 = jax.random.normal(ks[1], (1, output_features), jnp.float32) * 0.02
    w2 = jax.random.normal(ks[2], (output_features, output_features), jnp.float32) * 0.02
    b2 = jax.random.normal(ks[3], (1, output_features), jnp.float32) * 0.02
    # LayerNorm affine (perturbed from gamma=1/beta=0 so the kernel path is exercised)
    ln_g = 1.0 + jax.random.normal(ks[4], (1, input_features), jnp.float32) * 0.05
    ln_b = jax.random.normal(ks[5], (1, input_features), jnp.float32) * 0.05
    # pos_emb: PyTorch init is zeros; small random makes the add non-trivial
    pos_emb = jax.random.normal(ks[6], (num_image_tokens, input_features), jnp.float32) * 0.02
    # other_tokens: nn.Embedding(3, output_features), normal(0, 0.02)
    other_tokens = jax.random.normal(ks[7], (3, output_features), jnp.float32) * 0.02
    return {"w1": w1, "b1": b1, "w2": w2, "b2": b2,
            "ln_g": ln_g, "ln_b": ln_b,
            "pos_emb": pos_emb, "other_tokens": other_tokens}


if __name__ == "__main__":
    # Lane-dense toy shapes: D_in/D_out multiples of 128 (and >=256 for the wide MXU),
    # B*T = 2048 rows -> multiple row tiles at TM=512 so the pipeline actually cycles.
    L, B, T, D_IN, D_OUT = 4, 2, 1024, 256, 512   # num_image_tokens = T

    key = jax.random.PRNGKey(0)
    k_vis, k_par = jax.random.split(key)
    vision_outputs = jax.random.normal(k_vis, (L, B, T, D_IN), jnp.float32)
    params = make_params(k_par, D_IN, D_OUT, T)

    ref = _reference_forward(vision_outputs, params)

    # Path 1: w2 fully resident (nn == 1, Buffered(1) on every weight/constant).
    fwd_resident = jax.jit(image_adapter_forward)                       # tm=512, tn=2048
    out_resident = jax.block_until_ready(fwd_resident(vision_outputs, params))

    # Path 2: w2 column-tiled (nn == 2) with the h-scratch reuse across column tiles.
    fwd_tiled = jax.jit(functools.partial(image_adapter_forward, tm=512, tn=256))
    out_tiled = jax.block_until_ready(fwd_tiled(vision_outputs, params))

    for name, out in (("resident", out_resident), ("n-tiled", out_tiled)):
        assert out.shape == (B, T + 2, D_OUT), (name, out.shape)
        max_err = float(jnp.max(jnp.abs(out - ref)))
        # bf16 MXU inputs (f32 accumulation) vs an all-f32 reference -> loosened tolerance.
        assert jnp.allclose(out, ref, atol=1e-2, rtol=1e-2), \
            f"{name}: mismatch vs reference, max_err={max_err}"

    print("KERNEL_OK")
</pallas_src>

<mosaic_0001>
module attributes {stable_mosaic.version = 11 : i64} {
  func.func @_adapter_kernel(%arg0: i32, %arg1: i32, %arg2: i32, %arg3: memref<1x512x256xf32, #tpu.memory_space<vmem>>, %arg4: memref<512x256xf32, #tpu.memory_space<vmem>>, %arg5: memref<1x256xf32, #tpu.memory_space<vmem>>, %arg6: memref<1x256xf32, #tpu.memory_space<vmem>>, %arg7: memref<256x512xbf16, #tpu.memory_space<vmem>>, %arg8: memref<1x512xf32, #tpu.memory_space<vmem>>, %arg9: memref<512x512xbf16, #tpu.memory_space<vmem>>, %arg10: memref<1x512xf32, #tpu.memory_space<vmem>>, %arg11: memref<1x512x512xf32, #tpu.memory_space<vmem>>, %arg12: memref<512x512xbf16, #tpu.memory_space<vmem>>) attributes {dimension_semantics = [#tpu.dimension_semantics<parallel>, #tpu.dimension_semantics<parallel>, #tpu.dimension_semantics<arbitrary>], iteration_bounds = array<i64: 2, 2, 1>, scalar_prefetch = 0 : i64, scratch_operands = 1 : i64, tpu.core_type = #tpu.core_type<tc>, window_params = [{transform_indices = @transform_0, window_bounds = array<i64: 1, 512, 256>}, {transform_indices = @transform_1, window_bounds = array<i64: 512, 256>}, {pipeline_mode = #tpu.pipeline_mode<synchronous>, transform_indices = @transform_2, window_bounds = array<i64: 1, 256>}, {pipeline_mode = #tpu.pipeline_mode<synchronous>, transform_indices = @transform_3, window_bounds = array<i64: 1, 256>}, {pipeline_mode = #tpu.pipeline_mode<synchronous>, transform_indices = @transform_4, window_bounds = array<i64: 256, 512>}, {pipeline_mode = #tpu.pipeline_mode<synchronous>, transform_indices = @transform_5, window_bounds = array<i64: 1, 512>}, {pipeline_mode = #tpu.pipeline_mode<synchronous>, transform_indices = @transform_6, window_bounds = array<i64: 512, 512>}, {pipeline_mode = #tpu.pipeline_mode<synchronous>, transform_indices = @transform_7, window_bounds = array<i64: 1, 512>}, {transform_indices = @transform_8, window_bounds = array<i64: 1, 512, 512>}]} {
    %c0_i32 = arith.constant 0 : i32
    %0 = arith.cmpi eq, %arg2, %c0_i32 : i32
    %1 = arith.extui %0 : i1 to i32
    %c0_i32_0 = arith.constant 0 : i32
    %2 = arith.cmpi ne, %1, %c0_i32_0 : i32
    scf.if %2 {
      %c0_9 = arith.constant 0 : index
      %c0_10 = arith.constant 0 : index
      %c0_11 = arith.constant 0 : index
      %12 = vector.load %arg3[%c0_9, %c0_10, %c0_11] : memref<1x512x256xf32, #tpu.memory_space<vmem>>, vector<1x512x256xf32>
      %13 = vector.shape_cast %12 : vector<1x512x256xf32> to vector<512x256xf32>
      %cst_12 = arith.constant dense<0.000000e+00> : vector<512xf32>
      %14 = vector.multi_reduction <add>, %13, %cst_12 [1] : vector<512x256xf32> to vector<512xf32>
      %15 = vector.shape_cast %14 : vector<512xf32> to vector<512x1xf32>
      %cst_13 = arith.constant 2.560000e+02 : f32
      %16 = vector.broadcast %cst_13 : f32 to vector<512x1xf32>
      %17 = arith.divf %15, %16 : vector<512x1xf32>
      %18 = vector.broadcast %17 : vector<512x1xf32> to vector<512x256xf32>
      %19 = arith.subf %13, %18 : vector<512x256xf32>
      %20 = arith.mulf %19, %19 : vector<512x256xf32>
      %cst_14 = arith.constant dense<0.000000e+00> : vector<512xf32>
      %21 = vector.multi_reduction <add>, %20, %cst_14 [1] : vector<512x256xf32> to vector<512xf32>
      %22 = vector.shape_cast %21 : vector<512xf32> to vector<512x1xf32>
      %cst_15 = arith.constant 2.560000e+02 : f32
      %23 = vector.broadcast %cst_15 : f32 to vector<512x1xf32>
      %24 = arith.divf %22, %23 : vector<512x1xf32>
      %cst_16 = arith.constant 9.99999974E-6 : f32
      %25 = vector.broadcast %cst_16 : f32 to vector<512x1xf32>
      %26 = arith.addf %24, %25 : vector<512x1xf32>
      %27 = math.rsqrt %26 : vector<512x1xf32>
      %28 = vector.broadcast %27 : vector<512x1xf32> to vector<512x256xf32>
      %29 = arith.mulf %19, %28 : vector<512x256xf32>
      %c0_17 = arith.constant 0 : index
      %c0_18 = arith.constant 0 : index
      %30 = vector.load %arg5[%c0_17, %c0_18] : memref<1x256xf32, #tpu.memory_space<vmem>>, vector<1x256xf32>
      %31 = vector.broadcast %30 : vector<1x256xf32> to vector<512x256xf32>
      %32 = arith.mulf %29, %31 : vector<512x256xf32>
      %c0_19 = arith.constant 0 : index
      %c0_20 = arith.constant 0 : index
      %33 = vector.load %arg6[%c0_19, %c0_20] : memref<1x256xf32, #tpu.memory_space<vmem>>, vector<1x256xf32>
      %34 = vector.broadcast %33 : vector<1x256xf32> to vector<512x256xf32>
      %35 = arith.addf %32, %34 : vector<512x256xf32>
      %c0_21 = arith.constant 0 : index
      %c0_22 = arith.constant 0 : index
      %36 = vector.load %arg4[%c0_21, %c0_22] : memref<512x256xf32, #tpu.memory_space<vmem>>, vector<512x256xf32>
      %37 = arith.addf %35, %36 : vector<512x256xf32>
      %38 = arith.truncf %37 : vector<512x256xf32> to vector<512x256xbf16>
      %c0_23 = arith.constant 0 : index
      %c0_24 = arith.constant 0 : index
      %39 = vector.load %arg7[%c0_23, %c0_24] : memref<256x512xbf16, #tpu.memory_space<vmem>>, vector<256x512xbf16>
      %cst_25 = arith.constant dense<0.000000e+00> : vector<512x512xf32>
      %40 = tpu.matmul %38, %39, %cst_25 {dimension_numbers = #tpu.dot_dimension_numbers<[1], [0], [0], [1], [0, 0, 1, 1], [], []>} : vector<512x256xbf16>, vector<256x512xbf16>, vector<512x512xf32> -> vector<512x512xf32>
      %c0_26 = arith.constant 0 : index
      %c0_27 = arith.constant 0 : index
      %41 = vector.load %arg8[%c0_26, %c0_27] : memref<1x512xf32, #tpu.memory_space<vmem>>, vector<1x512xf32>
      %42 = vector.broadcast %41 : vector<1x512xf32> to vector<512x512xf32>
      %43 = arith.addf %40, %42 : vector<512x512xf32>
      %cst_28 = arith.constant 5.000000e-01 : f32
      %44 = vector.broadcast %cst_28 : f32 to vector<512x512xf32>
      %45 = arith.mulf %44, %43 : vector<512x512xf32>
      %cst_29 = arith.constant 0.707106769 : f32
      %46 = vector.broadcast %cst_29 : f32 to vector<512x512xf32>
      %47 = arith.mulf %43, %46 : vector<512x512xf32>
      %48 = math.erf %47 : vector<512x512xf32>
      %cst_30 = arith.constant 1.000000e+00 : f32
      %49 = vector.broadcast %cst_30 : f32 to vector<512x512xf32>
      %50 = arith.addf %49, %48 : vector<512x512xf32>
      %51 = arith.mulf %45, %50 : vector<512x512xf32>
      %52 = arith.truncf %51 : vector<512x512xf32> to vector<512x512xbf16>
      %c0_31 = arith.constant 0 : index
      %c0_32 = arith.constant 0 : index
      %53 = vector.load %arg12[%c0_31, %c0_32] : memref<512x512xbf16, #tpu.memory_space<vmem>>, vector<512x512xbf16>
      tpu.vector_store %arg12[%c0_31, %c0_32], %52 {strides = array<i32>} : memref<512x512xbf16, #tpu.memory_space<vmem>>, vector<512x512xbf16>,
    } else {
    }
    %c0 = arith.constant 0 : index
    %c0_1 = arith.constant 0 : index
    %3 = vector.load %arg12[%c0, %c0_1] : memref<512x512xbf16, #tpu.memory_space<vmem>>, vector<512x512xbf16>
    %c0_2 = arith.constant 0 : index
    %c0_3 = arith.constant 0 : index
    %4 = vector.load %arg9[%c0_2, %c0_3] : memref<512x512xbf16, #tpu.memory_space<vmem>>, vector<512x512xbf16>
    %cst = arith.constant dense<0.000000e+00> : vector<512x512xf32>
    %5 = tpu.matmul %3, %4, %cst {dimension_numbers = #tpu.dot_dimension_numbers<[1], [0], [0], [1], [0, 0, 1, 1], [], []>} : vector<512x512xbf16>, vector<512x512xbf16>, vector<512x512xf32> -> vector<512x512xf32>
    %c0_4 = arith.constant 0 : index
    %c0_5 = arith.constant 0 : index
    %6 = vector.load %arg10[%c0_4, %c0_5] : memref<1x512xf32, #tpu.memory_space<vmem>>, vector<1x512xf32>
    %7 = vector.broadcast %6 : vector<1x512xf32> to vector<512x512xf32>
    %8 = arith.addf %5, %7 : vector<512x512xf32>
    %c0_6 = arith.constant 0 : index
    %c0_7 = arith.constant 0 : index
    %c0_8 = arith.constant 0 : index
    %9 = vector.load %arg11[%c0_6, %c0_7, %c0_8] : memref<1x512x512xf32, #tpu.memory_space<vmem>>, vector<1x512x512xf32>
    %10 = vector.shape_cast %9 : vector<1x512x512xf32> to vector<512x512xf32>
    %11 = vector.shape_cast %8 : vector<512x512xf32> to vector<1x512x512xf32>
    tpu.vector_store %arg11[%c0_6, %c0_7, %c0_8], %11 {strides = array<i32>} : memref<1x512x512xf32, #tpu.memory_space<vmem>>, vector<1x512x512xf32>,
    return
  }
  func.func @transform_0(%arg0: i32, %arg1: i32, %arg2: i32) -> (i32, i32, i32) {
    %c0_i32 = arith.constant 0 : i32
    %c0_i32_0 = arith.constant 0 : i32
    return %arg0, %arg1, %c0_i32 : i32, i32, i32
  }
  func.func @transform_1(%arg0: i32, %arg1: i32, %arg2: i32) -> (i32, i32) {
    %c0_i32 = arith.constant 0 : i32
    %c0_i32_0 = arith.constant 0 : i32
    return %arg1, %c0_i32 : i32, i32
  }
  func.func @transform_2(%arg0: i32, %arg1: i32, %arg2: i32) -> (i32, i32) {
    %c0_i32 = arith.constant 0 : i32
    %c0_i32_0 = arith.constant 0 : i32
    %c0_i32_1 = arith.constant 0 : i32
    return %c0_i32, %c0_i32_0 : i32, i32
  }
  func.func @transform_3(%arg0: i32, %arg1: i32, %arg2: i32) -> (i32, i32) {
    %c0_i32 = arith.constant 0 : i32
    %c0_i32_0 = arith.constant 0 : i32
    %c0_i32_1 = arith.constant 0 : i32
    return %c0_i32, %c0_i32_0 : i32, i32
  }
  func.func @transform_4(%arg0: i32, %arg1: i32, %arg2: i32) -> (i32, i32) {
    %c0_i32 = arith.constant 0 : i32
    %c0_i32_0 = arith.constant 0 : i32
    %c0_i32_1 = arith.constant 0 : i32
    return %c0_i32, %c0_i32_0 : i32, i32
  }
  func.func @transform_5(%arg0: i32, %arg1: i32, %arg2: i32) -> (i32, i32) {
    %c0_i32 = arith.constant 0 : i32
    %c0_i32_0 = arith.constant 0 : i32
    %c0_i32_1 = arith.constant 0 : i32
    return %c0_i32, %c0_i32_0 : i32, i32
  }
  func.func @transform_6(%arg0: i32, %arg1: i32, %arg2: i32) -> (i32, i32) {
    %c0_i32 = arith.constant 0 : i32
    %c0_i32_0 = arith.constant 0 : i32
    return %c0_i32, %arg2 : i32, i32
  }
  func.func @transform_7(%arg0: i32, %arg1: i32, %arg2: i32) -> (i32, i32) {
    %c0_i32 = arith.constant 0 : i32
    %c0_i32_0 = arith.constant 0 : i32
    return %c0_i32, %arg2 : i32, i32
  }
  func.func @transform_8(%arg0: i32, %arg1: i32, %arg2: i32) -> (i32, i32, i32) {
    %c0_i32 = arith.constant 0 : i32
    return %arg0, %arg1, %arg2 : i32, i32, i32
  }
}

</mosaic_0001>

<bundles_post_ra>
// kernel: image_adapter_forward.1
= control target key start
LH: loop header
LB: loop body
LE: loop exit
PB: predicated region body
PF: predicated region fallthrough
CT: control target
= control target key end

     0   :  { %s10686_s27 = smov 0   ;;  %s10688_s28 = smov 0   ;;  %s16606_s0 = inlined_call_operand.vmem [shape: f32[2,1024,256], index: 0, kind: input, shape index: {}]   ;;  %s16607_s1 = inlined_call_operand.vmem [shape: f32[1024,256], index: 1, kind: input, shape index: {}]   ;;  %s16608_s2 = inlined_call_operand.vmem [shape: f32[1,256], index: 2, kind: input, shape index: {}]   ;;  %s16609_s3 = inlined_call_operand.vmem [shape: f32[1,256], index: 3, kind: input, shape index: {}]   ;;  %s16610_s4 = inlined_call_operand.vmem [shape: bf16[256,512], index: 4, kind: input, shape index: {}]   ;;  %s16611_s5 = inlined_call_operand.vmem [shape: f32[1,512], index: 5, kind: input, shape index: {}]   ;;  %s16612_s6 = inlined_call_operand.vmem [shape: bf16[512,512], index: 6, kind: input, shape index: {}]   ;;  %s16613_s7 = inlined_call_operand.vmem [shape: f32[1,512], index: 7, kind: input, shape index: {}]   ;;  %s16614_s8 = inlined_call_operand.vmem [shape: f32[2,1024,512], index: 8, kind: output, shape index: {}]  }
   0x1   :  { %s10690_s29 = smov 0   ;;  %s10692_s30 = smov 0  }
   0x2   :  { %s10694_s9 = smov 0  }
   0x3 LB: > { %s33_s10 = sadd.s32 1, %s10631_s29  ;;  %s37_s11 = sadd.s32 1, %s10635_s30  ;;  %s10639_s9 = sphi %s10694_s9, %s18_s9   ;;  %s10635_s30 = sphi %s10692_s30, %s17662_s30   ;;  %s10631_s29 = sphi %s10690_s29, %s17661_s29   ;;  %s10627_s28 = sphi %s10688_s28, %s17660_s28   ;;  %s10623_s27 = sphi %s10686_s27, %s17659_s27  }
   0x4   : > { %p35_p0 = scmp.ge.s32.totalorder %s33_s10, 2  ;;  %p8865_p1 = scmp.ge.s32.totalorder %s10639_s9, 1 }
   0x5   : > { %p326_p2 = scmp.lt.s32.totalorder %s10639_s9, 5 }
   0x6   : > { %s17664_s10 = smov (%p35_p0, %s33_s10), 0  ;;  %s17666_s11 = smov (!%p35_p0, %s37_s11), %s10635_s30 }
   0x7   : > { %p327_p3 = pnand %p8865_p1, %p326_p2  ;;  %p39_p4 = scmp.ge.s32.totalorder %s17666_s11, 2 }
   0x9   : > { %s17668_s11 = smov (%p39_p4, %s17666_s11), 0  ;;  %330 = sbr.rel (%p327_p3) target bundleno = 1576 (0x628), region = 52 }
   0xe   : > { %s8866_s12 = sshll.u32 %s10623_s27, 6  ;;  %p390_p5 = scmp.lt.s32.totalorder %s10627_s28, 1  ;;  %v9624_v60 = vld [vmem:[%s16610_s4 + $0xe4] ss:$16 sps:$4 sm:$0xff]   ;;  %v9626_v61 = vld [vmem:[%s16610_s4 + $0xec] ss:$16 sps:$4 sm:$0xff]  }
   0xf   : > { %p392_p6 = scmp.lt.s32.totalorder %s8866_s12, 127  ;;  %v9628_v62 = vld [vmem:[%s16610_s4 + $0xe0] ss:$16 sps:$4 sm:$0xff]   ;;  %v9629_v63 = vld [vmem:[%s16610_s4 + $0xe8] ss:$16 sps:$4 sm:$0xff]   ;;  %2597 = vmatprep.subr.bf16.mxu0 %v9624_v60  ;;  %2950 = vmatprep.subr.bf16.mxu1 %v9626_v61 }
  0x10   : > { %s17670_s28 = smov (!%p390_p5, %s10627_s28), 1  ;;  %2598 = vmatpush1.bf16.msra.mxu0 %v9628_v62  ;;  %2951 = vmatpush1.bf16.msra.mxu1 %v9629_v63  ;;  %v9660_v60 = vld [vmem:[%s16610_s4 + $0x24] ss:$16 sps:$4 sm:$0xff]   ;;  %v9662_v61 = vld [vmem:[%s16610_s4 + $0x2c] ss:$16 sps:$4 sm:$0xff]  }
  0x11   : > { %s17672_s12 = smov (!%p392_p6, %s8866_s12), 127  ;;  %s8868_s13 = sshll.u32 %s17670_s28, 8  ;;  %v9664_v62 = vld [vmem:[%s16610_s4 + $0x20] ss:$16 sps:$4 sm:$0xff]   ;;  %v9665_v63 = vld [vmem:[%s16610_s4 + $0x28] ss:$16 sps:$4 sm:$0xff]  }
  0x12   : > { %s8867_s14 = sshll.u32 %s17672_s12, 1  ;;  %s9327_s26 = sshll.u32 %s17672_s12, 4 }
  0x13   : > { %s396_s15 = sadd.s32 %s8868_s13, %s8867_s14  ;;  %s11564_s14 = scalar_lea.vmem %s16607_s1, %s9327_s26 }
  0x14   : > { %s8869_s16 = sshll.u32 %s396_s15, 3  ;;  %s8874_s18 = sshll.u32 %s17672_s12, 2 }
  0x15   : > { %s10725_s19 = scalar_lea.vmem %s16606_s0, %s8869_s16  ;;  %s8875_s20 = sshll.u32 %s17670_s28, 9 }
  0x16   : > { %v10728_v0 = vld [vmem:[%s10725_s19] sm:$0xff]  ;;  %v10731_v1 = vld [vmem:[%s10725_s19 + $0x8] sm:$0xff]  ;;  %v10734_v2 = vld [vmem:[%s10725_s19 + $0x10] sm:$0xff]  ;;  %s15682_s28 = sadd.s32 %s8875_s20, %s8874_s18 }
  0x17   : > { %v566_v3 = vadd.f32 %v10731_v1, %v10728_v0  ;;  %v10739_v4 = vld [vmem:[%s10725_s19 + $0x18] sm:$0xff]  ;;  %v10742_v5 = vld [vmem:[%s10725_s19 + $0x20] sm:$0xff]  ;;  %v10745_v6 = vld [vmem:[%s10725_s19 + $0x28] sm:$0xff]  ;;  %s8876_s12 = sshll.u32 %s15682_s28, 3 }
  0x18   : > { %v572_v7 = vadd.f32 %v10745_v6, %v10742_v5  ;;  %v10750_v8 = vld [vmem:[%s10725_s19 + $0x30] sm:$0xff]  ;;  %v10753_v9 = vld [vmem:[%s10725_s19 + $0x38] sm:$0xff]  ;;  %v569_v10 = vadd.f32 %v10739_v4, %v10734_v2  ;;  %v10760_v12 = vld [vmem:[%s10725_s19 + $0x40] sm:$0xff]  ;;  %s15724_s25 = scalar_lea.vmem %s16614_s8, %s8876_s12 }
  0x19   : > { %567 = vadd.xlane.f32.xlu0 %v566_v3  ;;  %v575_v11 = vadd.f32 %v10753_v9, %v10750_v8  ;;  %v10763_v13 = vld [vmem:[%s10725_s19 + $0x48] sm:$0xff]  ;;  %v10766_v14 = vld [vmem:[%s10725_s19 + $0x50] sm:$0xff]  ;;  %v10769_v15 = vld [vmem:[%s10725_s19 + $0x58] sm:$0xff] }
  0x1a   : > { %573 = vadd.xlane.f32.xlu1 %v572_v7  ;;  %v578_v16 = vadd.f32 %v10763_v13, %v10760_v12  ;;  %v581_v17 = vadd.f32 %v10769_v15, %v10766_v14  ;;  %v10776_v18 = vld [vmem:[%s10725_s19 + $0x60] sm:$0xff]  ;;  %v10779_v19 = vld [vmem:[%s10725_s19 + $0x68] sm:$0xff]  ;;  %v10782_v20 = vld [vmem:[%s10725_s19 + $0x70] sm:$0xff] }
  0x1b   : > { %v10785_v21 = vld [vmem:[%s10725_s19 + $0x78] sm:$0xff]  ;;  %v584_v22 = vadd.f32 %v10779_v19, %v10776_v18  ;;  %v10792_v24 = vld [vmem:[%s10725_s19 + $0x80] sm:$0xff]  ;;  %v10795_v25 = vld [vmem:[%s10725_s19 + $0x88] sm:$0xff] }
  0x1c   : > { %v587_v23 = vadd.f32 %v10785_v21, %v10782_v20  ;;  %v10798_v26 = vld [vmem:[%s10725_s19 + $0x90] sm:$0xff]  ;;  %v10801_v27 = vld [vmem:[%s10725_s19 + $0x98] sm:$0xff]  ;;  %v10804_v28 = vld [vmem:[%s10725_s19 + $0xa0] sm:$0xff]  ;;  %v590_v30 = vadd.f32 %v10795_v25, %v10792_v24 }
  0x1d   : > { %570 = vadd.xlane.f32.xlu0 %v569_v10  ;;  %v10807_v29 = vld [vmem:[%s10725_s19 + $0xa8] sm:$0xff]  ;;  %v10812_v31 = vld [vmem:[%s10725_s19 + $0xb0] sm:$0xff]  ;;  %v10815_v32 = vld [vmem:[%s10725_s19 + $0xb8] sm:$0xff]  ;;  %v593_v33 = vadd.f32 %v10801_v27, %v10798_v26 }
  0x1e   : > { %576 = vadd.xlane.f32.xlu1 %v575_v11  ;;  %v10820_v34 = vld [vmem:[%s10725_s19 + $0xc0] sm:$0xff]  ;;  %v10823_v35 = vld [vmem:[%s10725_s19 + $0xc8] sm:$0xff]  ;;  %v596_v36 = vadd.f32 %v10807_v29, %v10804_v28  ;;  %v599_v37 = vadd.f32 %v10815_v32, %v10812_v31  ;;  %v10830_v38 = vld [vmem:[%s10725_s19 + $0xd0] sm:$0xff] }
  0x1f   : > { %v10833_v39 = vld [vmem:[%s10725_s19 + $0xd8] sm:$0xff]  ;;  %v10836_v40 = vld [vmem:[%s10725_s19 + $0xe0] sm:$0xff]  ;;  %v10839_v41 = vld [vmem:[%s10725_s19 + $0xe8] sm:$0xff]  ;;  %v602_v42 = vadd.f32 %v10823_v35, %v10820_v34 }
  0x20   : > { %v10844_v43 = vld [vmem:[%s10725_s19 + $0xf0] sm:$0xff]  ;;  %v10847_v44 = vld [vmem:[%s10725_s19 + $0xf8] sm:$0xff]  ;;  %v605_v45 = vadd.f32 %v10833_v39, %v10830_v38  ;;  %v10852_v46 = vld [vmem:[%s10725_s19 + $0x100] sm:$0xff]  ;;  %v608_v48 = vadd.f32 %v10839_v41, %v10836_v40 }
  0x21   : > { %579 = vadd.xlane.f32.xlu0 %v578_v16  ;;  %v10855_v47 = vld [vmem:[%s10725_s19 + $0x108] sm:$0xff]  ;;  %v611_v49 = vadd.f32 %v10847_v44, %v10844_v43  ;;  %v10862_v50 = vld [vmem:[%s10725_s19 + $0x110] sm:$0xff]  ;;  %v10865_v51 = vld [vmem:[%s10725_s19 + $0x118] sm:$0xff] }
  0x22   : > { %582 = vadd.xlane.f32.xlu1 %v581_v17  ;;  %v10868_v52 = vld [vmem:[%s10725_s19 + $0x120] sm:$0xff]  ;;  %v10871_v53 = vld [vmem:[%s10725_s19 + $0x128] sm:$0xff]  ;;  %v614_v54 = vadd.f32 %v10855_v47, %v10852_v46  ;;  %v617_v55 = vadd.f32 %v10865_v51, %v10862_v50  ;;  %v10878_v56 = vld [vmem:[%s10725_s19 + $0x130] sm:$0xff] }
  0x23   : > { %v10881_v57 = vld [vmem:[%s10725_s19 + $0x138] sm:$0xff]  ;;  %v620_v58 = vadd.f32 %v10871_v53, %v10868_v52  ;;  %v9630_v3 = vld [vmem:[%s16610_s4 + $0xc4] ss:$16 sps:$4 sm:$0xff]   ;;  %v9634_v10 = vld [vmem:[%s16610_s4 + $0xc0] ss:$16 sps:$4 sm:$0xff]  }
  0x24   : > { %v623_v59 = vadd.f32 %v10881_v57, %v10878_v56  ;;  %v9632_v7 = vld [vmem:[%s16610_s4 + $0xcc] ss:$16 sps:$4 sm:$0xff]   ;;  %v9635_v11 = vld [vmem:[%s16610_s4 + $0xc8] ss:$16 sps:$4 sm:$0xff]   ;;  %2599 = vmatprep.subr.bf16.mxu0 %v9630_v3  ;;  %v9636_v16 = vld [vmem:[%s16610_s4 + $0xa4] ss:$16 sps:$4 sm:$0xff]  }
  0x25   : > { %585 = vadd.xlane.f32.xlu0 %v584_v22  ;;  %2952 = vmatprep.subr.bf16.mxu1 %v9632_v7  ;;  %v9638_v17 = vld [vmem:[%s16610_s4 + $0xac] ss:$16 sps:$4 sm:$0xff]   ;;  %v9640_v22 = vld [vmem:[%s16610_s4 + $0xa0] ss:$16 sps:$4 sm:$0xff]   ;;  %v9666_v3 = vld [vmem:[%s16610_s4 + $0x4] ss:$16 sps:$4 sm:$0xff]  }
  0x26   : > { %588 = vadd.xlane.f32.xlu1 %v587_v23  ;;  %2600 = vmatpush1.bf16.msra.mxu0 %v9634_v10  ;;  %v9641_v23 = vld [vmem:[%s16610_s4 + $0xa8] ss:$16 sps:$4 sm:$0xff]   ;;  %v9668_v7 = vld [vmem:[%s16610_s4 + $0xc] ss:$16 sps:$4 sm:$0xff]   ;;  %v9670_v10 = vld [vmem:[%s16610_s4] ss:$16 sps:$4 sm:$0xff]  }
  0x27   : > { %2953 = vmatpush1.bf16.msra.mxu1 %v9635_v11  ;;  %2601 = vmatprep.subr.bf16.mxu0 %v9636_v16  ;;  %v9671_v11 = vld [vmem:[%s16610_s4 + $0x8] ss:$16 sps:$4 sm:$0xff]  }
  0x28   : > { %2954 = vmatprep.subr.bf16.mxu1 %v9638_v17 }
  0x29   : > { %591 = vadd.xlane.f32.xlu0 %v590_v30  ;;  %v9642_v30 = vld [vmem:[%s16610_s4 + $0x84] ss:$16 sps:$4 sm:$0xff]  }
  0x2a   : > { %594 = vadd.xlane.f32.xlu1 %v593_v33  ;;  %v9644_v33 = vld [vmem:[%s16610_s4 + $0x8c] ss:$16 sps:$4 sm:$0xff]   ;;  %2602 = vmatpush1.bf16.msra.mxu0 %v9640_v22 }
  0x2b   : > { %2955 = vmatpush1.bf16.msra.mxu1 %v9641_v23  ;;  %2603 = vmatprep.subr.bf16.mxu0 %v9642_v30 }
  0x2c   : > { %2956 = vmatprep.subr.bf16.mxu1 %v9644_v33 }
  0x2d   : > { %597 = vadd.xlane.f32.xlu0 %v596_v36  ;;  %v9646_v36 = vld [vmem:[%s16610_s4 + $0x80] ss:$16 sps:$4 sm:$0xff]  }
  0x2e   : > { %600 = vadd.xlane.f32.xlu1 %v599_v37  ;;  %v9647_v37 = vld [vmem:[%s16610_s4 + $0x88] ss:$16 sps:$4 sm:$0xff]   ;;  %2604 = vmatpush1.bf16.msra.mxu0 %v9646_v36 }
  0x2f   : > { %2957 = vmatpush1.bf16.msra.mxu1 %v9647_v37 }
  0x31   : > { %603 = vadd.xlane.f32.xlu0 %v602_v42  ;;  %v9648_v42 = vld [vmem:[%s16610_s4 + $0x64] ss:$16 sps:$4 sm:$0xff]  }
  0x32   : > { %606 = vadd.xlane.f32.xlu1 %v605_v45  ;;  %v9650_v45 = vld [vmem:[%s16610_s4 + $0x6c] ss:$16 sps:$4 sm:$0xff]   ;;  %2605 = vmatprep.subr.bf16.mxu0 %v9648_v42 }
  0x33   : > { %2958 = vmatprep.subr.bf16.mxu1 %v9650_v45 }
  0x35   : > { %609 = vadd.xlane.f32.xlu0 %v608_v48  ;;  %v9652_v48 = vld [vmem:[%s16610_s4 + $0x60] ss:$16 sps:$4 sm:$0xff]  }
  0x36   : > { %612 = vadd.xlane.f32.xlu1 %v611_v49  ;;  %v9653_v49 = vld [vmem:[%s16610_s4 + $0x68] ss:$16 sps:$4 sm:$0xff]   ;;  %2606 = vmatpush1.bf16.msra.mxu0 %v9652_v48 }
  0x37   : > { %2959 = vmatpush1.bf16.msra.mxu1 %v9653_v49 }
  0x39   : > { %615 = vadd.xlane.f32.xlu0 %v614_v54  ;;  %v9654_v54 = vld [vmem:[%s16610_s4 + $0x44] ss:$16 sps:$4 sm:$0xff]  }
  0x3a   : > { %618 = vadd.xlane.f32.xlu1 %v617_v55  ;;  %v9656_v55 = vld [vmem:[%s16610_s4 + $0x4c] ss:$16 sps:$4 sm:$0xff]   ;;  %2607 = vmatprep.subr.bf16.mxu0 %v9654_v54 }
  0x3b   : > { %2960 = vmatprep.subr.bf16.mxu1 %v9656_v55 }
  0x3d   : > { %621 = vadd.xlane.f32.xlu0 %v620_v58  ;;  %v9658_v58 = vld [vmem:[%s16610_s4 + $0x40] ss:$16 sps:$4 sm:$0xff]  }
  0x3e   : > { %624 = vadd.xlane.f32.xlu1 %v623_v59  ;;  %v9659_v59 = vld [vmem:[%s16610_s4 + $0x48] ss:$16 sps:$4 sm:$0xff]   ;;  %2608 = vmatpush1.bf16.msra.mxu0 %v9658_v58 }
  0x3f   : > { %2961 = vmatpush1.bf16.msra.mxu1 %v9659_v59  ;;  %2609 = vmatprep.subr.bf16.mxu0 %v9660_v60 }
  0x40   : > { %2962 = vmatprep.subr.bf16.mxu1 %v9662_v61 }
  0x42   : > { %2610 = vmatpush1.bf16.msra.mxu0 %v9664_v62 }
  0x43   : > { %2963 = vmatpush1.bf16.msra.mxu1 %v9665_v63  ;;  %2611 = vmatprep.subr.bf16.mxu0 %v9666_v3 }
  0x44   : > { %2964 = vmatprep.subr.bf16.mxu1 %v9668_v7  ;;  %v11028_v7 = vld [vmem:[%s10725_s19 + $0x150] sm:$0xff] }
  0x46   : > { %2612 = vmatpush1.bf16.msra.mxu0 %v9670_v10  ;;  %v11031_v10 = vld [vmem:[%s10725_s19 + $0x158] sm:$0xff] }
  0x47   : > { %2965 = vmatpush1.bf16.msra.mxu1 %v9671_v11 }
  0xa2   : > { %v568_v16 = vpop.xlane.xlu0 %567 }
  0xa3   : > { %v759_v17 = vmul.f32 0.00390625, %v568_v16  ;;  %v574_v22 = vpop.xlane.xlu1 %573 }
  0xa4   : > { %v761_v23 = vmul.f32 0.00390625, %v574_v22 }
  0xa5   : > { %v10984_v30 = vsub.f32 %v10728_v0, %v759_v17  ;;  %v10987_v33 = vsub.f32 %v10731_v1, %v759_v17  ;;  %v11000_v0 = vld [vmem:[%s10725_s19 + $0x140] sm:$0xff]  ;;  %v11003_v1 = vld [vmem:[%s10725_s19 + $0x148] sm:$0xff] }
  0xa6   : > { %v571_v36 = vpop.xlane.xlu0 %570  ;;  %v10990_v37 = vsub.f32 %v10742_v5, %v761_v23  ;;  %v10993_v42 = vsub.f32 %v10745_v6, %v761_v23  ;;  %v626_v60 = vadd.f32 %v11003_v1, %v11000_v0 }
  0xa7   : > { %v760_v45 = vmul.f32 0.00390625, %v571_v36  ;;  %v951_v48 = vmul.f32 %v10984_v30, %v10984_v30  ;;  %v952_v49 = vmul.f32 %v10987_v33, %v10987_v33  ;;  %v577_v54 = vpop.xlane.xlu1 %576 }
  0xa8   : > { %v762_v55 = vmul.f32 0.00390625, %v577_v54  ;;  %v955_v62 = vmul.f32 %v10990_v37, %v10990_v37  ;;  %v956_v63 = vmul.f32 %v10993_v42, %v10993_v42 }
  0xa9   : > { %v11006_v5 = vsub.f32 %v10734_v2, %v760_v45  ;;  %v11009_v6 = vsub.f32 %v10739_v4, %v760_v45  ;;  %v1079_v58 = vadd.f32 %v952_v49, %v951_v48  ;;  %v11044_v48 = vld [vmem:[%s10725_s19 + $0x160] sm:$0xff]  ;;  %v11047_v49 = vld [vmem:[%s10725_s19 + $0x168] sm:$0xff] }
  0xaa   : > { %v11012_v59 = vsub.f32 %v10750_v8, %v762_v55  ;;  %v580_v61 = vpop.xlane.xlu0 %579  ;;  %v11021_v2 = vsub.f32 %v10753_v9, %v762_v55  ;;  %v1085_v17 = vadd.f32 %v956_v63, %v955_v62  ;;  %v629_v9 = vadd.f32 %v11031_v10, %v11028_v7  ;;  %v11060_v62 = vld [vmem:[%s10725_s19 + $0x170] sm:$0xff]  ;;  %v11063_v63 = vld [vmem:[%s10725_s19 + $0x178] sm:$0xff] }
  0xab   : > { %1080 = vadd.xlane.f32.xlu0 %v1079_v58  ;;  %v953_v4 = vmul.f32 %v11006_v5, %v11006_v5  ;;  %v954_v8 = vmul.f32 %v11009_v6, %v11009_v6  ;;  %v763_v3 = vmul.f32 0.00390625, %v580_v61  ;;  %v583_v11 = vpop.xlane.xlu1 %582 }
  0xac   : > { %16833 = vst [vmem:[#allocation3_spill] sm:$0xff] %v11012_v59  ;;  %v764_v22 = vmul.f32 0.00390625, %v583_v11  ;;  %v957_v23 = vmul.f32 %v11012_v59, %v11012_v59  ;;  %v958_v54 = vmul.f32 %v11021_v2, %v11021_v2  ;;  %v9676_v11 = vld [vmem:[%s16610_s4 + $0x1e0] ss:$16 sps:$4 sm:$0xff]  }
  0xad   : > { %v1082_v16 = vadd.f32 %v954_v8, %v953_v4  ;;  %v11038_v36 = vsub.f32 %v10760_v12, %v763_v3  ;;  %v11041_v45 = vsub.f32 %v10763_v13, %v763_v3  ;;  %v632_v12 = vadd.f32 %v11047_v49, %v11044_v48  ;;  %v9674_v3 = vld [vmem:[%s16610_s4 + $0x1ec] ss:$16 sps:$4 sm:$0xff]  }
  0xae   : > { %v586_v55 = vpop.xlane.xlu0 %585  ;;  %v11052_v58 = vsub.f32 %v10766_v14, %v764_v22  ;;  %v1088_v13 = vadd.f32 %v958_v54, %v957_v23  ;;  %2966 = vmatprep.subr.bf16.mxu1 %v9674_v3 }
  0xaf   : > { %627 = vadd.xlane.f32.xlu0 %v626_v60  ;;  %1083 = vadd.xlane.f32.xlu1 %v1082_v16  ;;  %16834 = vst [vmem:[#allocation4_spill] sm:$0xff] %v11038_v36  ;;  %16835 = vst [vmem:[#allocation5_spill] sm:$0xff] %v11041_v45  ;;  %v11055_v60 = vsub.f32 %v10769_v15, %v764_v22  ;;  %v765_v61 = vmul.f32 0.00390625, %v586_v55  ;;  %v959_v4 = vmul.f32 %v11038_v36, %v11038_v36  ;;  %v589_v8 = vpop.xlane.xlu1 %588  ;;  %v9672_v15 = vld [vmem:[%s16610_s4 + $0x1e4] ss:$16 sps:$4 sm:$0xff]  }
  0xb0   : > { %16836 = vst [vmem:[#allocation6_spill] sm:$0xff] %v11052_v58  ;;  %v960_v14 = vmul.f32 %v11041_v45, %v11041_v45  ;;  %v9677_v16 = vld [vmem:[%s16610_s4 + $0x1e8] ss:$16 sps:$4 sm:$0xff]   ;;  %v961_v22 = vmul.f32 %v11052_v58, %v11052_v58  ;;  %2613 = vmatprep.subr.bf16.mxu0 %v9672_v15  ;;  %v11094_v45 = vld [vmem:[%s10725_s19 + $0x180] sm:$0xff] }
  0xb1   : > { %v962_v23 = vmul.f32 %v11055_v60, %v11055_v60  ;;  %v11088_v54 = vsub.f32 %v10776_v18, %v765_v61  ;;  %v11091_v55 = vsub.f32 %v10779_v19, %v765_v61  ;;  %2614 = vmatpush2.bf16.msra.mxu0 %v9676_v11  ;;  %2967 = vmatpush2.bf16.msra.mxu1 %v9677_v16  ;;  %v9680_v18 = vld [vmem:[%s16610_s4 + $0x1cc] ss:$16 sps:$4 sm:$0xff]   ;;  %v9682_v19 = vld [vmem:[%s16610_s4 + $0x1c0] ss:$16 sps:$4 sm:$0xff]  }
  0xb2   : > { %v1091_v36 = vadd.f32 %v960_v14, %v959_v4  ;;  %v592_v59 = vpop.xlane.xlu0 %591  ;;  %2968 = vmatprep.subr.bf16.mxu1 %v9680_v18  ;;  %v11120_v11 = vld [vmem:[%s10725_s19 + $0x190] sm:$0xff]  ;;  %v11123_v16 = vld [vmem:[%s10725_s19 + $0x198] sm:$0xff]  ;;  %v11154_v58 = vld [vmem:[%s10725_s19 + $0x1a0] sm:$0xff] }
  0xb3   : > { %1086 = vadd.xlane.f32.xlu0 %v1085_v17  ;;  %630 = vadd.xlane.f32.xlu1 %v629_v9  ;;  %v635_v17 = vadd.f32 %v11063_v63, %v11060_v62  ;;  %v766_v9 = vmul.f32 0.00390625, %v589_v8  ;;  %16837 = vst [vmem:[#allocation7_spill] sm:$0xff] %v11088_v54  ;;  %16838 = vst [vmem:[#allocation8_spill] sm:$0xff] %v11091_v55  ;;  %v11097_v8 = vld [vmem:[%s10725_s19 + $0x188] sm:$0xff]  ;;  %v1094_v15 = vadd.f32 %v962_v23, %v961_v22 }
  0xb4   : > { %v638_v14 = vadd.f32 %v11097_v8, %v11094_v45  ;;  %v767_v3 = vmul.f32 0.00390625, %v592_v59  ;;  %v9686_v59 = vld [vmem:[%s16610_s4 + $0x1ac] ss:$16 sps:$4 sm:$0xff]   ;;  %v9689_v22 = vld [vmem:[%s16610_s4 + $0x1a8] ss:$16 sps:$4 sm:$0xff]   ;;  %v641_v23 = vadd.f32 %v11123_v16, %v11120_v11 }
  0xb5   : > { %v11112_v61 = vsub.f32 %v10782_v20, %v766_v9  ;;  %v11115_v4 = vsub.f32 %v10785_v21, %v766_v9  ;;  %v963_v20 = vmul.f32 %v11088_v54, %v11088_v54  ;;  %v964_v21 = vmul.f32 %v11091_v55, %v11091_v55  ;;  %v595_v9 = vpop.xlane.xlu1 %594 }
  0xb6   : > { %v11151_v54 = vsub.f32 %v10795_v25, %v767_v3 }
  0xb7   : > { %633 = vadd.xlane.f32.xlu0 %v632_v12  ;;  %1089 = vadd.xlane.f32.xlu1 %v1088_v13  ;;  %v9678_v12 = vld [vmem:[%s16610_s4 + $0x1c4] ss:$16 sps:$4 sm:$0xff]   ;;  %v9683_v13 = vld [vmem:[%s16610_s4 + $0x1c8] ss:$16 sps:$4 sm:$0xff]   ;;  %16839 = vst [vmem:[#allocation9_spill] sm:$0xff] %v11112_v61  ;;  %v965_v18 = vmul.f32 %v11112_v61, %v11112_v61  ;;  %v1097_v55 = vadd.f32 %v964_v21, %v963_v20  ;;  %v598_v61 = vpop.xlane.xlu0 %597 }
  0xb8   : > { %2615 = vmatprep.subr.bf16.mxu0 %v9678_v12  ;;  %2969 = vmatpush2.bf16.msra.mxu1 %v9683_v13  ;;  %v768_v12 = vmul.f32 0.00390625, %v595_v9  ;;  %v11148_v13 = vsub.f32 %v10792_v24, %v767_v3  ;;  %16841 = vst [vmem:[#allocation11_spill] sm:$0xff] %v11151_v54  ;;  %v11157_v9 = vld [vmem:[%s10725_s19 + $0x1a8] sm:$0xff]  ;;  %v9694_v20 = vld [vmem:[%s16610_s4 + $0x180] ss:$16 sps:$4 sm:$0xff]  }
  0xb9   : > { %2616 = vmatpush2.bf16.msra.mxu0 %v9682_v19  ;;  %v966_v19 = vmul.f32 %v11115_v4, %v11115_v4  ;;  %2970 = vmatprep.subr.bf16.mxu1 %v9686_v59  ;;  %v9692_v24 = vld [vmem:[%s16610_s4 + $0x18c] ss:$16 sps:$4 sm:$0xff]   ;;  %v644_v3 = vadd.f32 %v11157_v9, %v11154_v58  ;;  %v9695_v21 = vld [vmem:[%s16610_s4 + $0x188] ss:$16 sps:$4 sm:$0xff]   ;;  %v769_v59 = vmul.f32 0.00390625, %v598_v61 }
  0xba   : > { %16840 = vst [vmem:[#allocation10_spill] sm:$0xff] %v11148_v13  ;;  %v11166_v25 = vsub.f32 %v10798_v26, %v768_v12  ;;  %v11180_v26 = vld [vmem:[%s10725_s19 + $0x1b0] sm:$0xff]  ;;  %v9698_v61 = vld [vmem:[%s16610_s4 + $0x16c] ss:$16 sps:$4 sm:$0xff]  }
  0xbb   : > { %636 = vadd.xlane.f32.xlu1 %v635_v17  ;;  %1092 = vadd.xlane.f32.xlu0 %v1091_v36  ;;  %v9684_v36 = vld [vmem:[%s16610_s4 + $0x1a4] ss:$16 sps:$4 sm:$0xff]   ;;  %v9688_v17 = vld [vmem:[%s16610_s4 + $0x1a0] ss:$16 sps:$4 sm:$0xff]  }
  0xbc   : > { %2617 = vmatprep.subr.bf16.mxu0 %v9684_v36  ;;  %2971 = vmatpush2.bf16.msra.mxu1 %v9689_v22  ;;  %16842 = vst [vmem:[#allocation12_spill] sm:$0xff] %v11166_v25  ;;  %v1100_v36 = vadd.f32 %v966_v19, %v965_v18  ;;  %v968_v22 = vmul.f32 %v11151_v54, %v11151_v54  ;;  %v604_v54 = vpop.xlane.xlu0 %603 }
  0xbd   : > { %2618 = vmatpush2.bf16.msra.mxu0 %v9688_v17  ;;  %v11183_v17 = vld [vmem:[%s10725_s19 + $0x1b8] sm:$0xff]  ;;  %2972 = vmatprep.subr.bf16.mxu1 %v9692_v24  ;;  %v969_v19 = vmul.f32 %v11166_v25, %v11166_v25  ;;  %v9700_v24 = vld [vmem:[%s16610_s4 + $0x160] ss:$16 sps:$4 sm:$0xff]  }
  0xbf   : > { %1095 = vadd.xlane.f32.xlu1 %v1094_v15  ;;  %639 = vadd.xlane.f32.xlu0 %v638_v14  ;;  %v9690_v14 = vld [vmem:[%s16610_s4 + $0x184] ss:$16 sps:$4 sm:$0xff]   ;;  %v11169_v15 = vsub.f32 %v10801_v27, %v768_v12  ;;  %v967_v27 = vmul.f32 %v11148_v13, %v11148_v13  ;;  %v601_v12 = vpop.xlane.xlu1 %600 }
  0xc0   : > { %2619 = vmatprep.subr.bf16.mxu0 %v9690_v14  ;;  %2973 = vmatpush2.bf16.msra.mxu1 %v9695_v21  ;;  %v770_v18 = vmul.f32 0.00390625, %v601_v12  ;;  %v11208_v21 = vsub.f32 %v10804_v28, %v769_v59  ;;  %v11211_v12 = vsub.f32 %v10807_v29, %v769_v59  ;;  %v11214_v13 = vld [vmem:[%s10725_s19 + $0x1c0] sm:$0xff]  ;;  %v9704_v29 = vld [vmem:[%s16610_s4 + $0x14c] ss:$16 sps:$4 sm:$0xff]  }
  0xc1   : > { %16843 = vst [vmem:[#allocation13_spill] sm:$0xff] %v11169_v15  ;;  %2620 = vmatpush2.bf16.msra.mxu0 %v9694_v20  ;;  %v970_v14 = vmul.f32 %v11169_v15, %v11169_v15  ;;  %v9701_v20 = vld [vmem:[%s16610_s4 + $0x168] ss:$16 sps:$4 sm:$0xff]   ;;  %v1103_v25 = vadd.f32 %v968_v22, %v967_v27  ;;  %2974 = vmatprep.subr.bf16.mxu1 %v9698_v61  ;;  %v9702_v28 = vld [vmem:[%s16610_s4 + $0x144] ss:$16 sps:$4 sm:$0xff]   ;;  %v771_v61 = vmul.f32 0.00390625, %v604_v54 }
  0xc2   : > { %16844 = vst [vmem:[#allocation14_spill] sm:$0xff] %v11208_v21  ;;  %16845 = vst [vmem:[#allocation15_spill] sm:$0xff] %v11211_v12  ;;  %v11217_v15 = vld [vmem:[%s10725_s19 + $0x1c8] sm:$0xff]  ;;  %v9706_v27 = vld [vmem:[%s16610_s4 + $0x140] ss:$16 sps:$4 sm:$0xff]  }
  0xc3   : > { %642 = vadd.xlane.f32.xlu1 %v641_v23  ;;  %1098 = vadd.xlane.f32.xlu0 %v1097_v55  ;;  %v9696_v55 = vld [vmem:[%s16610_s4 + $0x164] ss:$16 sps:$4 sm:$0xff]   ;;  %v647_v23 = vadd.f32 %v11183_v17, %v11180_v26  ;;  %v650_v59 = vadd.f32 %v11217_v15, %v11214_v13  ;;  %v9707_v22 = vld [vmem:[%s16610_s4 + $0x148] ss:$16 sps:$4 sm:$0xff]  }
  0xc4   : > { %2621 = vmatprep.subr.bf16.mxu0 %v9696_v55  ;;  %2975 = vmatpush2.bf16.msra.mxu1 %v9701_v20  ;;  %v1106_v55 = vadd.f32 %v970_v14, %v969_v19  ;;  %v607_v20 = vpop.xlane.xlu1 %606  ;;  %v9708_v54 = vld [vmem:[%s16610_s4 + $0x124] ss:$16 sps:$4 sm:$0xff]  }
  0xc5   : > { %2622 = vmatpush2.bf16.msra.mxu0 %v9700_v24  ;;  %v11243_v24 = vld [vmem:[%s10725_s19 + $0x1d8] sm:$0xff]  ;;  %2976 = vmatprep.subr.bf16.mxu1 %v9704_v29  ;;  %v772_v19 = vmul.f32 0.00390625, %v607_v20  ;;  %v9712_v29 = vld [vmem:[%s16610_s4 + $0x120] ss:$16 sps:$4 sm:$0xff]   ;;  %v11271_v20 = vsub.f32 %v10823_v35, %v771_v61 }
  0xc6   : > { %2623 = vmatprep.subr.bf16.mxu0 %v9702_v28  ;;  %v9716_v35 = vld [vmem:[%s16610_s4 + $0x10c] ss:$16 sps:$4 sm:$0xff]  }
  0xc7   : > { %1101 = vadd.xlane.f32.xlu1 %v1100_v36  ;;  %645 = vadd.xlane.f32.xlu0 %v644_v3  ;;  %v11226_v3 = vsub.f32 %v10812_v31, %v770_v18  ;;  %v11229_v36 = vsub.f32 %v10815_v32, %v770_v18  ;;  %v11240_v31 = vld [vmem:[%s10725_s19 + $0x1d0] sm:$0xff]  ;;  %v971_v32 = vmul.f32 %v11208_v21, %v11208_v21  ;;  %v11274_v21 = vld [vmem:[%s10725_s19 + $0x1e0] sm:$0xff] }
  0xc8   : > { %v972_v18 = vmul.f32 %v11211_v12, %v11211_v12  ;;  %2977 = vmatpush2.bf16.msra.mxu1 %v9707_v22  ;;  %v11268_v22 = vsub.f32 %v10820_v34, %v771_v61  ;;  %16849 = vst [vmem:[#allocation19_spill] sm:$0xff] %v11271_v20  ;;  %v610_v12 = vpop.xlane.xlu0 %609  ;;  %v9714_v34 = vld [vmem:[%s16610_s4 + $0x104] ss:$16 sps:$4 sm:$0xff]  }
  0xc9   : > { %16846 = vst [vmem:[#allocation16_spill] sm:$0xff] %v11226_v3  ;;  %16847 = vst [vmem:[#allocation17_spill] sm:$0xff] %v11229_v36  ;;  %2624 = vmatpush2.bf16.msra.mxu0 %v9706_v27  ;;  %v973_v14 = vmul.f32 %v11226_v3, %v11226_v3  ;;  %v974_v28 = vmul.f32 %v11229_v36, %v11229_v36  ;;  %v9713_v27 = vld [vmem:[%s16610_s4 + $0x128] ss:$16 sps:$4 sm:$0xff]  }
  0xca   : > { %16848 = vst [vmem:[#allocation18_spill] sm:$0xff] %v11268_v22  ;;  %v1109_v3 = vadd.f32 %v972_v18, %v971_v32  ;;  %v11277_v36 = vld [vmem:[%s10725_s19 + $0x1e8] sm:$0xff]  ;;  %2625 = vmatprep.subr.bf16.mxu0 %v9708_v54  ;;  %v9718_v32 = vld [vmem:[%s16610_s4 + $0x100] ss:$16 sps:$4 sm:$0xff]  }
  0xcb   : > { %648 = vadd.xlane.f32.xlu1 %v647_v23  ;;  %1104 = vadd.xlane.f32.xlu0 %v1103_v25  ;;  %v9710_v25 = vld [vmem:[%s16610_s4 + $0x12c] ss:$16 sps:$4 sm:$0xff]   ;;  %v653_v23 = vadd.f32 %v11243_v24, %v11240_v31  ;;  %v656_v61 = vadd.f32 %v11277_v36, %v11274_v21  ;;  %v9719_v18 = vld [vmem:[%s16610_s4 + $0x108] ss:$16 sps:$4 sm:$0xff]   ;;  %v1112_v54 = vadd.f32 %v974_v28, %v973_v14 }
  0xcc   : > { %2978 = vmatprep.subr.bf16.mxu1 %v9710_v25  ;;  %v773_v25 = vmul.f32 0.00390625, %v610_v12 }
  0xcd   : > { %2626 = vmatpush2.bf16.msra.mxu0 %v9712_v29  ;;  %2979 = vmatpush2.bf16.msra.mxu1 %v9713_v27  ;;  %v11303_v29 = vld [vmem:[%s10725_s19 + $0x1f8] sm:$0xff]  ;;  %v613_v27 = vpop.xlane.xlu1 %612 }
  0xce   : > { %2627 = vmatprep.subr.bf16.mxu0 %v9714_v34  ;;  %2980 = vmatprep.subr.bf16.mxu1 %v9716_v35  ;;  %v11316_v28 = vsub.f32 %v10836_v40, %v773_v25  ;;  %v11319_v34 = vsub.f32 %v10839_v41, %v773_v25  ;;  %v11339_v25 = vld [vmem:[%s10725_s19 + $0x218] sm:$0xff] }
  0xcf   : > { %1107 = vadd.xlane.f32.xlu1 %v1106_v55  ;;  %651 = vadd.xlane.f32.xlu0 %v650_v59  ;;  %v11286_v59 = vsub.f32 %v10830_v38, %v772_v19  ;;  %v11289_v55 = vsub.f32 %v10833_v39, %v772_v19  ;;  %v11300_v38 = vld [vmem:[%s10725_s19 + $0x1f0] sm:$0xff]  ;;  %v975_v39 = vmul.f32 %v11268_v22, %v11268_v22 }
  0xd0   : > { %v976_v19 = vmul.f32 %v11271_v20, %v11271_v20  ;;  %v659_v12 = vadd.f32 %v11303_v29, %v11300_v38  ;;  %16852 = vst [vmem:[#allocation22_spill] sm:$0xff] %v11316_v28  ;;  %16853 = vst [vmem:[#allocation23_spill] sm:$0xff] %v11319_v34 }
  0xd1   : > { %16850 = vst [vmem:[#allocation20_spill] sm:$0xff] %v11286_v59  ;;  %16851 = vst [vmem:[#allocation21_spill] sm:$0xff] %v11289_v55  ;;  %2628 = vmatpush2.bf16.msra.mxu0 %v9718_v32  ;;  %2981 = vmatpush2.bf16.msra.mxu1 %v9719_v18  ;;  %v978_v14 = vmul.f32 %v11289_v55, %v11289_v55  ;;  %v11322_v32 = vld [vmem:[%s10725_s19 + $0x200] sm:$0xff]  ;;  %v11325_v18 = vld [vmem:[%s10725_s19 + $0x208] sm:$0xff] }
  0xd2   : > { %v1115_v35 = vadd.f32 %v976_v19, %v975_v39  ;;  %16854 = vst [vmem:[#allocation24_spill] sm:$0xff] %v11325_v18  ;;  %16858 = vst [vmem:[#allocation28_spill] sm:$0xff] %v11339_v25  ;;  %v619_v39 = vpop.xlane.xlu1 %618 }
  0xd3   : > { %654 = vadd.xlane.f32.xlu1 %v653_v23  ;;  %1110 = vadd.xlane.f32.xlu0 %v1109_v3  ;;  %v774_v3 = vmul.f32 0.00390625, %v613_v27  ;;  %v977_v23 = vmul.f32 %v11286_v59, %v11286_v59  ;;  %v616_v27 = vpop.xlane.xlu0 %615 }
  0xd4   : > { %v775_v41 = vmul.f32 0.00390625, %v616_v27 }
  0xd5   : > { %v11328_v59 = vsub.f32 %v10844_v43, %v774_v3  ;;  %v11331_v22 = vsub.f32 %v10847_v44, %v774_v3  ;;  %v1118_v40 = vadd.f32 %v978_v14, %v977_v23  ;;  %v979_v43 = vmul.f32 %v11316_v28, %v11316_v28  ;;  %v11358_v28 = vld [vmem:[%s10725_s19 + $0x220] sm:$0xff] }
  0xd6   : > { %v980_v44 = vmul.f32 %v11319_v34, %v11319_v34  ;;  %v11352_v14 = vsub.f32 %v10852_v46, %v775_v41  ;;  %16861 = vst [vmem:[#allocation31_spill] sm:$0xff] %v11358_v28 }
  0xd7   : > { %1113 = vadd.xlane.f32.xlu1 %v1112_v54  ;;  %657 = vadd.xlane.f32.xlu0 %v656_v61  ;;  %16855 = vst [vmem:[#allocation25_spill] sm:$0xff] %v11328_v59  ;;  %16856 = vst [vmem:[#allocation26_spill] sm:$0xff] %v11331_v22  ;;  %v662_v61 = vadd.f32 %v11325_v18, %v11322_v32  ;;  %v11336_v54 = vld [vmem:[%s10725_s19 + $0x210] sm:$0xff]  ;;  %v981_v3 = vmul.f32 %v11328_v59, %v11328_v59  ;;  %v622_v34 = vpop.xlane.xlu0 %621 }
  0xd8   : > { %16857 = vst [vmem:[#allocation27_spill] sm:$0xff] %v11336_v54  ;;  %v665_v19 = vadd.f32 %v11339_v25, %v11336_v54  ;;  %v982_v23 = vmul.f32 %v11331_v22, %v11331_v22  ;;  %16859 = vst [vmem:[#allocation29_spill] sm:$0xff] %v11352_v14  ;;  %v1121_v27 = vadd.f32 %v980_v44, %v979_v43  ;;  %v625_v43 = vpop.xlane.xlu1 %624  ;;  %v536_v25 = vld [vmem:[%s10725_s19 + $0x310] sm:$0xff]  ;;  %v537_v54 = vld [vmem:[%s10725_s19 + $0x318] sm:$0xff] }
  0xda   : > { %v1124_v46 = vadd.f32 %v982_v23, %v981_v3 }
  0xdb   : > { %660 = vadd.xlane.f32.xlu1 %v659_v12  ;;  %1116 = vadd.xlane.f32.xlu0 %v1115_v35  ;;  %v776_v12 = vmul.f32 0.00390625, %v619_v39  ;;  %v11355_v35 = vsub.f32 %v10855_v47, %v775_v41  ;;  %v11361_v39 = vld [vmem:[%s10725_s19 + $0x228] sm:$0xff]  ;;  %v777_v47 = vmul.f32 0.00390625, %v622_v34  ;;  %v11375_v41 = vld [vmem:[%s10725_s19 + $0x238] sm:$0xff] }
  0xdc   : > { %16862 = vst [vmem:[#allocation32_spill] sm:$0xff] %v11361_v39  ;;  %16866 = vst [vmem:[#allocation36_spill] sm:$0xff] %v11375_v41 }
  0xdd   : > { %16860 = vst [vmem:[#allocation30_spill] sm:$0xff] %v11355_v35  ;;  %v11364_v59 = vsub.f32 %v10862_v50, %v776_v12  ;;  %v11367_v22 = vsub.f32 %v10865_v51, %v776_v12  ;;  %v983_v50 = vmul.f32 %v11352_v14, %v11352_v14  ;;  %v984_v51 = vmul.f32 %v11355_v35, %v11355_v35  ;;  %v11394_v14 = vld [vmem:[%s10725_s19 + $0x240] sm:$0xff] }
  0xde   : > { %v11388_v3 = vsub.f32 %v10868_v52, %v777_v47  ;;  %v11391_v23 = vsub.f32 %v10871_v53, %v777_v47  ;;  %16869 = vst [vmem:[#allocation39_spill] sm:$0xff] %v11394_v14 }
  0xdf   : > { %1119 = vadd.xlane.f32.xlu1 %v1118_v40  ;;  %663 = vadd.xlane.f32.xlu0 %v662_v61  ;;  %16863 = vst [vmem:[#allocation33_spill] sm:$0xff] %v11364_v59  ;;  %16864 = vst [vmem:[#allocation34_spill] sm:$0xff] %v11367_v22  ;;  %v668_v61 = vadd.f32 %v11361_v39, %v11358_v28  ;;  %v11372_v40 = vld [vmem:[%s10725_s19 + $0x230] sm:$0xff]  ;;  %v985_v34 = vmul.f32 %v11364_v59, %v11364_v59 }
  0xe0   : > { %16865 = vst [vmem:[#allocation35_spill] sm:$0xff] %v11372_v40  ;;  %v671_v44 = vadd.f32 %v11375_v41, %v11372_v40  ;;  %v986_v12 = vmul.f32 %v11367_v22, %v11367_v22  ;;  %16867 = vst [vmem:[#allocation37_spill] sm:$0xff] %v11388_v3 }
  0xe1   : > { %16868 = vst [vmem:[#allocation38_spill] sm:$0xff] %v11391_v23 }
  0xe2   : > { %v1130_v53 = vadd.f32 %v986_v12, %v985_v34  ;;  %v11427_v34 = vld [vmem:[%s10725_s19 + $0x268] sm:$0xff] }
  0xe3   : > { %666 = vadd.xlane.f32.xlu1 %v665_v19  ;;  %1122 = vadd.xlane.f32.xlu0 %v1121_v27  ;;  %v778_v19 = vmul.f32 0.00390625, %v625_v43  ;;  %v1127_v27 = vadd.f32 %v984_v51, %v983_v50  ;;  %v11397_v43 = vld [vmem:[%s10725_s19 + $0x248] sm:$0xff]  ;;  %16876 = vst [vmem:[#allocation46_spill] sm:$0xff] %v11427_v34 }
  0xe4   : > { %16870 = vst [vmem:[#allocation40_spill] sm:$0xff] %v11397_v43  ;;  %v674_v52 = vadd.f32 %v11397_v43, %v11394_v14 }
  0xe5   : > { %v11400_v35 = vsub.f32 %v10878_v56, %v778_v19  ;;  %v11403_v59 = vsub.f32 %v10881_v57, %v778_v19  ;;  %v987_v56 = vmul.f32 %v11388_v3, %v11388_v3  ;;  %v988_v57 = vmul.f32 %v11391_v23, %v11391_v23  ;;  %v11424_v19 = vld [vmem:[%s10725_s19 + $0x260] sm:$0xff]  ;;  %v11432_v3 = vld [vmem:[%s10725_s19 + $0x270] sm:$0xff] }
  0xe6   : > { %16875 = vst [vmem:[#allocation45_spill] sm:$0xff] %v11424_v19  ;;  %16877 = vst [vmem:[#allocation47_spill] sm:$0xff] %v11432_v3 }
  0xe7   : > { %1125 = vadd.xlane.f32.xlu1 %v1124_v46  ;;  %669 = vadd.xlane.f32.xlu0 %v668_v61  ;;  %16871 = vst [vmem:[#allocation41_spill] sm:$0xff] %v11400_v35  ;;  %16872 = vst [vmem:[#allocation42_spill] sm:$0xff] %v11403_v59  ;;  %v11408_v61 = vld [vmem:[%s10725_s19 + $0x250] sm:$0xff]  ;;  %v11411_v46 = vld [vmem:[%s10725_s19 + $0x258] sm:$0xff]  ;;  %v1133_v50 = vadd.f32 %v988_v57, %v987_v56  ;;  %v989_v51 = vmul.f32 %v11400_v35, %v11400_v35  ;;  %v1593_v57 = vlaneseq }
  0xe8   : > { %16873 = vst [vmem:[#allocation43_spill] sm:$0xff] %v11408_v61  ;;  %16874 = vst [vmem:[#allocation44_spill] sm:$0xff] %v11411_v46  ;;  %v677_v47 = vadd.f32 %v11411_v46, %v11408_v61 }
  0xe9   : > { %v11439_v35 = vshrl.u32 %v1593_v57, 7 }
  0xeb   : > { %672 = vadd.xlane.f32.xlu1 %v671_v44  ;;  %1128 = vadd.xlane.f32.xlu0 %v1127_v27  ;;  %v990_v44 = vmul.f32 %v11403_v59, %v11403_v59  ;;  %v680_v27 = vadd.f32 %v11427_v34, %v11424_v19  ;;  %16879 = vst [vmem:[#allocation49_spill] sm:$0xff] %v11439_v35  ;;  %v11450_v57 = vsub.s32 0, %v11439_v35  ;;  %v11462_v20 = vsub.s32 1, %v11439_v35 }
  0xed   : > { %v1136_v12 = vadd.f32 %v990_v44, %v989_v51  ;;  %16882 = vst [vmem:[#allocation52_spill] sm:$0xff] %v11450_v57  ;;  %16883 = vst [vmem:[#allocation53_spill] sm:$0xff] %v11462_v20 }
  0xef   : > { %1131 = vadd.xlane.f32.xlu1 %v1130_v53  ;;  %675 = vadd.xlane.f32.xlu0 %v674_v52  ;;  %v11435_v52 = vld [vmem:[%s10725_s19 + $0x278] sm:$0xff] }
  0xf0   : > { %16878 = vst [vmem:[#allocation48_spill] sm:$0xff] %v11435_v52  ;;  %v683_v53 = vadd.f32 %v11435_v52, %v11432_v3  ;;  %v523_v52 = vld [vmem:[%s10725_s19 + $0x2a8] sm:$0xff]  ;;  %v1731_v3 = vld [vmem:[%s16609_s3] sm:$0x3] }
  0xf3   : > { %678 = vadd.xlane.f32.xlu1 %v677_v47  ;;  %1134 = vadd.xlane.f32.xlu0 %v1133_v50 }
  0xf7   : > { %1137 = vadd.xlane.f32.xlu1 %v1136_v12  ;;  %681 = vadd.xlane.f32.xlu0 %v680_v27 }
  0xfb   : > { %684 = vadd.xlane.f32.xlu1 %v683_v53 }
 0x134   : > { %v1081_v56 = vpop.xlane.xlu0 %1080 }
 0x135   : > { %v1271_v47 = vmul.f32 0.00390625, %v1081_v56  ;;  %v518_v56 = vld [vmem:[%s10725_s19 + $0x280] sm:$0xff] }
 0x137   : > { %v1335_v50 = vadd.f32 1e-05, %v1271_v47  ;;  %v519_v47 = vld [vmem:[%s10725_s19 + $0x288] sm:$0xff] }
 0x138   : > { %v1084_v51 = vpop.xlane.xlu1 %1083  ;;  %v628_v44 = vpop.xlane.xlu0 %627  ;;  %v686_v19 = vadd.f32 %v519_v47, %v518_v56  ;;  %v528_v56 = vld [vmem:[%s10725_s19 + $0x2d0] sm:$0xff]  ;;  %v529_v47 = vld [vmem:[%s10725_s19 + $0x2d8] sm:$0xff] }
 0x139   : > { %9912 = vrsqrt.f32 %v1335_v50  ;;  %v1272_v59 = vmul.f32 0.00390625, %v1084_v51  ;;  %v779_v12 = vmul.f32 0.00390625, %v628_v44  ;;  %v521_v44 = vld [vmem:[%s10725_s19 + $0x298] sm:$0xff] }
 0x13b   : > { %v1336_v27 = vadd.f32 1e-05, %v1272_v59  ;;  %v11442_v23 = vsub.f32 %v11000_v0, %v779_v12  ;;  %v11445_v53 = vsub.f32 %v11003_v1, %v779_v12  ;;  %v520_v0 = vld [vmem:[%s10725_s19 + $0x290] sm:$0xff]  ;;  %v1591_v1 = vld [vmem:[%s16608_s2] sm:$0x3] }
 0x13c   : > { %v631_v22 = vpop.xlane.xlu1 %630  ;;  %v1087_v55 = vpop.xlane.xlu0 %1086  ;;  %v11475_v46 = vadd.f32 %v521_v44, %v520_v0 }
 0x13d   : > { %16880 = vst [vmem:[#allocation50_spill] sm:$0xff] %v11442_v23  ;;  %16881 = vst [vmem:[#allocation51_spill] sm:$0xff] %v11445_v53  ;;  %9914 = vrsqrt.f32 %v1336_v27  ;;  %v780_v50 = vmul.f32 0.00390625, %v631_v22  ;;  %v1273_v51 = vmul.f32 0.00390625, %v1087_v55  ;;  %v991_v59 = vmul.f32 %v11442_v23, %v11442_v23  ;;  %v522_v23 = vld [vmem:[%s10725_s19 + $0x2a0] sm:$0xff] }
 0x13e   : > { %v992_v12 = vmul.f32 %v11445_v53, %v11445_v53  ;;  %v11490_v44 = vadd.f32 %v523_v52, %v522_v23  ;;  %v531_v23 = vld [vmem:[%s10725_s19 + $0x2e8] sm:$0xff]  ;;  %v532_v52 = vld [vmem:[%s10725_s19 + $0x2f0] sm:$0xff] }
 0x13f   : > { %v11465_v22 = vsub.f32 %v11028_v7, %v780_v50  ;;  %v11468_v55 = vsub.f32 %v11031_v10, %v780_v50  ;;  %v1337_v27 = vadd.f32 1e-05, %v1273_v51  ;;  %v524_v7 = vld [vmem:[%s10725_s19 + $0x2b0] sm:$0xff]  ;;  %v525_v10 = vld [vmem:[%s10725_s19 + $0x2b8] sm:$0xff]  ;;  %v11480_v50 = vrot.slane %v1591_v1, %v11450_v57  ;;  %v526_v51 = vld [vmem:[%s10725_s19 + $0x2c0] sm:$0xff] }
 0x140   : > { %v1090_v53 = vpop.xlane.xlu1 %1089  ;;  %v634_v34 = vpop.xlane.xlu0 %633  ;;  %v1139_v35 = vadd.f32 %v992_v12, %v991_v59  ;;  %v527_v59 = vld [vmem:[%s10725_s19 + $0x2c8] sm:$0xff]  ;;  %v11493_v12 = vrot.slane %v1591_v1, %v11462_v20  ;;  %v533_v1 = vld [vmem:[%s10725_s19 + $0x2f8] sm:$0xff]  ;;  %v11511_v39 = vadd.f32 %v525_v10, %v524_v7 }
 0x141   : > { %16884 = vst [vmem:[#allocation54_spill] sm:$0xff] %v11465_v22  ;;  %16885 = vst [vmem:[#allocation55_spill] sm:$0xff] %v11468_v55  ;;  %9916 = vrsqrt.f32 %v1337_v27  ;;  %v1274_v61 = vmul.f32 0.00390625, %v1090_v53  ;;  %v781_v43 = vmul.f32 0.00390625, %v634_v34  ;;  %v993_v14 = vmul.f32 %v11465_v22, %v11465_v22  ;;  %v530_v53 = vld [vmem:[%s10725_s19 + $0x2e0] sm:$0xff] }
 0x142   : > { %16886 = vst [vmem:[#allocation56_spill] sm:$0xff] %v11480_v50  ;;  %1140 = vadd.xlane.f32.xlu0 %v1139_v35  ;;  %v994_v0 = vmul.f32 %v11468_v55, %v11468_v55  ;;  %16887 = vst [vmem:[#allocation57_spill] sm:$0xff] %v11493_v12  ;;  %v11496_v34 = vrot.slane %v1731_v3, %v11450_v57  ;;  %v11506_v55 = vrot.slane %v1731_v3, %v11462_v20 }
 0x143   : > { %v1338_v27 = vadd.f32 1e-05, %v1274_v61  ;;  %v11500_v22 = vsub.f32 %v11044_v48, %v781_v43  ;;  %v11503_v35 = vsub.f32 %v11047_v49, %v781_v43  ;;  %v11513_v61 = vadd.f32 %v527_v59, %v526_v51  ;;  %v534_v49 = vld [vmem:[%s10725_s19 + $0x300] sm:$0xff]  ;;  %v535_v43 = vld [vmem:[%s10725_s19 + $0x308] sm:$0xff] }
 0x144   : > { %16888 = vst [vmem:[#allocation58_spill] sm:$0xff] %v11496_v34  ;;  %16889 = vst [vmem:[#allocation59_spill] sm:$0xff] %v11506_v55  ;;  %v637_v41 = vpop.xlane.xlu1 %636  ;;  %v1093_v57 = vpop.xlane.xlu0 %1092  ;;  %v1142_v40 = vadd.f32 %v994_v0, %v993_v14  ;;  %v11515_v48 = vadd.f32 %v529_v47, %v528_v56  ;;  %v11525_v7 = vadd.f32 %v531_v23, %v530_v53 }
 0x145   : > { %9918 = vrsqrt.f32 %v1338_v27  ;;  %v782_v3 = vmul.f32 0.00390625, %v637_v41  ;;  %v1275_v20 = vmul.f32 0.00390625, %v1093_v57  ;;  %v995_v28 = vmul.f32 %v11500_v22, %v11500_v22  ;;  %v538_v41 = vld [vmem:[%s10725_s19 + $0x320] sm:$0xff]  ;;  %v539_v57 = vld [vmem:[%s10725_s19 + $0x328] sm:$0xff] }
 0x146   : > { %v9913_v18 = vpop.eup %9912  ;;  %1143 = vadd.xlane.f32.xlu1 %v1142_v40  ;;  %687 = vadd.xlane.f32.xlu0 %v686_v19  ;;  %v996_v14 = vmul.f32 %v11503_v35, %v11503_v35  ;;  %v11527_v10 = vadd.f32 %v533_v1, %v532_v52  ;;  %v11538_v19 = vadd.f32 %v535_v43, %v534_v49  ;;  %v540_v52 = vld [vmem:[%s10725_s19 + $0x330] sm:$0xff]  ;;  %v541_v1 = vld [vmem:[%s10725_s19 + $0x338] sm:$0xff] }
 0x147   : > { %v11532_v51 = vsub.f32 %v11060_v62, %v782_v3  ;;  %v11535_v59 = vsub.f32 %v11063_v63, %v782_v3  ;;  %v1464_v40 = vmul.f32 %v9913_v18, %v10987_v33  ;;  %v1339_v56 = vadd.f32 1e-05, %v1275_v20  ;;  %v542_v3 = vld [vmem:[%s10725_s19 + $0x340] sm:$0xff] }
 0x148   : > { %v1096_v47 = vpop.xlane.xlu1 %1095  ;;  %v640_v0 = vpop.xlane.xlu0 %639  ;;  %v1145_v53 = vadd.f32 %v996_v14, %v995_v28  ;;  %v1463_v27 = vmul.f32 %v9913_v18, %v10984_v30  ;;  %v11542_v23 = vadd.f32 %v537_v54, %v536_v25  ;;  %v11548_v49 = vadd.f32 %v539_v57, %v538_v41  ;;  %v543_v14 = vld [vmem:[%s10725_s19 + $0x348] sm:$0xff] }
 0x149   : > { %16890 = vst [vmem:[#allocation60_spill] sm:$0xff] %v11532_v51  ;;  %v1276_v62 = vmul.f32 0.00390625, %v1096_v47  ;;  %v783_v63 = vmul.f32 0.00390625, %v640_v0  ;;  %v997_v33 = vmul.f32 %v11532_v51, %v11532_v51  ;;  %v998_v30 = vmul.f32 %v11535_v59, %v11535_v59  ;;  %v544_v47 = vld [vmem:[%s10725_s19 + $0x350] sm:$0xff]  ;;  %v545_v0 = vld [vmem:[%s10725_s19 + $0x358] sm:$0xff] }
 0x14a   : > { %v9915_v20 = vpop.eup %9914  ;;  %690 = vadd.xlane.f32.xlu1 %v11475_v46  ;;  %1146 = vadd.xlane.f32.xlu0 %v1145_v53  ;;  %v1604_v28 = vmul.f32 %v11493_v12, %v1464_v40  ;;  %v1603_v18 = vmul.f32 %v11480_v50, %v1463_v27  ;;  %v11567_v43 = vadd.f32 %v541_v1, %v540_v52  ;;  %9920 = vrsqrt.f32 %v1339_v56 }
 0x14b   : > { %v11556_v54 = vsub.f32 %v11094_v45, %v783_v63  ;;  %v11559_v25 = vsub.f32 %v11097_v8, %v783_v63  ;;  %v1466_v46 = vmul.f32 %v9915_v20, %v11009_v6  ;;  %v1340_v41 = vadd.f32 1e-05, %v1276_v62  ;;  %v1872_v63 = vld [vmem:[%s11564_s14 + $0x8] sm:$0xff] }
 0x14c   : > { %v643_v57 = vpop.xlane.xlu1 %642  ;;  %v1099_v45 = vpop.xlane.xlu0 %1098  ;;  %v1148_v40 = vadd.f32 %v998_v30, %v997_v33  ;;  %v1465_v8 = vmul.f32 %v9915_v20, %v11006_v5  ;;  %v1744_v27 = vadd.f32 %v11506_v55, %v1604_v28  ;;  %v1743_v52 = vadd.f32 %v11496_v34, %v1603_v18  ;;  %v1871_v33 = vld [vmem:[%s11564_s14] sm:$0xff]  ;;  %v1874_v18 = vld [vmem:[%s11564_s14 + $0x18] sm:$0xff] }
 0x14d   : > { %16891 = vst [vmem:[#allocation61_spill] sm:$0xff] %v11556_v54  ;;  %16892 = vst [vmem:[#allocation62_spill] sm:$0xff] %v11559_v25  ;;  %v784_v53 = vmul.f32 0.00390625, %v643_v57  ;;  %v999_v6 = vmul.f32 %v11556_v54, %v11556_v54  ;;  %v1277_v1 = vmul.f32 0.00390625, %v1099_v45  ;;  %v1000_v5 = vmul.f32 %v11559_v25, %v11559_v25  ;;  %v549_v25 = vld [vmem:[%s10725_s19 + $0x378] sm:$0xff] }
 0x14e   : > { %v11578_v56 = vpop.eup %9916  ;;  %1149 = vadd.xlane.f32.xlu1 %v1148_v40  ;;  %693 = vadd.xlane.f32.xlu0 %v11490_v44  ;;  %v1606_v62 = vmul.f32 %v11493_v12, %v1466_v46  ;;  %v11586_v20 = vadd.f32 %v543_v14, %v542_v3  ;;  %v1605_v44 = vmul.f32 %v11480_v50, %v1465_v8  ;;  %9922 = vrsqrt.f32 %v1340_v41  ;;  %v1873_v8 = vld [vmem:[%s11564_s14 + $0x10] sm:$0xff] }
 0x14f   : > { %v11589_v30 = vsub.f32 %v11120_v11, %v784_v53  ;;  %v11592_v28 = vsub.f32 %v11123_v16, %v784_v53  ;;  %v11596_v57 = vadd.f32 %v545_v0, %v544_v47  ;;  %v1151_v40 = vadd.f32 %v1000_v5, %v999_v6  ;;  %v546_v0 = vld [vmem:[%s10725_s19 + $0x360] sm:$0xff] }
 0x150   : > { %v1102_v45 = vpop.xlane.xlu1 %1101  ;;  %v646_v46 = vpop.xlane.xlu0 %645  ;;  %v1746_v3 = vadd.f32 %v11506_v55, %v1606_v62  ;;  %v1468_v11 = vmul.f32 %v11578_v56, %v10993_v42  ;;  %v2000_v53 = vadd.f32 %v1872_v63, %v1744_v27  ;;  %v1999_v47 = vadd.f32 %v1871_v33, %v1743_v52  ;;  %v547_v62 = vld [vmem:[%s10725_s19 + $0x368] sm:$0xff] }
 0x151   : > { %16893 = vst [vmem:[#allocation63_spill] sm:$0xff] %v11589_v30  ;;  %v785_v14 = vmul.f32 0.00390625, %v646_v46  ;;  %v1001_v16 = vmul.f32 %v11589_v30, %v11589_v30  ;;  %v1341_v54 = vadd.f32 1e-05, %v1277_v1  ;;  %v1002_v6 = vmul.f32 %v11592_v28, %v11592_v28  ;;  %v548_v46 = vld [vmem:[%s10725_s19 + $0x370] sm:$0xff] }
 0x152   : > { %v9919_v41 = vpop.eup %9918  ;;  %696 = vadd.xlane.f32.xlu1 %v11511_v39  ;;  %1152 = vadd.xlane.f32.xlu0 %v1151_v40  ;;  %v2002_v5 = vadd.f32 %v1874_v18, %v1746_v3  ;;  %v1745_v42 = vadd.f32 %v11496_v34, %v1605_v44  ;;  %v1278_v51 = vmul.f32 0.00390625, %v1102_v45  ;;  %v1608_v18 = vmul.f32 %v11493_v12, %v1468_v11 }
 0x153   : > { %v11613_v27 = vsub.f32 %v11154_v58, %v785_v14  ;;  %v11616_v52 = vsub.f32 %v11157_v9, %v785_v14  ;;  %v1470_v1 = vmul.f32 %v9919_v41, %v11021_v2  ;;  %v1154_v33 = vadd.f32 %v1002_v6, %v1001_v16 }
 0x154   : > { %v649_v39 = vpop.xlane.xlu1 %648  ;;  %v1105_v63 = vpop.xlane.xlu0 %1104  ;;  %v2128_v40 = vpack.c.bf16 %v2002_v5, %v2000_v53  ;;  %v2001_v30 = vadd.f32 %v1873_v8, %v1745_v42  ;;  %v11622_v58 = vadd.f32 %v547_v62, %v546_v0  ;;  %v11624_v3 = vadd.f32 %v549_v25, %v548_v46  ;;  %v1876_v8 = vld [vmem:[%s11564_s14 + $0x28] sm:$0xff]  ;;  %v1878_v0 = vld [vmem:[%s11564_s14 + $0x38] sm:$0xff] }
 0x155   : > { %v786_v44 = vmul.f32 0.00390625, %v649_v39  ;;  %v1003_v45 = vmul.f32 %v11613_v27, %v11613_v27  ;;  %v1004_v9 = vmul.f32 %v11616_v52, %v11616_v52  ;;  %v1610_v14 = vmul.f32 %v11493_v12, %v1470_v1  ;;  %v16894_v39 = vld [vmem:[#allocation3_spill] sm:$0xff] }
 0x156   : > { %1155 = vadd.xlane.f32.xlu1 %v1154_v33  ;;  %2629 = vmatprep.mubr.bf16.mxu0 %v2128_v40  ;;  %v2127_v2 = vpack.c.bf16 %v2001_v30, %v1999_v47  ;;  %v1342_v16 = vadd.f32 1e-05, %v1278_v51  ;;  %v1748_v25 = vadd.f32 %v11506_v55, %v1608_v18  ;;  %9924 = vrsqrt.f32 %v1341_v54 }
 0x157   : > { %v11630_v11 = vsub.f32 %v11180_v26, %v786_v44  ;;  %v11633_v53 = vsub.f32 %v11183_v17, %v786_v44  ;;  %2982 = vmatprep.mubr.bf16.mxu1 %v2128_v40  ;;  %699 = vadd.xlane.f32.xlu0 %v11513_v61  ;;  %v1157_v47 = vadd.f32 %v1004_v9, %v1003_v45  ;;  %v11642_v6 = vpop.eup %9920  ;;  %v1279_v61 = vmul.f32 0.00390625, %v1105_v63  ;;  %v550_v40 = vld [vmem:[%s10725_s19 + $0x380] sm:$0xff] }
 0x158   : > { %2630 = vmatmul.mubr.bf16.vlgmr.msra.gmra.mxu0 %v2127_v2  ;;  %2983 = vmatmul.mubr.bf16.vlgmr.msra.gmra.mxu1 %v2127_v2  ;;  %v1108_v30 = vpop.xlane.xlu1 %1107  ;;  %v652_v51 = vpop.xlane.xlu0 %651  ;;  %v1750_v26 = vadd.f32 %v11506_v55, %v1610_v14  ;;  %v1467_v17 = vmul.f32 %v11578_v56, %v10990_v37  ;;  %v2004_v46 = vadd.f32 %v1876_v8, %v1748_v25  ;;  %v551_v37 = vld [vmem:[%s10725_s19 + $0x388] sm:$0xff]  ;;  %9926 = vrsqrt.f32 %v1342_v16  ;;  %v16895_v14 = vld [vmem:[#allocation5_spill] sm:$0xff] }
 0x159   : > { %v1280_v5 = vmul.f32 0.00390625, %v1108_v30  ;;  %v787_v42 = vmul.f32 0.00390625, %v652_v51  ;;  %v1005_v54 = vmul.f32 %v11630_v11, %v11630_v11  ;;  %v1006_v62 = vmul.f32 %v11633_v53, %v11633_v53 }
 0x15a   : > { %702 = vadd.xlane.f32.xlu1 %v11515_v48  ;;  %v2006_v1 = vadd.f32 %v1878_v0, %v1750_v26  ;;  %v1469_v33 = vmul.f32 %v9919_v41, %v16894_v39  ;;  %v1607_v48 = vmul.f32 %v11480_v50, %v1467_v17  ;;  %v1875_v41 = vld [vmem:[%s11564_s14 + $0x20] sm:$0xff]  ;;  %v1472_v16 = vmul.f32 %v11642_v6, %v16895_v14 }
 0x15b   : > { %v11653_v56 = vsub.f32 %v11214_v13, %v787_v42  ;;  %v11656_v63 = vsub.f32 %v11217_v15, %v787_v42  ;;  %1158 = vadd.xlane.f32.xlu0 %v1157_v47  ;;  %v1160_v45 = vadd.f32 %v1006_v62, %v1005_v54  ;;  %v9923_v25 = vpop.eup %9922  ;;  %v1343_v8 = vadd.f32 1e-05, %v1279_v61  ;;  %v1877_v15 = vld [vmem:[%s11564_s14 + $0x30] sm:$0xff] }
 0x15c   : > { %v655_v18 = vpop.xlane.xlu1 %654  ;;  %v1111_v44 = vpop.xlane.xlu0 %1110  ;;  %v2130_v2 = vpack.c.bf16 %v2006_v1, %v2004_v46  ;;  %v1609_v9 = vmul.f32 %v11480_v50, %v1469_v33  ;;  %v1747_v0 = vadd.f32 %v11496_v34, %v1607_v48  ;;  %v11665_v30 = vadd.f32 %v551_v37, %v550_v40 }
 0x15d   : > { %v788_v13 = vmul.f32 0.00390625, %v655_v18  ;;  %v1344_v51 = vadd.f32 1e-05, %v1280_v5  ;;  %v1007_v26 = vmul.f32 %v11653_v56, %v11653_v56  ;;  %v1008_v17 = vmul.f32 %v11656_v63, %v11656_v63 }
 0x15e   : > { %1161 = vadd.xlane.f32.xlu1 %v1160_v45  ;;  %2639 = vmatprep.mubr.bf16.mxu0 %v2130_v2  ;;  %v1749_v47 = vadd.f32 %v11496_v34, %v1609_v9  ;;  %v1281_v54 = vmul.f32 0.00390625, %v1111_v44  ;;  %v2003_v5 = vadd.f32 %v1875_v41, %v1747_v0  ;;  %v1474_v33 = vmul.f32 %v9923_v25, %v11055_v60  ;;  %v1880_v60 = vld [vmem:[%s11564_s14 + $0x48] sm:$0xff]  ;;  %v1882_v9 = vld [vmem:[%s11564_s14 + $0x58] sm:$0xff] }
 0x15f   : > { %v11673_v42 = vsub.f32 %v11240_v31, %v788_v13  ;;  %v11676_v61 = vsub.f32 %v11243_v24, %v788_v13  ;;  %2992 = vmatprep.mubr.bf16.mxu1 %v2130_v2  ;;  %705 = vadd.xlane.f32.xlu0 %v11525_v7  ;;  %v1163_v39 = vadd.f32 %v1008_v17, %v1007_v26  ;;  %9928 = vrsqrt.f32 %v1343_v8 }
 0x160   : > { %v2005_v62 = vadd.f32 %v1877_v15, %v1749_v47  ;;  %v1114_v46 = vpop.xlane.xlu1 %1113  ;;  %v658_v1 = vpop.xlane.xlu0 %657  ;;  %v1612_v40 = vmul.f32 %v11493_v12, %v1472_v16  ;;  %v1614_v18 = vmul.f32 %v11493_v12, %v1474_v33  ;;  %9930 = vrsqrt.f32 %v1344_v51  ;;  %v552_v15 = vld [vmem:[%s10725_s19 + $0x390] sm:$0xff]  ;;  %v553_v51 = vld [vmem:[%s10725_s19 + $0x398] sm:$0xff]  ;;  %v555_v33 = vld [vmem:[%s10725_s19 + $0x3a8] sm:$0xff] }
 0x161   : > { %v1282_v31 = vmul.f32 0.00390625, %v1114_v46  ;;  %v789_v37 = vmul.f32 0.00390625, %v658_v1  ;;  %v1009_v24 = vmul.f32 %v11673_v42, %v11673_v42  ;;  %v1010_v7 = vmul.f32 %v11676_v61, %v11676_v61 }
 0x162   : > { %v2129_v48 = vpack.c.bf16 %v2005_v62, %v2003_v5  ;;  %708 = vadd.xlane.f32.xlu1 %v11527_v10  ;;  %v1752_v44 = vadd.f32 %v11506_v55, %v1612_v40  ;;  %v16896_v10 = vld [vmem:[#allocation4_spill] sm:$0xff]  ;;  %v1345_v14 = vadd.f32 1e-05, %v1281_v54  ;;  %v16897_v5 = vld [vmem:[#allocation6_spill] sm:$0xff] }
 0x163   : > { %v11690_v45 = vsub.f32 %v11274_v21, %v789_v37  ;;  %v11693_v2 = vsub.f32 %v11277_v36, %v789_v37  ;;  %1164 = vadd.xlane.f32.xlu0 %v1163_v39  ;;  %v1471_v41 = vmul.f32 %v11642_v6, %v16896_v10  ;;  %v1346_v16 = vadd.f32 1e-05, %v1282_v31  ;;  %v9925_v36 = vpop.eup %9924  ;;  %v554_v39 = vld [vmem:[%s10725_s19 + $0x3a0] sm:$0xff] }
 0x164   : > { %2640 = vmatmul.mubr.bf16.gmra.mxu0 %v2129_v48  ;;  %2993 = vmatmul.mubr.bf16.gmra.mxu1 %v2129_v48  ;;  %v661_v8 = vpop.xlane.xlu1 %660  ;;  %v1117_v13 = vpop.xlane.xlu0 %1116  ;;  %v1166_v0 = vadd.f32 %v1010_v7, %v1009_v24  ;;  %v1754_v21 = vadd.f32 %v11506_v55, %v1614_v18  ;;  %v2008_v17 = vadd.f32 %v1880_v60, %v1752_v44  ;;  %v1879_v18 = vld [vmem:[%s11564_s14 + $0x40] sm:$0xff]  ;;  %v1881_v44 = vld [vmem:[%s11564_s14 + $0x50] sm:$0xff]  ;;  %9932 = vrsqrt.f32 %v1345_v14 }
 0x165   : > { %v790_v47 = vmul.f32 0.00390625, %v661_v8  ;;  %v1283_v26 = vmul.f32 0.00390625, %v1117_v13  ;;  %v1473_v62 = vmul.f32 %v9923_v25, %v16897_v5  ;;  %v1611_v54 = vmul.f32 %v11480_v50, %v1471_v41  ;;  %v9927_v24 = vpop.eup %9926 }
 0x166   : > { %1167 = vadd.xlane.f32.xlu1 %v1166_v0  ;;  %v2010_v6 = vadd.f32 %v1882_v9, %v1754_v21  ;;  %v1011_v46 = vmul.f32 %v11690_v45, %v11690_v45  ;;  %v1012_v1 = vmul.f32 %v11693_v2, %v11693_v2  ;;  %v11717_v37 = vadd.f32 %v553_v51, %v552_v15 }
 0x167   : > { %v11710_v40 = vsub.f32 %v11300_v38, %v790_v47  ;;  %v11713_v31 = vsub.f32 %v11303_v29, %v790_v47  ;;  %711 = vadd.xlane.f32.xlu0 %v11538_v19  ;;  %v1613_v25 = vmul.f32 %v11480_v50, %v1473_v62  ;;  %v1751_v7 = vadd.f32 %v11496_v34, %v1611_v54  ;;  %v16898_v38 = vld [vmem:[#allocation8_spill] sm:$0xff] }
 0x168   : > { %v2132_v48 = vpack.c.bf16 %v2010_v6, %v2008_v17  ;;  %v1120_v60 = vpop.xlane.xlu1 %1119  ;;  %v664_v9 = vpop.xlane.xlu0 %663  ;;  %v1169_v10 = vadd.f32 %v1012_v1, %v1011_v46  ;;  %v1476_v41 = vmul.f32 %v9925_v36, %v16898_v38  ;;  %v11724_v19 = vadd.f32 %v555_v33, %v554_v39  ;;  %v16899_v6 = vld [vmem:[#allocation7_spill] sm:$0xff]  ;;  %v16900_v1 = vld [vmem:[#allocation24_spill] sm:$0xff] }
 0x169   : > { %v1753_v29 = vadd.f32 %v11496_v34, %v1613_v25  ;;  %v791_v8 = vmul.f32 0.00390625, %v664_v9  ;;  %9934 = vrsqrt.f32 %v1346_v16  ;;  %v1347_v13 = vadd.f32 1e-05, %v1283_v26 }
 0x16a   : > { %2649 = vmatprep.mubr.bf16.mxu0 %v2132_v48  ;;  %3002 = vmatprep.mubr.bf16.mxu1 %v2132_v48  ;;  %v1013_v0 = vmul.f32 %v11710_v40, %v11710_v40  ;;  %v1014_v21 = vmul.f32 %v11713_v31, %v11713_v31  ;;  %v2007_v15 = vadd.f32 %v1879_v18, %v1751_v7  ;;  %v1284_v47 = vmul.f32 0.00390625, %v1120_v60  ;;  %v1884_v7 = vld [vmem:[%s11564_s14 + $0x68] sm:$0xff]  ;;  %v16901_v18 = vld [vmem:[#allocation9_spill] sm:$0xff]  ;;  %v16902_v60 = vld [vmem:[#allocation27_spill] sm:$0xff] }
 0x16b   : > { %v2009_v51 = vadd.f32 %v1881_v44, %v1753_v29  ;;  %v11731_v14 = vsub.f32 %v11322_v32, %v791_v8  ;;  %714 = vadd.xlane.f32.xlu1 %v11542_v23  ;;  %1170 = vadd.xlane.f32.xlu0 %v1169_v10  ;;  %v1478_v5 = vmul.f32 %v9927_v24, %v11115_v4  ;;  %9936 = vrsqrt.f32 %v1347_v13  ;;  %v16903_v10 = vld [vmem:[#allocation28_spill] sm:$0xff] }
 0x16c   : > { %v667_v16 = vpop.xlane.xlu1 %666  ;;  %v1123_v26 = vpop.xlane.xlu0 %1122  ;;  %v1172_v17 = vadd.f32 %v1014_v21, %v1013_v0  ;;  %v1616_v62 = vmul.f32 %v11493_v12, %v1476_v41  ;;  %v1475_v54 = vmul.f32 %v9925_v36, %v16899_v6  ;;  %v11738_v39 = vsub.f32 %v16900_v1, %v791_v8  ;;  %v1886_v41 = vld [vmem:[%s11564_s14 + $0x78] sm:$0xff]  ;;  %v1883_v0 = vld [vmem:[%s11564_s14 + $0x60] sm:$0xff] }
 0x16d   : > { %v2131_v46 = vpack.c.bf16 %v2009_v51, %v2007_v15  ;;  %v792_v32 = vmul.f32 0.00390625, %v667_v16  ;;  %v1285_v33 = vmul.f32 0.00390625, %v1123_v26  ;;  %v11740_v25 = vpop.eup %9928  ;;  %v1618_v23 = vmul.f32 %v11493_v12, %v1478_v5  ;;  %v557_v16 = vld [vmem:[%s10725_s19 + $0x3b8] sm:$0xff] }
 0x16e   : > { %v1756_v48 = vadd.f32 %v11506_v55, %v1616_v62  ;;  %v1477_v4 = vmul.f32 %v9927_v24, %v16901_v18  ;;  %v1615_v44 = vmul.f32 %v11480_v50, %v1475_v54  ;;  %v1348_v36 = vadd.f32 1e-05, %v1284_v47  ;;  %v9931_v29 = vpop.eup %9930  ;;  %v556_v47 = vld [vmem:[%s10725_s19 + $0x3b0] sm:$0xff] }
 0x16f   : > { %2650 = vmatmul.mubr.bf16.gmra.mxu0 %v2131_v46  ;;  %3003 = vmatmul.mubr.bf16.gmra.mxu1 %v2131_v46  ;;  %v11748_v9 = vsub.f32 %v16902_v60, %v792_v32  ;;  %v11751_v38 = vsub.f32 %v16903_v10, %v792_v32  ;;  %v1349_v8 = vadd.f32 1e-05, %v1285_v33  ;;  %v1758_v24 = vadd.f32 %v11506_v55, %v1618_v23  ;;  %v1885_v62 = vld [vmem:[%s11564_s14 + $0x70] sm:$0xff]  ;;  %v16904_v10 = vld [vmem:[#allocation31_spill] sm:$0xff] }
 0x170   : > { %1173 = vadd.xlane.f32.xlu1 %v1172_v17  ;;  %717 = vadd.xlane.f32.xlu0 %v11548_v49  ;;  %v1617_v13 = vmul.f32 %v11480_v50, %v1477_v4  ;;  %v1126_v21 = vpop.xlane.xlu1 %1125  ;;  %v670_v15 = vpop.xlane.xlu0 %669  ;;  %v1015_v51 = vmul.f32 %v11731_v14, %v11731_v14  ;;  %v2012_v26 = vadd.f32 %v1884_v7, %v1756_v48  ;;  %9938 = vrsqrt.f32 %v1348_v36  ;;  %v16906_v36 = vld [vmem:[#allocation11_spill] sm:$0xff] }
 0x171   : > { %v1755_v5 = vadd.f32 %v11496_v34, %v1615_v44  ;;  %v1286_v6 = vmul.f32 0.00390625, %v1126_v21  ;;  %v793_v17 = vmul.f32 0.00390625, %v670_v15  ;;  %v2014_v54 = vadd.f32 %v1886_v41, %v1758_v24  ;;  %v11779_v21 = vpop.eup %9932 }
 0x172   : > { %v1757_v46 = vadd.f32 %v11496_v34, %v1617_v13  ;;  %v1016_v49 = vmul.f32 %v11738_v39, %v11738_v39  ;;  %v1017_v1 = vmul.f32 %v11748_v9, %v11748_v9  ;;  %v11769_v23 = vadd.f32 %v557_v16, %v556_v47 }
 0x173   : > { %v2011_v32 = vadd.f32 %v1883_v0, %v1755_v5  ;;  %v1350_v33 = vadd.f32 1e-05, %v1286_v6  ;;  %v2134_v48 = vpack.c.bf16 %v2014_v54, %v2012_v26  ;;  %v1018_v60 = vmul.f32 %v11751_v38, %v11751_v38  ;;  %v16908_v26 = vld [vmem:[#allocation32_spill] sm:$0xff] }
 0x174   : > { %v2013_v7 = vadd.f32 %v1885_v62, %v1757_v46  ;;  %720 = vadd.xlane.f32.xlu1 %v11567_v43  ;;  %v1175_v18 = vadd.f32 %v1016_v49, %v1015_v51  ;;  %v673_v4 = vpop.xlane.xlu1 %672  ;;  %v1129_v44 = vpop.xlane.xlu0 %1128  ;;  %v11775_v41 = vsub.f32 %v16904_v10, %v793_v17  ;;  %v1480_v0 = vmul.f32 %v11740_v25, %v16906_v36  ;;  %v16907_v51 = vld [vmem:[#allocation13_spill] sm:$0xff]  ;;  %v16909_v62 = vld [vmem:[#allocation35_spill] sm:$0xff]  ;;  %v1888_v49 = vld [vmem:[%s11564_s14 + $0x88] sm:$0xff] }
 0x175   : > { %v794_v24 = vmul.f32 0.00390625, %v673_v4  ;;  %v1287_v13 = vmul.f32 0.00390625, %v1129_v44  ;;  %9940 = vrsqrt.f32 %v1349_v8  ;;  %2659 = vmatprep.mubr.bf16.mxu0 %v2134_v48  ;;  %3012 = vmatprep.mubr.bf16.mxu1 %v2134_v48  ;;  %v1178_v15 = vadd.f32 %v1018_v60, %v1017_v1  ;;  %v16910_v1 = vld [vmem:[#allocation10_spill] sm:$0xff]  ;;  %v16911_v48 = vld [vmem:[#allocation12_spill] sm:$0xff] }
 0x176   : > { %16905 = vst [vmem:[#allocation3_spill] sm:$0xff] %v11775_v41  ;;  %v2133_v43 = vpack.c.bf16 %v2013_v7, %v2011_v32  ;;  %v1482_v47 = vmul.f32 %v9931_v29, %v16907_v51  ;;  %v11782_v16 = vpop.eup %9934  ;;  %v11785_v5 = vsub.f32 %v16908_v26, %v793_v17  ;;  %1176 = vadd.xlane.f32.xlu0 %v1175_v18  ;;  %9942 = vrsqrt.f32 %v1350_v33  ;;  %v16912_v4 = vld [vmem:[#allocation36_spill] sm:$0xff]  ;;  %v1890_v10 = vld [vmem:[%s11564_s14 + $0x98] sm:$0xff] }
 0x177   : > { %v11788_v6 = vsub.f32 %v16909_v62, %v794_v24  ;;  %v1351_v54 = vadd.f32 1e-05, %v1287_v13  ;;  %v1620_v8 = vmul.f32 %v11493_v12, %v1480_v0  ;;  %v1479_v32 = vmul.f32 %v11740_v25, %v16910_v1 }
 0x178   : > { %2660 = vmatmul.mubr.bf16.gmra.mxu0 %v2133_v43  ;;  %3013 = vmatmul.mubr.bf16.gmra.mxu1 %v2133_v43  ;;  %v1622_v46 = vmul.f32 %v11493_v12, %v1482_v47  ;;  %v1481_v17 = vmul.f32 %v9931_v29, %v16911_v48  ;;  %v1132_v7 = vpop.xlane.xlu1 %1131  ;;  %v676_v18 = vpop.xlane.xlu0 %675  ;;  %v11797_v44 = vsub.f32 %v16912_v4, %v794_v24  ;;  %v1887_v24 = vld [vmem:[%s11564_s14 + $0x80] sm:$0xff]  ;;  %v16915_v48 = vld [vmem:[#allocation40_spill] sm:$0xff] }
 0x179   : > { %1179 = vadd.xlane.f32.xlu1 %v1178_v15  ;;  %v1760_v60 = vadd.f32 %v11506_v55, %v1620_v8  ;;  %v1288_v33 = vmul.f32 0.00390625, %v1132_v7  ;;  %v795_v13 = vmul.f32 0.00390625, %v676_v18  ;;  %v1619_v0 = vmul.f32 %v11480_v50, %v1479_v32  ;;  %v1889_v15 = vld [vmem:[%s11564_s14 + $0x90] sm:$0xff]  ;;  %v16913_v47 = vld [vmem:[#allocation39_spill] sm:$0xff]  ;;  %v11812_v62 = vpop.eup %9936 }
 0x17a   : > { %v1762_v36 = vadd.f32 %v11506_v55, %v1622_v46  ;;  %v1621_v25 = vmul.f32 %v11480_v50, %v1481_v17  ;;  %v1019_v29 = vmul.f32 %v11775_v41, %v11775_v41  ;;  %9944 = vrsqrt.f32 %v1351_v54  ;;  %723 = vadd.xlane.f32.xlu0 %v11586_v20 }
 0x17b   : > { %v2016_v43 = vadd.f32 %v1888_v49, %v1760_v60  ;;  %v1352_v51 = vadd.f32 1e-05, %v1288_v33  ;;  %v11810_v26 = vsub.f32 %v16913_v47, %v795_v13  ;;  %v1759_v46 = vadd.f32 %v11496_v34, %v1619_v0 }
 0x17c   : > { %v2018_v8 = vadd.f32 %v1890_v10, %v1762_v36  ;;  %v1761_v1 = vadd.f32 %v11496_v34, %v1621_v25  ;;  %v1020_v32 = vmul.f32 %v11785_v5, %v11785_v5  ;;  %v679_v54 = vpop.xlane.xlu1 %678  ;;  %v1135_v49 = vpop.xlane.xlu0 %1134  ;;  %v11819_v20 = vsub.f32 %v16915_v48, %v795_v13  ;;  %v16917_v36 = vld [vmem:[#allocation43_spill] sm:$0xff]  ;;  %v16918_v25 = vld [vmem:[#allocation44_spill] sm:$0xff] }
 0x17d   : > { %16914 = vst [vmem:[#allocation5_spill] sm:$0xff] %v11810_v26  ;;  %726 = vadd.xlane.f32.xlu1 %v11596_v57  ;;  %v796_v17 = vmul.f32 0.00390625, %v679_v54  ;;  %v1289_v7 = vmul.f32 0.00390625, %v1135_v49  ;;  %v1021_v18 = vmul.f32 %v11788_v6, %v11788_v6  ;;  %v2015_v60 = vadd.f32 %v1887_v24, %v1759_v46  ;;  %v11832_v57 = vpop.eup %9938  ;;  %v16922_v48 = vld [vmem:[#allocation16_spill] sm:$0xff] }
 0x17e   : > { %16916 = vst [vmem:[#allocation4_spill] sm:$0xff] %v11819_v20  ;;  %v2136_v4 = vpack.c.bf16 %v2018_v8, %v2016_v43  ;;  %v2017_v10 = vadd.f32 %v1889_v15, %v1761_v1  ;;  %v1181_v33 = vadd.f32 %v1020_v32, %v1019_v29  ;;  %v1022_v13 = vmul.f32 %v11797_v44, %v11797_v44  ;;  %v16919_v43 = vld [vmem:[#allocation15_spill] sm:$0xff]  ;;  %v16920_v29 = vld [vmem:[#allocation17_spill] sm:$0xff]  ;;  %v16921_v32 = vld [vmem:[#allocation14_spill] sm:$0xff] }
 0x17f   : > { %v11825_v0 = vsub.f32 %v16917_v36, %v796_v17  ;;  %v11828_v47 = vsub.f32 %v16918_v25, %v796_v17  ;;  %v1353_v41 = vadd.f32 1e-05, %v1289_v7  ;;  %9946 = vrsqrt.f32 %v1352_v51 }
 0x180   : > { %2669 = vmatprep.mubr.bf16.mxu0 %v2136_v4  ;;  %3022 = vmatprep.mubr.bf16.mxu1 %v2136_v4  ;;  %v2135_v54 = vpack.c.bf16 %v2017_v10, %v2015_v60  ;;  %v1484_v24 = vmul.f32 %v11779_v21, %v16919_v43  ;;  %v1486_v15 = vmul.f32 %v11782_v16, %v16920_v29  ;;  %v1138_v8 = vpop.xlane.xlu1 %1137  ;;  %v682_v46 = vpop.xlane.xlu0 %681  ;;  %v1893_v43 = vld [vmem:[%s11564_s14 + $0xb0] sm:$0xff] }
 0x181   : > { %1182 = vadd.xlane.f32.xlu0 %v1181_v33  ;;  %9948 = vrsqrt.f32 %v1353_v41  ;;  %v1184_v1 = vadd.f32 %v1022_v13, %v1021_v18  ;;  %v1483_v49 = vmul.f32 %v11779_v21, %v16921_v32  ;;  %v1485_v17 = vmul.f32 %v11782_v16, %v16922_v48  ;;  %v1892_v41 = vld [vmem:[%s11564_s14 + $0xa8] sm:$0xff]  ;;  %v1894_v18 = vld [vmem:[%s11564_s14 + $0xb8] sm:$0xff]  ;;  %v16923_v29 = vld [vmem:[#allocation45_spill] sm:$0xff] }
 0x182   : > { %2670 = vmatmul.mubr.bf16.gmra.mxu0 %v2135_v54  ;;  %3023 = vmatmul.mubr.bf16.gmra.mxu1 %v2135_v54  ;;  %v1624_v51 = vmul.f32 %v11493_v12, %v1484_v24  ;;  %v1626_v7 = vmul.f32 %v11493_v12, %v1486_v15  ;;  %v1290_v4 = vmul.f32 0.00390625, %v1138_v8  ;;  %v797_v60 = vmul.f32 0.00390625, %v682_v46  ;;  %v11844_v10 = vpop.eup %9940  ;;  %v1891_v54 = vld [vmem:[%s11564_s14 + $0xa0] sm:$0xff] }
 0x183   : > { %1185 = vadd.xlane.f32.xlu1 %v1184_v1  ;;  %v1623_v21 = vmul.f32 %v11480_v50, %v1483_v49  ;;  %v1625_v33 = vmul.f32 %v11480_v50, %v1485_v17  ;;  %v1023_v16 = vmul.f32 %v11810_v26, %v11810_v26  ;;  %v1024_v36 = vmul.f32 %v11819_v20, %v11819_v20  ;;  %v11861_v46 = vpop.eup %9942  ;;  %v16924_v49 = vld [vmem:[#allocation46_spill] sm:$0xff] }
 0x184   : > { %v1764_v25 = vadd.f32 %v11506_v55, %v1624_v51  ;;  %v1766_v13 = vadd.f32 %v11506_v55, %v1626_v7  ;;  %v1354_v24 = vadd.f32 1e-05, %v1290_v4  ;;  %v11859_v15 = vsub.f32 %v16923_v29, %v797_v60  ;;  %v685_v8 = vpop.xlane.xlu1 %684 }
 0x185   : > { %729 = vadd.xlane.f32.xlu0 %v11622_v58  ;;  %v1763_v1 = vadd.f32 %v11496_v34, %v1623_v21  ;;  %v1765_v32 = vadd.f32 %v11496_v34, %v1625_v33  ;;  %v11867_v48 = vsub.f32 %v16924_v49, %v797_v60  ;;  %v1187_v17 = vadd.f32 %v1024_v36, %v1023_v16  ;;  %v16925_v60 = vld [vmem:[#allocation47_spill] sm:$0xff] }
 0x186   : > { %v2020_v51 = vadd.f32 %v1892_v41, %v1764_v25  ;;  %v2022_v7 = vadd.f32 %v1894_v18, %v1766_v13  ;;  %9950 = vrsqrt.f32 %v1354_v24  ;;  %v798_v4 = vmul.f32 0.00390625, %v685_v8  ;;  %v16927_v41 = vld [vmem:[#allocation48_spill] sm:$0xff]  ;;  %v16928_v16 = vld [vmem:[#allocation19_spill] sm:$0xff]  ;;  %v16929_v13 = vld [vmem:[#allocation21_spill] sm:$0xff] }
 0x187   : > { %v2019_v26 = vadd.f32 %v1891_v54, %v1763_v1  ;;  %v2021_v29 = vadd.f32 %v1893_v43, %v1765_v32  ;;  %732 = vadd.xlane.f32.xlu1 %v11624_v3  ;;  %v1025_v20 = vmul.f32 %v11825_v0, %v11825_v0  ;;  %v1026_v58 = vmul.f32 %v11828_v47, %v11828_v47  ;;  %v11874_v21 = vpop.eup %9944  ;;  %v16930_v43 = vld [vmem:[#allocation18_spill] sm:$0xff]  ;;  %v16931_v1 = vld [vmem:[#allocation20_spill] sm:$0xff] }
 0x188   : > { %v2138_v33 = vpack.c.bf16 %v2022_v7, %v2020_v51  ;;  %v11877_v49 = vsub.f32 %v16925_v60, %v798_v4  ;;  %v11880_v18 = vsub.f32 %v16927_v41, %v798_v4  ;;  %v1488_v36 = vmul.f32 %v11812_v62, %v16928_v16  ;;  %v1898_v4 = vld [vmem:[%s11564_s14 + $0xd8] sm:$0xff] }
 0x189   : > { %v2137_v3 = vpack.c.bf16 %v2021_v29, %v2019_v26  ;;  %1188 = vadd.xlane.f32.xlu0 %v1187_v17  ;;  %v1190_v25 = vadd.f32 %v1026_v58, %v1025_v20  ;;  %v1490_v54 = vmul.f32 %v11832_v57, %v16929_v13  ;;  %v1487_v24 = vmul.f32 %v11812_v62, %v16930_v43  ;;  %v1896_v17 = vld [vmem:[%s11564_s14 + $0xc8] sm:$0xff]  ;;  %v1895_v29 = vld [vmem:[%s11564_s14 + $0xc0] sm:$0xff] }
 0x18a   : > { %16926 = vst [vmem:[#allocation6_spill] sm:$0xff] %v11877_v49  ;;  %2679 = vmatprep.mubr.bf16.mxu0 %v2138_v33  ;;  %3032 = vmatprep.mubr.bf16.mxu1 %v2138_v33  ;;  %v1628_v8 = vmul.f32 %v11493_v12, %v1488_v36  ;;  %v1489_v32 = vmul.f32 %v11832_v57, %v16931_v1  ;;  %v1897_v36 = vld [vmem:[%s11564_s14 + $0xd0] sm:$0xff]  ;;  %v16933_v1 = vld [vmem:[#allocation26_spill] sm:$0xff] }
 0x18b   : > { %v1027_v26 = vmul.f32 %v11859_v15, %v11859_v15  ;;  %2680 = vmatmul.mubr.bf16.gmra.mxu0 %v2137_v3  ;;  %3033 = vmatmul.mubr.bf16.gmra.mxu1 %v2137_v3  ;;  %v1630_v20 = vmul.f32 %v11493_v12, %v1490_v54  ;;  %v1627_v51 = vmul.f32 %v11480_v50, %v1487_v24 }
 0x18c   : > { %v1028_v62 = vmul.f32 %v11867_v48, %v11867_v48  ;;  %1191 = vadd.xlane.f32.xlu1 %v1190_v25  ;;  %v1768_v7 = vadd.f32 %v11506_v55, %v1628_v8  ;;  %v1629_v57 = vmul.f32 %v11480_v50, %v1489_v32  ;;  %v1029_v58 = vmul.f32 %v11877_v49, %v11877_v49  ;;  %v9947_v60 = vpop.eup %9946  ;;  %v16932_v25 = vld [vmem:[#allocation23_spill] sm:$0xff]  ;;  %v16934_v49 = vld [vmem:[#allocation22_spill] sm:$0xff] }
 0x18d   : > { %v1030_v33 = vmul.f32 %v11880_v18, %v11880_v18  ;;  %v1770_v41 = vadd.f32 %v11506_v55, %v1630_v20  ;;  %735 = vadd.xlane.f32.xlu0 %v11665_v30  ;;  %v1767_v16 = vadd.f32 %v11496_v34, %v1627_v51  ;;  %v1492_v13 = vmul.f32 %v11844_v10, %v16932_v25 }
 0x18e   : > { %v1193_v3 = vadd.f32 %v1028_v62, %v1027_v26  ;;  %v11912_v54 = vpop.eup %9948  ;;  %v2024_v43 = vadd.f32 %v1896_v17, %v1768_v7  ;;  %v1769_v24 = vadd.f32 %v11496_v34, %v1629_v57  ;;  %v1494_v32 = vmul.f32 %v11861_v46, %v16933_v1  ;;  %v1900_v7 = vld [vmem:[%s11564_s14 + $0xe8] sm:$0xff]  ;;  %v16935_v57 = vld [vmem:[#allocation25_spill] sm:$0xff] }
 0x18f   : > { %v1196_v8 = vadd.f32 %v1030_v33, %v1029_v58  ;;  %v2026_v20 = vadd.f32 %v1898_v4, %v1770_v41  ;;  %v2023_v30 = vadd.f32 %v1895_v29, %v1767_v16  ;;  %v1632_v51 = vmul.f32 %v11493_v12, %v1492_v13  ;;  %v16936_v33 = vld [vmem:[#allocation30_spill] sm:$0xff] }
 0x190   : > { %v1491_v26 = vmul.f32 %v11844_v10, %v16934_v49  ;;  %v2025_v62 = vadd.f32 %v1897_v36, %v1769_v24  ;;  %738 = vadd.xlane.f32.xlu1 %v11717_v37  ;;  %v1634_v17 = vmul.f32 %v11493_v12, %v1494_v32  ;;  %v1493_v58 = vmul.f32 %v11861_v46, %v16935_v57  ;;  %v1902_v10 = vld [vmem:[%s11564_s14 + $0xf8] sm:$0xff]  ;;  %v1899_v46 = vld [vmem:[%s11564_s14 + $0xe0] sm:$0xff]  ;;  %v1901_v32 = vld [vmem:[%s11564_s14 + $0xf0] sm:$0xff] }
 0x191   : > { %v1496_v25 = vmul.f32 %v11874_v21, %v16936_v33  ;;  %v2140_v4 = vpack.c.bf16 %v2026_v20, %v2024_v43  ;;  %1194 = vadd.xlane.f32.xlu0 %v1193_v3  ;;  %v1772_v29 = vadd.f32 %v11506_v55, %v1632_v51  ;;  %v16937_v41 = vld [vmem:[#allocation34_spill] sm:$0xff]  ;;  %v1904_v51 = vld [vmem:[%s11564_s14 + $0x108] sm:$0xff] }
 0x192   : > { %v1631_v49 = vmul.f32 %v11480_v50, %v1491_v26  ;;  %v1498_v37 = vmul.f32 %v9947_v60, %v16937_v41  ;;  %v2139_v16 = vpack.c.bf16 %v2025_v62, %v2023_v30  ;;  %v1774_v36 = vadd.f32 %v11506_v55, %v1634_v17  ;;  %v1906_v17 = vld [vmem:[%s11564_s14 + $0x118] sm:$0xff] }
 0x193   : > { %v1633_v13 = vmul.f32 %v11480_v50, %v1493_v58  ;;  %v1636_v24 = vmul.f32 %v11493_v12, %v1496_v25  ;;  %v9951_v43 = vpop.eup %9950  ;;  %2689 = vmatprep.mubr.bf16.mxu0 %v2140_v4  ;;  %3042 = vmatprep.mubr.bf16.mxu1 %v2140_v4  ;;  %v2028_v3 = vadd.f32 %v1900_v7, %v1772_v29  ;;  %v16938_v58 = vld [vmem:[#allocation29_spill] sm:$0xff] }
 0x194   : > { %v1771_v1 = vadd.f32 %v11496_v34, %v1631_v49  ;;  %v1638_v20 = vmul.f32 %v11493_v12, %v1498_v37  ;;  %2690 = vmatmul.mubr.bf16.gmra.mxu0 %v2139_v16  ;;  %3043 = vmatmul.mubr.bf16.gmra.mxu1 %v2139_v16  ;;  %v2030_v30 = vadd.f32 %v1902_v10, %v1774_v36  ;;  %v16939_v49 = vld [vmem:[#allocation33_spill] sm:$0xff]  ;;  %v16940_v16 = vld [vmem:[#allocation38_spill] sm:$0xff] }
 0x195   : > { %v1773_v26 = vadd.f32 %v11496_v34, %v1633_v13  ;;  %v1776_v62 = vadd.f32 %v11506_v55, %v1636_v24  ;;  %1197 = vadd.xlane.f32.xlu1 %v1196_v8  ;;  %741 = vadd.xlane.f32.xlu0 %v11724_v19  ;;  %v1495_v33 = vmul.f32 %v11874_v21, %v16938_v58  ;;  %v16941_v19 = vld [vmem:[#allocation42_spill] sm:$0xff]  ;;  %v1908_v58 = vld [vmem:[%s11564_s14 + $0x128] sm:$0xff] }
 0x196   : > { %v2027_v57 = vadd.f32 %v1899_v46, %v1771_v1  ;;  %v1778_v7 = vadd.f32 %v11506_v55, %v1638_v20  ;;  %v2142_v25 = vpack.c.bf16 %v2030_v30, %v2028_v3  ;;  %v1497_v10 = vmul.f32 %v9947_v60, %v16939_v49  ;;  %v1905_v60 = vld [vmem:[%s11564_s14 + $0x110] sm:$0xff]  ;;  %v1910_v20 = vld [vmem:[%s11564_s14 + $0x138] sm:$0xff] }
 0x197   : > { %v2029_v4 = vadd.f32 %v1901_v32, %v1773_v26  ;;  %v2032_v29 = vadd.f32 %v1904_v51, %v1776_v62  ;;  %v1635_v37 = vmul.f32 %v11480_v50, %v1495_v33  ;;  %v1500_v8 = vmul.f32 %v11912_v54, %v16940_v16  ;;  %v16942_v51 = vld [vmem:[#allocation37_spill] sm:$0xff]  ;;  %v1907_v16 = vld [vmem:[%s11564_s14 + $0x120] sm:$0xff] }
 0x198   : > { %v2034_v41 = vadd.f32 %v1906_v17, %v1778_v7  ;;  %v1502_v36 = vmul.f32 %v9951_v43, %v16941_v19  ;;  %2699 = vmatprep.mubr.bf16.mxu0 %v2142_v25  ;;  %3052 = vmatprep.mubr.bf16.mxu1 %v2142_v25  ;;  %v1637_v21 = vmul.f32 %v11480_v50, %v1497_v10  ;;  %v16943_v26 = vld [vmem:[#allocation41_spill] sm:$0xff]  ;;  %v1903_v17 = vld [vmem:[%s11564_s14 + $0x100] sm:$0xff] }
 0x199   : > { %v2141_v13 = vpack.c.bf16 %v2029_v4, %v2027_v57  ;;  %744 = vadd.xlane.f32.xlu1 %v11769_v23  ;;  %v1640_v24 = vmul.f32 %v11493_v12, %v1500_v8  ;;  %v1775_v1 = vadd.f32 %v11496_v34, %v1635_v37  ;;  %v1499_v30 = vmul.f32 %v11912_v54, %v16942_v51 }
 0x19a   : > { %v2144_v46 = vpack.c.bf16 %v2034_v41, %v2032_v29  ;;  %v1642_v3 = vmul.f32 %v11493_v12, %v1502_v36  ;;  %v1777_v32 = vadd.f32 %v11496_v34, %v1637_v21  ;;  %v1501_v62 = vmul.f32 %v9951_v43, %v16943_v26  ;;  %v1909_v41 = vld [vmem:[%s11564_s14 + $0x130] sm:$0xff] }
 0x19b   : > { %v1780_v23 = vadd.f32 %v11506_v55, %v1640_v24  ;;  %v2031_v4 = vadd.f32 %v1903_v17, %v1775_v1  ;;  %v1639_v54 = vmul.f32 %v11480_v50, %v1499_v30  ;;  %v10553_v30 = vld [vmem:[%s10725_s19 + $0x288] sm:$0xff]  ;;  %v9722_v17 = vld [vmem:[%s16612_s6 + $0xe4] ss:$16 sps:$4 sm:$0xff]  }
 0x19c   : > { %v1782_v57 = vadd.f32 %v11506_v55, %v1642_v3  ;;  %2700 = vmatmul.mubr.bf16.gmra.mxu0 %v2141_v13  ;;  %3053 = vmatmul.mubr.bf16.gmra.mxu1 %v2141_v13  ;;  %v2033_v7 = vadd.f32 %v1905_v60, %v1777_v32  ;;  %v1641_v33 = vmul.f32 %v11480_v50, %v1501_v62  ;;  %v9720_v62 = vld [vmem:[%s16612_s6 + $0xe0] ss:$16 sps:$4 sm:$0xff]  }
 0x19d   : > { %2709 = vmatprep.mubr.bf16.mxu0 %v2144_v46  ;;  %3062 = vmatprep.mubr.bf16.mxu1 %v2144_v46  ;;  %v2036_v43 = vadd.f32 %v1908_v58, %v1780_v23  ;;  %v1779_v37 = vadd.f32 %v11496_v34, %v1639_v54 }
 0x19e   : > { %v2038_v25 = vadd.f32 %v1910_v20, %v1782_v57  ;;  %v2143_v29 = vpack.c.bf16 %v2033_v7, %v2031_v4  ;;  %v1781_v49 = vadd.f32 %v11496_v34, %v1641_v33  ;;  %v10552_v20 = vld [vmem:[%s10725_s19 + $0x280] sm:$0xff]  ;;  %v559_v4 = vld [vmem:[%s10725_s19 + $0x3c8] sm:$0xff]  ;;  %7037 = vmatprep.subr.bf16.mxu0 %v9722_v17 }
 0x19f   : > { %v2035_v19 = vadd.f32 %v1907_v16, %v1779_v37  ;;  %7038 = vmatpush1.bf16.msra.mxu0 %v9720_v62  ;;  %v10557_v62 = vld [vmem:[%s10725_s19 + $0x2a8] sm:$0xff] }
 0x1a0   : > { %v2146_v10 = vpack.c.bf16 %v2038_v25, %v2036_v43  ;;  %v2037_v8 = vadd.f32 %v1909_v41, %v1781_v49  ;;  %v558_v25 = vld [vmem:[%s10725_s19 + $0x3c0] sm:$0xff]  ;;  %v10554_v49 = vld [vmem:[%s10725_s19 + $0x290] sm:$0xff]  ;;  %v10555_v41 = vld [vmem:[%s10725_s19 + $0x298] sm:$0xff] }
 0x1a1   : > { %v9723_v43 = vld [vmem:[%s16612_s6 + $0x2e0] ss:$16 sps:$4 sm:$0xff]  }
 0x1a2   : > { %v2145_v36 = vpack.c.bf16 %v2037_v8, %v2035_v19 }
 0x1a4   : > { %2710 = vmatmul.mubr.bf16.gmra.mxu0 %v2143_v29  ;;  %3063 = vmatmul.mubr.bf16.gmra.mxu1 %v2143_v29  ;;  %v9725_v29 = vld [vmem:[%s16612_s6 + $0x2e4] ss:$16 sps:$4 sm:$0xff]  }
 0x1a5   : > { %2719 = vmatprep.mubr.bf16.mxu0 %v2146_v10  ;;  %3072 = vmatprep.mubr.bf16.mxu1 %v2146_v10 }
 0x1a6   : > { %7390 = vmatprep.subr.bf16.mxu1 %v9725_v29 }
 0x1a7   : > { %7391 = vmatpush1.bf16.msra.mxu1 %v9723_v43  ;;  %v563_v43 = vld [vmem:[%s10725_s19 + $0x3e8] sm:$0xff] }
 0x1ac   : > { %2720 = vmatmul.mubr.bf16.gmra.mxu0 %v2145_v36  ;;  %3073 = vmatmul.mubr.bf16.gmra.mxu1 %v2145_v36 }
 0x1cb   : > { %v1141_v13 = vpop.xlane.xlu0 %1140 }
 0x1cc   : > { %v1291_v21 = vmul.f32 0.00390625, %v1141_v13  ;;  %v746_v13 = vadd.f32 %v559_v4, %v558_v25 }
 0x1ce   : > { %v1355_v46 = vadd.f32 1e-05, %v1291_v21 }
 0x1cf   : > { %v1144_v60 = vpop.xlane.xlu1 %1143  ;;  %v688_v24 = vpop.xlane.xlu0 %687 }
 0x1d0   : > { %9952 = vrsqrt.f32 %v1355_v46  ;;  %v1292_v3 = vmul.f32 0.00390625, %v1144_v60  ;;  %v799_v1 = vmul.f32 0.00390625, %v688_v24 }
 0x1d2   : > { %v1356_v32 = vadd.f32 1e-05, %v1292_v3  ;;  %v11973_v51 = vsub.f32 %v10552_v20, %v799_v1  ;;  %v11976_v26 = vsub.f32 %v10553_v30, %v799_v1  ;;  %v560_v3 = vld [vmem:[%s10725_s19 + $0x3d0] sm:$0xff]  ;;  %v561_v1 = vld [vmem:[%s10725_s19 + $0x3d8] sm:$0xff]  ;;  %v10556_v20 = vld [vmem:[%s10725_s19 + $0x2a0] sm:$0xff] }
 0x1d3   : > { %v691_v23 = vpop.xlane.xlu1 %690  ;;  %v1147_v57 = vpop.xlane.xlu0 %1146 }
 0x1d4   : > { %9954 = vrsqrt.f32 %v1356_v32  ;;  %v1031_v7 = vmul.f32 %v11973_v51, %v11973_v51  ;;  %v1032_v58 = vmul.f32 %v11976_v26, %v11976_v26  ;;  %v800_v33 = vmul.f32 0.00390625, %v691_v23 }
 0x1d5   : > { %v1293_v54 = vmul.f32 0.00390625, %v1147_v57 }
 0x1d6   : > { %v11997_v10 = vsub.f32 %v10554_v49, %v800_v33  ;;  %v12000_v37 = vsub.f32 %v10555_v41, %v800_v33  ;;  %v1199_v16 = vadd.f32 %v1032_v58, %v1031_v7  ;;  %v749_v58 = vadd.f32 %v561_v1, %v560_v3  ;;  %v10558_v41 = vld [vmem:[%s10725_s19 + $0x2b0] sm:$0xff] }
 0x1d7   : > { %v1357_v8 = vadd.f32 1e-05, %v1293_v54  ;;  %v1150_v19 = vpop.xlane.xlu1 %1149  ;;  %v694_v36 = vpop.xlane.xlu0 %693  ;;  %v562_v54 = vld [vmem:[%s10725_s19 + $0x3e0] sm:$0xff] }
 0x1d8   : > { %v1033_v21 = vmul.f32 %v11997_v10, %v11997_v10  ;;  %v1034_v46 = vmul.f32 %v12000_v37, %v12000_v37  ;;  %v1294_v60 = vmul.f32 0.00390625, %v1150_v19  ;;  %v801_v24 = vmul.f32 0.00390625, %v694_v36  ;;  %1200 = vadd.xlane.f32.xlu0 %v1199_v16 }
 0x1d9   : > { %9956 = vrsqrt.f32 %v1357_v8  ;;  %v10559_v8 = vld [vmem:[%s10725_s19 + $0x2b8] sm:$0xff] }
 0x1da   : > { %v1358_v32 = vadd.f32 1e-05, %v1294_v60  ;;  %v12009_v30 = vsub.f32 %v10556_v20, %v801_v24  ;;  %v12012_v17 = vsub.f32 %v10557_v62, %v801_v24  ;;  %v1202_v23 = vadd.f32 %v1034_v46, %v1033_v21  ;;  %v564_v21 = vld [vmem:[%s10725_s19 + $0x3f0] sm:$0xff]  ;;  %v565_v46 = vld [vmem:[%s10725_s19 + $0x3f8] sm:$0xff]  ;;  %v16948_v60 = vld [vmem:[#allocation51_spill] sm:$0xff] }
 0x1db   : > { %v697_v57 = vpop.xlane.xlu1 %696  ;;  %v1153_v7 = vpop.xlane.xlu0 %1152 }
 0x1dc   : > { %16944 = vst [vmem:[#allocation8_spill] sm:$0xff] %v12009_v30  ;;  %16945 = vst [vmem:[#allocation7_spill] sm:$0xff] %v12012_v17  ;;  %9958 = vrsqrt.f32 %v1358_v32  ;;  %v1035_v33 = vmul.f32 %v12009_v30, %v12009_v30  ;;  %v1036_v25 = vmul.f32 %v12012_v17, %v12012_v17  ;;  %v802_v4 = vmul.f32 0.00390625, %v697_v57  ;;  %1203 = vadd.xlane.f32.xlu1 %v1202_v23  ;;  %v1916_v30 = vld [vmem:[%s11564_s14 + $0x168] sm:$0xff] }
 0x1dd   : > { %747 = vadd.xlane.f32.xlu0 %v746_v13  ;;  %v9953_v29 = vpop.eup %9952  ;;  %v1295_v49 = vmul.f32 0.00390625, %v1153_v7  ;;  %v752_v32 = vadd.f32 %v563_v43, %v562_v54  ;;  %v16949_v13 = vld [vmem:[#allocation50_spill] sm:$0xff]  ;;  %v755_v54 = vadd.f32 %v565_v46, %v564_v21  ;;  %v1912_v43 = vld [vmem:[%s11564_s14 + $0x148] sm:$0xff]  ;;  %v1911_v46 = vld [vmem:[%s11564_s14 + $0x140] sm:$0xff] }
 0x1de   : > { %v12021_v16 = vsub.f32 %v10558_v41, %v802_v4  ;;  %v12024_v19 = vsub.f32 %v10559_v8, %v802_v4  ;;  %v1205_v36 = vadd.f32 %v1036_v25, %v1035_v33  ;;  %v1504_v24 = vmul.f32 %v9953_v29, %v16948_v60  ;;  %v16950_v8 = vld [vmem:[#allocation55_spill] sm:$0xff] }
 0x1df   : > { %v1359_v3 = vadd.f32 1e-05, %v1295_v49  ;;  %v1156_v1 = vpop.xlane.xlu1 %1155  ;;  %v1503_v20 = vmul.f32 %v9953_v29, %v16949_v13  ;;  %v10560_v13 = vld [vmem:[%s10725_s19 + $0x2c0] sm:$0xff] }
 0x1e0   : > { %16946 = vst [vmem:[#allocation24_spill] sm:$0xff] %v12021_v16  ;;  %16947 = vst [vmem:[#allocation9_spill] sm:$0xff] %v12024_v19  ;;  %v1037_v62 = vmul.f32 %v12021_v16, %v12021_v16  ;;  %v1038_v23 = vmul.f32 %v12024_v19, %v12024_v19  ;;  %v1296_v57 = vmul.f32 0.00390625, %v1156_v1  ;;  %v700_v7 = vpop.xlane.xlu0 %699  ;;  %750 = vadd.xlane.f32.xlu1 %v749_v58  ;;  %v10561_v58 = vld [vmem:[%s10725_s19 + $0x2c8] sm:$0xff] }
 0x1e1   : > { %1206 = vadd.xlane.f32.xlu0 %v1205_v36  ;;  %v1644_v33 = vmul.f32 %v11493_v12, %v1504_v24  ;;  %v9955_v25 = vpop.eup %9954  ;;  %9960 = vrsqrt.f32 %v1359_v3  ;;  %v803_v4 = vmul.f32 0.00390625, %v700_v7  ;;  %v1643_v29 = vmul.f32 %v11480_v50, %v1503_v20  ;;  %v16953_v3 = vld [vmem:[#allocation54_spill] sm:$0xff] }
 0x1e2   : > { %v1360_v49 = vadd.f32 1e-05, %v1296_v57  ;;  %v1208_v41 = vadd.f32 %v1038_v23, %v1037_v62  ;;  %v1506_v60 = vmul.f32 %v9955_v25, %v16950_v8  ;;  %v1505_v7 = vmul.f32 %v9955_v25, %v16953_v3  ;;  %v1914_v8 = vld [vmem:[%s11564_s14 + $0x158] sm:$0xff] }
 0x1e3   : > { %v1784_v1 = vadd.f32 %v11506_v55, %v1644_v33  ;;  %v12040_v16 = vsub.f32 %v10560_v13, %v803_v4  ;;  %v12043_v36 = vsub.f32 %v10561_v58, %v803_v4  ;;  %v703_v24 = vpop.xlane.xlu1 %702  ;;  %v1783_v21 = vadd.f32 %v11496_v34, %v1643_v29 }
 0x1e4   : > { %9962 = vrsqrt.f32 %v1360_v49  ;;  %v804_v20 = vmul.f32 0.00390625, %v703_v24  ;;  %v1159_v62 = vpop.xlane.xlu0 %1158  ;;  %1209 = vadd.xlane.f32.xlu1 %v1208_v41  ;;  %v1646_v23 = vmul.f32 %v11493_v12, %v1506_v60  ;;  %v1645_v29 = vmul.f32 %v11480_v50, %v1505_v7  ;;  %v10562_v49 = vld [vmem:[%s10725_s19 + $0x2d0] sm:$0xff]  ;;  %v10563_v24 = vld [vmem:[%s10725_s19 + $0x2d8] sm:$0xff] }
 0x1e5   : > { %16951 = vst [vmem:[#allocation27_spill] sm:$0xff] %v12040_v16  ;;  %16952 = vst [vmem:[#allocation28_spill] sm:$0xff] %v12043_v36  ;;  %753 = vadd.xlane.f32.xlu0 %v752_v32  ;;  %v2040_v57 = vadd.f32 %v1912_v43, %v1784_v1  ;;  %v1039_v33 = vmul.f32 %v12040_v16, %v12040_v16  ;;  %v1040_v25 = vmul.f32 %v12043_v36, %v12043_v36  ;;  %v1913_v43 = vld [vmem:[%s11564_s14 + $0x150] sm:$0xff] }
 0x1e6   : > { %v1297_v4 = vmul.f32 0.00390625, %v1159_v62  ;;  %v9957_v13 = vpop.eup %9956  ;;  %v12056_v58 = vsub.f32 %v10562_v49, %v804_v20  ;;  %v12059_v41 = vsub.f32 %v10563_v24, %v804_v20  ;;  %v1786_v32 = vadd.f32 %v11506_v55, %v1646_v23 }
 0x1e7   : > { %v2039_v60 = vadd.f32 %v1911_v46, %v1783_v21  ;;  %v1162_v3 = vpop.xlane.xlu1 %1161  ;;  %v1211_v16 = vadd.f32 %v1040_v25, %v1039_v33  ;;  %v1785_v36 = vadd.f32 %v11496_v34, %v1645_v29  ;;  %v1508_v62 = vmul.f32 %v9957_v13, %v11503_v35 }
 0x1e8   : > { %16954 = vst [vmem:[#allocation31_spill] sm:$0xff] %v12056_v58  ;;  %16955 = vst [vmem:[#allocation11_spill] sm:$0xff] %v12059_v41  ;;  %v1361_v1 = vadd.f32 1e-05, %v1297_v4  ;;  %v1041_v7 = vmul.f32 %v12056_v58, %v12056_v58  ;;  %v1042_v49 = vmul.f32 %v12059_v41, %v12059_v41  ;;  %v1298_v20 = vmul.f32 0.00390625, %v1162_v3  ;;  %v706_v24 = vpop.xlane.xlu0 %705  ;;  %756 = vadd.xlane.f32.xlu1 %v755_v54  ;;  %v10564_v41 = vld [vmem:[%s10725_s19 + $0x2e0] sm:$0xff] }
 0x1e9   : > { %v2042_v21 = vadd.f32 %v1914_v8, %v1786_v32  ;;  %v9959_v46 = vpop.eup %9958  ;;  %v805_v23 = vmul.f32 0.00390625, %v706_v24  ;;  %1212 = vadd.xlane.f32.xlu0 %v1211_v16  ;;  %v2041_v33 = vadd.f32 %v1913_v43, %v1785_v36  ;;  %v1648_v35 = vmul.f32 %v11493_v12, %v1508_v62  ;;  %v10565_v3 = vld [vmem:[%s10725_s19 + $0x2e8] sm:$0xff]  ;;  %v10567_v24 = vld [vmem:[%s10725_s19 + $0x2f8] sm:$0xff] }
 0x1ea   : > { %9964 = vrsqrt.f32 %v1361_v1  ;;  %v1362_v25 = vadd.f32 1e-05, %v1298_v20  ;;  %v1214_v4 = vadd.f32 %v1042_v49, %v1041_v7  ;;  %v1510_v58 = vmul.f32 %v9959_v46, %v11535_v59  ;;  %v1918_v1 = vld [vmem:[%s11564_s14 + $0x178] sm:$0xff]  ;;  %v10566_v49 = vld [vmem:[%s10725_s19 + $0x2f0] sm:$0xff] }
 0x1eb   : > { %v2148_v29 = vpack.c.bf16 %v2042_v21, %v2040_v57  ;;  %v12073_v19 = vsub.f32 %v10564_v41, %v805_v23  ;;  %v12076_v17 = vsub.f32 %v10565_v3, %v805_v23  ;;  %v709_v54 = vpop.xlane.xlu1 %708  ;;  %v2147_v8 = vpack.c.bf16 %v2041_v33, %v2039_v60 }
 0x1ec   : > { %v1788_v16 = vadd.f32 %v11506_v55, %v1648_v35  ;;  %9966 = vrsqrt.f32 %v1362_v25  ;;  %v806_v36 = vmul.f32 0.00390625, %v709_v54  ;;  %v1165_v32 = vpop.xlane.xlu0 %1164  ;;  %1215 = vadd.xlane.f32.xlu1 %v1214_v4  ;;  %v1650_v59 = vmul.f32 %v11493_v12, %v1510_v58  ;;  %v16957_v4 = vld [vmem:[#allocation62_spill] sm:$0xff] }
 0x1ed   : > { %2729 = vmatprep.mubr.bf16.mxu0 %v2148_v29  ;;  %v1507_v57 = vmul.f32 %v9957_v13, %v11500_v22  ;;  %v1043_v41 = vmul.f32 %v12073_v19, %v12073_v19  ;;  %v1044_v43 = vmul.f32 %v12076_v17, %v12076_v17  ;;  %v1299_v60 = vmul.f32 0.00390625, %v1165_v32  ;;  %3082 = vmatprep.mubr.bf16.mxu1 %v2148_v29  ;;  %v16956_v13 = vld [vmem:[#allocation60_spill] sm:$0xff] }
 0x1ee   : > { %2730 = vmatmul.mubr.bf16.gmra.mxu0 %v2147_v8  ;;  %v2044_v62 = vadd.f32 %v1916_v30, %v1788_v16  ;;  %v9961_v7 = vpop.eup %9960  ;;  %v12087_v20 = vsub.f32 %v10566_v49, %v806_v36  ;;  %v12090_v58 = vsub.f32 %v10567_v24, %v806_v36  ;;  %3083 = vmatmul.mubr.bf16.gmra.mxu1 %v2147_v8  ;;  %v1915_v36 = vld [vmem:[%s11564_s14 + $0x160] sm:$0xff] }
 0x1ef   : > { %v1790_v22 = vadd.f32 %v11506_v55, %v1650_v59  ;;  %v1509_v21 = vmul.f32 %v9959_v46, %v16956_v13  ;;  %v1363_v23 = vadd.f32 1e-05, %v1299_v60  ;;  %v1168_v33 = vpop.xlane.xlu1 %1167  ;;  %v1217_v35 = vadd.f32 %v1044_v43, %v1043_v41  ;;  %v10568_v24 = vld [vmem:[%s10725_s19 + $0x300] sm:$0xff] }
 0x1f0   : > { %v1647_v25 = vmul.f32 %v11480_v50, %v1507_v57  ;;  %v1512_v30 = vmul.f32 %v9961_v7, %v16957_v4  ;;  %v1045_v29 = vmul.f32 %v12087_v20, %v12087_v20  ;;  %v1046_v3 = vmul.f32 %v12090_v58, %v12090_v58  ;;  %v712_v8 = vpop.xlane.xlu0 %711 }
 0x1f1   : > { %v1300_v54 = vmul.f32 0.00390625, %v1168_v33  ;;  %v2046_v16 = vadd.f32 %v1918_v1, %v1790_v22  ;;  %v9963_v46 = vpop.eup %9962  ;;  %9968 = vrsqrt.f32 %v1363_v23  ;;  %v807_v32 = vmul.f32 0.00390625, %v712_v8  ;;  %1218 = vadd.xlane.f32.xlu0 %v1217_v35  ;;  %v10569_v33 = vld [vmem:[%s10725_s19 + $0x308] sm:$0xff]  ;;  %v1917_v23 = vld [vmem:[%s11564_s14 + $0x170] sm:$0xff] }
 0x1f2   : > { %v1649_v59 = vmul.f32 %v11480_v50, %v1509_v21  ;;  %v1787_v57 = vadd.f32 %v11496_v34, %v1647_v25  ;;  %v1220_v43 = vadd.f32 %v1046_v3, %v1045_v29  ;;  %v1514_v49 = vmul.f32 %v9963_v46, %v11592_v28  ;;  %v16960_v25 = vld [vmem:[#allocation61_spill] sm:$0xff] }
 0x1f3   : > { %v1364_v41 = vadd.f32 1e-05, %v1300_v54  ;;  %v2150_v60 = vpack.c.bf16 %v2046_v16, %v2044_v62  ;;  %v12105_v13 = vsub.f32 %v10568_v24, %v807_v32  ;;  %v12108_v1 = vsub.f32 %v10569_v33, %v807_v32  ;;  %v9726_v3 = vld [vmem:[%s16612_s6 + $0xc0] ss:$16 sps:$4 sm:$0xff]   ;;  %v9728_v54 = vld [vmem:[%s16612_s6 + $0xc4] ss:$16 sps:$4 sm:$0xff]  }
 0x1f4   : > { %v1789_v22 = vadd.f32 %v11496_v34, %v1649_v59  ;;  %v2043_v4 = vadd.f32 %v1915_v36, %v1787_v57  ;;  %v715_v21 = vpop.xlane.xlu1 %714  ;;  %v1171_v35 = vpop.xlane.xlu0 %1170  ;;  %1221 = vadd.xlane.f32.xlu1 %v1220_v43  ;;  %v1652_v62 = vmul.f32 %v11493_v12, %v1512_v30  ;;  %v1654_v28 = vmul.f32 %v11493_v12, %v1514_v49  ;;  %v1922_v32 = vld [vmem:[%s11564_s14 + $0x198] sm:$0xff]  ;;  %v16961_v49 = vld [vmem:[#allocation63_spill] sm:$0xff] }
 0x1f5   : > { %16958 = vst [vmem:[#allocation13_spill] sm:$0xff] %v12105_v13  ;;  %16959 = vst [vmem:[#allocation32_spill] sm:$0xff] %v12108_v1  ;;  %9970 = vrsqrt.f32 %v1364_v41  ;;  %2739 = vmatprep.mubr.bf16.mxu0 %v2150_v60  ;;  %v1511_v29 = vmul.f32 %v9961_v7, %v16960_v25  ;;  %v1047_v8 = vmul.f32 %v12105_v13, %v12105_v13  ;;  %v808_v30 = vmul.f32 0.00390625, %v715_v21  ;;  %v1920_v7 = vld [vmem:[%s11564_s14 + $0x188] sm:$0xff]  ;;  %v9729_v33 = vld [vmem:[%s16612_s6 + $0x2c0] ss:$16 sps:$4 sm:$0xff]  }
 0x1f6   : > { %v1048_v16 = vmul.f32 %v12108_v1, %v12108_v1  ;;  %v1301_v36 = vmul.f32 0.00390625, %v1171_v35  ;;  %3092 = vmatprep.mubr.bf16.mxu1 %v2150_v60  ;;  %v2045_v57 = vadd.f32 %v1917_v23, %v1789_v22  ;;  %v1792_v41 = vadd.f32 %v11506_v55, %v1652_v62  ;;  %7039 = vmatprep.subr.bf16.mxu0 %v9728_v54  ;;  %v9731_v21 = vld [vmem:[%s16612_s6 + $0x2c4] ss:$16 sps:$4 sm:$0xff]   ;;  %v10571_v25 = vld [vmem:[%s10725_s19 + $0x318] sm:$0xff] }
 0x1f7   : > { %v9965_v59 = vpop.eup %9964  ;;  %v1794_v43 = vadd.f32 %v11506_v55, %v1654_v28  ;;  %v1513_v24 = vmul.f32 %v9963_v46, %v16961_v49  ;;  %v10570_v60 = vld [vmem:[%s10725_s19 + $0x310] sm:$0xff]  ;;  %v12140_v22 = vsub.f32 %v10571_v25, %v808_v30  ;;  %7040 = vmatpush1.bf16.msra.mxu0 %v9726_v3  ;;  %v1651_v49 = vmul.f32 %v11480_v50, %v1511_v29  ;;  %v1919_v3 = vld [vmem:[%s11564_s14 + $0x180] sm:$0xff] }
 0x1f8   : > { %v12137_v35 = vsub.f32 %v10570_v60, %v808_v30  ;;  %v1365_v23 = vadd.f32 1e-05, %v1301_v36  ;;  %v1223_v62 = vadd.f32 %v1048_v16, %v1047_v8  ;;  %v2149_v46 = vpack.c.bf16 %v2045_v57, %v2043_v4  ;;  %7392 = vmatprep.subr.bf16.mxu1 %v9731_v21 }
 0x1f9   : > { %v2048_v28 = vadd.f32 %v1920_v7, %v1792_v41  ;;  %v2050_v54 = vadd.f32 %v1922_v32, %v1794_v43  ;;  %v9967_v13 = vpop.eup %9966  ;;  %v1050_v60 = vmul.f32 %v12140_v22, %v12140_v22  ;;  %v1174_v30 = vpop.xlane.xlu1 %1173  ;;  %v1653_v4 = vmul.f32 %v11480_v50, %v1513_v24  ;;  %7393 = vmatpush1.bf16.msra.mxu1 %v9729_v33  ;;  %v1921_v32 = vld [vmem:[%s11564_s14 + $0x190] sm:$0xff]  ;;  %v10572_v24 = vld [vmem:[%s10725_s19 + $0x320] sm:$0xff]  ;;  %v10573_v33 = vld [vmem:[%s10725_s19 + $0x328] sm:$0xff] }
 0x1fa   : > { %v1049_v1 = vmul.f32 %v12137_v35, %v12137_v35  ;;  %9972 = vrsqrt.f32 %v1365_v23  ;;  %v718_v36 = vpop.xlane.xlu0 %717  ;;  %1224 = vadd.xlane.f32.xlu0 %v1223_v62  ;;  %2740 = vmatmul.mubr.bf16.gmra.mxu0 %v2149_v46  ;;  %v1302_v29 = vmul.f32 0.00390625, %v1174_v30  ;;  %v1791_v7 = vadd.f32 %v11496_v34, %v1651_v49 }
 0x1fb   : > { %3093 = vmatmul.mubr.bf16.gmra.mxu1 %v2149_v46  ;;  %v809_v8 = vmul.f32 0.00390625, %v718_v36  ;;  %v2152_v16 = vpack.c.bf16 %v2050_v54, %v2048_v28  ;;  %v1793_v41 = vadd.f32 %v11496_v34, %v1653_v4  ;;  %v1516_v43 = vmul.f32 %v9965_v59, %v11616_v52  ;;  %v1924_v4 = vld [vmem:[%s11564_s14 + $0x1a8] sm:$0xff] }
 0x1fc   : > { %v1226_v57 = vadd.f32 %v1050_v60, %v1049_v1  ;;  %v1518_v21 = vmul.f32 %v9967_v13, %v11633_v53  ;;  %v1366_v25 = vadd.f32 1e-05, %v1302_v29  ;;  %v2047_v46 = vadd.f32 %v1919_v3, %v1791_v7  ;;  %v1926_v3 = vld [vmem:[%s11564_s14 + $0x1b8] sm:$0xff] }
 0x1fd   : > { %v12155_v23 = vsub.f32 %v10572_v24, %v809_v8  ;;  %v12158_v62 = vsub.f32 %v10573_v33, %v809_v8  ;;  %2749 = vmatprep.mubr.bf16.mxu0 %v2152_v16  ;;  %3102 = vmatprep.mubr.bf16.mxu1 %v2152_v16  ;;  %v721_v28 = vpop.xlane.xlu1 %720  ;;  %v2049_v1 = vadd.f32 %v1921_v32, %v1793_v41  ;;  %v10574_v32 = vld [vmem:[%s10725_s19 + $0x330] sm:$0xff] }
 0x1fe   : > { %1227 = vadd.xlane.f32.xlu1 %v1226_v57  ;;  %v1656_v52 = vmul.f32 %v11493_v12, %v1516_v43  ;;  %v1658_v53 = vmul.f32 %v11493_v12, %v1518_v21  ;;  %v1515_v54 = vmul.f32 %v9965_v59, %v11613_v27  ;;  %v9969_v49 = vpop.eup %9968  ;;  %9974 = vrsqrt.f32 %v1366_v25  ;;  %v10575_v59 = vld [vmem:[%s10725_s19 + $0x338] sm:$0xff] }
 0x1ff   : > { %16962 = vst [vmem:[#allocation35_spill] sm:$0xff] %v12155_v23  ;;  %16963 = vst [vmem:[#allocation10_spill] sm:$0xff] %v12158_v62  ;;  %v1051_v60 = vmul.f32 %v12155_v23, %v12155_v23  ;;  %v1052_v30 = vmul.f32 %v12158_v62, %v12158_v62  ;;  %v810_v36 = vmul.f32 0.00390625, %v721_v28  ;;  %v2151_v29 = vpack.c.bf16 %v2049_v1, %v2047_v46  ;;  %v1177_v41 = vpop.xlane.xlu0 %1176 }
 0x200   : > { %v1796_v8 = vadd.f32 %v11506_v55, %v1656_v52  ;;  %v1798_v16 = vadd.f32 %v11506_v55, %v1658_v53  ;;  %v1517_v7 = vmul.f32 %v9967_v13, %v11630_v11  ;;  %v1655_v21 = vmul.f32 %v11480_v50, %v1515_v54  ;;  %v1923_v53 = vld [vmem:[%s11564_s14 + $0x1a0] sm:$0xff] }
 0x201   : > { %v12173_v27 = vsub.f32 %v10574_v32, %v810_v36  ;;  %v12176_v57 = vsub.f32 %v10575_v59, %v810_v36  ;;  %v1229_v43 = vadd.f32 %v1052_v30, %v1051_v60  ;;  %v1303_v24 = vmul.f32 0.00390625, %v1177_v41  ;;  %v1925_v60 = vld [vmem:[%s11564_s14 + $0x1b0] sm:$0xff] }
 0x202   : > { %v9971_v25 = vpop.eup %9970  ;;  %v2052_v33 = vadd.f32 %v1924_v4, %v1796_v8  ;;  %v2054_v46 = vadd.f32 %v1926_v3, %v1798_v16  ;;  %v1657_v28 = vmul.f32 %v11480_v50, %v1517_v7  ;;  %2750 = vmatmul.mubr.bf16.gmra.mxu0 %v2151_v29  ;;  %v1180_v1 = vpop.xlane.xlu1 %1179  ;;  %v1795_v52 = vadd.f32 %v11496_v34, %v1655_v21 }
 0x203   : > { %16964 = vst [vmem:[#allocation12_spill] sm:$0xff] %v12173_v27  ;;  %16965 = vst [vmem:[#allocation36_spill] sm:$0xff] %v12176_v57  ;;  %v1053_v11 = vmul.f32 %v12173_v27, %v12173_v27  ;;  %v1054_v13 = vmul.f32 %v12176_v57, %v12176_v57  ;;  %3103 = vmatmul.mubr.bf16.gmra.mxu1 %v2151_v29  ;;  %v1304_v54 = vmul.f32 0.00390625, %v1180_v1  ;;  %1230 = vadd.xlane.f32.xlu0 %v1229_v43  ;;  %v724_v4 = vpop.xlane.xlu0 %723 }
 0x204   : > { %v2154_v30 = vpack.c.bf16 %v2054_v46, %v2052_v33  ;;  %v1797_v36 = vadd.f32 %v11496_v34, %v1657_v28  ;;  %v1520_v8 = vmul.f32 %v9969_v49, %v11656_v63  ;;  %v1522_v16 = vmul.f32 %v9971_v25, %v11676_v61  ;;  %v10576_v46 = vld [vmem:[%s10725_s19 + $0x340] sm:$0xff] }
 0x205   : > { %v1232_v3 = vadd.f32 %v1054_v13, %v1053_v11  ;;  %v1367_v7 = vadd.f32 1e-05, %v1303_v24  ;;  %v811_v29 = vmul.f32 0.00390625, %v724_v4  ;;  %v2051_v32 = vadd.f32 %v1923_v53, %v1795_v52  ;;  %v10577_v11 = vld [vmem:[%s10725_s19 + $0x348] sm:$0xff]  ;;  %v1930_v53 = vld [vmem:[%s11564_s14 + $0x1d8] sm:$0xff] }
 0x206   : > { %2759 = vmatprep.mubr.bf16.mxu0 %v2154_v30  ;;  %3112 = vmatprep.mubr.bf16.mxu1 %v2154_v30  ;;  %v2053_v59 = vadd.f32 %v1925_v60, %v1797_v36  ;;  %v727_v43 = vpop.xlane.xlu1 %726  ;;  %v1660_v21 = vmul.f32 %v11493_v12, %v1520_v8  ;;  %v1662_v63 = vmul.f32 %v11493_v12, %v1522_v16  ;;  %v1368_v24 = vadd.f32 1e-05, %v1304_v54  ;;  %v1928_v52 = vld [vmem:[%s11564_s14 + $0x1c8] sm:$0xff]  ;;  %v10579_v4 = vld [vmem:[%s10725_s19 + $0x358] sm:$0xff] }
 0x207   : > { %v12190_v41 = vpop.eup %9972  ;;  %1233 = vadd.xlane.f32.xlu1 %v1232_v3  ;;  %v1519_v33 = vmul.f32 %v9969_v49, %v11653_v56  ;;  %v1521_v61 = vmul.f32 %v9971_v25, %v11673_v42  ;;  %v12197_v28 = vsub.f32 %v10576_v46, %v811_v29  ;;  %v12200_v13 = vsub.f32 %v10577_v11, %v811_v29  ;;  %v10578_v25 = vld [vmem:[%s10725_s19 + $0x350] sm:$0xff]  ;;  %v1927_v11 = vld [vmem:[%s11564_s14 + $0x1c0] sm:$0xff] }
 0x208   : > { %v812_v1 = vmul.f32 0.00390625, %v727_v43  ;;  %v2153_v60 = vpack.c.bf16 %v2053_v59, %v2051_v32  ;;  %v1800_v30 = vadd.f32 %v11506_v55, %v1660_v21  ;;  %v1802_v36 = vadd.f32 %v11506_v55, %v1662_v63  ;;  %v9732_v59 = vld [vmem:[%s16612_s6 + $0xa0] ss:$16 sps:$4 sm:$0xff]   ;;  %v9734_v43 = vld [vmem:[%s16612_s6 + $0xa4] ss:$16 sps:$4 sm:$0xff]  }
 0x209   : > { %16966 = vst [vmem:[#allocation39_spill] sm:$0xff] %v12197_v28  ;;  %16967 = vst [vmem:[#allocation40_spill] sm:$0xff] %v12200_v13  ;;  %v1659_v56 = vmul.f32 %v11480_v50, %v1519_v33  ;;  %v1055_v42 = vmul.f32 %v12197_v28, %v12197_v28  ;;  %v1056_v49 = vmul.f32 %v12200_v13, %v12200_v13  ;;  %9976 = vrsqrt.f32 %v1367_v7 }
 0x20a   : > { %v12212_v54 = vsub.f32 %v10578_v25, %v812_v1  ;;  %v12215_v3 = vsub.f32 %v10579_v4, %v812_v1  ;;  %v12217_v8 = vpop.xlane.xlu0 %1182  ;;  %2760 = vmatmul.mubr.bf16.gmra.mxu0 %v2153_v60  ;;  %v2056_v16 = vadd.f32 %v1928_v52, %v1800_v30  ;;  %v2058_v29 = vadd.f32 %v1930_v53, %v1802_v36  ;;  %v1929_v1 = vld [vmem:[%s11564_s14 + $0x1d0] sm:$0xff] }
 0x20b   : > { %3113 = vmatmul.mubr.bf16.gmra.mxu1 %v2153_v60  ;;  %v1661_v32 = vmul.f32 %v11480_v50, %v1521_v61  ;;  %v9975_v21 = vpop.eup %9974  ;;  %v1235_v46 = vadd.f32 %v1056_v49, %v1055_v42  ;;  %v1799_v53 = vadd.f32 %v11496_v34, %v1659_v56  ;;  %v1524_v30 = vmul.f32 %v12190_v41, %v11693_v2  ;;  %v9735_v42 = vld [vmem:[%s16612_s6 + $0x2a0] ss:$16 sps:$4 sm:$0xff]  }
 0x20c   : > { %16968 = vst [vmem:[#allocation43_spill] sm:$0xff] %v12212_v54  ;;  %16969 = vst [vmem:[#allocation44_spill] sm:$0xff] %v12215_v3  ;;  %v1057_v63 = vmul.f32 %v12212_v54, %v12212_v54  ;;  %v1058_v33 = vmul.f32 %v12215_v3, %v12215_v3  ;;  %v12232_v61 = vpop.xlane.xlu1 %1185  ;;  %v2156_v52 = vpack.c.bf16 %v2058_v29, %v2056_v16  ;;  %7041 = vmatprep.subr.bf16.mxu0 %v9734_v43  ;;  %v10588_v54 = vld [vmem:[%s10725_s19 + $0x3a0] sm:$0xff]  ;;  %v10589_v3 = vld [vmem:[%s10725_s19 + $0x3a8] sm:$0xff] }
 0x20d   : > { %v1801_v60 = vadd.f32 %v11496_v34, %v1661_v32  ;;  %9978 = vrsqrt.f32 %v1368_v24  ;;  %1236 = vadd.xlane.f32.xlu0 %v1235_v46  ;;  %v1526_v36 = vmul.f32 %v9975_v21, %v11713_v31  ;;  %7042 = vmatpush1.bf16.msra.mxu0 %v9732_v59  ;;  %v2055_v56 = vadd.f32 %v1927_v11, %v1799_v53  ;;  %v9737_v24 = vld [vmem:[%s16612_s6 + $0x2a4] ss:$16 sps:$4 sm:$0xff]   ;;  %v10581_v46 = vld [vmem:[%s10725_s19 + $0x368] sm:$0xff]  ;;  %v1934_v53 = vld [vmem:[%s11564_s14 + $0x1f8] sm:$0xff] }
 0x20e   : > { %v1238_v7 = vadd.f32 %v1058_v33, %v1057_v63  ;;  %v730_v49 = vpop.xlane.xlu0 %729  ;;  %2769 = vmatprep.mubr.bf16.mxu0 %v2156_v52  ;;  %3122 = vmatprep.mubr.bf16.mxu1 %v2156_v52  ;;  %v1664_v2 = vmul.f32 %v11493_v12, %v1524_v30  ;;  %v1523_v59 = vmul.f32 %v12190_v41, %v11690_v45  ;;  %v10580_v63 = vld [vmem:[%s10725_s19 + $0x360] sm:$0xff]  ;;  %v1932_v52 = vld [vmem:[%s11564_s14 + $0x1e8] sm:$0xff] }
 0x20f   : > { %v2057_v25 = vadd.f32 %v1929_v1, %v1801_v60  ;;  %v813_v31 = vmul.f32 0.00390625, %v730_v49  ;;  %v1666_v4 = vmul.f32 %v11493_v12, %v1526_v36  ;;  %v1525_v43 = vmul.f32 %v9975_v21, %v11710_v40  ;;  %7394 = vmatprep.subr.bf16.mxu1 %v9737_v24  ;;  %v12266_v41 = vld [vmem:[%s16611_s5] sm:$0xf]  ;;  %v16972_v21 = vld [vmem:[#allocation49_spill] sm:$0xff]  ;;  %v16975_v30 = vld [vmem:[#allocation52_spill] sm:$0xff] }
 0x210   : > { %1239 = vadd.xlane.f32.xlu1 %v1238_v7  ;;  %v733_v16 = vpop.xlane.xlu1 %732  ;;  %v1804_v32 = vadd.f32 %v11506_v55, %v1664_v2  ;;  %7395 = vmatpush1.bf16.msra.mxu1 %v9735_v42  ;;  %v1663_v40 = vmul.f32 %v11480_v50, %v1523_v59  ;;  %v10582_v42 = vld [vmem:[%s10725_s19 + $0x370] sm:$0xff] }
 0x211   : > { %v2155_v29 = vpack.c.bf16 %v2057_v25, %v2055_v56  ;;  %v12252_v33 = vsub.f32 %v10580_v63, %v813_v31  ;;  %v12255_v11 = vsub.f32 %v10581_v46, %v813_v31  ;;  %v814_v1 = vmul.f32 0.00390625, %v733_v16  ;;  %v10583_v56 = vld [vmem:[%s10725_s19 + $0x378] sm:$0xff]  ;;  %v1931_v46 = vld [vmem:[%s11564_s14 + $0x1e0] sm:$0xff] }
 0x212   : > { %v12259_v60 = vpop.xlane.xlu0 %1188  ;;  %v1806_v45 = vadd.f32 %v11506_v55, %v1666_v4  ;;  %v2060_v2 = vadd.f32 %v1932_v52, %v1804_v32  ;;  %v1665_v31 = vmul.f32 %v11480_v50, %v1525_v43  ;;  %v1803_v4 = vadd.f32 %v11496_v34, %v1663_v40 }
 0x213   : > { %16970 = vst [vmem:[#allocation15_spill] sm:$0xff] %v12252_v33  ;;  %16971 = vst [vmem:[#allocation17_spill] sm:$0xff] %v12255_v11  ;;  %2770 = vmatmul.mubr.bf16.gmra.mxu0 %v2155_v29  ;;  %3123 = vmatmul.mubr.bf16.gmra.mxu1 %v2155_v29  ;;  %v1059_v7 = vmul.f32 %v12252_v33, %v12252_v33  ;;  %v1060_v36 = vmul.f32 %v12255_v11, %v12255_v11  ;;  %v16976_v40 = vsub.s32 2, %v16972_v21 }
 0x214   : > { %v12274_v49 = vsub.f32 %v10582_v42, %v814_v1  ;;  %v12277_v25 = vsub.f32 %v10583_v56, %v814_v1  ;;  %v2062_v24 = vadd.f32 %v1934_v53, %v1806_v45  ;;  %v1933_v42 = vld [vmem:[%s11564_s14 + $0x1f0] sm:$0xff]  ;;  %v12291_v1 = vrot.slane %v12266_v41, %v16975_v30 }
 0x215   : > { %v12285_v59 = vpop.xlane.xlu1 %1191  ;;  %v1241_v63 = vadd.f32 %v1060_v36, %v1059_v7  ;;  %v1805_v52 = vadd.f32 %v11496_v34, %v1665_v31  ;;  %v12297_v56 = vrot.slane %v12266_v41, %v16976_v40  ;;  %v2059_v36 = vadd.f32 %v1931_v46, %v1803_v4 }
 0x216   : > { %16973 = vst [vmem:[#allocation14_spill] sm:$0xff] %v12274_v49  ;;  %16974 = vst [vmem:[#allocation16_spill] sm:$0xff] %v12277_v25  ;;  %v1061_v16 = vmul.f32 %v12274_v49, %v12274_v49  ;;  %v1062_v29 = vmul.f32 %v12277_v25, %v12277_v25  ;;  %v736_v32 = vpop.xlane.xlu0 %735  ;;  %v2158_v43 = vpack.c.bf16 %v2062_v24, %v2060_v2  ;;  %v12299_v7 = vpop.eup %9976  ;;  %v1305_v2 = vmul.f32 0.00390625, %v12217_v8  ;;  %v10584_v24 = vld [vmem:[%s10725_s19 + $0x380] sm:$0xff] }
 0x217   : > { %v815_v53 = vmul.f32 0.00390625, %v736_v32  ;;  %1242 = vadd.xlane.f32.xlu0 %v1241_v63  ;;  %v2061_v30 = vadd.f32 %v1933_v42, %v1805_v52  ;;  %v10585_v63 = vld [vmem:[%s10725_s19 + $0x388] sm:$0xff]  ;;  %v1308_v27 = vmul.f32 0.00390625, %v12285_v59  ;;  %v9741_v59 = vld [vmem:[%s16612_s6 + $0x280] ss:$16 sps:$4 sm:$0xff]  }
 0x218   : > { %v1244_v45 = vadd.f32 %v1062_v29, %v1061_v16  ;;  %2779 = vmatprep.mubr.bf16.mxu0 %v2158_v43  ;;  %3132 = vmatprep.mubr.bf16.mxu1 %v2158_v43  ;;  %v2631_v49 = vpop.f32.mrf.mxu0  ;;  %v2984_v33 = vpop.f32.mrf.mxu1 }
 0x219   : > { %v12303_v31 = vsub.f32 %v10584_v24, %v815_v53  ;;  %v12306_v16 = vsub.f32 %v10585_v63, %v815_v53  ;;  %v739_v29 = vpop.xlane.xlu1 %738  ;;  %v12309_v32 = vadd.f32 %v2631_v49, %v12291_v1  ;;  %v2157_v42 = vpack.c.bf16 %v2061_v30, %v2059_v36  ;;  %v10586_v63 = vld [vmem:[%s10725_s19 + $0x390] sm:$0xff]  ;;  %v10587_v36 = vld [vmem:[%s10725_s19 + $0x398] sm:$0xff] }
 0x21a   : > { %1245 = vadd.xlane.f32.xlu1 %v1244_v45  ;;  %v12311_v43 = vpop.eup %9978  ;;  %v816_v4 = vmul.f32 0.00390625, %v739_v29  ;;  %v12313_v46 = vpop.xlane.xlu0 %1194  ;;  %v12322_v40 = vadd.f32 %v2984_v33, %v12297_v56  ;;  %v1528_v49 = vmul.f32 %v12299_v7, %v11738_v39  ;;  %v1306_v24 = vmul.f32 0.00390625, %v12232_v61 }
 0x21b   : > { %16977 = vst [vmem:[#allocation45_spill] sm:$0xff] %v12303_v31  ;;  %16978 = vst [vmem:[#allocation46_spill] sm:$0xff] %v12306_v16  ;;  %v12315_v8 = vpop.f32.mrf.mxu0  ;;  %v1063_v52 = vmul.f32 %v12303_v31, %v12303_v31  ;;  %v1064_v53 = vmul.f32 %v12306_v16, %v12306_v16  ;;  %v12324_v45 = vpop.f32.mrf.mxu1  ;;  %2780 = vmatmul.mubr.bf16.gmra.mxu0 %v2157_v42  ;;  %3133 = vmatmul.mubr.bf16.gmra.mxu1 %v2157_v42  ;;  %v3559_v31 = vmul.f32 0.70710677, %v12309_v32 }
 0x21c   : > { %v12330_v30 = vsub.f32 %v10586_v63, %v816_v4  ;;  %v12333_v29 = vsub.f32 %v10587_v36, %v816_v4  ;;  %v1369_v16 = vadd.f32 1e-05, %v1305_v2  ;;  %v1530_v39 = vmul.f32 %v12311_v43, %v11751_v38 }
 0x21d   : > { %v1247_v33 = vadd.f32 %v1064_v53, %v1063_v52  ;;  %v2635_v25 = vpop.f32.mrf.mxu0  ;;  %v2988_v11 = vpop.f32.mrf.mxu1  ;;  %v3561_v36 = vmul.f32 0.70710677, %v12322_v40  ;;  %v1668_v52 = vmul.f32 %v11493_v12, %v1528_v49  ;;  %v1370_v53 = vadd.f32 1e-05, %v1306_v24 }
 0x21e   : > { %16979 = vst [vmem:[#allocation47_spill] sm:$0xff] %v12330_v30  ;;  %16980 = vst [vmem:[#allocation48_spill] sm:$0xff] %v12333_v29  ;;  %v1065_v61 = vmul.f32 %v12330_v30, %v12330_v30  ;;  %v1066_v4 = vmul.f32 %v12333_v29, %v12333_v29  ;;  %v12342_v63 = vpop.xlane.xlu1 %1197  ;;  %v742_v42 = vpop.xlane.xlu0 %741  ;;  %9980 = verf.f32 %v3559_v31  ;;  %v12347_v38 = vadd.f32 %v2635_v25, %v12291_v1 }
 0x21f   : > { %v817_v2 = vmul.f32 0.00390625, %v742_v42  ;;  %1248 = vadd.xlane.f32.xlu0 %v1247_v33  ;;  %9982 = vrsqrt.f32 %v1369_v16  ;;  %v1670_v30 = vmul.f32 %v11493_v12, %v1530_v39  ;;  %v12350_v29 = vpop.f32.mrf.mxu0  ;;  %v12359_v49 = vadd.f32 %v2988_v11, %v12297_v56  ;;  %v12361_v16 = vpop.f32.mrf.mxu1  ;;  %v1936_v39 = vld [vmem:[%s11564_s14 + $0x208] sm:$0xff] }
 0x220   : > { %v1250_v31 = vadd.f32 %v1066_v4, %v1065_v61  ;;  %9984 = verf.f32 %v3561_v36  ;;  %v1808_v25 = vadd.f32 %v11506_v55, %v1668_v52  ;;  %v3563_v24 = vmul.f32 0.70710677, %v12347_v38  ;;  %v9740_v4 = vld [vmem:[%s16612_s6 + $0x84] ss:$16 sps:$4 sm:$0xff]  }
 0x221   : > { %v12353_v28 = vsub.f32 %v10588_v54, %v817_v2  ;;  %v12356_v42 = vsub.f32 %v10589_v3, %v817_v2  ;;  %9986 = vrsqrt.f32 %v1370_v53  ;;  %v1938_v54 = vld [vmem:[%s11564_s14 + $0x218] sm:$0xff]  ;;  %v9738_v3 = vld [vmem:[%s16612_s6 + $0x80] ss:$16 sps:$4 sm:$0xff]   ;;  %v3565_v11 = vmul.f32 0.70710677, %v12359_v49  ;;  %7043 = vmatprep.subr.bf16.mxu0 %v9740_v4 }
 0x222   : > { %v745_v33 = vpop.xlane.xlu1 %744  ;;  %1251 = vadd.xlane.f32.xlu1 %v1250_v31  ;;  %v1810_v61 = vadd.f32 %v11506_v55, %v1670_v30  ;;  %9988 = verf.f32 %v3563_v24  ;;  %v1527_v53 = vmul.f32 %v12299_v7, %v11731_v14  ;;  %v1307_v30 = vmul.f32 0.00390625, %v12259_v60  ;;  %7044 = vmatpush1.bf16.msra.mxu0 %v9738_v3  ;;  %v10590_v24 = vld [vmem:[%s10725_s19 + $0x3b0] sm:$0xff]  ;;  %v10591_v14 = vld [vmem:[%s10725_s19 + $0x3b8] sm:$0xff] }
 0x223   : > { %16981 = vst [vmem:[#allocation19_spill] sm:$0xff] %v12353_v28  ;;  %16982 = vst [vmem:[#allocation21_spill] sm:$0xff] %v12356_v42  ;;  %v818_v2 = vmul.f32 0.00390625, %v745_v33  ;;  %v1067_v36 = vmul.f32 %v12353_v28, %v12353_v28  ;;  %v1068_v52 = vmul.f32 %v12356_v42, %v12356_v42  ;;  %9990 = verf.f32 %v3565_v11  ;;  %v1935_v11 = vld [vmem:[%s11564_s14 + $0x200] sm:$0xff] }
 0x224   : > { %v2641_v33 = vpop.f32.mrf.mxu0  ;;  %v2994_v31 = vpop.f32.mrf.mxu1  ;;  %v2064_v13 = vadd.f32 %v1936_v39, %v1808_v25  ;;  %v2066_v23 = vadd.f32 %v1938_v54, %v1810_v61  ;;  %v1529_v28 = vmul.f32 %v12311_v43, %v11748_v9  ;;  %v1667_v42 = vmul.f32 %v11480_v50, %v1527_v53  ;;  %v9743_v9 = vld [vmem:[%s16612_s6 + $0x284] ss:$16 sps:$4 sm:$0xff]  }
 0x225   : > { %v12387_v57 = vsub.f32 %v10590_v24, %v818_v2  ;;  %v12390_v7 = vsub.f32 %v10591_v14, %v818_v2  ;;  %v12393_v25 = vadd.f32 %v2641_v33, %v12291_v1  ;;  %v12404_v54 = vadd.f32 %v2994_v31, %v12297_v56  ;;  %v1937_v61 = vld [vmem:[%s11564_s14 + $0x210] sm:$0xff]  ;;  %7396 = vmatprep.subr.bf16.mxu1 %v9743_v9 }
 0x226   : > { %v2160_v60 = vpack.c.bf16 %v2066_v23, %v2064_v13  ;;  %v1669_v43 = vmul.f32 %v11480_v50, %v1529_v28  ;;  %v1807_v39 = vadd.f32 %v11496_v34, %v1667_v42  ;;  %v1253_v3 = vadd.f32 %v1068_v52, %v1067_v36  ;;  %v12406_v23 = vpop.f32.mrf.mxu0  ;;  %v12408_v13 = vpop.f32.mrf.mxu1  ;;  %7397 = vmatpush1.bf16.msra.mxu1 %v9741_v59 }
 0x227   : > { %16983 = vst [vmem:[#allocation18_spill] sm:$0xff] %v12387_v57  ;;  %16984 = vst [vmem:[#allocation20_spill] sm:$0xff] %v12390_v7  ;;  %v1371_v2 = vadd.f32 1e-05, %v1307_v30  ;;  %v1372_v4 = vadd.f32 1e-05, %v1308_v27  ;;  %v1069_v42 = vmul.f32 %v12387_v57, %v12387_v57  ;;  %v1070_v36 = vmul.f32 %v12390_v7, %v12390_v7 }
 0x228   : > { %2789 = vmatprep.mubr.bf16.mxu0 %v2160_v60  ;;  %3142 = vmatprep.mubr.bf16.mxu1 %v2160_v60  ;;  %v1809_v53 = vadd.f32 %v11496_v34, %v1669_v43  ;;  %v3567_v52 = vmul.f32 0.70710677, %v12393_v25  ;;  %v2063_v31 = vadd.f32 %v1935_v11, %v1807_v39  ;;  %v3569_v24 = vmul.f32 0.70710677, %v12404_v54  ;;  %v2645_v27 = vpop.f32.mrf.mxu0  ;;  %v2998_v14 = vpop.f32.mrf.mxu1 }
 0x229   : > { %1254 = vadd.xlane.f32.xlu0 %v1253_v3  ;;  %9992 = vrsqrt.f32 %v1371_v2  ;;  %v12420_v57 = vadd.f32 %v2645_v27, %v12291_v1  ;;  %v12423_v7 = vadd.f32 %v2998_v14, %v12297_v56  ;;  %v1256_v59 = vadd.f32 %v1070_v36, %v1069_v42 }
 0x22a   : > { %v2065_v30 = vadd.f32 %v1937_v61, %v1809_v53  ;;  %9994 = vrsqrt.f32 %v1372_v4  ;;  %v3303_v39 = vmul.f32 0.5, %v12309_v32  ;;  %v3305_v11 = vmul.f32 0.5, %v12322_v40 }
 0x22b   : > { %v9981_v28 = vpop.eup %9980  ;;  %9996 = verf.f32 %v3567_v52  ;;  %v3307_v53 = vmul.f32 0.5, %v12347_v38  ;;  %v3573_v52 = vmul.f32 0.70710677, %v12423_v7  ;;  %1257 = vadd.xlane.f32.xlu1 %v1256_v59  ;;  %v3309_v40 = vmul.f32 0.5, %v12359_v49  ;;  %v1940_v49 = vld [vmem:[%s11564_s14 + $0x228] sm:$0xff] }
 0x22c   : > { %v9983_v33 = vpop.eup %9982  ;;  %v4071_v9 = vadd.f32 1.0, %v9981_v28  ;;  %v2159_v43 = vpack.c.bf16 %v2065_v30, %v2063_v31  ;;  %9998 = verf.f32 %v3569_v24  ;;  %v3571_v28 = vmul.f32 0.70710677, %v12420_v57  ;;  %v16985_v24 = vld [vmem:[#allocation3_spill] sm:$0xff] }
 0x22d   : > { %v9985_v60 = vpop.eup %9984  ;;  %v1532_v2 = vmul.f32 %v9983_v33, %v11785_v5  ;;  %v1531_v38 = vmul.f32 %v9983_v33, %v16985_v24 }
 0x22e   : > { %v9987_v3 = vpop.eup %9986  ;;  %2790 = vmatmul.mubr.bf16.gmra.mxu0 %v2159_v43  ;;  %3143 = vmatmul.mubr.bf16.gmra.mxu1 %v2159_v43  ;;  %v4073_v4 = vadd.f32 1.0, %v9985_v60  ;;  %v4327_v5 = vmul.f32 %v4071_v9, %v3303_v39  ;;  %10000 = verf.f32 %v3571_v28 }
 0x22f   : > { %v9989_v61 = vpop.eup %9988  ;;  %v1534_v36 = vmul.f32 %v9987_v3, %v11797_v44  ;;  %v1672_v31 = vmul.f32 %v11493_v12, %v1532_v2  ;;  %10002 = verf.f32 %v3573_v52  ;;  %v1533_v44 = vmul.f32 %v9987_v3, %v11788_v6  ;;  %v9744_v3 = vld [vmem:[%s16612_s6 + $0x60] ss:$16 sps:$4 sm:$0xff]  }
 0x230   : > { %v9991_v42 = vpop.eup %9990  ;;  %v4075_v32 = vadd.f32 1.0, %v9989_v61  ;;  %v4329_v43 = vmul.f32 %v4073_v4, %v3305_v11  ;;  %v1942_v61 = vld [vmem:[%s11564_s14 + $0x238] sm:$0xff]  ;;  %v1671_v33 = vmul.f32 %v11480_v50, %v1531_v38  ;;  %v1309_v38 = vmul.f32 0.00390625, %v12313_v46  ;;  %v9750_v46 = vld [vmem:[%s16612_s6 + $0x40] ss:$16 sps:$4 sm:$0xff]  }
 0x231   : > { %v4077_v30 = vadd.f32 1.0, %v9991_v42  ;;  %v1674_v14 = vmul.f32 %v11493_v12, %v1534_v36  ;;  %v1812_v60 = vadd.f32 %v11506_v55, %v1672_v31  ;;  %v1939_v42 = vld [vmem:[%s11564_s14 + $0x220] sm:$0xff] }
 0x232   : > { %v4331_v27 = vmul.f32 %v4075_v32, %v3307_v53  ;;  %v1673_v53 = vmul.f32 %v11480_v50, %v1533_v44  ;;  %v1941_v32 = vld [vmem:[%s11564_s14 + $0x230] sm:$0xff]  ;;  %v1811_v11 = vadd.f32 %v11496_v34, %v1671_v33 }
 0x233   : > { %v4333_v59 = vmul.f32 %v4077_v30, %v3309_v40  ;;  %v1814_v9 = vadd.f32 %v11506_v55, %v1674_v14  ;;  %v2068_v28 = vadd.f32 %v1940_v49, %v1812_v60  ;;  %v9746_v30 = vld [vmem:[%s16612_s6 + $0x64] ss:$16 sps:$4 sm:$0xff]  }
 0x234   : > { %v12440_v2 = vpack.c.bf16 %v4331_v27, %v4327_v5  ;;  %v1813_v4 = vadd.f32 %v11496_v34, %v1673_v53  ;;  %v2067_v31 = vadd.f32 %v1939_v42, %v1811_v11  ;;  %v9747_v27 = vld [vmem:[%s16612_s6 + $0x260] ss:$16 sps:$4 sm:$0xff]   ;;  %v9749_v14 = vld [vmem:[%s16612_s6 + $0x264] ss:$16 sps:$4 sm:$0xff]   ;;  %7045 = vmatprep.subr.bf16.mxu0 %v9746_v30  ;;  %v3311_v42 = vmul.f32 0.5, %v12393_v25  ;;  %v16988_v30 = vld [vmem:[#allocation4_spill] sm:$0xff] }
 0x235   : > { %v12443_v39 = vpack.c.bf16 %v4333_v59, %v4329_v43  ;;  %v2070_v52 = vadd.f32 %v1942_v61, %v1814_v9  ;;  %v1310_v43 = vmul.f32 0.00390625, %v12342_v63  ;;  %v9752_v49 = vld [vmem:[%s16612_s6 + $0x44] ss:$16 sps:$4 sm:$0xff]   ;;  %7046 = vmatpush1.bf16.msra.mxu0 %v9744_v3  ;;  %7398 = vmatprep.subr.bf16.mxu1 %v9749_v14  ;;  %v1373_v9 = vadd.f32 1e-05, %v1309_v38 }
 0x236   : > { %16986 = vst [vmem:[#allocation23_spill] sm:$0xff] %v12440_v2  ;;  %v9993_v40 = vpop.eup %9992  ;;  %v2069_v5 = vadd.f32 %v1941_v32, %v1813_v4  ;;  %v9755_v44 = vld [vmem:[%s16612_s6 + $0x244] ss:$16 sps:$4 sm:$0xff]   ;;  %7399 = vmatpush1.bf16.msra.mxu1 %v9747_v27  ;;  %7047 = vmatprep.subr.bf16.mxu0 %v9752_v49  ;;  %v9753_v53 = vld [vmem:[%s16612_s6 + $0x240] ss:$16 sps:$4 sm:$0xff]   ;;  %v3315_v32 = vmul.f32 0.5, %v12420_v57 }
 0x237   : > { %16987 = vst [vmem:[#allocation26_spill] sm:$0xff] %v12443_v39  ;;  %v2162_v6 = vpack.c.bf16 %v2070_v52, %v2068_v28  ;;  %v9995_v36 = vpop.eup %9994  ;;  %v1374_v52 = vadd.f32 1e-05, %v1310_v43  ;;  %7400 = vmatprep.subr.bf16.mxu1 %v9755_v44  ;;  %v3313_v4 = vmul.f32 0.5, %v12404_v54  ;;  %10004 = vrsqrt.f32 %v1373_v9  ;;  %v9756_v57 = vld [vmem:[%s16612_s6 + $0x20] ss:$16 sps:$4 sm:$0xff]  }
 0x238   : > { %v9997_v24 = vpop.eup %9996  ;;  %v2161_v59 = vpack.c.bf16 %v2069_v5, %v2067_v31  ;;  %v1538_v38 = vmul.f32 %v9995_v36, %v11828_v47  ;;  %v1944_v43 = vld [vmem:[%s11564_s14 + $0x248] sm:$0xff]  ;;  %v16991_v49 = vld [vmem:[#allocation5_spill] sm:$0xff] }
 0x239   : > { %2799 = vmatprep.mubr.bf16.mxu0 %v2162_v6  ;;  %3152 = vmatprep.mubr.bf16.mxu1 %v2162_v6  ;;  %v9999_v60 = vpop.eup %9998  ;;  %v4079_v61 = vadd.f32 1.0, %v9997_v24  ;;  %v3317_v6 = vmul.f32 0.5, %v12423_v7  ;;  %v1536_v24 = vmul.f32 %v9993_v40, %v16988_v30  ;;  %10006 = vrsqrt.f32 %v1374_v52  ;;  %v9759_v52 = vld [vmem:[%s16612_s6 + $0x220] ss:$16 sps:$4 sm:$0xff]  }
 0x23a   : > { %2800 = vmatmul.mubr.bf16.gmra.mxu0 %v2161_v59  ;;  %3153 = vmatmul.mubr.bf16.gmra.mxu1 %v2161_v59  ;;  %v4081_v33 = vadd.f32 1.0, %v9999_v60  ;;  %v1678_v14 = vmul.f32 %v11493_v12, %v1538_v38  ;;  %v9758_v60 = vld [vmem:[%s16612_s6 + $0x24] ss:$16 sps:$4 sm:$0xff]   ;;  %v1946_v59 = vld [vmem:[%s11564_s14 + $0x258] sm:$0xff]  ;;  %v9762_v30 = vld [vmem:[%s16612_s6] ss:$16 sps:$4 sm:$0xff]  }
 0x23b   : > { %v10001_v63 = vpop.eup %10000  ;;  %7048 = vmatpush1.bf16.msra.mxu0 %v9750_v46  ;;  %v4335_v31 = vmul.f32 %v4079_v61, %v3311_v42  ;;  %7401 = vmatpush1.bf16.msra.mxu1 %v9753_v53  ;;  %v1676_v54 = vmul.f32 %v11493_v12, %v1536_v24  ;;  %v1535_v46 = vmul.f32 %v9993_v40, %v16991_v49  ;;  %v9761_v40 = vld [vmem:[%s16612_s6 + $0x224] ss:$16 sps:$4 sm:$0xff]  }
 0x23c   : > { %v10003_v28 = vpop.eup %10002  ;;  %v4083_v11 = vadd.f32 1.0, %v10001_v63  ;;  %v4337_v25 = vmul.f32 %v4081_v33, %v3313_v4  ;;  %v1818_v44 = vadd.f32 %v11506_v55, %v1678_v14  ;;  %v1537_v63 = vmul.f32 %v9995_v36, %v11825_v0  ;;  %7049 = vmatprep.subr.bf16.mxu0 %v9758_v60  ;;  %v1945_v0 = vld [vmem:[%s11564_s14 + $0x250] sm:$0xff]  ;;  %7402 = vmatprep.subr.bf16.mxu1 %v9761_v40  ;;  %v1950_v60 = vld [vmem:[%s11564_s14 + $0x278] sm:$0xff] }
 0x23d   : > { %v4085_v3 = vadd.f32 1.0, %v10003_v28  ;;  %v1816_v61 = vadd.f32 %v11506_v55, %v1676_v54  ;;  %v1675_v9 = vmul.f32 %v11480_v50, %v1535_v46  ;;  %v9767_v54 = vld [vmem:[%s16612_s6 + $0x204] ss:$16 sps:$4 sm:$0xff]  }
 0x23e   : > { %v4339_v5 = vmul.f32 %v4083_v11, %v3315_v32  ;;  %v2074_v53 = vadd.f32 %v1946_v59, %v1818_v44  ;;  %v1677_v28 = vmul.f32 %v11480_v50, %v1537_v63  ;;  %v1943_v32 = vld [vmem:[%s11564_s14 + $0x240] sm:$0xff] }
 0x23f   : > { %v4341_v27 = vmul.f32 %v4085_v3, %v3317_v6  ;;  %7050 = vmatpush1.bf16.msra.mxu0 %v9756_v57  ;;  %v2072_v33 = vadd.f32 %v1944_v43, %v1816_v61  ;;  %v1815_v42 = vadd.f32 %v11496_v34, %v1675_v9  ;;  %7403 = vmatpush1.bf16.msra.mxu1 %v9759_v52  ;;  %v9765_v57 = vld [vmem:[%s16612_s6 + $0x200] ss:$16 sps:$4 sm:$0xff]   ;;  %v16992_v43 = vld [vmem:[#allocation6_spill] sm:$0xff] }
 0x240   : > { %v12486_v7 = vpack.c.bf16 %v4339_v5, %v4335_v31  ;;  %v1817_v11 = vadd.f32 %v11496_v34, %v1677_v28  ;;  %7404 = vmatprep.subr.bf16.mxu1 %v9767_v54 }
 0x241   : > { %v12493_v47 = vpack.c.bf16 %v4341_v27, %v4337_v25  ;;  %v2164_v36 = vpack.c.bf16 %v2074_v53, %v2072_v33  ;;  %v2071_v4 = vadd.f32 %v1943_v32, %v1815_v42  ;;  %v9764_v25 = vld [vmem:[%s16612_s6 + $0x4] ss:$16 sps:$4 sm:$0xff]  }
 0x242   : > { %16989 = vst [vmem:[#allocation22_spill] sm:$0xff] %v12486_v7  ;;  %v2073_v6 = vadd.f32 %v1945_v0, %v1817_v11  ;;  %7051 = vmatprep.subr.bf16.mxu0 %v9764_v25  ;;  %v1947_v33 = vld [vmem:[%s11564_s14 + $0x260] sm:$0xff]  ;;  %v1949_v53 = vld [vmem:[%s11564_s14 + $0x270] sm:$0xff] }
 0x243   : > { %16990 = vst [vmem:[#allocation25_spill] sm:$0xff] %v12493_v47  ;;  %2809 = vmatprep.mubr.bf16.mxu0 %v2164_v36  ;;  %3162 = vmatprep.mubr.bf16.mxu1 %v2164_v36  ;;  %v9768_v0 = vld [vmem:[%s16612_s6 + $0x1e0] ss:$16 sps:$4 sm:$0xff]   ;;  %v9770_v36 = vld [vmem:[%s16612_s6 + $0x1e4] ss:$16 sps:$4 sm:$0xff]  }
 0x244   : > { %v2163_v3 = vpack.c.bf16 %v2073_v6, %v2071_v4  ;;  %v10005_v31 = vpop.eup %10004  ;;  %7052 = vmatpush1.bf16.msra.mxu0 %v9762_v30  ;;  %7405 = vmatpush1.bf16.msra.mxu1 %v9765_v57  ;;  %v9771_v11 = vld [vmem:[%s16612_s6 + $0x3e0] ss:$16 sps:$4 sm:$0xff]   ;;  %v9773_v4 = vld [vmem:[%s16612_s6 + $0x3e4] ss:$16 sps:$4 sm:$0xff]   ;;  %v16708_v6 = vsub.s32 3, %v16972_v21  ;;  %v2647_v30 = vpop.f32.mrf.mxu0 }
 0x245   : > { %v1540_v24 = vmul.f32 %v10005_v31, %v11867_v48  ;;  %v1539_v27 = vmul.f32 %v10005_v31, %v11859_v15  ;;  %7053 = vmatprep.subr.bf16.mxu0 %v9770_v36  ;;  %7406 = vmatprep.subr.bf16.mxu1 %v9773_v4  ;;  %v9776_v25 = vld [vmem:[%s16612_s6 + $0x1c4] ss:$16 sps:$4 sm:$0xff]  }
 0x246   : > { %2810 = vmatmul.mubr.bf16.gmra.mxu0 %v2163_v3  ;;  %3163 = vmatmul.mubr.bf16.gmra.mxu1 %v2163_v3  ;;  %v10007_v5 = vpop.eup %10006  ;;  %v16993_v3 = vld [vmem:[#allocation53_spill] sm:$0xff]  ;;  %v2651_v54 = vpop.f32.mrf.mxu0 }
 0x247   : > { %v1542_v38 = vmul.f32 %v10007_v5, %v11880_v18  ;;  %v1680_v14 = vmul.f32 %v11493_v12, %v1540_v24  ;;  %v1948_v18 = vld [vmem:[%s11564_s14 + $0x268] sm:$0xff]  ;;  %v1541_v59 = vmul.f32 %v10007_v5, %v16992_v43  ;;  %v1679_v15 = vmul.f32 %v11480_v50, %v1539_v27  ;;  %v9774_v24 = vld [vmem:[%s16612_s6 + $0x1c0] ss:$16 sps:$4 sm:$0xff]  }
 0x248   : > { %7054 = vmatpush2.bf16.msra.mxu0 %v9768_v0  ;;  %7407 = vmatpush2.bf16.msra.mxu1 %v9771_v11  ;;  %v12556_v31 = vrot.slane %v12266_v41, %v16993_v3  ;;  %v12561_v5 = vrot.slane %v12266_v41, %v16708_v6 }
 0x249   : > { %v1682_v48 = vmul.f32 %v11493_v12, %v1542_v38  ;;  %v1820_v49 = vadd.f32 %v11506_v55, %v1680_v14  ;;  %v1681_v61 = vmul.f32 %v11480_v50, %v1541_v59  ;;  %v1819_v44 = vadd.f32 %v11496_v34, %v1679_v15  ;;  %v3000_v38 = vpop.f32.mrf.mxu1  ;;  %7055 = vmatprep.subr.bf16.mxu0 %v9776_v25  ;;  %v2653_v59 = vpop.f32.mrf.mxu0 }
 0x24a   : > { %v2634_v27 = vadd.f32 %v12315_v8, %v12556_v31  ;;  %v2987_v57 = vadd.f32 %v12324_v45, %v12561_v5  ;;  %v2638_v41 = vadd.f32 %v12350_v29, %v12556_v31  ;;  %v9779_v8 = vld [vmem:[%s16612_s6 + $0x3c4] ss:$16 sps:$4 sm:$0xff]   ;;  %v2644_v43 = vadd.f32 %v12406_v23, %v12556_v31 }
 0x24b   : > { %v1822_v46 = vadd.f32 %v11506_v55, %v1682_v48  ;;  %v2076_v63 = vadd.f32 %v1948_v18, %v1820_v49  ;;  %v1821_v28 = vadd.f32 %v11496_v34, %v1681_v61  ;;  %v2075_v40 = vadd.f32 %v1947_v33, %v1819_v44  ;;  %v3004_v14 = vpop.f32.mrf.mxu1  ;;  %v9777_v48 = vld [vmem:[%s16612_s6 + $0x3c0] ss:$16 sps:$4 sm:$0xff]   ;;  %7408 = vmatprep.subr.bf16.mxu1 %v9779_v8  ;;  %v2655_v44 = vpop.f32.mrf.mxu0 }
 0x24c   : > { %7056 = vmatpush2.bf16.msra.mxu0 %v9774_v24  ;;  %v3560_v18 = vmul.f32 0.70710677, %v2634_v27  ;;  %v3562_v45 = vmul.f32 0.70710677, %v2987_v57  ;;  %v3564_v29 = vmul.f32 0.70710677, %v2638_v41  ;;  %v2997_v15 = vadd.f32 %v12408_v13, %v12561_v5  ;;  %7409 = vmatpush2.bf16.msra.mxu1 %v9777_v48 }
 0x24d   : > { %v2078_v9 = vadd.f32 %v1950_v60, %v1822_v46  ;;  %v2077_v42 = vadd.f32 %v1949_v53, %v1821_v28  ;;  %v2991_v60 = vadd.f32 %v12361_v16, %v12561_v5  ;;  %v3006_v49 = vpop.f32.mrf.mxu1  ;;  %v3568_v16 = vmul.f32 0.70710677, %v2644_v43  ;;  %v2657_v53 = vpop.f32.mrf.mxu0 }
 0x24e   : > { %10008 = verf.f32 %v3560_v18  ;;  %v2648_v61 = vadd.f32 %v2647_v30, %v12556_v31  ;;  %v3001_v23 = vadd.f32 %v3000_v38, %v12561_v5  ;;  %v2652_v13 = vadd.f32 %v2651_v54, %v12291_v1 }
 0x24f   : > { %v2166_v52 = vpack.c.bf16 %v2078_v9, %v2076_v63  ;;  %v2165_v32 = vpack.c.bf16 %v2077_v42, %v2075_v40  ;;  %v3566_v46 = vmul.f32 0.70710677, %v2991_v60  ;;  %10010 = verf.f32 %v3562_v45  ;;  %v3008_v9 = vpop.f32.mrf.mxu1  ;;  %v12592_v42 = vpop.f32.mrf.mxu0 }
 0x250   : > { %10012 = verf.f32 %v3564_v29  ;;  %v3570_v63 = vmul.f32 0.70710677, %v2997_v15  ;;  %v3572_v33 = vmul.f32 0.70710677, %v2648_v61  ;;  %v3005_v36 = vadd.f32 %v3004_v14, %v12297_v56 }
 0x251   : > { %2819 = vmatprep.mubr.bf16.mxu0 %v2166_v52  ;;  %3172 = vmatprep.mubr.bf16.mxu1 %v2166_v52  ;;  %10014 = verf.f32 %v3566_v46  ;;  %v12590_v28 = vpop.f32.mrf.mxu1  ;;  %v3574_v52 = vmul.f32 0.70710677, %v3001_v23  ;;  %v12597_v24 = vpop.f32.mrf.mxu0  ;;  %v2654_v29 = vadd.f32 %v2653_v59, %v12556_v31  ;;  %v3304_v46 = vmul.f32 0.5, %v2634_v27 }
 0x252   : > { %2820 = vmatmul.mubr.bf16.gmra.mxu0 %v2165_v32  ;;  %3173 = vmatmul.mubr.bf16.gmra.mxu1 %v2165_v32  ;;  %10016 = verf.f32 %v3568_v16  ;;  %v3575_v32 = vmul.f32 0.70710677, %v2652_v13  ;;  %v3577_v48 = vmul.f32 0.70710677, %v3005_v36  ;;  %v3306_v16 = vmul.f32 0.5, %v2987_v57 }
 0x253   : > { %10018 = verf.f32 %v3570_v63  ;;  %v12594_v0 = vpop.f32.mrf.mxu1  ;;  %v3308_v63 = vmul.f32 0.5, %v2638_v41  ;;  %v3007_v14 = vadd.f32 %v3006_v49, %v12561_v5  ;;  %v3312_v21 = vmul.f32 0.5, %v2644_v43 }
 0x254   : > { %10020 = verf.f32 %v3572_v33  ;;  %v12603_v33 = vpop.f32.mrf.mxu0  ;;  %v2656_v3 = vadd.f32 %v2655_v44, %v12291_v1  ;;  %v3314_v59 = vmul.f32 0.5, %v2997_v15  ;;  %v3009_v27 = vadd.f32 %v3008_v9, %v12297_v56 }
 0x255   : > { %10022 = verf.f32 %v3574_v52  ;;  %v12599_v38 = vpop.f32.mrf.mxu1  ;;  %v3576_v49 = vmul.f32 0.70710677, %v2654_v29  ;;  %v3578_v39 = vmul.f32 0.70710677, %v3007_v14 }
 0x256   : > { %10024 = verf.f32 %v3575_v32  ;;  %v3310_v32 = vmul.f32 0.5, %v2991_v60  ;;  %v2658_v60 = vadd.f32 %v2657_v53, %v12556_v31  ;;  %v12618_v2 = vpop.f32.mrf.mxu0  ;;  %v3579_v9 = vmul.f32 0.70710677, %v2656_v3 }
 0x257   : > { %v12606_v47 = vpop.f32.mrf.mxu1  ;;  %10026 = verf.f32 %v3577_v48  ;;  %v12626_v53 = vmul.f32 0.5, %v2652_v13 }
 0x258   : > { %10028 = verf.f32 %v3576_v49 }
 0x259   : > { %10030 = verf.f32 %v3578_v39 }
 0x25a   : > { %10032 = verf.f32 %v3579_v9  ;;  %v9783_v9 = vld [vmem:[%s16612_s6 + $0x3a0] ss:$16 sps:$4 sm:$0xff]  }
 0x25b   : > { %v10009_v11 = vpop.eup %10008 }
 0x25c   : > { %v10011_v30 = vpop.eup %10010  ;;  %v4072_v8 = vadd.f32 1.0, %v10009_v11 }
 0x25d   : > { %v10013_v54 = vpop.eup %10012  ;;  %v4074_v45 = vadd.f32 1.0, %v10011_v30 }
 0x25e   : > { %v10015_v18 = vpop.eup %10014  ;;  %v4076_v6 = vadd.f32 1.0, %v10013_v54  ;;  %v12611_v57 = vmul.f32 %v4072_v8, %v3304_v46  ;;  %v3316_v54 = vmul.f32 0.5, %v2648_v61  ;;  %v12622_v8 = vpop.f32.mrf.mxu1  ;;  %v12628_v61 = vmul.f32 0.5, %v3005_v36 }
 0x25f   : > { %v10017_v52 = vpop.eup %10016  ;;  %v4078_v30 = vadd.f32 1.0, %v10015_v18  ;;  %v12613_v41 = vmul.f32 %v4074_v45, %v3306_v16  ;;  %v3318_v16 = vmul.f32 0.5, %v3001_v23  ;;  %v9780_v23 = vld [vmem:[%s16612_s6 + $0x1a0] ss:$16 sps:$4 sm:$0xff]  }
 0x260   : > { %v10019_v11 = vpop.eup %10018  ;;  %16994 = vst [vmem:[#allocation30_spill] sm:$0xff] %v12611_v57  ;;  %v4080_v44 = vadd.f32 1.0, %v10017_v52  ;;  %v12620_v15 = vmul.f32 %v4076_v6, %v3308_v63  ;;  %v3580_v57 = vmul.f32 0.70710677, %v2658_v60  ;;  %v3011_v6 = vadd.f32 %v12590_v28, %v12561_v5  ;;  %v12641_v36 = vpop.f32.mrf.mxu1 }
 0x261   : > { %v1201_v40 = vpop.xlane.xlu0 %1200  ;;  %16995 = vst [vmem:[#allocation34_spill] sm:$0xff] %v12613_v41  ;;  %v10021_v18 = vpop.eup %10020  ;;  %v4082_v48 = vadd.f32 1.0, %v10019_v11  ;;  %v12624_v46 = vmul.f32 %v4078_v30, %v3310_v32  ;;  %v3581_v41 = vmul.f32 0.70710677, %v3009_v27 }
 0x262   : > { %v1311_v62 = vmul.f32 0.00390625, %v1201_v40  ;;  %16996 = vst [vmem:[#allocation29_spill] sm:$0xff] %v12620_v15  ;;  %v10023_v52 = vpop.eup %10022  ;;  %v12632_v63 = vmul.f32 %v4080_v44, %v3312_v21  ;;  %v4084_v11 = vadd.f32 1.0, %v10021_v18  ;;  %v9782_v21 = vld [vmem:[%s16612_s6 + $0x1a4] ss:$16 sps:$4 sm:$0xff]   ;;  %v12646_v18 = vmul.f32 0.5, %v2654_v29 }
 0x263   : > { %16997 = vst [vmem:[#allocation33_spill] sm:$0xff] %v12624_v46  ;;  %v12639_v13 = vmul.f32 %v4082_v48, %v3314_v59  ;;  %v10025_v39 = vpop.eup %10024  ;;  %v4086_v44 = vadd.f32 1.0, %v10023_v52  ;;  %10034 = verf.f32 %v3581_v41  ;;  %v12650_v59 = vmul.f32 0.5, %v3007_v14  ;;  %7057 = vmatprep.subr.bf16.mxu0 %v9782_v21  ;;  %v12670_v52 = vpop.f32.mrf.mxu1 }
 0x264   : > { %16998 = vst [vmem:[#allocation38_spill] sm:$0xff] %v12632_v63  ;;  %v1375_v32 = vadd.f32 1e-05, %v1311_v62  ;;  %v2662_v62 = vadd.f32 %v12592_v42, %v12291_v1  ;;  %v12652_v48 = vmul.f32 0.5, %v2656_v3  ;;  %10036 = verf.f32 %v3580_v57  ;;  %7058 = vmatpush2.bf16.msra.mxu0 %v9780_v23  ;;  %v9785_v3 = vld [vmem:[%s16612_s6 + $0x3a4] ss:$16 sps:$4 sm:$0xff]  }
 0x265   : > { %v1204_v4 = vpop.xlane.xlu1 %1203  ;;  %16999 = vst [vmem:[#allocation42_spill] sm:$0xff] %v12639_v13  ;;  %v12659_v29 = vmul.f32 0.5, %v3009_v27  ;;  %v12661_v41 = vmul.f32 0.5, %v2658_v60  ;;  %v4087_v14 = vadd.f32 1.0, %v10025_v39  ;;  %v12668_v57 = vmul.f32 0.5, %v3011_v6  ;;  %17002 = vst [vmem:[#allocation51_spill] sm:$0xff] %v12670_v52  ;;  %7410 = vmatprep.subr.bf16.mxu1 %v9785_v3  ;;  %v10027_v39 = vpop.eup %10026 }
 0x266   : > { %v748_v25 = vpop.xlane.xlu0 %747  ;;  %v1312_v45 = vmul.f32 0.00390625, %v1204_v4  ;;  %v12634_v4 = vpop.f32.mrf.mxu0  ;;  %10038 = vrsqrt.f32 %v1375_v32  ;;  %v12675_v60 = vmul.f32 %v4086_v44, %v3318_v16  ;;  %v12677_v21 = vmul.f32 0.5, %v2662_v62  ;;  %v10593_v23 = vld [vmem:[%s10725_s19 + $0x3c8] sm:$0xff]  ;;  %7411 = vmatpush2.bf16.msra.mxu1 %v9783_v9  ;;  %v10594_v9 = vld [vmem:[%s10725_s19 + $0x3d0] sm:$0xff] }
 0x267   : > { %v819_v49 = vmul.f32 0.00390625, %v748_v25  ;;  %v3582_v25 = vmul.f32 0.70710677, %v3011_v6  ;;  %v3583_v32 = vmul.f32 0.70710677, %v2662_v62  ;;  %v3015_v6 = vadd.f32 %v12594_v0, %v12297_v56 }
 0x268   : > { %v1376_v30 = vadd.f32 1e-05, %v1312_v45  ;;  %v12657_v45 = vmul.f32 %v4084_v11, %v3316_v54  ;;  %v12663_v42 = vpop.f32.mrf.mxu0  ;;  %v10592_v54 = vld [vmem:[%s10725_s19 + $0x3c0] sm:$0xff]  ;;  %17004 = vst [vmem:[#allocation55_spill] sm:$0xff] %v12675_v60  ;;  %v12693_v0 = vmul.f32 %v4087_v14, %v12626_v53  ;;  %v10595_v60 = vld [vmem:[%s10725_s19 + $0x3d8] sm:$0xff]  ;;  %v4089_v63 = vadd.f32 1.0, %v10027_v39 }
 0x269   : > { %v12608_v7 = vpop.xlane.xlu1 %750  ;;  %17001 = vst [vmem:[#allocation41_spill] sm:$0xff] %v12663_v42  ;;  %v12673_v27 = vsub.f32 %v10592_v54, %v819_v49  ;;  %v12680_v13 = vsub.f32 %v10593_v23, %v819_v49  ;;  %v10597_v14 = vld [vmem:[%s10725_s19 + $0x3e8] sm:$0xff]  ;;  %v3017_v39 = vadd.f32 %v12599_v38, %v12561_v5  ;;  %v12727_v38 = vmul.f32 0.5, %v3015_v6 }
 0x26a   : > { %v12616_v43 = vpop.xlane.xlu0 %1206  ;;  %17000 = vst [vmem:[#allocation37_spill] sm:$0xff] %v12657_v45  ;;  %10040 = vrsqrt.f32 %v1376_v30  ;;  %v820_v30 = vmul.f32 0.00390625, %v12608_v7  ;;  %v12686_v44 = vpop.f32.mrf.mxu0  ;;  %v12697_v7 = vadd.f32 %v12597_v24, %v12556_v31 }
 0x26b   : > { %17003 = vst [vmem:[#allocation50_spill] sm:$0xff] %v12673_v27  ;;  %17005 = vst [vmem:[#allocation54_spill] sm:$0xff] %v12680_v13  ;;  %10042 = verf.f32 %v3582_v25  ;;  %v1313_v54 = vmul.f32 0.00390625, %v12616_v43  ;;  %v1071_v49 = vmul.f32 %v12673_v27, %v12673_v27  ;;  %v1072_v62 = vmul.f32 %v12680_v13, %v12680_v13  ;;  %v12699_v43 = vpop.f32.mrf.mxu1 }
 0x26c   : > { %17006 = vst [vmem:[#allocation60_spill] sm:$0xff] %v12686_v44  ;;  %17007 = vst [vmem:[#allocation62_spill] sm:$0xff] %v12699_v43  ;;  %v12702_v23 = vsub.f32 %v10594_v9, %v820_v30  ;;  %v12705_v45 = vsub.f32 %v10595_v60, %v820_v30  ;;  %10044 = verf.f32 %v3583_v32  ;;  %v10029_v60 = vpop.eup %10028  ;;  %v12719_v30 = vpop.f32.mrf.mxu0 }
 0x26d   : > { %v1210_v40 = vpop.xlane.xlu1 %1209  ;;  %v1377_v46 = vadd.f32 1e-05, %v1313_v54  ;;  %17012 = vst [vmem:[#allocation5_spill] sm:$0xff] %v12719_v30  ;;  %v1259_v54 = vadd.f32 %v1072_v62, %v1071_v49  ;;  %17014 = vst [vmem:[#allocation64_spill] sm:$0xff] %v12727_v38  ;;  %v3585_v49 = vmul.f32 0.70710677, %v3015_v6  ;;  %v12740_v38 = vmul.f32 %v4089_v63, %v12628_v61 }
 0x26e   : > { %v754_v28 = vpop.xlane.xlu0 %753  ;;  %v1314_v25 = vmul.f32 0.00390625, %v1210_v40  ;;  %17008 = vst [vmem:[#allocation61_spill] sm:$0xff] %v12702_v23  ;;  %17009 = vst [vmem:[#allocation63_spill] sm:$0xff] %v12705_v45  ;;  %v1073_v53 = vmul.f32 %v12702_v23, %v12702_v23  ;;  %v1074_v24 = vmul.f32 %v12705_v45, %v12705_v45  ;;  %v10598_v62 = vld [vmem:[%s10725_s19 + $0x3f0] sm:$0xff] }
 0x26f   : > { %v821_v3 = vmul.f32 0.00390625, %v754_v28  ;;  %v10596_v28 = vld [vmem:[%s10725_s19 + $0x3e0] sm:$0xff]  ;;  %10046 = vrsqrt.f32 %v1377_v46  ;;  %1260 = vadd.xlane.f32.xlu0 %v1259_v54  ;;  %v4088_v54 = vadd.f32 1.0, %v10029_v60  ;;  %v12756_v60 = vmul.f32 0.5, %v3017_v39 }
 0x270   : > { %v1378_v40 = vadd.f32 1e-05, %v1314_v25  ;;  %v10031_v25 = vpop.eup %10030  ;;  %v1262_v46 = vadd.f32 %v1074_v24, %v1073_v53  ;;  %v12743_v53 = vmul.f32 0.5, %v12697_v7 }
 0x271   : > { %v757_v11 = vpop.xlane.xlu1 %756  ;;  %v12708_v15 = vsub.f32 %v10596_v28, %v821_v3  ;;  %v12715_v27 = vsub.f32 %v10597_v14, %v821_v3  ;;  %v12723_v28 = vpop.f32.mrf.mxu1  ;;  %17020 = vst [vmem:[#allocation70_spill] sm:$0xff] %v12756_v60  ;;  %v17031_v60 = vld [vmem:[#allocation24_spill] sm:$0xff] }
 0x272   : > { %v1213_v16 = vpop.xlane.xlu0 %1212  ;;  %17013 = vst [vmem:[#allocation6_spill] sm:$0xff] %v12723_v28  ;;  %10048 = vrsqrt.f32 %v1378_v40  ;;  %v822_v14 = vmul.f32 0.00390625, %v757_v11  ;;  %v10033_v45 = vpop.eup %10032  ;;  %v10599_v28 = vld [vmem:[%s10725_s19 + $0x3f8] sm:$0xff]  ;;  %17017 = vst [vmem:[#allocation67_spill] sm:$0xff] %v12743_v53  ;;  %1263 = vadd.xlane.f32.xlu1 %v1262_v46  ;;  %v12753_v46 = vadd.f32 1.0, %v10031_v25 }
 0x273   : > { %17010 = vst [vmem:[#allocation3_spill] sm:$0xff] %v12708_v15  ;;  %17011 = vst [vmem:[#allocation4_spill] sm:$0xff] %v12715_v27  ;;  %v1075_v32 = vmul.f32 %v12708_v15, %v12708_v15  ;;  %v1076_v3 = vmul.f32 %v12715_v27, %v12715_v27  ;;  %v1315_v23 = vmul.f32 0.00390625, %v1213_v16  ;;  %v12729_v15 = vpop.eup %10034 }
 0x274   : > { %v12732_v44 = vsub.f32 %v10598_v62, %v822_v14  ;;  %v12735_v40 = vsub.f32 %v10599_v28, %v822_v14  ;;  %v12737_v16 = vpop.eup %10036  ;;  %v12747_v28 = vpop.f32.mrf.mxu1 }
 0x275   : > { %v1216_v9 = vpop.xlane.xlu1 %1215  ;;  %v1379_v52 = vadd.f32 1e-05, %v1315_v23  ;;  %v1265_v24 = vadd.f32 %v1076_v3, %v1075_v32  ;;  %17019 = vst [vmem:[#allocation69_spill] sm:$0xff] %v12747_v28 }
 0x276   : > { %v1316_v30 = vmul.f32 0.00390625, %v1216_v9  ;;  %17015 = vst [vmem:[#allocation65_spill] sm:$0xff] %v12732_v44  ;;  %17016 = vst [vmem:[#allocation66_spill] sm:$0xff] %v12735_v40  ;;  %v10039_v9 = vpop.eup %10038  ;;  %v1077_v23 = vmul.f32 %v12732_v44, %v12732_v44  ;;  %v1078_v14 = vmul.f32 %v12735_v40, %v12735_v40  ;;  %v12760_v44 = vmul.f32 0.70710677, %v3017_v39  ;;  %v12768_v25 = vpop.f32.mrf.mxu1 }
 0x277   : > { %10050 = vrsqrt.f32 %v1379_v52  ;;  %v10041_v61 = vpop.eup %10040  ;;  %1266 = vadd.xlane.f32.xlu0 %v1265_v24  ;;  %v12764_v52 = vadd.f32 %v12603_v33, %v12291_v1  ;;  %17022 = vst [vmem:[#allocation72_spill] sm:$0xff] %v12768_v25  ;;  %v1543_v39 = vmul.f32 %v10039_v9, %v11973_v51  ;;  %v12774_v24 = vmul.f32 %v4088_v54, %v12646_v18  ;;  %v1954_v54 = vld [vmem:[%s11564_s14 + $0x298] sm:$0xff] }
 0x278   : > { %v1380_v6 = vadd.f32 1e-05, %v1316_v30  ;;  %v3584_v30 = vmul.f32 0.70710677, %v12697_v7  ;;  %v1268_v32 = vadd.f32 %v1078_v14, %v1077_v23  ;;  %v12758_v28 = vpop.eup %10042  ;;  %v1545_v33 = vmul.f32 %v10041_v61, %v11997_v10 }
 0x279   : > { %17023 = vst [vmem:[#allocation73_spill] sm:$0xff] %v12774_v24  ;;  %v12782_v51 = vadd.f32 1.0, %v10033_v45  ;;  %v1951_v45 = vld [vmem:[%s11564_s14 + $0x280] sm:$0xff] }
 0x27a   : > { %v1219_v13 = vpop.xlane.xlu0 %1218  ;;  %10052 = vrsqrt.f32 %v1380_v6  ;;  %1269 = vadd.xlane.f32.xlu1 %v1268_v32  ;;  %v1546_v6 = vmul.f32 %v10041_v61, %v12000_v37  ;;  %v1685_v10 = vmul.f32 %v11480_v50, %v1545_v33 }
 0x27b   : > { %v1317_v43 = vmul.f32 0.00390625, %v1219_v13  ;;  %v12745_v13 = vpop.f32.mrf.mxu0  ;;  %10054 = verf.f32 %v3585_v49 }
 0x27c   : > { %17018 = vst [vmem:[#allocation68_spill] sm:$0xff] %v12745_v13  ;;  %v1825_v40 = vadd.f32 %v11496_v34, %v1685_v10 }
 0x27d   : > { %v1222_v27 = vpop.xlane.xlu1 %1221  ;;  %v1381_v63 = vadd.f32 1e-05, %v1317_v43  ;;  %v12766_v43 = vpop.f32.mrf.mxu0 }
 0x27e   : > { %v1318_v62 = vmul.f32 0.00390625, %v1222_v27  ;;  %17021 = vst [vmem:[#allocation71_spill] sm:$0xff] %v12766_v43 }
 0x27f   : > { %10056 = vrsqrt.f32 %v1381_v63  ;;  %v12784_v18 = vpop.f32.mrf.mxu0 }
 0x280   : > { %v1382_v27 = vadd.f32 1e-05, %v1318_v62  ;;  %v12780_v62 = vpop.eup %10044  ;;  %17024 = vst [vmem:[#allocation74_spill] sm:$0xff] %v12784_v18  ;;  %v17026_v18 = vld [vmem:[#allocation7_spill] sm:$0xff] }
 0x281   : > { %v10047_v32 = vpop.eup %10046 }
 0x282   : > { %10058 = vrsqrt.f32 %v1382_v27  ;;  %v10049_v24 = vpop.eup %10048  ;;  %v1548_v33 = vmul.f32 %v10047_v32, %v17026_v18 }
 0x283   : > { %v1225_v11 = vpop.xlane.xlu0 %1224  ;;  %v1549_v53 = vmul.f32 %v10049_v24, %v17031_v60 }
 0x284   : > { %v1319_v13 = vmul.f32 0.00390625, %v1225_v11  ;;  %v1544_v11 = vmul.f32 %v10039_v9, %v11976_v26  ;;  %v1683_v26 = vmul.f32 %v11480_v50, %v1543_v39  ;;  %v1952_v9 = vld [vmem:[%s11564_s14 + $0x288] sm:$0xff]  ;;  %v1953_v39 = vld [vmem:[%s11564_s14 + $0x290] sm:$0xff] }
 0x285   : > { %v2081_v18 = vadd.f32 %v1953_v39, %v1825_v40  ;;  %v1955_v39 = vld [vmem:[%s11564_s14 + $0x2a0] sm:$0xff] }
 0x286   : > { %v1383_v7 = vadd.f32 1e-05, %v1319_v13  ;;  %v1684_v14 = vmul.f32 %v11493_v12, %v1544_v11  ;;  %v1686_v13 = vmul.f32 %v11493_v12, %v1546_v6  ;;  %v1823_v6 = vadd.f32 %v11496_v34, %v1683_v26  ;;  %v12805_v26 = vpop.f32.mrf.mxu0 }
 0x287   : > { %v1228_v3 = vpop.xlane.xlu1 %1227  ;;  %17028 = vst [vmem:[#allocation7_spill] sm:$0xff] %v12805_v26  ;;  %v10051_v26 = vpop.eup %10050 }
 0x288   : > { %v1320_v23 = vmul.f32 0.00390625, %v1228_v3  ;;  %v12789_v3 = vpop.f32.mrf.mxu1  ;;  %10060 = vrsqrt.f32 %v1383_v7  ;;  %v1824_v27 = vadd.f32 %v11506_v55, %v1684_v14  ;;  %v1826_v11 = vadd.f32 %v11506_v55, %v1686_v13  ;;  %v17027_v7 = vld [vmem:[#allocation9_spill] sm:$0xff] }
 0x289   : > { %17025 = vst [vmem:[#allocation75_spill] sm:$0xff] %v12789_v3  ;;  %v1550_v43 = vmul.f32 %v10049_v24, %v17027_v7  ;;  %v9786_v14 = vld [vmem:[%s16612_s6 + $0x180] ss:$16 sps:$4 sm:$0xff]   ;;  %v9788_v13 = vld [vmem:[%s16612_s6 + $0x184] ss:$16 sps:$4 sm:$0xff]   ;;  %v2079_v10 = vadd.f32 %v1951_v45, %v1823_v6  ;;  %v1956_v7 = vld [vmem:[%s11564_s14 + $0x2a8] sm:$0xff] }
 0x28a   : > { %v1384_v61 = vadd.f32 1e-05, %v1320_v23  ;;  %v2082_v25 = vadd.f32 %v1954_v54, %v1826_v11  ;;  %7059 = vmatprep.subr.bf16.mxu0 %v9788_v13  ;;  %v1958_v6 = vld [vmem:[%s11564_s14 + $0x2b8] sm:$0xff]  ;;  %v17032_v24 = vld [vmem:[#allocation28_spill] sm:$0xff] }
 0x28b   : > { %v1690_v11 = vmul.f32 %v11493_v12, %v1550_v43  ;;  %v2167_v42 = vpack.c.bf16 %v2081_v18, %v2079_v10  ;;  %7060 = vmatpush2.bf16.msra.mxu0 %v9786_v14  ;;  %v12827_v14 = vpop.f32.mrf.mxu0  ;;  %v1957_v10 = vld [vmem:[%s11564_s14 + $0x2b0] sm:$0xff]  ;;  %v17034_v18 = vld [vmem:[#allocation11_spill] sm:$0xff] }
 0x28c   : > { %v1231_v49 = vpop.xlane.xlu0 %1230  ;;  %10062 = vrsqrt.f32 %v1384_v61 }
 0x28d   : > { %v1321_v63 = vmul.f32 0.00390625, %v1231_v49  ;;  %v2080_v49 = vadd.f32 %v1952_v9, %v1824_v27  ;;  %v17029_v9 = vld [vmem:[#allocation8_spill] sm:$0xff]  ;;  %10064 = verf.f32 %v3584_v30  ;;  %v10053_v30 = vpop.eup %10052  ;;  %v1830_v43 = vadd.f32 %v11506_v55, %v1690_v11 }
 0x28e   : > { %v1547_v54 = vmul.f32 %v10047_v32, %v17029_v9  ;;  %17033 = vst [vmem:[#allocation8_spill] sm:$0xff] %v12827_v14  ;;  %v12832_v9 = vpop.eup %10054 }
 0x28f   : > { %v1385_v3 = vadd.f32 1e-05, %v1321_v63  ;;  %v12809_v63 = vpop.f32.mrf.mxu1  ;;  %v2168_v27 = vpack.c.bf16 %v2082_v25, %v2080_v49  ;;  %v1689_v25 = vmul.f32 %v11480_v50, %v1549_v53  ;;  %v9789_v49 = vld [vmem:[%s16612_s6 + $0x380] ss:$16 sps:$4 sm:$0xff]  }
 0x290   : > { %v1234_v37 = vpop.xlane.xlu1 %1233  ;;  %17030 = vst [vmem:[#allocation9_spill] sm:$0xff] %v12809_v63  ;;  %v1687_v45 = vmul.f32 %v11480_v50, %v1547_v54 }
 0x291   : > { %v1322_v23 = vmul.f32 0.00390625, %v1234_v37  ;;  %v1688_v37 = vmul.f32 %v11493_v12, %v1548_v33  ;;  %2829 = vmatprep.mubr.bf16.mxu0 %v2168_v27  ;;  %3182 = vmatprep.mubr.bf16.mxu1 %v2168_v27  ;;  %v1552_v33 = vmul.f32 %v10051_v26, %v17032_v24  ;;  %10066 = vrsqrt.f32 %v1385_v3  ;;  %v12834_v54 = vpop.f32.mrf.mxu1  ;;  %v17036_v24 = vld [vmem:[#allocation27_spill] sm:$0xff] }
 0x292   : > { %2830 = vmatmul.mubr.bf16.gmra.mxu0 %v2167_v42  ;;  %3183 = vmatmul.mubr.bf16.gmra.mxu1 %v2167_v42  ;;  %v1827_v53 = vadd.f32 %v11496_v34, %v1687_v45  ;;  %17035 = vst [vmem:[#allocation24_spill] sm:$0xff] %v12834_v54  ;;  %v1829_v27 = vadd.f32 %v11496_v34, %v1689_v25 }
 0x293   : > { %v1828_v40 = vadd.f32 %v11506_v55, %v1688_v37  ;;  %v1386_v32 = vadd.f32 1e-05, %v1322_v23  ;;  %v9791_v23 = vld [vmem:[%s16612_s6 + $0x384] ss:$16 sps:$4 sm:$0xff]   ;;  %v1554_v37 = vmul.f32 %v10053_v30, %v17034_v18  ;;  %v1692_v11 = vmul.f32 %v11493_v12, %v1552_v33  ;;  %v10057_v18 = vpop.eup %10056 }
 0x294   : > { %v1551_v42 = vmul.f32 %v10051_v26, %v17036_v24  ;;  %7412 = vmatprep.subr.bf16.mxu1 %v9791_v23  ;;  %v2083_v3 = vadd.f32 %v1955_v39, %v1827_v53  ;;  %v2085_v63 = vadd.f32 %v1957_v10, %v1829_v27  ;;  %v10059_v26 = vpop.eup %10058  ;;  %v12851_v39 = vpop.f32.mrf.mxu0 }
 0x295   : > { %v2084_v13 = vadd.f32 %v1956_v7, %v1828_v40  ;;  %10068 = vrsqrt.f32 %v1386_v32  ;;  %v1694_v7 = vmul.f32 %v11493_v12, %v1554_v37  ;;  %v17037_v40 = vld [vmem:[#allocation31_spill] sm:$0xff]  ;;  %7413 = vmatpush2.bf16.msra.mxu1 %v9789_v49  ;;  %v1832_v54 = vadd.f32 %v11506_v55, %v1692_v11  ;;  %v12859_v53 = vpop.f32.mrf.mxu1  ;;  %v10061_v10 = vpop.eup %10060 }
 0x296   : > { %v1237_v61 = vpop.xlane.xlu0 %1236  ;;  %v1553_v45 = vmul.f32 %v10053_v30, %v17037_v40  ;;  %v1691_v25 = vmul.f32 %v11480_v50, %v1551_v42  ;;  %v12847_v32 = vmul.f32 %v12753_v46, %v12650_v59  ;;  %v3019_v30 = vadd.f32 %v12606_v47, %v12297_v56  ;;  %v1961_v47 = vld [vmem:[%s11564_s14 + $0x2d0] sm:$0xff]  ;;  %v1959_v11 = vld [vmem:[%s11564_s14 + $0x2c0] sm:$0xff] }
 0x297   : > { %v1323_v60 = vmul.f32 0.00390625, %v1237_v61  ;;  %v2086_v61 = vadd.f32 %v1958_v6, %v1830_v43  ;;  %v1960_v6 = vld [vmem:[%s11564_s14 + $0x2c8] sm:$0xff]  ;;  %v1962_v43 = vld [vmem:[%s11564_s14 + $0x2d8] sm:$0xff]  ;;  %v1834_v49 = vadd.f32 %v11506_v55, %v1694_v7  ;;  %10070 = verf.f32 %v12760_v44 }
 0x298   : > { %17038 = vst [vmem:[#allocation28_spill] sm:$0xff] %v12847_v32  ;;  %v1693_v23 = vmul.f32 %v11480_v50, %v1553_v45  ;;  %v2169_v59 = vpack.c.bf16 %v2085_v63, %v2083_v3  ;;  %v1831_v46 = vadd.f32 %v11496_v34, %v1691_v25  ;;  %v2088_v37 = vadd.f32 %v1960_v6, %v1832_v54  ;;  %v1964_v25 = vld [vmem:[%s11564_s14 + $0x2e8] sm:$0xff]  ;;  %v17066_v32 = vld [vmem:[#allocation62_spill] sm:$0xff] }
 0x299   : > { %v2170_v14 = vpack.c.bf16 %v2086_v61, %v2084_v13  ;;  %v1240_v33 = vpop.xlane.xlu1 %1239  ;;  %v12857_v13 = vmul.f32 0.5, %v12764_v52  ;;  %v2090_v61 = vadd.f32 %v1962_v43, %v1834_v49  ;;  %v10063_v42 = vpop.eup %10062  ;;  %v1387_v44 = vadd.f32 1e-05, %v1323_v60 }
 0x29a   : > { %v1833_v27 = vadd.f32 %v11496_v34, %v1693_v23  ;;  %v1324_v24 = vmul.f32 0.00390625, %v1240_v33  ;;  %v1556_v7 = vmul.f32 %v10057_v18, %v12076_v17  ;;  %v1558_v40 = vmul.f32 %v10059_v26, %v12090_v58  ;;  %v12874_v17 = vpop.f32.mrf.mxu1  ;;  %v1966_v33 = vld [vmem:[%s11564_s14 + $0x2f8] sm:$0xff] }
 0x29b   : > { %2839 = vmatprep.mubr.bf16.mxu0 %v2170_v14  ;;  %3192 = vmatprep.mubr.bf16.mxu1 %v2170_v14  ;;  %v1555_v45 = vmul.f32 %v10057_v18, %v12073_v19  ;;  %v3587_v63 = vmul.f32 0.70710677, %v12764_v52  ;;  %v12869_v14 = vpop.f32.mrf.mxu0  ;;  %v2172_v54 = vpack.c.bf16 %v2090_v61, %v2088_v37  ;;  %v1557_v6 = vmul.f32 %v10059_v26, %v12087_v20  ;;  %v12878_v18 = vpop.eup %10064  ;;  %v17039_v26 = vld [vmem:[#allocation32_spill] sm:$0xff] }
 0x29c   : > { %2840 = vmatmul.mubr.bf16.gmra.mxu0 %v2169_v59  ;;  %3193 = vmatmul.mubr.bf16.gmra.mxu1 %v2169_v59  ;;  %v2089_v3 = vadd.f32 %v1961_v47, %v1833_v27  ;;  %v4347_v60 = vmul.f32 %v12782_v51, %v12652_v48  ;;  %v2087_v58 = vadd.f32 %v1959_v11, %v1831_v46  ;;  %v1388_v43 = vadd.f32 1e-05, %v1324_v24 }
 0x29d   : > { %v1696_v19 = vmul.f32 %v11493_v12, %v1556_v7  ;;  %v1698_v52 = vmul.f32 %v11493_v12, %v1558_v40  ;;  %2849 = vmatprep.mubr.bf16.mxu0 %v2172_v54  ;;  %3202 = vmatprep.mubr.bf16.mxu1 %v2172_v54  ;;  %v1695_v49 = vmul.f32 %v11480_v50, %v1555_v45  ;;  %v4093_v51 = vadd.f32 1.0, %v12729_v15  ;;  %v12888_v46 = vpop.f32.mrf.mxu0  ;;  %v1965_v45 = vld [vmem:[%s11564_s14 + $0x2f0] sm:$0xff] }
 0x29e   : > { %v1697_v20 = vmul.f32 %v11480_v50, %v1557_v6  ;;  %v1560_v48 = vmul.f32 %v10061_v10, %v17039_v26  ;;  %10072 = vrsqrt.f32 %v1387_v44  ;;  %v2171_v47 = vpack.c.bf16 %v2089_v3, %v2087_v58  ;;  %v10067_v11 = vpop.eup %10066  ;;  %v12895_v44 = vpop.f32.mrf.mxu1 }
 0x29f   : > { %v1836_v23 = vadd.f32 %v11506_v55, %v1696_v19  ;;  %v1838_v59 = vadd.f32 %v11506_v55, %v1698_v52  ;;  %v1562_v61 = vmul.f32 %v10063_v42, %v12140_v22  ;;  %v12893_v24 = vmul.f32 0.5, %v3019_v30  ;;  %v17040_v22 = vld [vmem:[#allocation13_spill] sm:$0xff] }
 0x2a0   : > { %v1837_v37 = vadd.f32 %v11496_v34, %v1697_v20  ;;  %v1700_v27 = vmul.f32 %v11493_v12, %v1560_v48  ;;  %v3589_v15 = vmul.f32 0.70710677, %v3019_v30  ;;  %10074 = vrsqrt.f32 %v1388_v43  ;;  %v1243_v54 = vpop.xlane.xlu0 %1242  ;;  %v1963_v30 = vld [vmem:[%s11564_s14 + $0x2e0] sm:$0xff] }
 0x2a1   : > { %v2092_v7 = vadd.f32 %v1964_v25, %v1836_v23  ;;  %v2094_v40 = vadd.f32 %v1966_v33, %v1838_v59  ;;  %v1835_v3 = vadd.f32 %v11496_v34, %v1695_v49  ;;  %v1702_v6 = vmul.f32 %v11493_v12, %v1562_v61  ;;  %v1970_v25 = vld [vmem:[%s11564_s14 + $0x318] sm:$0xff]  ;;  %v12910_v49 = vpop.f32.mrf.mxu0  ;;  %v12915_v61 = vpop.f32.mrf.mxu1 }
 0x2a2   : > { %v1559_v58 = vmul.f32 %v10061_v10, %v17040_v22  ;;  %v10069_v19 = vpop.eup %10068  ;;  %v2668_v52 = vadd.f32 %v12618_v2, %v12556_v31  ;;  %v1840_v26 = vadd.f32 %v11506_v55, %v1700_v27  ;;  %v1561_v33 = vmul.f32 %v10063_v42, %v12137_v35  ;;  %v1968_v2 = vld [vmem:[%s11564_s14 + $0x308] sm:$0xff] }
 0x2a3   : > { %v2174_v20 = vpack.c.bf16 %v2094_v40, %v2092_v7  ;;  %v12908_v43 = vpack.c.bf16 %v4347_v60, %v12693_v0  ;;  %10076 = verf.f32 %v3587_v63  ;;  %v2093_v10 = vadd.f32 %v1965_v45, %v1837_v37  ;;  %v1246_v48 = vpop.xlane.xlu1 %1245  ;;  %v17042_v0 = vld [vmem:[#allocation10_spill] sm:$0xff]  ;;  %v17043_v7 = vld [vmem:[#allocation36_spill] sm:$0xff] }
 0x2a4   : > { %2850 = vmatmul.mubr.bf16.gmra.mxu0 %v2171_v47  ;;  %3203 = vmatmul.mubr.bf16.gmra.mxu1 %v2171_v47  ;;  %v1842_v23 = vadd.f32 %v11506_v55, %v1702_v6  ;;  %v4349_v59 = vmul.f32 %v4093_v51, %v12659_v29  ;;  %v1325_v27 = vmul.f32 0.00390625, %v1243_v54  ;;  %v1701_v35 = vmul.f32 %v11480_v50, %v1561_v33  ;;  %v12919_v63 = vpop.eup %10070  ;;  %v12924_v6 = vpop.f32.mrf.mxu0 }
 0x2a5   : > { %17041 = vst [vmem:[#allocation11_spill] sm:$0xff] %v12908_v43  ;;  %2859 = vmatprep.mubr.bf16.mxu0 %v2174_v20  ;;  %3212 = vmatprep.mubr.bf16.mxu1 %v2174_v20  ;;  %v1564_v42 = vmul.f32 %v10067_v11, %v17042_v0  ;;  %v2091_v60 = vadd.f32 %v1963_v30, %v1835_v3  ;;  %v3588_v45 = vmul.f32 0.70710677, %v2668_v52  ;;  %v1326_v29 = vmul.f32 0.00390625, %v1246_v48  ;;  %v17044_v3 = vld [vmem:[#allocation12_spill] sm:$0xff]  ;;  %v12936_v48 = vpop.f32.mrf.mxu1 }
 0x2a6   : > { %v2098_v47 = vadd.f32 %v1970_v25, %v1842_v23  ;;  %v1699_v37 = vmul.f32 %v11480_v50, %v1559_v58  ;;  %v1566_v40 = vmul.f32 %v10069_v19, %v17043_v7  ;;  %v2096_v51 = vadd.f32 %v1968_v2, %v1840_v26  ;;  %v9792_v58 = vld [vmem:[%s16612_s6 + $0x160] ss:$16 sps:$4 sm:$0xff]   ;;  %v9794_v26 = vld [vmem:[%s16612_s6 + $0x164] ss:$16 sps:$4 sm:$0xff]   ;;  %17045 = vst [vmem:[#allocation27_spill] sm:$0xff] %v12936_v48 }
 0x2a7   : > { %v1704_v54 = vmul.f32 %v11493_v12, %v1564_v42  ;;  %v2173_v22 = vpack.c.bf16 %v2093_v10, %v2091_v60  ;;  %v1841_v20 = vadd.f32 %v11496_v34, %v1701_v35  ;;  %v1565_v30 = vmul.f32 %v10069_v19, %v17044_v3  ;;  %v1969_v2 = vld [vmem:[%s11564_s14 + $0x310] sm:$0xff]  ;;  %v1974_v42 = vld [vmem:[%s11564_s14 + $0x338] sm:$0xff]  ;;  %v17046_v60 = vld [vmem:[#allocation35_spill] sm:$0xff]  ;;  %7061 = vmatprep.subr.bf16.mxu0 %v9794_v26  ;;  %v12960_v3 = vpop.f32.mrf.mxu1 }
 0x2a8   : > { %v1706_v33 = vmul.f32 %v11493_v12, %v1566_v40  ;;  %v4092_v25 = vadd.f32 1.0, %v12737_v16  ;;  %10078 = verf.f32 %v3589_v15  ;;  %v1389_v10 = vadd.f32 1e-05, %v1325_v27  ;;  %7062 = vmatpush2.bf16.msra.mxu0 %v9792_v58  ;;  %17048 = vst [vmem:[#allocation32_spill] sm:$0xff] %v12960_v3  ;;  %v9809_v3 = vld [vmem:[%s16612_s6 + $0x324] ss:$16 sps:$4 sm:$0xff]  }
 0x2a9   : > { %v2176_v23 = vpack.c.bf16 %v2098_v47, %v2096_v51  ;;  %v3021_v19 = vadd.f32 %v12622_v8, %v12561_v5  ;;  %v1839_v35 = vadd.f32 %v11496_v34, %v1699_v37  ;;  %v1563_v7 = vmul.f32 %v10067_v11, %v17046_v60  ;;  %v1967_v47 = vld [vmem:[%s11564_s14 + $0x300] sm:$0xff]  ;;  %v12952_v37 = vpop.f32.mrf.mxu0  ;;  %v12988_v60 = vpop.f32.mrf.mxu1 }
 0x2aa   : > { %v1846_v0 = vadd.f32 %v11506_v55, %v1706_v33  ;;  %v4094_v16 = vadd.f32 1.0, %v12758_v28  ;;  %v12946_v15 = vmul.f32 0.5, %v2668_v52  ;;  %v2672_v27 = vadd.f32 %v12634_v4, %v12291_v1  ;;  %v1972_v33 = vld [vmem:[%s11564_s14 + $0x328] sm:$0xff]  ;;  %17053 = vst [vmem:[#allocation12_spill] sm:$0xff] %v12988_v60 }
 0x2ab   : > { %v1844_v40 = vadd.f32 %v11506_v55, %v1704_v54  ;;  %v10073_v8 = vpop.eup %10072  ;;  %10080 = verf.f32 %v3588_v45  ;;  %v1390_v51 = vadd.f32 1e-05, %v1326_v29  ;;  %v2097_v11 = vadd.f32 %v1969_v2, %v1841_v20  ;;  %v9795_v54 = vld [vmem:[%s16612_s6 + $0x360] ss:$16 sps:$4 sm:$0xff]   ;;  %v17052_v2 = vld [vmem:[#allocation40_spill] sm:$0xff] }
 0x2ac   : > { %2860 = vmatmul.mubr.bf16.gmra.mxu0 %v2173_v22  ;;  %3213 = vmatmul.mubr.bf16.gmra.mxu1 %v2173_v22  ;;  %v1705_v28 = vmul.f32 %v11480_v50, %v1565_v30  ;;  %v12957_v52 = vpack.c.bf16 %v4349_v59, %v12740_v38  ;;  %v4095_v4 = vadd.f32 1.0, %v12780_v62  ;;  %10082 = vrsqrt.f32 %v1389_v10  ;;  %v9797_v62 = vld [vmem:[%s16612_s6 + $0x364] ss:$16 sps:$4 sm:$0xff]  }
 0x2ad   : > { %2869 = vmatprep.mubr.bf16.mxu0 %v2176_v23  ;;  %3222 = vmatprep.mubr.bf16.mxu1 %v2176_v23  ;;  %v2102_v45 = vadd.f32 %v1974_v42, %v1846_v0  ;;  %v12966_v29 = vmul.f32 %v4092_v25, %v12661_v41  ;;  %v3590_v22 = vmul.f32 0.70710677, %v3021_v19  ;;  %v2095_v20 = vadd.f32 %v1967_v47, %v1839_v35  ;;  %v10075_v59 = vpop.eup %10074  ;;  %v12977_v23 = vpop.f32.mrf.mxu0 }
 0x2ae   : > { %17047 = vst [vmem:[#allocation31_spill] sm:$0xff] %v12957_v52  ;;  %v1703_v38 = vmul.f32 %v11480_v50, %v1563_v7  ;;  %v12973_v30 = vmul.f32 %v4094_v16, %v12668_v57  ;;  %v12975_v58 = vmul.f32 0.5, %v3021_v19  ;;  %v3591_v26 = vmul.f32 0.70710677, %v2672_v27  ;;  %17051 = vst [vmem:[#allocation36_spill] sm:$0xff] %v12977_v23  ;;  %7414 = vmatprep.subr.bf16.mxu1 %v9797_v62  ;;  %v1973_v16 = vld [vmem:[%s11564_s14 + $0x330] sm:$0xff] }
 0x2af   : > { %17049 = vst [vmem:[#allocation13_spill] sm:$0xff] %v12966_v29  ;;  %v2100_v10 = vadd.f32 %v1972_v33, %v1844_v40  ;;  %10084 = vrsqrt.f32 %v1390_v51  ;;  %v2175_v41 = vpack.c.bf16 %v2097_v11, %v2095_v20  ;;  %v1845_v25 = vadd.f32 %v11496_v34, %v1705_v28  ;;  %7415 = vmatpush2.bf16.msra.mxu1 %v9795_v54  ;;  %v17054_v51 = vld [vmem:[#allocation44_spill] sm:$0xff]  ;;  %v17057_v20 = vld [vmem:[#allocation39_spill] sm:$0xff] }
 0x2b0   : > { %17050 = vst [vmem:[#allocation10_spill] sm:$0xff] %v12973_v30  ;;  %v1568_v35 = vmul.f32 %v10073_v8, %v17052_v2  ;;  %v10077_v0 = vpop.eup %10076  ;;  %v12982_v42 = vmul.f32 %v4095_v4, %v12677_v21  ;;  %v12984_v57 = vmul.f32 0.5, %v2672_v27  ;;  %v3025_v19 = vadd.f32 %v12641_v36, %v12297_v56  ;;  %v17055_v21 = vld [vmem:[#allocation41_spill] sm:$0xff]  ;;  %v17056_v27 = vld [vmem:[#allocation51_spill] sm:$0xff] }
 0x2b1   : > { %v2178_v7 = vpack.c.bf16 %v2102_v45, %v2100_v10  ;;  %v4097_v47 = vadd.f32 1.0, %v12832_v9  ;;  %10086 = verf.f32 %v3590_v22  ;;  %v1843_v40 = vadd.f32 %v11496_v34, %v1703_v38  ;;  %v1971_v4 = vld [vmem:[%s11564_s14 + $0x320] sm:$0xff]  ;;  %v13001_v9 = vpop.f32.mrf.mxu0 }
 0x2b2   : > { %v1570_v11 = vmul.f32 %v10075_v59, %v17054_v51  ;;  %v2674_v33 = vadd.f32 %v17055_v21, %v12556_v31  ;;  %v3027_v28 = vadd.f32 %v17056_v27, %v12561_v5  ;;  %v1708_v36 = vmul.f32 %v11493_v12, %v1568_v35  ;;  %17058 = vst [vmem:[#allocation35_spill] sm:$0xff] %v13001_v9  ;;  %v17059_v38 = vld [vmem:[#allocation43_spill] sm:$0xff]  ;;  %v13008_v35 = vpop.f32.mrf.mxu1  ;;  %v1978_v21 = vld [vmem:[%s11564_s14 + $0x358] sm:$0xff] }
 0x2b3   : > { %v1567_v45 = vmul.f32 %v10073_v8, %v17057_v20  ;;  %10088 = verf.f32 %v3591_v26  ;;  %v2101_v54 = vadd.f32 %v1973_v16, %v1845_v25  ;;  %v1569_v62 = vmul.f32 %v10075_v59, %v17059_v38  ;;  %17060 = vst [vmem:[#allocation40_spill] sm:$0xff] %v13008_v35  ;;  %v1976_v26 = vld [vmem:[%s11564_s14 + $0x348] sm:$0xff]  ;;  %v1249_v38 = vpop.xlane.xlu0 %1248  ;;  %v13024_v52 = vpop.f32.mrf.mxu0  ;;  %v1977_v35 = vld [vmem:[%s11564_s14 + $0x350] sm:$0xff] }
 0x2b4   : > { %2870 = vmatmul.mubr.bf16.gmra.mxu0 %v2175_v41  ;;  %3223 = vmatmul.mubr.bf16.gmra.mxu1 %v2175_v41  ;;  %v1710_v22 = vmul.f32 %v11493_v12, %v1570_v11  ;;  %v4096_v10 = vadd.f32 1.0, %v12878_v18  ;;  %v13006_v2 = vmul.f32 0.5, %v3025_v19  ;;  %v3593_v51 = vmul.f32 0.70710677, %v3025_v19  ;;  %v17061_v18 = vld [vmem:[#allocation64_spill] sm:$0xff]  ;;  %17063 = vst [vmem:[#allocation44_spill] sm:$0xff] %v13024_v52 }
 0x2b5   : > { %2879 = vmatprep.mubr.bf16.mxu0 %v2178_v7  ;;  %3232 = vmatprep.mubr.bf16.mxu1 %v2178_v7  ;;  %v1848_v8 = vadd.f32 %v11506_v55, %v1708_v36  ;;  %v10079_v27 = vpop.eup %10078  ;;  %v2099_v41 = vadd.f32 %v1971_v4, %v1843_v40  ;;  %v1707_v16 = vmul.f32 %v11480_v50, %v1567_v45  ;;  %v4098_v19 = vadd.f32 1.0, %v12919_v63  ;;  %v17062_v7 = vld [vmem:[#allocation60_spill] sm:$0xff]  ;;  %v1252_v40 = vpop.xlane.xlu1 %1251 }
 0x2b6   : > { %v1850_v25 = vadd.f32 %v11506_v55, %v1710_v22  ;;  %v1709_v59 = vmul.f32 %v11480_v50, %v1569_v62  ;;  %v13017_v11 = vmul.f32 %v4097_v47, %v17061_v18  ;;  %v13020_v20 = vmul.f32 0.5, %v2674_v33  ;;  %v17064_v47 = vld [vmem:[#allocation67_spill] sm:$0xff] }
 0x2b7   : > { %v2676_v36 = vadd.f32 %v17062_v7, %v12291_v1  ;;  %v2177_v4 = vpack.c.bf16 %v2101_v54, %v2099_v41  ;;  %v2104_v22 = vadd.f32 %v1976_v26, %v1848_v8  ;;  %v13028_v18 = vmul.f32 %v4096_v10, %v17064_v47  ;;  %v13032_v7 = vpop.f32.mrf.mxu1  ;;  %v17070_v47 = vld [vmem:[#allocation5_spill] sm:$0xff] }
 0x2b8   : > { %v2106_v45 = vadd.f32 %v1978_v21, %v1850_v25  ;;  %v1849_v62 = vadd.f32 %v11496_v34, %v1709_v59  ;;  %v10081_v43 = vpop.eup %10080  ;;  %v4099_v63 = vadd.f32 1.0, %v10077_v0  ;;  %v3592_v30 = vmul.f32 0.70710677, %v2674_v33  ;;  %17067 = vst [vmem:[#allocation51_spill] sm:$0xff] %v13032_v7  ;;  %v1975_v0 = vld [vmem:[%s11564_s14 + $0x340] sm:$0xff]  ;;  %v17068_v33 = vld [vmem:[#allocation70_spill] sm:$0xff]  ;;  %v13046_v7 = vpop.f32.mrf.mxu0 }
 0x2b9   : > { %17065 = vst [vmem:[#allocation41_spill] sm:$0xff] %v13028_v18  ;;  %v3029_v29 = vadd.f32 %v17066_v32, %v12297_v56  ;;  %v13035_v52 = vpop.eup %10082  ;;  %v3594_v54 = vmul.f32 0.70710677, %v3027_v28  ;;  %v1327_v8 = vmul.f32 0.00390625, %v1249_v38  ;;  %v1847_v21 = vadd.f32 %v11496_v34, %v1707_v16  ;;  %17071 = vst [vmem:[#allocation43_spill] sm:$0xff] %v13046_v7  ;;  %v17073_v16 = vld [vmem:[#allocation17_spill] sm:$0xff] }
 0x2ba   : > { %v2180_v26 = vpack.c.bf16 %v2106_v45, %v2104_v22  ;;  %v4101_v41 = vadd.f32 1.0, %v10079_v27  ;;  %10090 = verf.f32 %v3593_v51  ;;  %v13038_v25 = vmul.f32 0.5, %v3027_v28  ;;  %v13049_v51 = vpop.f32.mrf.mxu1 }
 0x2bb   : > { %v1328_v10 = vmul.f32 0.00390625, %v1252_v40  ;;  %v13042_v59 = vmul.f32 %v4098_v19, %v17068_v33  ;;  %v3595_v32 = vmul.f32 0.70710677, %v2676_v36  ;;  %v2678_v18 = vadd.f32 %v17070_v47, %v12556_v31  ;;  %17072 = vst [vmem:[#allocation64_spill] sm:$0xff] %v13049_v51  ;;  %v1258_v51 = vpop.xlane.xlu1 %1257 }
 0x2bc   : > { %2880 = vmatmul.mubr.bf16.gmra.mxu0 %v2177_v4  ;;  %3233 = vmatmul.mubr.bf16.gmra.mxu1 %v2177_v4  ;;  %v2105_v38 = vadd.f32 %v1977_v35, %v1849_v62  ;;  %v10085_v22 = vpop.eup %10084  ;;  %v4355_v27 = vmul.f32 %v4099_v63, %v12857_v13  ;;  %10092 = verf.f32 %v3592_v30  ;;  %v3597_v28 = vmul.f32 0.70710677, %v3029_v29  ;;  %v17074_v13 = vld [vmem:[#allocation6_spill] sm:$0xff] }
 0x2bd   : > { %17069 = vst [vmem:[#allocation39_spill] sm:$0xff] %v13042_v59  ;;  %2889 = vmatprep.mubr.bf16.mxu0 %v2180_v26  ;;  %3242 = vmatprep.mubr.bf16.mxu1 %v2180_v26  ;;  %v1572_v19 = vmul.f32 %v13035_v52, %v17073_v16  ;;  %10094 = verf.f32 %v3594_v54  ;;  %v13053_v40 = vmul.f32 0.5, %v2676_v36  ;;  %v1391_v45 = vadd.f32 1e-05, %v1327_v8  ;;  %v13062_v26 = vpop.f32.mrf.mxu0  ;;  %v17076_v54 = vld [vmem:[#allocation16_spill] sm:$0xff] }
 0x2be   : > { %v2103_v33 = vadd.f32 %v1975_v0, %v1847_v21  ;;  %v10087_v47 = vpop.eup %10086  ;;  %v4357_v35 = vmul.f32 %v4101_v41, %v12893_v24  ;;  %v13056_v4 = vmul.f32 0.5, %v3029_v29  ;;  %v3031_v30 = vadd.f32 %v17074_v13, %v12561_v5  ;;  %17075 = vst [vmem:[#allocation60_spill] sm:$0xff] %v13062_v26  ;;  %v13068_v29 = vpop.f32.mrf.mxu1  ;;  %v9798_v41 = vld [vmem:[%s16612_s6 + $0x140] ss:$16 sps:$4 sm:$0xff]  }
 0x2bf   : > { %v1392_v62 = vadd.f32 1e-05, %v1328_v10  ;;  %10096 = verf.f32 %v3595_v32  ;;  %v13060_v63 = vmul.f32 0.5, %v2678_v18  ;;  %v1574_v36 = vmul.f32 %v10085_v22, %v17076_v54  ;;  %17078 = vst [vmem:[#allocation62_spill] sm:$0xff] %v13068_v29  ;;  %v9800_v10 = vld [vmem:[%s16612_s6 + $0x144] ss:$16 sps:$4 sm:$0xff]  }
 0x2c0   : > { %v2179_v16 = vpack.c.bf16 %v2105_v38, %v2103_v33  ;;  %v10089_v59 = vpop.eup %10088  ;;  %v13066_v8 = vpack.c.bf16 %v4355_v27, %v12982_v42  ;;  %10098 = verf.f32 %v3597_v28  ;;  %v3596_v24 = vmul.f32 0.70710677, %v2678_v18  ;;  %v17079_v42 = vld [vmem:[#allocation68_spill] sm:$0xff]  ;;  %v1982_v33 = vld [vmem:[%s11564_s14 + $0x378] sm:$0xff]  ;;  %7063 = vmatprep.subr.bf16.mxu0 %v9800_v10  ;;  %v13101_v10 = vpop.f32.mrf.mxu1 }
 0x2c1   : > { %v1712_v21 = vmul.f32 %v11493_v12, %v1572_v19  ;;  %v13077_v0 = vadd.f32 1.0, %v10081_v43  ;;  %v2682_v32 = vadd.f32 %v17079_v42, %v12291_v1  ;;  %10100 = vrsqrt.f32 %v1391_v45  ;;  %v1980_v19 = vld [vmem:[%s11564_s14 + $0x368] sm:$0xff]  ;;  %v17081_v43 = vld [vmem:[#allocation69_spill] sm:$0xff]  ;;  %17086 = vst [vmem:[#allocation17_spill] sm:$0xff] %v13101_v10  ;;  %v17087_v42 = vld [vmem:[#allocation14_spill] sm:$0xff]  ;;  %7064 = vmatpush2.bf16.msra.mxu0 %v9798_v41 }
 0x2c2   : > { %17077 = vst [vmem:[#allocation67_spill] sm:$0xff] %v13066_v8  ;;  %v1714_v18 = vmul.f32 %v11493_v12, %v1574_v36  ;;  %v13083_v38 = vpack.c.bf16 %v4357_v35, %v13017_v11  ;;  %v3598_v27 = vmul.f32 0.70710677, %v3031_v30  ;;  %10102 = vrsqrt.f32 %v1392_v62  ;;  %v13092_v8 = vpop.f32.mrf.mxu0  ;;  %v17083_v11 = vld [vmem:[#allocation15_spill] sm:$0xff]  ;;  %v13127_v26 = vpop.f32.mrf.mxu1 }
 0x2c3   : > { %v1852_v28 = vadd.f32 %v11506_v55, %v1712_v21  ;;  %v13088_v13 = vmul.f32 0.5, %v3031_v30  ;;  %v3035_v54 = vadd.f32 %v17081_v43, %v12297_v56  ;;  %17082 = vst [vmem:[#allocation5_spill] sm:$0xff] %v13092_v8  ;;  %v1571_v35 = vmul.f32 %v13035_v52, %v17083_v11  ;;  %v17084_v62 = vld [vmem:[#allocation71_spill] sm:$0xff]  ;;  %v17085_v21 = vld [vmem:[#allocation72_spill] sm:$0xff]  ;;  %v17088_v11 = vld [vmem:[#allocation74_spill] sm:$0xff] }
 0x2c4   : > { %17080 = vst [vmem:[#allocation70_spill] sm:$0xff] %v13083_v38  ;;  %2890 = vmatmul.mubr.bf16.gmra.mxu0 %v2179_v16  ;;  %3243 = vmatmul.mubr.bf16.gmra.mxu1 %v2179_v16  ;;  %v1854_v45 = vadd.f32 %v11506_v55, %v1714_v18  ;;  %10104 = verf.f32 %v3596_v24  ;;  %v2684_v36 = vadd.f32 %v17084_v62, %v12556_v31  ;;  %v13104_v38 = vmul.f32 0.5, %v2682_v32  ;;  %v9803_v41 = vld [vmem:[%s16612_s6 + $0x344] ss:$16 sps:$4 sm:$0xff]  }
 0x2c5   : > { %v3037_v30 = vadd.f32 %v17085_v21, %v12561_v5  ;;  %v1573_v43 = vmul.f32 %v10085_v22, %v17087_v42  ;;  %v2108_v16 = vadd.f32 %v1980_v19, %v1852_v28  ;;  %v1711_v52 = vmul.f32 %v11480_v50, %v1571_v35  ;;  %v9801_v22 = vld [vmem:[%s16612_s6 + $0x340] ss:$16 sps:$4 sm:$0xff]   ;;  %17091 = vst [vmem:[#allocation16_spill] sm:$0xff] %v13127_v26 }
 0x2c6   : > { %v2110_v18 = vadd.f32 %v1982_v33, %v1854_v45  ;;  %10106 = verf.f32 %v3598_v27  ;;  %v3599_v24 = vmul.f32 0.70710677, %v2682_v32  ;;  %v2686_v62 = vadd.f32 %v17088_v11, %v12291_v1  ;;  %v13118_v45 = vpop.f32.mrf.mxu0  ;;  %v1255_v32 = vpop.xlane.xlu0 %1254  ;;  %v1979_v42 = vld [vmem:[%s11564_s14 + $0x360] sm:$0xff]  ;;  %7416 = vmatprep.subr.bf16.mxu1 %v9803_v41 }
 0x2c7   : > { %v1713_v21 = vmul.f32 %v11480_v50, %v1573_v43  ;;  %v10091_v28 = vpop.eup %10090  ;;  %v13116_v19 = vmul.f32 0.5, %v3035_v54  ;;  %v3601_v33 = vmul.f32 0.70710677, %v3035_v54  ;;  %17089 = vst [vmem:[#allocation6_spill] sm:$0xff] %v13118_v45  ;;  %v1851_v35 = vadd.f32 %v11496_v34, %v1711_v52  ;;  %v1981_v43 = vld [vmem:[%s11564_s14 + $0x370] sm:$0xff]  ;;  %v17090_v8 = vld [vmem:[#allocation75_spill] sm:$0xff]  ;;  %7417 = vmatpush2.bf16.msra.mxu1 %v9801_v22 }
 0x2c8   : > { %v2182_v27 = vpack.c.bf16 %v2110_v18, %v2108_v16  ;;  %v4102_v11 = vadd.f32 1.0, %v10087_v47  ;;  %v13123_v10 = vmul.f32 0.5, %v2684_v36  ;;  %v3039_v29 = vadd.f32 %v17090_v8, %v12297_v56  ;;  %v9804_v54 = vld [vmem:[%s16612_s6 + $0x120] ss:$16 sps:$4 sm:$0xff]   ;;  %v9806_v16 = vld [vmem:[%s16612_s6 + $0x124] ss:$16 sps:$4 sm:$0xff]   ;;  %v13148_v22 = vpop.f32.mrf.mxu0  ;;  %7418 = vmatprep.subr.bf16.mxu1 %v9809_v3 }
 0x2c9   : > { %v1853_v7 = vadd.f32 %v11496_v34, %v1713_v21  ;;  %v10093_v47 = vpop.eup %10092  ;;  %v4103_v18 = vadd.f32 1.0, %v10089_v59  ;;  %v3600_v52 = vmul.f32 0.70710677, %v2684_v36  ;;  %v13136_v45 = vmul.f32 0.5, %v3037_v30  ;;  %v17092_v8 = vld [vmem:[#allocation7_spill] sm:$0xff]  ;;  %7065 = vmatprep.subr.bf16.mxu0 %v9806_v16 }
 0x2ca   : > { %v2688_v26 = vadd.f32 %v17092_v8, %v12556_v31  ;;  %2899 = vmatprep.mubr.bf16.mxu0 %v2182_v27  ;;  %3252 = vmatprep.mubr.bf16.mxu1 %v2182_v27  ;;  %v10095_v21 = vpop.eup %10094  ;;  %v3602_v41 = vmul.f32 0.70710677, %v3037_v30  ;;  %v1329_v9 = vmul.f32 0.00390625, %v1255_v32  ;;  %v2107_v60 = vadd.f32 %v1979_v42, %v1851_v35  ;;  %v9807_v27 = vld [vmem:[%s16612_s6 + $0x320] ss:$16 sps:$4 sm:$0xff]   ;;  %v13150_v35 = vpop.f32.mrf.mxu1 }
 0x2cb   : > { %v2109_v23 = vadd.f32 %v1981_v43, %v1853_v7  ;;  %10108 = verf.f32 %v3599_v24  ;;  %v13143_v59 = vmul.f32 0.5, %v2686_v62  ;;  %v3603_v36 = vmul.f32 0.70710677, %v2686_v62  ;;  %7066 = vmatpush2.bf16.msra.mxu0 %v9804_v54  ;;  %v17094_v43 = vld [vmem:[#allocation9_spill] sm:$0xff]  ;;  %7419 = vmatpush2.bf16.msra.mxu1 %v9807_v27 }
 0x2cc   : > { %v1330_v48 = vmul.f32 0.00390625, %v1258_v51  ;;  %v10097_v30 = vpop.eup %10096  ;;  %v4105_v32 = vadd.f32 1.0, %v10091_v28  ;;  %10110 = verf.f32 %v3601_v33  ;;  %v3605_v7 = vmul.f32 0.70710677, %v3039_v29  ;;  %v9810_v28 = vld [vmem:[%s16612_s6 + $0x100] ss:$16 sps:$4 sm:$0xff]  }
 0x2cd   : > { %v2181_v42 = vpack.c.bf16 %v2109_v23, %v2107_v60  ;;  %v10099_v24 = vpop.eup %10098  ;;  %v13154_v62 = vmul.f32 %v13077_v0, %v12946_v15  ;;  %10112 = verf.f32 %v3600_v52  ;;  %v3604_v51 = vmul.f32 0.70710677, %v2688_v26  ;;  %v9812_v33 = vld [vmem:[%s16612_s6 + $0x104] ss:$16 sps:$4 sm:$0xff]  }
 0x2ce   : > { %v3041_v54 = vadd.f32 %v17094_v43, %v12561_v5  ;;  %v10101_v23 = vpop.eup %10100  ;;  %v4104_v3 = vadd.f32 1.0, %v10093_v47  ;;  %v4106_v60 = vadd.f32 1.0, %v10095_v21  ;;  %10114 = verf.f32 %v3602_v41  ;;  %7067 = vmatprep.subr.bf16.mxu0 %v9812_v33  ;;  %v9813_v47 = vld [vmem:[%s16612_s6 + $0x300] ss:$16 sps:$4 sm:$0xff]  }
 0x2cf   : > { %17093 = vst [vmem:[#allocation68_spill] sm:$0xff] %v13154_v62  ;;  %v1393_v16 = vadd.f32 1e-05, %v1329_v9  ;;  %2900 = vmatmul.mubr.bf16.gmra.mxu0 %v2181_v42  ;;  %3253 = vmatmul.mubr.bf16.gmra.mxu1 %v2181_v42  ;;  %v10103_v15 = vpop.eup %10102  ;;  %v13165_v0 = vmul.f32 %v4102_v11, %v12975_v58  ;;  %v13168_v52 = vmul.f32 %v4103_v18, %v12984_v57  ;;  %10116 = verf.f32 %v3603_v36  ;;  %v9815_v9 = vld [vmem:[%s16612_s6 + $0x304] ss:$16 sps:$4 sm:$0xff]   ;;  %v13183_v11 = vpop.f32.mrf.mxu0  ;;  %v17097_v36 = vld [vmem:[#allocation8_spill] sm:$0xff] }
 0x2d0   : > { %v1394_v8 = vadd.f32 1e-05, %v1330_v48  ;;  %v13177_v21 = vmul.f32 %v4105_v32, %v13006_v2  ;;  %v13179_v58 = vmul.f32 0.5, %v3039_v29  ;;  %10118 = verf.f32 %v3605_v7  ;;  %v13185_v48 = vpop.f32.mrf.mxu1  ;;  %7068 = vmatpush2.bf16.msra.mxu0 %v9810_v28  ;;  %v17098_v42 = vld [vmem:[#allocation46_spill] sm:$0xff]  ;;  %7420 = vmatprep.subr.bf16.mxu1 %v9815_v9  ;;  %v17102_v7 = vld [vmem:[#allocation48_spill] sm:$0xff] }
 0x2d1   : > { %17095 = vst [vmem:[#allocation69_spill] sm:$0xff] %v13165_v0  ;;  %v13181_v57 = vmul.f32 0.5, %v2688_v26  ;;  %17096 = vst [vmem:[#allocation15_spill] sm:$0xff] %v13185_v48  ;;  %v10105_v18 = vpop.eup %10104  ;;  %10120 = verf.f32 %v3604_v51  ;;  %v3606_v41 = vmul.f32 0.70710677, %v3041_v54  ;;  %v2692_v27 = vadd.f32 %v17097_v36, %v12291_v1  ;;  %v13195_v26 = vpop.f32.mrf.mxu0  ;;  %v17104_v9 = vld [vmem:[#allocation24_spill] sm:$0xff]  ;;  %7421 = vmatpush2.bf16.msra.mxu1 %v9813_v47 }
 0x2d2   : > { %v1576_v43 = vmul.f32 %v10101_v23, %v17098_v42  ;;  %v13191_v2 = vmul.f32 %v4104_v3, %v13020_v20  ;;  %v13193_v29 = vmul.f32 0.5, %v3041_v54  ;;  %10122 = vrsqrt.f32 %v1393_v16  ;;  %17100 = vst [vmem:[#allocation72_spill] sm:$0xff] %v13195_v26  ;;  %v13197_v32 = vpop.f32.mrf.mxu1 }
 0x2d3   : > { %17101 = vst [vmem:[#allocation14_spill] sm:$0xff] %v13197_v32  ;;  %v1578_v51 = vmul.f32 %v10103_v15, %v17102_v7  ;;  %v10107_v28 = vpop.eup %10106  ;;  %v13201_v33 = vmul.f32 %v4106_v60, %v13038_v25  ;;  %v3045_v36 = vadd.f32 %v17104_v9, %v12297_v56  ;;  %v2694_v20 = vadd.f32 %v12851_v39, %v12556_v31  ;;  %v1984_v25 = vld [vmem:[%s11564_s14 + $0x388] sm:$0xff]  ;;  %v1986_v60 = vld [vmem:[%s11564_s14 + $0x398] sm:$0xff]  ;;  %v17106_v9 = vld [vmem:[#allocation47_spill] sm:$0xff] }
 0x2d4   : > { %17099 = vst [vmem:[#allocation71_spill] sm:$0xff] %v13191_v2  ;;  %10124 = vrsqrt.f32 %v1394_v8  ;;  %v4107_v54 = vadd.f32 1.0, %v10097_v30  ;;  %v3047_v3 = vadd.f32 %v12859_v53, %v12561_v5  ;;  %v1716_v16 = vmul.f32 %v11493_v12, %v1576_v43  ;;  %v13217_v30 = vpop.f32.mrf.mxu0  ;;  %v13219_v53 = vpop.f32.mrf.mxu1 }
 0x2d5   : > { %17103 = vst [vmem:[#allocation74_spill] sm:$0xff] %v13201_v33  ;;  %v1718_v42 = vmul.f32 %v11493_v12, %v1578_v51  ;;  %10126 = verf.f32 %v3606_v41  ;;  %v3607_v7 = vmul.f32 0.70710677, %v2692_v27  ;;  %v17105_v33 = vld [vmem:[#allocation45_spill] sm:$0xff]  ;;  %v1577_v0 = vmul.f32 %v10103_v15, %v17106_v9  ;;  %17107 = vst [vmem:[#allocation75_spill] sm:$0xff] %v13217_v30 }
 0x2d6   : > { %v1575_v2 = vmul.f32 %v10101_v23, %v17105_v33  ;;  %v4109_v62 = vadd.f32 1.0, %v10099_v24  ;;  %v13215_v39 = vmul.f32 0.5, %v2692_v27  ;;  %17108 = vst [vmem:[#allocation7_spill] sm:$0xff] %v13219_v53  ;;  %v1856_v8 = vadd.f32 %v11506_v55, %v1716_v16  ;;  %v9818_v24 = vld [vmem:[%s16612_s6 + $0xec] ss:$16 sps:$4 sm:$0xff]   ;;  %v1983_v53 = vld [vmem:[%s11564_s14 + $0x380] sm:$0xff] }
 0x2d7   : > { %v1858_v47 = vadd.f32 %v11506_v55, %v1718_v42  ;;  %v13223_v41 = vmul.f32 0.5, %v3045_v36  ;;  %v3609_v43 = vmul.f32 0.70710677, %v3045_v36  ;;  %v1717_v15 = vmul.f32 %v11480_v50, %v1577_v0  ;;  %v1985_v42 = vld [vmem:[%s11564_s14 + $0x390] sm:$0xff]  ;;  %7743 = vmatprep.subr.bf16.mxu0 %v9818_v24 }
 0x2d8   : > { %v1715_v23 = vmul.f32 %v11480_v50, %v1575_v2  ;;  %v10109_v27 = vpop.eup %10108  ;;  %v4363_v51 = vmul.f32 %v4107_v54, %v13053_v40  ;;  %v13231_v33 = vmul.f32 0.5, %v2694_v20  ;;  %v2112_v9 = vadd.f32 %v1984_v25, %v1856_v8  ;;  %v13240_v54 = vpop.f32.mrf.mxu0 }
 0x2d9   : > { %v2114_v16 = vadd.f32 %v1986_v60, %v1858_v47  ;;  %v10111_v30 = vpop.eup %10110  ;;  %v4108_v32 = vadd.f32 1.0, %v10105_v18  ;;  %10128 = verf.f32 %v3607_v7  ;;  %v1857_v0 = vadd.f32 %v11496_v34, %v1717_v15  ;;  %v13242_v25 = vpop.f32.mrf.mxu1 }
 0x2da   : > { %v1855_v2 = vadd.f32 %v11496_v34, %v1715_v23  ;;  %v10113_v36 = vpop.eup %10112  ;;  %v4365_v26 = vmul.f32 %v4109_v62, %v13056_v4  ;;  %v3608_v48 = vmul.f32 0.70710677, %v2694_v20  ;;  %v2696_v40 = vadd.f32 %v12869_v14, %v12291_v1 }
 0x2db   : > { %v2184_v60 = vpack.c.bf16 %v2114_v16, %v2112_v9  ;;  %v10115_v8 = vpop.eup %10114  ;;  %v4110_v18 = vadd.f32 1.0, %v10107_v28  ;;  %v3049_v7 = vadd.f32 %v12874_v17, %v12297_v56  ;;  %v2113_v23 = vadd.f32 %v1985_v42, %v1857_v0 }
 0x2dc   : > { %v2111_v47 = vadd.f32 %v1983_v53, %v1855_v2  ;;  %v10117_v15 = vpop.eup %10116  ;;  %v13247_v24 = vpack.c.bf16 %v4363_v51, %v13168_v52  ;;  %10130 = verf.f32 %v3609_v43  ;;  %v13249_v4 = vmul.f32 0.5, %v3047_v3  ;;  %v13256_v43 = vpop.f32.mrf.mxu0 }
 0x2dd   : > { %v3610_v14 = vmul.f32 0.70710677, %v3047_v3  ;;  %2909 = vmatprep.mubr.bf16.mxu0 %v2184_v60  ;;  %3262 = vmatprep.mubr.bf16.mxu1 %v2184_v60  ;;  %v10119_v62 = vpop.eup %10118  ;;  %v13252_v20 = vmul.f32 %v4108_v32, %v13060_v63  ;;  %v4111_v28 = vadd.f32 1.0, %v10109_v27  ;;  %v2698_v17 = vadd.f32 %v12888_v46, %v12556_v31  ;;  %v13258_v51 = vpop.f32.mrf.mxu1  ;;  %v9821_v60 = vld [vmem:[%s16612_s6 + $0x2ec] ss:$16 sps:$4 sm:$0xff]  }
 0x2de   : > { %17109 = vst [vmem:[#allocation9_spill] sm:$0xff] %v13247_v24  ;;  %v2183_v53 = vpack.c.bf16 %v2113_v23, %v2111_v47  ;;  %v10121_v9 = vpop.eup %10120  ;;  %v4113_v16 = vadd.f32 1.0, %v10111_v30  ;;  %v4112_v42 = vadd.f32 1.0, %v10113_v36  ;;  %10132 = verf.f32 %v3608_v48  ;;  %8096 = vmatprep.subr.bf16.mxu1 %v9821_v60  ;;  %v1990_v60 = vld [vmem:[%s11564_s14 + $0x3b8] sm:$0xff] }
 0x2df   : > { %17110 = vst [vmem:[#allocation8_spill] sm:$0xff] %v13252_v20  ;;  %v3611_v52 = vmul.f32 0.70710677, %v2696_v40  ;;  %v10123_v3 = vpop.eup %10122  ;;  %v13261_v2 = vpack.c.bf16 %v4365_v26, %v13177_v21  ;;  %v13264_v63 = vmul.f32 %v4110_v18, %v13088_v13  ;;  %v3613_v32 = vmul.f32 0.70710677, %v3049_v7 }
 0x2e0   : > { %v3051_v46 = vadd.f32 %v12895_v44, %v12561_v5  ;;  %2910 = vmatmul.mubr.bf16.gmra.mxu0 %v2183_v53  ;;  %3263 = vmatmul.mubr.bf16.gmra.mxu1 %v2183_v53  ;;  %v4114_v48 = vadd.f32 1.0, %v10115_v8  ;;  %10134 = verf.f32 %v3610_v14  ;;  %v13268_v27 = vmul.f32 0.5, %v2696_v40  ;;  %v13284_v40 = vpop.f32.mrf.mxu0  ;;  %v17115_v14 = vld [vmem:[#allocation20_spill] sm:$0xff] }
 0x2e1   : > { %17111 = vst [vmem:[#allocation46_spill] sm:$0xff] %v13261_v2  ;;  %17112 = vst [vmem:[#allocation48_spill] sm:$0xff] %v13264_v63  ;;  %v10125_v30 = vpop.eup %10124  ;;  %v13270_v0 = vmul.f32 0.5, %v3049_v7  ;;  %v4367_v36 = vmul.f32 %v4111_v28, %v13104_v38  ;;  %v4115_v21 = vadd.f32 1.0, %v10117_v15  ;;  %v13273_v26 = vmul.f32 0.5, %v2698_v17  ;;  %v13286_v7 = vpop.f32.mrf.mxu1  ;;  %v17114_v38 = vld [vmem:[#allocation21_spill] sm:$0xff] }
 0x2e2   : > { %v3612_v13 = vmul.f32 0.70710677, %v2698_v17  ;;  %v10127_v44 = vpop.eup %10126  ;;  %v13279_v18 = vmul.f32 %v4113_v16, %v13116_v19  ;;  %v13282_v8 = vmul.f32 %v4112_v42, %v13123_v10  ;;  %10136 = verf.f32 %v3611_v52 }
 0x2e3   : > { %v1580_v47 = vmul.f32 %v10123_v3, %v17114_v38  ;;  %v4117_v23 = vadd.f32 1.0, %v10119_v62  ;;  %10138 = verf.f32 %v3613_v32  ;;  %v3614_v15 = vmul.f32 0.70710677, %v3051_v46  ;;  %v13304_v32 = vpop.f32.mrf.mxu0  ;;  %v17117_v38 = vld [vmem:[#allocation19_spill] sm:$0xff] }
 0x2e4   : > { %17113 = vst [vmem:[#allocation24_spill] sm:$0xff] %v13282_v8  ;;  %v1582_v28 = vmul.f32 %v10125_v30, %v17115_v14  ;;  %v13291_v19 = vmul.f32 %v4114_v48, %v13136_v45  ;;  %v13293_v10 = vmul.f32 0.5, %v3051_v46  ;;  %v2702_v17 = vadd.f32 %v12910_v49, %v12291_v1  ;;  %v13306_v46 = vpop.f32.mrf.mxu1  ;;  %v1988_v48 = vld [vmem:[%s11564_s14 + $0x3a8] sm:$0xff] }
 0x2e5   : > { %v1720_v53 = vmul.f32 %v11493_v12, %v1580_v47  ;;  %v4371_v16 = vmul.f32 %v4115_v21, %v13143_v59  ;;  %10140 = verf.f32 %v3612_v13  ;;  %v3055_v62 = vadd.f32 %v12915_v61, %v12297_v56  ;;  %v17118_v21 = vld [vmem:[#allocation18_spill] sm:$0xff] }
 0x2e6   : > { %17116 = vst [vmem:[#allocation45_spill] sm:$0xff] %v13291_v19  ;;  %v1722_v42 = vmul.f32 %v11493_v12, %v1582_v28  ;;  %v10129_v52 = vpop.eup %10128  ;;  %v2704_v45 = vadd.f32 %v12924_v6, %v12556_v31  ;;  %v1579_v59 = vmul.f32 %v10123_v3, %v17117_v38  ;;  %v1581_v61 = vmul.f32 %v10125_v30, %v17118_v21  ;;  %v17119_v38 = vld [vmem:[#allocation27_spill] sm:$0xff]  ;;  %v13327_v19 = vpop.f32.mrf.mxu0 }
 0x2e7   : > { %v1860_v49 = vadd.f32 %v11506_v55, %v1720_v53  ;;  %v4373_v13 = vmul.f32 %v4117_v23, %v13179_v58  ;;  %v4116_v47 = vadd.f32 1.0, %v10121_v9  ;;  %10142 = verf.f32 %v3614_v15  ;;  %v1987_v9 = vld [vmem:[%s11564_s14 + $0x3a0] sm:$0xff]  ;;  %v1989_v23 = vld [vmem:[%s11564_s14 + $0x3b0] sm:$0xff] }
 0x2e8   : > { %v1862_v6 = vadd.f32 %v11506_v55, %v1722_v42  ;;  %v3615_v14 = vmul.f32 0.70710677, %v2702_v17  ;;  %v13317_v28 = vadd.f32 %v12952_v37, %v12291_v1  ;;  %v1719_v53 = vmul.f32 %v11480_v50, %v1579_v59  ;;  %v13329_v37 = vpop.f32.mrf.mxu1 }
 0x2e9   : > { %v1721_v2 = vmul.f32 %v11480_v50, %v1581_v61  ;;  %v10131_v24 = vpop.eup %10130  ;;  %v3617_v3 = vmul.f32 0.70710677, %v3055_v62  ;;  %v3057_v30 = vadd.f32 %v17119_v38, %v12561_v5  ;;  %v2116_v21 = vadd.f32 %v1988_v48, %v1860_v49  ;;  %v17122_v49 = vld [vmem:[#allocation32_spill] sm:$0xff] }
 0x2ea   : > { %v2118_v58 = vadd.f32 %v1990_v60, %v1862_v6  ;;  %v13325_v15 = vpack.c.bf16 %v4371_v16, %v4367_v36  ;;  %v3616_v42 = vmul.f32 0.70710677, %v2704_v45  ;;  %v1859_v59 = vadd.f32 %v11496_v34, %v1719_v53 }
 0x2eb   : > { %v1861_v61 = vadd.f32 %v11496_v34, %v1721_v2  ;;  %v10133_v8 = vpop.eup %10132  ;;  %v13334_v63 = vmul.f32 %v4116_v47, %v13181_v57  ;;  %v4118_v38 = vadd.f32 1.0, %v10127_v44  ;;  %v3059_v48 = vadd.f32 %v17122_v49, %v12297_v56  ;;  %v17123_v2 = vld [vmem:[#allocation36_spill] sm:$0xff]  ;;  %v13343_v47 = vpop.f32.mrf.mxu0 }
 0x2ec   : > { %17120 = vst [vmem:[#allocation47_spill] sm:$0xff] %v13325_v15  ;;  %v2186_v60 = vpack.c.bf16 %v2118_v58, %v2116_v21  ;;  %10144 = verf.f32 %v3615_v14  ;;  %v3619_v36 = vmul.f32 0.70710677, %v13317_v28  ;;  %v2115_v16 = vadd.f32 %v1987_v9, %v1859_v59  ;;  %v13345_v14 = vpop.f32.mrf.mxu1 }
 0x2ed   : > { %17121 = vst [vmem:[#allocation21_spill] sm:$0xff] %v13334_v63  ;;  %v2117_v6 = vadd.f32 %v1989_v23, %v1861_v61  ;;  %v10135_v15 = vpop.eup %10134  ;;  %v13339_v20 = vmul.f32 0.5, %v2702_v17  ;;  %10146 = verf.f32 %v3617_v3  ;;  %v3618_v53 = vmul.f32 0.70710677, %v3057_v30 }
 0x2ee   : > { %v2708_v34 = vadd.f32 %v17123_v2, %v12556_v31  ;;  %2919 = vmatprep.mubr.bf16.mxu0 %v2186_v60  ;;  %3272 = vmatprep.mubr.bf16.mxu1 %v2186_v60  ;;  %v4119_v57 = vadd.f32 1.0, %v10129_v52  ;;  %v4121_v44 = vadd.f32 1.0, %v10131_v24  ;;  %10148 = verf.f32 %v3616_v42  ;;  %v17126_v24 = vld [vmem:[#allocation12_spill] sm:$0xff] }
 0x2ef   : > { %v2185_v21 = vpack.c.bf16 %v2117_v6, %v2115_v16  ;;  %v10137_v58 = vpop.eup %10136  ;;  %v13348_v9 = vpack.c.bf16 %v4373_v13, %v13279_v18  ;;  %v13351_v17 = vmul.f32 %v4118_v38, %v13193_v29  ;;  %v13353_v3 = vmul.f32 0.5, %v3055_v62  ;;  %v17127_v29 = vld [vmem:[#allocation35_spill] sm:$0xff]  ;;  %v17128_v60 = vld [vmem:[#allocation40_spill] sm:$0xff]  ;;  %v13367_v16 = vpop.f32.mrf.mxu0 }
 0x2f0   : > { %v3621_v23 = vmul.f32 0.70710677, %v3059_v48  ;;  %v10139_v59 = vpop.eup %10138  ;;  %v4120_v61 = vadd.f32 1.0, %v10133_v8  ;;  %v13355_v52 = vmul.f32 0.5, %v2704_v45  ;;  %10150 = verf.f32 %v3619_v36  ;;  %v13369_v6 = vpop.f32.mrf.mxu1 }
 0x2f1   : > { %17124 = vst [vmem:[#allocation20_spill] sm:$0xff] %v13348_v9  ;;  %17125 = vst [vmem:[#allocation19_spill] sm:$0xff] %v13351_v17  ;;  %v3061_v42 = vadd.f32 %v17126_v24, %v12561_v5  ;;  %2920 = vmatmul.mubr.bf16.gmra.mxu0 %v2185_v21  ;;  %3273 = vmatmul.mubr.bf16.gmra.mxu1 %v2185_v21  ;;  %v13359_v49 = vmul.f32 0.5, %v3057_v30  ;;  %10152 = verf.f32 %v3618_v53  ;;  %v3620_v18 = vmul.f32 0.70710677, %v2708_v34  ;;  %v17129_v53 = vld [vmem:[#allocation44_spill] sm:$0xff] }
 0x2f2   : > { %v2712_v13 = vadd.f32 %v17127_v29, %v12291_v1  ;;  %v10141_v62 = vpop.eup %10140  ;;  %v4375_v38 = vmul.f32 %v4119_v57, %v13215_v39  ;;  %v4377_v8 = vmul.f32 %v4121_v44, %v13223_v41  ;;  %v4123_v45 = vadd.f32 1.0, %v10137_v58  ;;  %v17131_v57 = vld [vmem:[#allocation51_spill] sm:$0xff] }
 0x2f3   : > { %v3065_v36 = vadd.f32 %v17128_v60, %v12297_v56  ;;  %v4122_v30 = vadd.f32 1.0, %v10135_v15  ;;  %v4125_v2 = vadd.f32 1.0, %v10139_v59  ;;  %10154 = verf.f32 %v3621_v23  ;;  %v17132_v23 = vld [vmem:[#allocation43_spill] sm:$0xff] }
 0x2f4   : > { %v2714_v21 = vadd.f32 %v17129_v53, %v12556_v31  ;;  %v10143_v24 = vpop.eup %10142  ;;  %v13374_v29 = vmul.f32 %v4120_v61, %v13231_v33  ;;  %v13377_v39 = vmul.f32 0.5, %v13317_v28  ;;  %v3622_v41 = vmul.f32 0.70710677, %v3061_v42  ;;  %v13388_v61 = vpop.f32.mrf.mxu0 }
 0x2f5   : > { %v3067_v44 = vadd.f32 %v17131_v57, %v12561_v5  ;;  %v13381_v58 = vmul.f32 0.5, %v3059_v48  ;;  %10156 = verf.f32 %v3620_v18  ;;  %v3623_v15 = vmul.f32 0.70710677, %v2712_v13  ;;  %v13390_v28 = vpop.f32.mrf.mxu1  ;;  %v17134_v57 = vld [vmem:[#allocation64_spill] sm:$0xff] }
 0x2f6   : > { %17130 = vst [vmem:[#allocation18_spill] sm:$0xff] %v13374_v29  ;;  %v2716_v59 = vadd.f32 %v17132_v23, %v12291_v1  ;;  %v4379_v60 = vmul.f32 %v4123_v45, %v13268_v27  ;;  %v4124_v53 = vadd.f32 1.0, %v10141_v62  ;;  %v13386_v9 = vmul.f32 0.5, %v2708_v34 }
 0x2f7   : > { %v3625_v33 = vmul.f32 0.70710677, %v3065_v36  ;;  %v13393_v29 = vmul.f32 %v4122_v30, %v13249_v4  ;;  %v4381_v48 = vmul.f32 %v4125_v2, %v13270_v0  ;;  %v3624_v18 = vmul.f32 0.70710677, %v2714_v21  ;;  %v17137_v2 = vld [vmem:[#allocation60_spill] sm:$0xff] }
 0x2f8   : > { %v3069_v17 = vadd.f32 %v17134_v57, %v12297_v56  ;;  %v4126_v23 = vadd.f32 1.0, %v10143_v24  ;;  %v13398_v63 = vmul.f32 0.5, %v3061_v42  ;;  %10158 = verf.f32 %v3622_v41  ;;  %v13411_v24 = vpop.f32.mrf.mxu0  ;;  %v13413_v41 = vpop.f32.mrf.mxu1 }
 0x2f9   : > { %17133 = vst [vmem:[#allocation27_spill] sm:$0xff] %v13393_v29  ;;  %v3626_v34 = vmul.f32 0.70710677, %v3067_v44  ;;  %v10145_v27 = vpop.eup %10144  ;;  %v13400_v62 = vmul.f32 0.5, %v2712_v13  ;;  %10160 = verf.f32 %v3623_v15  ;;  %v13402_v45 = vmul.f32 0.5, %v3065_v36  ;;  %17138 = vst [vmem:[#allocation12_spill] sm:$0xff] %v13413_v41 }
 0x2fa   : > { %v3627_v55 = vmul.f32 0.70710677, %v2716_v59  ;;  %v10147_v4 = vpop.eup %10146  ;;  %v13404_v30 = vpack.c.bf16 %v4379_v60, %v4375_v38  ;;  %v13407_v0 = vmul.f32 %v4124_v53, %v13273_v26  ;;  %10162 = verf.f32 %v3625_v33  ;;  %v17140_v15 = vld [vmem:[#allocation62_spill] sm:$0xff] }
 0x2fb   : > { %v2718_v42 = vadd.f32 %v17137_v2, %v12556_v31  ;;  %v10149_v13 = vpop.eup %10148  ;;  %v13415_v57 = vpack.c.bf16 %v4381_v48, %v4377_v8  ;;  %10164 = verf.f32 %v3624_v18  ;;  %v3629_v36 = vmul.f32 0.70710677, %v3069_v17  ;;  %v17142_v8 = vld [vmem:[#allocation5_spill] sm:$0xff] }
 0x2fc   : > { %17135 = vst [vmem:[#allocation32_spill] sm:$0xff] %v13404_v30  ;;  %17136 = vst [vmem:[#allocation36_spill] sm:$0xff] %v13407_v0  ;;  %v3071_v38 = vadd.f32 %v17140_v15, %v12561_v5  ;;  %v13420_v60 = vmul.f32 %v4126_v23, %v13293_v10  ;;  %v4127_v26 = vadd.f32 1.0, %v10145_v27  ;;  %v13422_v53 = vmul.f32 0.5, %v2714_v21  ;;  %v13434_v21 = vpop.f32.mrf.mxu0  ;;  %v13436_v23 = vpop.f32.mrf.mxu1 }
 0x2fd   : > { %17139 = vst [vmem:[#allocation35_spill] sm:$0xff] %v13415_v57  ;;  %10166 = verf.f32 %v3626_v34  ;;  %v10151_v33 = vpop.eup %10150  ;;  %v4129_v2 = vadd.f32 1.0, %v10147_v4  ;;  %v13424_v30 = vmul.f32 0.5, %v3067_v44  ;;  %v2722_v48 = vadd.f32 %v17142_v8, %v12291_v1  ;;  %17143 = vst [vmem:[#allocation44_spill] sm:$0xff] %v13434_v21 }
 0x2fe   : > { %17141 = vst [vmem:[#allocation40_spill] sm:$0xff] %v13420_v60  ;;  %10168 = verf.f32 %v3627_v55  ;;  %v10153_v18 = vpop.eup %10152  ;;  %v4128_v57 = vadd.f32 1.0, %v10149_v13  ;;  %v13428_v29 = vmul.f32 0.5, %v2716_v59  ;;  %v3628_v15 = vmul.f32 0.70710677, %v2718_v42  ;;  %17144 = vst [vmem:[#allocation51_spill] sm:$0xff] %v13436_v23 }
 0x2ff   : > { %v13432_v10 = vadd.f32 %v13148_v22, %v12291_v1  ;;  %v13438_v34 = vmul.f32 0.5, %v3069_v17  ;;  %10170 = verf.f32 %v3629_v36  ;;  %v3630_v55 = vmul.f32 0.70710677, %v3071_v38  ;;  %v17145_v22 = vld [vmem:[#allocation17_spill] sm:$0xff]  ;;  %v17146_v36 = vld [vmem:[#allocation6_spill] sm:$0xff] }
 0x300   : > { %v13442_v44 = vadd.f32 %v13150_v35, %v12297_v56  ;;  %v10155_v27 = vpop.eup %10154  ;;  %v4383_v59 = vmul.f32 %v4127_v26, %v13339_v20  ;;  %v4131_v4 = vadd.f32 1.0, %v10151_v33  ;;  %v13445_v13 = vmul.f32 0.5, %v2718_v42  ;;  %v17148_v20 = vld [vmem:[#allocation16_spill] sm:$0xff]  ;;  %v13458_v33 = vpop.f32.mrf.mxu0 }
 0x301   : > { %v3075_v8 = vadd.f32 %v17145_v22, %v12297_v56  ;;  %v4385_v60 = vmul.f32 %v4129_v2, %v13353_v3  ;;  %v4130_v0 = vadd.f32 1.0, %v10153_v18  ;;  %v3631_v17 = vmul.f32 0.70710677, %v2722_v48  ;;  %17149 = vst [vmem:[#allocation64_spill] sm:$0xff] %v13458_v33  ;;  %v13460_v22 = vpop.f32.mrf.mxu1 }
 0x302   : > { %v2724_v50 = vadd.f32 %v17146_v36, %v12556_v31  ;;  %v10157_v12 = vpop.eup %10156  ;;  %v13453_v35 = vmul.f32 %v4128_v57, %v13355_v52  ;;  %10172 = verf.f32 %v3628_v15  ;;  %v3077_v26 = vadd.f32 %v17148_v20, %v12561_v5  ;;  %17150 = vst [vmem:[#allocation60_spill] sm:$0xff] %v13460_v22  ;;  %v17151_v36 = vld [vmem:[#allocation15_spill] sm:$0xff] }
 0x303   : > { %v3635_v42 = vmul.f32 0.70710677, %v13432_v10  ;;  %v4133_v3 = vadd.f32 1.0, %v10155_v27  ;;  %10174 = verf.f32 %v3630_v55  ;;  %v3637_v2 = vmul.f32 0.70710677, %v13442_v44 }
 0x304   : > { %17147 = vst [vmem:[#allocation43_spill] sm:$0xff] %v13453_v35  ;;  %v13465_v18 = vadd.f32 %v13183_v11, %v12556_v31  ;;  %v4387_v52 = vmul.f32 %v4131_v4, %v13377_v39  ;;  %v13468_v57 = vmul.f32 0.5, %v3071_v38  ;;  %v3633_v15 = vmul.f32 0.70710677, %v3075_v8  ;;  %v13481_v38 = vpop.f32.mrf.mxu0  ;;  %v13483_v4 = vpop.f32.mrf.mxu1 }
 0x305   : > { %v13472_v20 = vadd.f32 %v17151_v36, %v12561_v5  ;;  %v10159_v35 = vpop.eup %10158  ;;  %v13475_v22 = vmul.f32 %v4130_v0, %v13359_v49  ;;  %v4132_v55 = vadd.f32 1.0, %v10157_v12  ;;  %10176 = verf.f32 %v3631_v17  ;;  %17153 = vst [vmem:[#allocation5_spill] sm:$0xff] %v13483_v4 }
 0x306   : > { %v3632_v27 = vmul.f32 0.70710677, %v2724_v50  ;;  %v10161_v33 = vpop.eup %10160  ;;  %v13477_v23 = vmul.f32 0.5, %v2722_v48  ;;  %v13479_v11 = vmul.f32 0.5, %v3075_v8  ;;  %v3634_v39 = vmul.f32 0.70710677, %v3077_v26 }
 0x307   : > { %17152 = vst [vmem:[#allocation62_spill] sm:$0xff] %v13475_v22  ;;  %10178 = verf.f32 %v3635_v42  ;;  %v10163_v36 = vpop.eup %10162  ;;  %v4389_v21 = vmul.f32 %v4133_v3, %v13381_v58  ;;  %v13486_v41 = vmul.f32 0.5, %v2724_v50  ;;  %v3636_v12 = vmul.f32 0.70710677, %v13465_v18  ;;  %v17156_v58 = vld [vmem:[#allocation72_spill] sm:$0xff] }
 0x308   : > { %10180 = verf.f32 %v3637_v2  ;;  %v10165_v49 = vpop.eup %10164  ;;  %v13489_v0 = vpack.c.bf16 %v4387_v52, %v4383_v59  ;;  %v4134_v48 = vadd.f32 1.0, %v10159_v35  ;;  %v3638_v8 = vmul.f32 0.70710677, %v13472_v20  ;;  %v17157_v59 = vld [vmem:[#allocation14_spill] sm:$0xff]  ;;  %v13505_v52 = vpop.f32.mrf.mxu0 }
 0x309   : > { %10182 = verf.f32 %v3633_v15  ;;  %v13493_v42 = vmul.f32 %v4132_v55, %v13386_v9  ;;  %v4135_v22 = vadd.f32 1.0, %v10161_v33  ;;  %v13497_v50 = vadd.f32 %v17156_v58, %v12291_v1  ;;  %v13507_v15 = vpop.f32.mrf.mxu1  ;;  %v17159_v55 = vld [vmem:[#allocation75_spill] sm:$0xff] }
 0x30a   : > { %17154 = vst [vmem:[#allocation17_spill] sm:$0xff] %v13489_v0  ;;  %v10167_v17 = vpop.eup %10166  ;;  %10184 = verf.f32 %v3632_v27  ;;  %v4137_v2 = vadd.f32 1.0, %v10163_v36  ;;  %v13499_v4 = vmul.f32 0.5, %v3077_v26  ;;  %v13503_v35 = vadd.f32 %v17157_v59, %v12297_v56 }
 0x30b   : > { %17155 = vst [vmem:[#allocation6_spill] sm:$0xff] %v13493_v42  ;;  %v10169_v3 = vpop.eup %10168  ;;  %10186 = verf.f32 %v3634_v39  ;;  %v13509_v9 = vpack.c.bf16 %v4389_v21, %v4385_v60  ;;  %v4136_v33 = vadd.f32 1.0, %v10165_v49  ;;  %v13513_v27 = vadd.f32 %v17159_v55, %v12556_v31 }
 0x30c   : > { %10188 = verf.f32 %v3636_v12  ;;  %v10171_v36 = vpop.eup %10170  ;;  %v13516_v26 = vmul.f32 %v4134_v48, %v13398_v63  ;;  %v4138_v39 = vadd.f32 1.0, %v10167_v17  ;;  %v13520_v58 = vadd.f32 %v13240_v54, %v12291_v1  ;;  %v13537_v17 = vpop.f32.mrf.mxu0 }
 0x30d   : > { %17158 = vst [vmem:[#allocation16_spill] sm:$0xff] %v13509_v9  ;;  %10190 = verf.f32 %v3638_v8  ;;  %v4391_v59 = vmul.f32 %v4135_v22, %v13400_v62  ;;  %v4139_v60 = vadd.f32 1.0, %v10169_v3  ;;  %v3639_v21 = vmul.f32 0.70710677, %v13497_v50  ;;  %v17161_v8 = vld [vmem:[#allocation7_spill] sm:$0xff]  ;;  %v13539_v62 = vpop.f32.mrf.mxu1 }
 0x30e   : > { %17160 = vst [vmem:[#allocation15_spill] sm:$0xff] %v13516_v26  ;;  %v13526_v12 = vadd.f32 %v13242_v25, %v12297_v56  ;;  %v4393_v49 = vmul.f32 %v4137_v2, %v13402_v45  ;;  %v13530_v63 = vmul.f32 0.5, %v13432_v10  ;;  %v3641_v48 = vmul.f32 0.70710677, %v13503_v35 }
 0x30f   : > { %v13535_v54 = vadd.f32 %v17161_v8, %v12561_v5  ;;  %v10173_v22 = vpop.eup %10172  ;;  %v13542_v3 = vmul.f32 %v4136_v33, %v13422_v53  ;;  %v4141_v25 = vadd.f32 1.0, %v10171_v36  ;;  %v3381_v45 = vmul.f32 0.5, %v13442_v44 }
 0x310   : > { %v3640_v10 = vmul.f32 0.70710677, %v13513_v27  ;;  %v10175_v2 = vpop.eup %10174  ;;  %v13547_v55 = vmul.f32 %v4138_v39, %v13424_v30  ;;  %v13550_v8 = vmul.f32 0.5, %v13465_v18  ;;  %v3643_v9 = vmul.f32 0.70710677, %v13520_v58 }
 0x311   : > { %17162 = vst [vmem:[#allocation72_spill] sm:$0xff] %v13542_v3  ;;  %v13555_v0 = vadd.f32 %v13256_v43, %v12556_v31  ;;  %v4395_v53 = vmul.f32 %v4139_v60, %v13428_v29  ;;  %10192 = verf.f32 %v3639_v21  ;;  %v3645_v44 = vmul.f32 0.70710677, %v13526_v12  ;;  %v13568_v43 = vpop.f32.mrf.mxu0 }
 0x312   : > { %17163 = vst [vmem:[#allocation14_spill] sm:$0xff] %v13547_v55  ;;  %v13561_v33 = vadd.f32 %v13258_v51, %v12561_v5  ;;  %v10177_v30 = vpop.eup %10176  ;;  %v4140_v36 = vadd.f32 1.0, %v10173_v22  ;;  %10194 = verf.f32 %v3641_v48  ;;  %v3642_v18 = vmul.f32 0.70710677, %v13535_v54  ;;  %17164 = vst [vmem:[#allocation75_spill] sm:$0xff] %v13568_v43  ;;  %v13570_v55 = vpop.f32.mrf.mxu1 }
 0x313   : > { %v13566_v39 = vadd.f32 %v13284_v40, %v12291_v1  ;;  %17165 = vst [vmem:[#allocation7_spill] sm:$0xff] %v13570_v55  ;;  %v4397_v60 = vmul.f32 %v4141_v25, %v13438_v34  ;;  %v4142_v21 = vadd.f32 1.0, %v10175_v2  ;;  %10196 = verf.f32 %v3640_v10 }
 0x314   : > { %v10179_v29 = vpop.eup %10178  ;;  %v13575_v51 = vadd.f32 %v13286_v7, %v12297_v56  ;;  %v3382_v22 = vmul.f32 0.5, %v13472_v20  ;;  %10198 = verf.f32 %v3643_v9  ;;  %v3644_v40 = vmul.f32 0.70710677, %v13555_v0 }
 0x315   : > { %v10181_v48 = vpop.eup %10180  ;;  %v13581_v3 = vadd.f32 %v13304_v32, %v12556_v31  ;;  %v13583_v42 = vpack.c.bf16 %v4395_v53, %v4391_v59  ;;  %10200 = verf.f32 %v3645_v44  ;;  %v3646_v34 = vmul.f32 0.70710677, %v13561_v33  ;;  %v13595_v32 = vpop.f32.mrf.mxu0 }
 0x316   : > { %v10183_v26 = vpop.eup %10182  ;;  %v13588_v7 = vadd.f32 %v13327_v19, %v12291_v1  ;;  %v4147_v10 = vadd.f32 1.0, %v10179_v29  ;;  %10202 = verf.f32 %v3642_v18  ;;  %v3647_v20 = vmul.f32 0.70710677, %v13566_v39  ;;  %17167 = vst [vmem:[#allocation77_spill] sm:$0xff] %v13595_v32  ;;  %v13597_v59 = vpop.f32.mrf.mxu1 }
 0x317   : > { %17166 = vst [vmem:[#allocation76_spill] sm:$0xff] %v13583_v42  ;;  %v10185_v25 = vpop.eup %10184  ;;  %v13593_v9 = vadd.f32 %v13329_v37, %v12297_v56  ;;  %17168 = vst [vmem:[#allocation78_spill] sm:$0xff] %v13597_v59  ;;  %v13600_v53 = vmul.f32 %v4140_v36, %v13445_v13  ;;  %v4149_v44 = vadd.f32 1.0, %v10181_v48  ;;  %v3649_v19 = vmul.f32 0.70710677, %v13575_v51 }
 0x318   : > { %v10187_v2 = vpop.eup %10186  ;;  %v13605_v18 = vadd.f32 %v13306_v46, %v12561_v5  ;;  %v13607_v42 = vpack.c.bf16 %v4397_v60, %v4393_v49  ;;  %v4143_v37 = vadd.f32 1.0, %v10177_v30  ;;  %10204 = verf.f32 %v3644_v40  ;;  %v13615_v49 = vpop.f32.mrf.mxu1 }
 0x319   : > { %17169 = vst [vmem:[#allocation79_spill] sm:$0xff] %v13600_v53  ;;  %v10189_v29 = vpop.eup %10188  ;;  %v3648_v32 = vmul.f32 0.70710677, %v13581_v3  ;;  %v4145_v59 = vadd.f32 1.0, %v10183_v26  ;;  %v4144_v43 = vadd.f32 1.0, %v10185_v25  ;;  %10206 = verf.f32 %v3646_v34  ;;  %v13613_v53 = vpop.f32.mrf.mxu0 }
 0x31a   : > { %17170 = vst [vmem:[#allocation80_spill] sm:$0xff] %v13607_v42  ;;  %v10191_v55 = vpop.eup %10190  ;;  %v3651_v13 = vmul.f32 0.70710677, %v13588_v7  ;;  %v4146_v36 = vadd.f32 1.0, %v10187_v2  ;;  %v4403_v48 = vmul.f32 %v4147_v10, %v13530_v63  ;;  %10208 = verf.f32 %v3647_v20 }
 0x31b   : > { %v3653_v46 = vmul.f32 0.70710677, %v13593_v9  ;;  %v4405_v30 = vmul.f32 %v4149_v44, %v3381_v45  ;;  %v4148_v60 = vadd.f32 1.0, %v10189_v29  ;;  %10210 = verf.f32 %v3649_v19 }
 0x31c   : > { %v3650_v40 = vmul.f32 0.70710677, %v13605_v18  ;;  %v4399_v26 = vmul.f32 %v4143_v37, %v13477_v23  ;;  %v4150_v34 = vadd.f32 1.0, %v10191_v55  ;;  %10212 = verf.f32 %v3648_v32  ;;  %v13639_v55 = vpop.f32.mrf.mxu0 }
 0x31d   : > { %v13621_v25 = vadd.f32 %v13343_v47, %v12556_v31  ;;  %v13624_v63 = vmul.f32 %v4142_v21, %v13468_v57  ;;  %v4401_v10 = vmul.f32 %v4145_v59, %v13479_v11  ;;  %v13628_v20 = vmul.f32 %v4144_v43, %v13486_v41  ;;  %v13641_v57 = vpop.f32.mrf.mxu1 }
 0x31e   : > { %10214 = verf.f32 %v3651_v13  ;;  %v10193_v45 = vpop.eup %10192  ;;  %v13631_v2 = vmul.f32 %v4146_v36, %v13499_v4  ;;  %v13633_v23 = vpack.c.bf16 %v4403_v48, %v4399_v26  ;;  %v13637_v47 = vadd.f32 %v13345_v14, %v12561_v5  ;;  %v13670_v48 = vpop.f32.mrf.mxu0 }
 0x31f   : > { %17171 = vst [vmem:[#allocation81_spill] sm:$0xff] %v13624_v63  ;;  %17172 = vst [vmem:[#allocation82_spill] sm:$0xff] %v13628_v20  ;;  %10216 = verf.f32 %v3653_v46  ;;  %v10195_v11 = vpop.eup %10194  ;;  %v13643_v21 = vpack.c.bf16 %v4405_v30, %v4401_v10  ;;  %v13646_v41 = vmul.f32 %v4148_v60, %v13550_v8  ;;  %v13650_v4 = vadd.f32 %v13367_v16, %v12291_v1  ;;  %v17223_v63 = vld [vmem:[#allocation78_spill] sm:$0xff] }
 0x320   : > { %17173 = vst [vmem:[#allocation83_spill] sm:$0xff] %v13631_v2  ;;  %17174 = vst [vmem:[#allocation84_spill] sm:$0xff] %v13633_v23  ;;  %10218 = verf.f32 %v3650_v40  ;;  %v10197_v43 = vpop.eup %10196  ;;  %v13652_v32 = vmul.f32 %v4150_v34, %v3382_v22  ;;  %v3383_v14 = vmul.f32 0.5, %v13497_v50  ;;  %v3385_v59 = vmul.f32 0.5, %v13503_v35  ;;  %v1261_v23 = vpop.xlane.xlu0 %1260 }
 0x321   : > { %17175 = vst [vmem:[#allocation85_spill] sm:$0xff] %v13643_v21  ;;  %17176 = vst [vmem:[#allocation86_spill] sm:$0xff] %v13646_v41  ;;  %v3652_v44 = vmul.f32 0.70710677, %v13621_v25  ;;  %v10199_v19 = vpop.eup %10198  ;;  %v3384_v29 = vmul.f32 0.5, %v13513_v27  ;;  %v3386_v8 = vmul.f32 0.5, %v13535_v54  ;;  %v13662_v16 = vadd.f32 %v13369_v6, %v12297_v56  ;;  %v13672_v27 = vpop.f32.mrf.mxu1 }
 0x322   : > { %17177 = vst [vmem:[#allocation87_spill] sm:$0xff] %v13652_v32  ;;  %v3387_v37 = vmul.f32 0.5, %v13520_v58  ;;  %v10201_v13 = vpop.eup %10200  ;;  %v3389_v22 = vmul.f32 0.5, %v13526_v12  ;;  %v3388_v50 = vmul.f32 0.5, %v13555_v0  ;;  %v13667_v35 = vmul.f32 0.5, %v13561_v33 }
 0x323   : > { %v3654_v36 = vmul.f32 0.70710677, %v13637_v47  ;;  %v10203_v54 = vpop.eup %10202  ;;  %v4151_v58 = vadd.f32 1.0, %v10193_v45  ;;  %v13675_v46 = vmul.f32 0.5, %v13566_v39  ;;  %v3655_v6 = vmul.f32 0.70710677, %v13650_v4 }
 0x324   : > { %v13680_v12 = vadd.f32 %v13388_v61, %v12556_v31  ;;  %v4153_v0 = vadd.f32 1.0, %v10195_v11  ;;  %v4155_v33 = vadd.f32 1.0, %v10199_v19  ;;  %10220 = verf.f32 %v3652_v44  ;;  %v13699_v44 = vpop.f32.mrf.mxu1 }
 0x325   : > { %v13684_v30 = vadd.f32 %v13411_v24, %v12291_v1  ;;  %v10205_v60 = vpop.eup %10204  ;;  %v4157_v40 = vadd.f32 1.0, %v10201_v13  ;;  %v13687_v26 = vmul.f32 0.5, %v13575_v51  ;;  %v13690_v39 = vmul.f32 0.5, %v13581_v3  ;;  %v13697_v24 = vpop.f32.mrf.mxu0 }
 0x326   : > { %v3657_v34 = vmul.f32 0.70710677, %v13662_v16  ;;  %v10207_v10 = vpop.eup %10206  ;;  %v4152_v61 = vadd.f32 1.0, %v10197_v43  ;;  %v4154_v45 = vadd.f32 1.0, %v10203_v54  ;;  %10222 = verf.f32 %v3654_v36 }
 0x327   : > { %v13695_v11 = vadd.f32 %v13390_v28, %v12561_v5  ;;  %v10209_v19 = vpop.eup %10208  ;;  %v4407_v51 = vmul.f32 %v4151_v58, %v3383_v14  ;;  %v13702_v13 = vmul.f32 0.5, %v13605_v18  ;;  %10224 = verf.f32 %v3655_v6 }
 0x328   : > { %v3656_v3 = vmul.f32 0.70710677, %v13680_v12  ;;  %v10211_v21 = vpop.eup %10210  ;;  %v4409_v43 = vmul.f32 %v4153_v0, %v3385_v59  ;;  %v4411_v54 = vmul.f32 %v4155_v33, %v3387_v37  ;;  %v3395_v36 = vmul.f32 0.5, %v13588_v7  ;;  %v13716_v7 = vpop.f32.mrf.mxu0 }
 0x329   : > { %v3659_v28 = vmul.f32 0.70710677, %v13684_v30  ;;  %v10213_v42 = vpop.eup %10212  ;;  %v4413_v32 = vmul.f32 %v4157_v40, %v3389_v22  ;;  %v4156_v2 = vadd.f32 1.0, %v10205_v60  ;;  %v3397_v41 = vmul.f32 0.5, %v13593_v9  ;;  %v13718_v37 = vpop.f32.mrf.mxu1  ;;  %v17180_v9 = vld [vmem:[#allocation12_spill] sm:$0xff] }
 0x32a   : > { %10226 = verf.f32 %v3657_v34  ;;  %v13708_v18 = vmul.f32 %v4152_v61, %v3384_v29  ;;  %v13710_v58 = vmul.f32 %v4154_v45, %v3386_v8  ;;  %v13713_v6 = vmul.f32 0.5, %v13621_v25  ;;  %v17182_v25 = vld [vmem:[#allocation44_spill] sm:$0xff]  ;;  %v1264_v61 = vpop.xlane.xlu1 %1263 }
 0x32b   : > { %v10215_v14 = vpop.eup %10214  ;;  %v3658_v59 = vmul.f32 0.70710677, %v13695_v11  ;;  %v4158_v22 = vadd.f32 1.0, %v10207_v10  ;;  %10228 = verf.f32 %v3656_v3  ;;  %v3109_v33 = vadd.f32 %v17180_v9, %v12297_v56  ;;  %v13730_v9 = vpop.f32.mrf.mxu0 }
 0x32c   : > { %17178 = vst [vmem:[#allocation88_spill] sm:$0xff] %v13708_v18  ;;  %17179 = vst [vmem:[#allocation89_spill] sm:$0xff] %v13710_v58  ;;  %v10217_v0 = vpop.eup %10216  ;;  %v1331_v60 = vmul.f32 0.00390625, %v1261_v23  ;;  %v13722_v40 = vpack.c.bf16 %v4411_v54, %v4407_v51  ;;  %v4159_v8 = vadd.f32 1.0, %v10209_v19  ;;  %10230 = verf.f32 %v3659_v28  ;;  %v13732_v23 = vpop.f32.mrf.mxu1 }
 0x32d   : > { %v10219_v29 = vpop.eup %10218  ;;  %v2758_v34 = vadd.f32 %v17182_v25, %v12556_v31  ;;  %v13726_v45 = vpack.c.bf16 %v4413_v32, %v4409_v43  ;;  %v13728_v58 = vmul.f32 %v4156_v2, %v3388_v50  ;;  %v4161_v18 = vadd.f32 1.0, %v10211_v21  ;;  %17185 = vst [vmem:[#allocation91_spill] sm:$0xff] %v13732_v23 }
 0x32e   : > { %17181 = vst [vmem:[#allocation12_spill] sm:$0xff] %v13722_v40  ;;  %v4163_v10 = vadd.f32 1.0, %v10215_v14  ;;  %v4160_v3 = vadd.f32 1.0, %v10213_v42  ;;  %v4165_v20 = vadd.f32 1.0, %v10217_v0  ;;  %10232 = verf.f32 %v3658_v59  ;;  %v1267_v0 = vpop.xlane.xlu0 %1266 }
 0x32f   : > { %17183 = vst [vmem:[#allocation44_spill] sm:$0xff] %v13726_v45  ;;  %17184 = vst [vmem:[#allocation90_spill] sm:$0xff] %v13728_v58  ;;  %v1395_v51 = vadd.f32 1e-05, %v1331_v60  ;;  %v13735_v19 = vmul.f32 %v4158_v22, %v13667_v35  ;;  %v4162_v54 = vadd.f32 1.0, %v10219_v29  ;;  %v1332_v25 = vmul.f32 0.00390625, %v1264_v61  ;;  %v1270_v35 = vpop.xlane.xlu1 %1269 }
 0x330   : > { %v3661_v28 = vmul.f32 0.70710677, %v3109_v33  ;;  %v4415_v32 = vmul.f32 %v4159_v8, %v13675_v46  ;;  %v3398_v2 = vmul.f32 0.5, %v13637_v47  ;;  %v3399_v21 = vmul.f32 0.5, %v13650_v4  ;;  %v13748_v47 = vpop.f32.mrf.mxu0  ;;  %v13750_v4 = vpop.f32.mrf.mxu1 }
 0x331   : > { %17186 = vst [vmem:[#allocation92_spill] sm:$0xff] %v13735_v19  ;;  %v3660_v42 = vmul.f32 0.70710677, %v2758_v34  ;;  %v10221_v50 = vpop.eup %10220  ;;  %v4417_v43 = vmul.f32 %v4161_v18, %v13687_v26  ;;  %v4419_v14 = vmul.f32 %v4163_v10, %v3395_v36  ;;  %v3401_v59 = vmul.f32 0.5, %v13662_v16  ;;  %17188 = vst [vmem:[#allocation94_spill] sm:$0xff] %v13748_v47  ;;  %v17222_v19 = vld [vmem:[#allocation58_spill] sm:$0xff] }
 0x332   : > { %10234 = vrsqrt.f32 %v1395_v51  ;;  %v13743_v22 = vmul.f32 %v4160_v3, %v13690_v39  ;;  %v4421_v60 = vmul.f32 %v4165_v20, %v3397_v41  ;;  %v13746_v46 = vmul.f32 0.5, %v13680_v12  ;;  %17189 = vst [vmem:[#allocation95_spill] sm:$0xff] %v13750_v4  ;;  %v17191_v39 = vld [vmem:[#allocation51_spill] sm:$0xff]  ;;  %v17193_v3 = vld [vmem:[#allocation64_spill] sm:$0xff] }
 0x333   : > { %v1396_v29 = vadd.f32 1e-05, %v1332_v25  ;;  %v10223_v8 = vpop.eup %10222  ;;  %v13753_v26 = vmul.f32 %v4162_v54, %v13702_v13  ;;  %v13756_v16 = vmul.f32 0.5, %v13695_v11  ;;  %10236 = verf.f32 %v3661_v28  ;;  %v17195_v25 = vld [vmem:[#allocation60_spill] sm:$0xff] }
 0x334   : > { %17187 = vst [vmem:[#allocation93_spill] sm:$0xff] %v13743_v22  ;;  %v3111_v36 = vadd.f32 %v17191_v39, %v12561_v5  ;;  %v10225_v20 = vpop.eup %10224  ;;  %v4164_v41 = vadd.f32 1.0, %v10221_v50  ;;  %10238 = verf.f32 %v3660_v42  ;;  %v1333_v12 = vmul.f32 0.00390625, %v1267_v0  ;;  %v13773_v50 = vpop.f32.mrf.mxu0 }
 0x335   : > { %17190 = vst [vmem:[#allocation96_spill] sm:$0xff] %v13753_v26  ;;  %v1334_v18 = vmul.f32 0.00390625, %v1270_v35  ;;  %v13760_v61 = vpack.c.bf16 %v4419_v14, %v4415_v32  ;;  %v3403_v10 = vmul.f32 0.5, %v13684_v30  ;;  %v2762_v13 = vadd.f32 %v17193_v3, %v12291_v1  ;;  %17196 = vst [vmem:[#allocation60_spill] sm:$0xff] %v13773_v50  ;;  %v13775_v32 = vpop.f32.mrf.mxu1  ;;  %v17227_v50 = vld [vmem:[#allocation66_spill] sm:$0xff] }
 0x336   : > { %10240 = vrsqrt.f32 %v1396_v29  ;;  %v13765_v11 = vpack.c.bf16 %v4421_v60, %v4417_v43  ;;  %v13767_v54 = vmul.f32 0.5, %v3109_v33  ;;  %v13769_v28 = vmul.f32 0.5, %v2758_v34  ;;  %17197 = vst [vmem:[#allocation97_spill] sm:$0xff] %v13775_v32 }
 0x337   : > { %17192 = vst [vmem:[#allocation51_spill] sm:$0xff] %v13760_v61  ;;  %v10227_v51 = vpop.eup %10226  ;;  %v3115_v42 = vadd.f32 %v17195_v25, %v12297_v56  ;;  %v4166_v14 = vadd.f32 1.0, %v10223_v8  ;;  %v4167_v30 = vadd.f32 1.0, %v10225_v20  ;;  %v3662_v0 = vmul.f32 0.70710677, %v3111_v36 }
 0x338   : > { %17194 = vst [vmem:[#allocation64_spill] sm:$0xff] %v13765_v11  ;;  %v1397_v35 = vadd.f32 1e-05, %v1333_v12  ;;  %v10229_v39 = vpop.eup %10228  ;;  %v13778_v29 = vmul.f32 %v4164_v41, %v13713_v6  ;;  %v13780_v43 = vmul.f32 0.5, %v3111_v36  ;;  %v2764_v33 = vadd.f32 %v13481_v38, %v12556_v31  ;;  %v17199_v11 = vld [vmem:[#allocation5_spill] sm:$0xff]  ;;  %v13790_v41 = vpop.f32.mrf.mxu0 }
 0x339   : > { %v1398_v34 = vadd.f32 1e-05, %v1334_v18  ;;  %v10231_v60 = vpop.eup %10230  ;;  %v4169_v3 = vadd.f32 1.0, %v10227_v51  ;;  %v3663_v25 = vmul.f32 0.70710677, %v2762_v13  ;;  %v3117_v61 = vadd.f32 %v17199_v11, %v12561_v5  ;;  %17200 = vst [vmem:[#allocation5_spill] sm:$0xff] %v13790_v41  ;;  %v13792_v36 = vpop.f32.mrf.mxu1 }
 0x33a   : > { %17198 = vst [vmem:[#allocation98_spill] sm:$0xff] %v13778_v29  ;;  %10242 = vrsqrt.f32 %v1397_v35  ;;  %v13786_v8 = vmul.f32 0.5, %v2762_v13  ;;  %v3665_v20 = vmul.f32 0.70710677, %v3115_v42  ;;  %v2766_v6 = vadd.f32 %v13505_v52, %v12291_v1  ;;  %17201 = vst [vmem:[#allocation99_spill] sm:$0xff] %v13792_v36 }
 0x33b   : > { %10244 = vrsqrt.f32 %v1398_v34  ;;  %v10233_v38 = vpop.eup %10232  ;;  %v13794_v12 = vmul.f32 %v4166_v14, %v3398_v2  ;;  %v4423_v18 = vmul.f32 %v4167_v30, %v3399_v21  ;;  %v3119_v51 = vadd.f32 %v13507_v15, %v12297_v56  ;;  %v13808_v15 = vpop.f32.mrf.mxu0 }
 0x33c   : > { %10246 = verf.f32 %v3662_v0  ;;  %v4168_v11 = vadd.f32 1.0, %v10229_v39  ;;  %v4171_v13 = vadd.f32 1.0, %v10231_v60  ;;  %v3664_v35 = vmul.f32 0.70710677, %v2764_v33  ;;  %17203 = vst [vmem:[#allocation101_spill] sm:$0xff] %v13808_v15  ;;  %v13810_v0 = vpop.f32.mrf.mxu1  ;;  %v17205_v60 = vld [vmem:[#allocation54_spill] sm:$0xff] }
 0x33d   : > { %17202 = vst [vmem:[#allocation100_spill] sm:$0xff] %v13794_v12  ;;  %v13800_v45 = vadd.f32 %v13537_v17, %v12556_v31  ;;  %v13802_v52 = vmul.f32 %v4169_v3, %v3401_v59  ;;  %10248 = verf.f32 %v3663_v25  ;;  %v13804_v40 = vmul.f32 0.5, %v3115_v42  ;;  %17204 = vst [vmem:[#allocation102_spill] sm:$0xff] %v13810_v0  ;;  %v17206_v3 = vld [vmem:[#allocation50_spill] sm:$0xff]  ;;  %v1991_v0 = vld [vmem:[%s11564_s14 + $0x3c0] sm:$0xff] }
 0x33e   : > { %v3666_v34 = vmul.f32 0.70710677, %v3117_v61  ;;  %v4170_v14 = vadd.f32 1.0, %v10233_v38  ;;  %10250 = verf.f32 %v3665_v20  ;;  %v13806_v21 = vmul.f32 0.5, %v2764_v33  ;;  %v1993_v15 = vld [vmem:[%s11564_s14 + $0x3d0] sm:$0xff] }
 0x33f   : > { %v10235_v2 = vpop.eup %10234  ;;  %v3667_v30 = vmul.f32 0.70710677, %v2766_v6  ;;  %v13812_v39 = vmul.f32 0.5, %v3117_v61  ;;  %v3669_v17 = vmul.f32 0.70710677, %v3119_v51  ;;  %v13817_v12 = vmul.f32 %v4168_v11, %v13746_v46  ;;  %v17208_v61 = vld [vmem:[#allocation75_spill] sm:$0xff]  ;;  %v13834_v11 = vpop.f32.mrf.mxu0 }
 0x340   : > { %v1584_v59 = vmul.f32 %v10235_v2, %v17205_v60  ;;  %v1583_v25 = vmul.f32 %v10235_v2, %v17206_v3  ;;  %v10237_v42 = vpop.eup %10236  ;;  %v4427_v38 = vmul.f32 %v4171_v13, %v3403_v10  ;;  %10252 = verf.f32 %v3664_v35  ;;  %v17209_v60 = vld [vmem:[#allocation57_spill] sm:$0xff]  ;;  %17211 = vst [vmem:[#allocation75_spill] sm:$0xff] %v13834_v11  ;;  %v13836_v13 = vpop.f32.mrf.mxu1  ;;  %v17213_v35 = vld [vmem:[#allocation56_spill] sm:$0xff] }
 0x341   : > { %17207 = vst [vmem:[#allocation54_spill] sm:$0xff] %v13817_v12  ;;  %v3668_v33 = vmul.f32 0.70710677, %v13800_v45  ;;  %v10239_v20 = vpop.eup %10238  ;;  %10254 = verf.f32 %v3666_v34  ;;  %v13822_v26 = vadd.f32 %v13539_v62, %v12561_v5  ;;  %v13826_v29 = vadd.f32 %v17208_v61, %v12291_v1  ;;  %17212 = vst [vmem:[#allocation57_spill] sm:$0xff] %v13836_v13  ;;  %v17214_v61 = vld [vmem:[#allocation63_spill] sm:$0xff] }
 0x342   : > { %v1724_v2 = vmul.f32 %v17209_v60, %v1584_v59  ;;  %v13830_v46 = vmul.f32 %v4170_v14, %v13756_v16  ;;  %v13832_v10 = vmul.f32 0.5, %v2766_v6  ;;  %10256 = verf.f32 %v3667_v30  ;;  %v17215_v59 = vld [vmem:[#allocation61_spill] sm:$0xff] }
 0x343   : > { %v10241_v3 = vpop.eup %10240  ;;  %v1723_v62 = vmul.f32 %v17213_v35, %v1583_v25  ;;  %v13839_v34 = vmul.f32 0.5, %v3119_v51  ;;  %10258 = verf.f32 %v3669_v17  ;;  %v13843_v16 = vpack.c.bf16 %v4427_v38, %v4423_v18  ;;  %v17217_v17 = vld [vmem:[#allocation59_spill] sm:$0xff] }
 0x344   : > { %17210 = vst [vmem:[#allocation50_spill] sm:$0xff] %v13830_v46  ;;  %v1586_v12 = vmul.f32 %v10241_v3, %v17214_v61  ;;  %v1585_v22 = vmul.f32 %v10241_v3, %v17215_v59  ;;  %v4173_v6 = vadd.f32 1.0, %v10237_v42  ;;  %v13845_v14 = vadd.f32 1.0, %v10239_v20  ;;  %v17218_v3 = vld [vmem:[#allocation7_spill] sm:$0xff]  ;;  %v17219_v42 = vld [vmem:[#allocation77_spill] sm:$0xff]  ;;  %v13863_v20 = vpop.f32.mrf.mxu1  ;;  %v1992_v59 = vld [vmem:[%s11564_s14 + $0x3c8] sm:$0xff] }
 0x345   : > { %17216 = vst [vmem:[#allocation56_spill] sm:$0xff] %v13843_v16  ;;  %10260 = verf.f32 %v3668_v33  ;;  %v3670_v30 = vmul.f32 0.70710677, %v13822_v26  ;;  %v13849_v46 = vmul.f32 0.70710677, %v13826_v29  ;;  %v1864_v25 = vadd.f32 %v17217_v17, %v1724_v2  ;;  %v13861_v33 = vpop.f32.mrf.mxu0  ;;  %17221 = vst [vmem:[#allocation61_spill] sm:$0xff] %v13863_v20 }
 0x346   : > { %v1726_v51 = vmul.f32 %v17209_v60, %v1586_v12  ;;  %v13855_v18 = vadd.f32 %v17218_v3, %v12297_v56  ;;  %v13859_v38 = vadd.f32 %v17219_v42, %v12556_v31  ;;  %17220 = vst [vmem:[#allocation63_spill] sm:$0xff] %v13861_v33  ;;  %v1994_v16 = vld [vmem:[%s11564_s14 + $0x3d8] sm:$0xff]  ;;  %v1725_v12 = vmul.f32 %v17213_v35, %v1585_v22  ;;  %v17224_v3 = vld [vmem:[#allocation3_spill] sm:$0xff]  ;;  %v17225_v33 = vld [vmem:[#allocation4_spill] sm:$0xff] }
 0x347   : > { %v10243_v61 = vpop.eup %10242  ;;  %v1863_v58 = vadd.f32 %v17222_v19, %v1723_v62  ;;  %v13871_v13 = vadd.f32 %v17223_v63, %v12561_v5  ;;  %v13880_v41 = vadd.f32 %v13613_v53, %v12291_v1  ;;  %v17226_v22 = vld [vmem:[#allocation65_spill] sm:$0xff]  ;;  %v2120_v4 = vadd.f32 %v1992_v59, %v1864_v25  ;;  %v13887_v47 = vpop.f32.mrf.mxu0 }
 0x348   : > { %v10245_v2 = vpop.eup %10244  ;;  %v1587_v11 = vmul.f32 %v10243_v61, %v17224_v3  ;;  %v1866_v42 = vadd.f32 %v17217_v17, %v1726_v51  ;;  %v1588_v36 = vmul.f32 %v10243_v61, %v17225_v33  ;;  %v1865_v32 = vadd.f32 %v17222_v19, %v1725_v12  ;;  %v13889_v53 = vpop.f32.mrf.mxu1 }
 0x349   : > { %v10247_v20 = vpop.eup %10246  ;;  %v1589_v62 = vmul.f32 %v10245_v2, %v17226_v22  ;;  %v1590_v63 = vmul.f32 %v10245_v2, %v17227_v50  ;;  %17228 = vst [vmem:[#allocation59_spill] sm:$0xff] %v13889_v53  ;;  %v2119_v23 = vadd.f32 %v1991_v0, %v1863_v58  ;;  %v1996_v2 = vld [vmem:[%s11564_s14 + $0x3e8] sm:$0xff]  ;;  %v1997_v53 = vld [vmem:[%s11564_s14 + $0x3f0] sm:$0xff]  ;;  %10262 = verf.f32 %v3670_v30 }
 0x34a   : > { %v2122_v3 = vadd.f32 %v1994_v16, %v1866_v42  ;;  %v1728_v51 = vmul.f32 %v17209_v60, %v1588_v36  ;;  %v1727_v61 = vmul.f32 %v17213_v35, %v1587_v11  ;;  %v10249_v33 = vpop.eup %10248  ;;  %v2121_v22 = vadd.f32 %v1993_v15, %v1865_v32  ;;  %v1998_v42 = vld [vmem:[%s11564_s14 + $0x3f8] sm:$0xff] }
 0x34b   : > { %v1730_v12 = vmul.f32 %v17209_v60, %v1590_v63  ;;  %v1729_v50 = vmul.f32 %v17213_v35, %v1589_v62  ;;  %v10251_v25 = vpop.eup %10250  ;;  %v3673_v16 = vmul.f32 0.70710677, %v13855_v18  ;;  %v13896_v36 = vadd.f32 %v13615_v49, %v12297_v56  ;;  %v1995_v62 = vld [vmem:[%s11564_s14 + $0x3e0] sm:$0xff] }
 0x34c   : > { %v2188_v59 = vpack.c.bf16 %v2122_v3, %v2120_v4  ;;  %v1868_v11 = vadd.f32 %v17217_v17, %v1728_v51  ;;  %v2187_v58 = vpack.c.bf16 %v2121_v22, %v2119_v23  ;;  %v1867_v15 = vadd.f32 %v17222_v19, %v1727_v61  ;;  %v13914_v3 = vpop.f32.mrf.mxu1 }
 0x34d   : > { %v1870_v32 = vadd.f32 %v17217_v17, %v1730_v12  ;;  %v1869_v0 = vadd.f32 %v17222_v19, %v1729_v50  ;;  %v10253_v60 = vpop.eup %10252  ;;  %v4429_v35 = vmul.f32 %v4173_v6, %v13767_v54  ;;  %v13907_v49 = vmul.f32 0.5, %v13800_v45  ;;  %v13912_v17 = vpop.f32.mrf.mxu0  ;;  %17230 = vst [vmem:[#allocation77_spill] sm:$0xff] %v13914_v3 }
 0x34e   : > { %v3672_v4 = vmul.f32 0.70710677, %v13859_v38  ;;  %2929 = vmatprep.mubr.bf16.mxu0 %v2188_v59  ;;  %3282 = vmatprep.mubr.bf16.mxu1 %v2188_v59  ;;  %v10255_v63 = vpop.eup %10254  ;;  %v3674_v23 = vmul.f32 0.70710677, %v13871_v13  ;;  %17229 = vst [vmem:[#allocation7_spill] sm:$0xff] %v13912_v17  ;;  %v2124_v19 = vadd.f32 %v1996_v2, %v1868_v11  ;;  %v4174_v51 = vadd.f32 1.0, %v10247_v20  ;;  %v13936_v11 = vpop.f32.mrf.mxu1 }
 0x34f   : > { %2930 = vmatmul.mubr.bf16.gmra.mxu0 %v2187_v58  ;;  %3283 = vmatmul.mubr.bf16.gmra.mxu1 %v2187_v58  ;;  %v2126_v54 = vadd.f32 %v1998_v42, %v1870_v32  ;;  %v2125_v6 = vadd.f32 %v1997_v53, %v1869_v0  ;;  %v10257_v45 = vpop.eup %10256  ;;  %v4175_v30 = vadd.f32 1.0, %v10249_v33  ;;  %10264 = verf.f32 %v13849_v46  ;;  %v17234_v42 = vld [vmem:[#allocation30_spill] sm:$0xff]  ;;  %v17238_v32 = vld [vmem:[#allocation33_spill] sm:$0xff] }
 0x350   : > { %v3675_v61 = vmul.f32 0.70710677, %v13880_v41  ;;  %v10259_v22 = vpop.eup %10258  ;;  %10266 = verf.f32 %v3673_v16  ;;  %v3677_v12 = vmul.f32 0.70710677, %v13896_v36  ;;  %v2123_v59 = vadd.f32 %v1995_v62, %v1867_v15  ;;  %v13934_v16 = vpop.f32.mrf.mxu0 }
 0x351   : > { %v2190_v50 = vpack.c.bf16 %v2126_v54, %v2124_v19  ;;  %v13920_v3 = vpack.c.bf16 %v4429_v35, %v13802_v52  ;;  %v13924_v53 = vmul.f32 %v13845_v14, %v13769_v28  ;;  %10268 = verf.f32 %v3672_v4 }
 0x352   : > { %v10261_v17 = vpop.eup %10260  ;;  %v13928_v46 = vadd.f32 %v13639_v55, %v12556_v31  ;;  %v4177_v20 = vadd.f32 1.0, %v10251_v25  ;;  %10270 = verf.f32 %v3674_v23  ;;  %v13932_v33 = vadd.f32 %v13641_v57, %v12561_v5  ;;  %v13977_v4 = vpop.f32.mrf.mxu0 }
 0x353   : > { %17231 = vst [vmem:[#allocation58_spill] sm:$0xff] %v13920_v3  ;;  %17232 = vst [vmem:[#allocation78_spill] sm:$0xff] %v13924_v53  ;;  %2939 = vmatprep.mubr.bf16.mxu0 %v2190_v50  ;;  %3292 = vmatprep.mubr.bf16.mxu1 %v2190_v50  ;;  %v2189_v52 = vpack.c.bf16 %v2125_v6, %v2123_v59  ;;  %v13939_v28 = vmul.f32 %v4174_v51, %v13780_v43  ;;  %v13942_v14 = vmul.f32 0.5, %v13822_v26 }
 0x354   : > { %10272 = verf.f32 %v3675_v61  ;;  %v13946_v55 = vadd.f32 %v13670_v48, %v12291_v1  ;;  %v13949_v57 = vmul.f32 %v4175_v30, %v13786_v8  ;;  %v13952_v25 = vmul.f32 0.5, %v13826_v29  ;;  %v17235_v48 = vld [vmem:[#allocation29_spill] sm:$0xff]  ;;  %v17237_v8 = vld [vmem:[#allocation34_spill] sm:$0xff]  ;;  %v14010_v61 = vpop.f32.mrf.mxu0 }
 0x355   : > { %17233 = vst [vmem:[#allocation3_spill] sm:$0xff] %v13939_v28  ;;  %10274 = verf.f32 %v3677_v12  ;;  %v13956_v2 = vadd.f32 %v13672_v27, %v12297_v56  ;;  %v3676_v43 = vmul.f32 0.70710677, %v13928_v46  ;;  %v13961_v26 = vadd.f32 %v13697_v24, %v12556_v31  ;;  %v13979_v24 = vpop.f32.mrf.mxu1 }
 0x356   : > { %v13965_v58 = vpack.c.bf16 %v17235_v48, %v17234_v42  ;;  %v13969_v15 = vpack.c.bf16 %v17238_v32, %v17237_v8  ;;  %v4433_v29 = vmul.f32 %v4177_v20, %v13804_v40  ;;  %v4176_v0 = vadd.f32 1.0, %v10253_v60  ;;  %v10263_v30 = vpop.eup %10262  ;;  %v17242_v42 = vld [vmem:[#allocation38_spill] sm:$0xff] }
 0x357   : > { %v3678_v27 = vmul.f32 0.70710677, %v13932_v33  ;;  %v13975_v35 = vadd.f32 %v13699_v44, %v12561_v5  ;;  %2940 = vmatmul.mubr.bf16.gmra.mxu0 %v2189_v52  ;;  %3293 = vmatmul.mubr.bf16.gmra.mxu1 %v2189_v52  ;;  %v4179_v62 = vadd.f32 1.0, %v10257_v45  ;;  %v4181_v23 = vadd.f32 1.0, %v10259_v22  ;;  %v9827_v8 = vld [vmem:[%s16612_s6 + $0x2cc] ss:$16 sps:$4 sm:$0xff]  }
 0x358   : > { %17236 = vst [vmem:[#allocation4_spill] sm:$0xff] %v13965_v58  ;;  %17239 = vst [vmem:[#allocation65_spill] sm:$0xff] %v13969_v15  ;;  %v3679_v19 = vmul.f32 0.70710677, %v13946_v55  ;;  %v13984_v40 = vadd.f32 %v13716_v7, %v12291_v1  ;;  %7069 = vmatprep.mubr.bf16.mxu0 %v13965_v58  ;;  %7422 = vmatprep.mubr.bf16.mxu1 %v13969_v15  ;;  %v4178_v44 = vadd.f32 1.0, %v10255_v63  ;;  %v13989_v60 = vmul.f32 0.5, %v13855_v18 }
 0x359   : > { %v3681_v54 = vmul.f32 0.70710677, %v13956_v2  ;;  %v13994_v6 = vadd.f32 %v13718_v37, %v12297_v56  ;;  %v13997_v45 = vmul.f32 0.5, %v13859_v38  ;;  %v14000_v7 = vmul.f32 0.5, %v13871_v13  ;;  %v14012_v38 = vpop.f32.mrf.mxu1 }
 0x35a   : > { %10276 = verf.f32 %v3676_v43  ;;  %v3680_v51 = vmul.f32 0.70710677, %v13961_v26  ;;  %v14004_v63 = vmul.f32 %v4176_v0, %v13806_v21  ;;  %v14007_v18 = vmul.f32 0.5, %v13880_v41  ;;  %v9816_v21 = vld [vmem:[%s16612_s6 + $0xe8] ss:$16 sps:$4 sm:$0xff]   ;;  %v17245_v0 = vld [vmem:[#allocation91_spill] sm:$0xff] }
 0x35b   : > { %10278 = verf.f32 %v3678_v27  ;;  %v3682_v37 = vmul.f32 0.70710677, %v13975_v35  ;;  %v4435_v13 = vmul.f32 %v4179_v62, %v13832_v10  ;;  %v4437_v22 = vmul.f32 %v4181_v23, %v13839_v34  ;;  %v9819_v10 = vld [vmem:[%s16612_s6 + $0x2e8] ss:$16 sps:$4 sm:$0xff]   ;;  %v14050_v62 = vpop.f32.mrf.mxu1  ;;  %v17246_v23 = vld [vmem:[#allocation23_spill] sm:$0xff] }
 0x35c   : > { %17240 = vst [vmem:[#allocation66_spill] sm:$0xff] %v14004_v63  ;;  %10280 = verf.f32 %v3679_v19  ;;  %v3683_v12 = vmul.f32 0.70710677, %v13984_v40  ;;  %v10265_v41 = vpop.eup %10264  ;;  %v14021_v50 = vmul.f32 %v4178_v44, %v13812_v39  ;;  %v4180_v59 = vadd.f32 1.0, %v10261_v17  ;;  %v17243_v39 = vld [vmem:[#allocation37_spill] sm:$0xff]  ;;  %v17247_v19 = vld [vmem:[#allocation26_spill] sm:$0xff] }
 0x35d   : > { %10282 = verf.f32 %v3681_v54  ;;  %v3685_v20 = vmul.f32 0.70710677, %v13994_v6  ;;  %v10267_v34 = vpop.eup %10266  ;;  %v14028_v52 = vmul.f32 0.5, %v13896_v36  ;;  %v14032_v43 = vadd.f32 %v13730_v9, %v12556_v31  ;;  %v9824_v17 = vld [vmem:[%s16612_s6 + $0xcc] ss:$16 sps:$4 sm:$0xff]   ;;  %v14048_v9 = vpop.f32.mrf.mxu0  ;;  %v17249_v54 = vld [vmem:[#allocation55_spill] sm:$0xff] }
 0x35e   : > { %17241 = vst [vmem:[#allocation30_spill] sm:$0xff] %v14021_v50  ;;  %10284 = verf.f32 %v3680_v51  ;;  %v14036_v48 = vpack.c.bf16 %v17243_v39, %v17242_v42  ;;  %v10269_v32 = vpop.eup %10268  ;;  %v4182_v36 = vadd.f32 1.0, %v10263_v30  ;;  %v14046_v27 = vadd.f32 %v17245_v0, %v12561_v5  ;;  %v17248_v44 = vld [vmem:[#allocation42_spill] sm:$0xff] }
 0x35f   : > { %10286 = verf.f32 %v3682_v37  ;;  %7070 = vmatmul.mubr.bf16.vlgmr.msra.gmra.mxu0 %v17246_v23  ;;  %7423 = vmatmul.mubr.bf16.vlgmr.msra.gmra.mxu1 %v17247_v19  ;;  %v14056_v51 = vpack.c.bf16 %v17249_v54, %v17248_v44  ;;  %v10271_v42 = vpop.eup %10270  ;;  %v14059_v30 = vpack.c.bf16 %v4435_v13, %v13949_v57  ;;  %v14061_v37 = vpack.c.bf16 %v4437_v22, %v4433_v29  ;;  %v9822_v0 = vld [vmem:[%s16612_s6 + $0xc8] ss:$16 sps:$4 sm:$0xff]   ;;  %v9830_v13 = vld [vmem:[%s16612_s6 + $0xac] ss:$16 sps:$4 sm:$0xff]  }
 0x360   : > { %17244 = vst [vmem:[#allocation29_spill] sm:$0xff] %v14036_v48  ;;  %v14064_v39 = vmul.f32 0.5, %v13928_v46  ;;  %10288 = verf.f32 %v3683_v12  ;;  %7744 = vmatpush1.bf16.msra.mxu0 %v9816_v21  ;;  %7079 = vmatprep.mubr.bf16.mxu0 %v14036_v48  ;;  %v14071_v44 = vmul.f32 %v4180_v59, %v13907_v49  ;;  %v14074_v57 = vmul.f32 0.5, %v13932_v33  ;;  %v9825_v46 = vld [vmem:[%s16612_s6 + $0x2c8] ss:$16 sps:$4 sm:$0xff]   ;;  %v14106_v48 = vpop.f32.mrf.mxu1 }
 0x361   : > { %17250 = vst [vmem:[#allocation34_spill] sm:$0xff] %v14056_v51  ;;  %17251 = vst [vmem:[#allocation33_spill] sm:$0xff] %v14059_v30  ;;  %v10273_v19 = vpop.eup %10272  ;;  %v14077_v29 = vmul.f32 0.5, %v13946_v55  ;;  %10290 = verf.f32 %v3685_v20  ;;  %7432 = vmatprep.mubr.bf16.mxu1 %v14056_v51  ;;  %8097 = vmatpush1.bf16.msra.mxu1 %v9819_v10  ;;  %v14087_v22 = vmul.f32 0.5, %v13956_v2  ;;  %v14090_v33 = vmul.f32 0.5, %v13961_v26  ;;  %v17254_v12 = vld [vmem:[#allocation94_spill] sm:$0xff]  ;;  %v14104_v51 = vpop.f32.mrf.mxu0 }
 0x362   : > { %17252 = vst [vmem:[#allocation38_spill] sm:$0xff] %v14061_v37  ;;  %17253 = vst [vmem:[#allocation37_spill] sm:$0xff] %v14071_v44  ;;  %v10275_v49 = vpop.eup %10274  ;;  %v3684_v55 = vmul.f32 0.70710677, %v14032_v43  ;;  %v2792_v21 = vadd.f32 %v17254_v12, %v12291_v1  ;;  %7745 = vmatprep.subr.bf16.mxu0 %v9824_v17  ;;  %8098 = vmatprep.subr.bf16.mxu1 %v9827_v8  ;;  %v9833_v59 = vld [vmem:[%s16612_s6 + $0x2ac] ss:$16 sps:$4 sm:$0xff]   ;;  %v14099_v20 = vmul.f32 %v4182_v36, %v13942_v14 }
 0x363   : > { %v4183_v10 = vadd.f32 1.0, %v10265_v41  ;;  %v3686_v2 = vmul.f32 0.70710677, %v14046_v27  ;;  %v17256_v26 = vld [vmem:[#allocation95_spill] sm:$0xff]  ;;  %v4185_v12 = vadd.f32 1.0, %v10267_v34  ;;  %v14109_v17 = vmul.f32 0.5, %v13975_v35 }
 0x364   : > { %17255 = vst [vmem:[#allocation91_spill] sm:$0xff] %v14099_v20  ;;  %v3145_v54 = vadd.f32 %v17256_v26, %v12297_v56  ;;  %v14112_v8 = vmul.f32 0.5, %v13984_v40  ;;  %v17257_v14 = vld [vmem:[#allocation60_spill] sm:$0xff]  ;;  %7746 = vmatpush1.bf16.msra.mxu0 %v9822_v0  ;;  %v4184_v26 = vadd.f32 1.0, %v10269_v32  ;;  %v4186_v23 = vadd.f32 1.0, %v10271_v42  ;;  %v17258_v34 = vld [vmem:[#allocation73_spill] sm:$0xff] }
 0x365   : > { %v2794_v36 = vadd.f32 %v17257_v14, %v12556_v31  ;;  %v9828_v41 = vld [vmem:[%s16612_s6 + $0xa8] ss:$16 sps:$4 sm:$0xff]   ;;  %v4187_v15 = vadd.f32 1.0, %v10273_v19  ;;  %v4189_v58 = vadd.f32 1.0, %v10275_v49  ;;  %8099 = vmatpush1.bf16.msra.mxu1 %v9825_v46  ;;  %7747 = vmatprep.subr.bf16.mxu0 %v9830_v13  ;;  %10292 = verf.f32 %v3684_v55  ;;  %v17259_v37 = vld [vmem:[#allocation13_spill] sm:$0xff]  ;;  %v14139_v55 = vpop.f32.mrf.mxu0 }
 0x366   : > { %v9831_v35 = vld [vmem:[%s16612_s6 + $0x2a8] ss:$16 sps:$4 sm:$0xff]   ;;  %v3687_v40 = vmul.f32 0.70710677, %v2792_v21  ;;  %v14124_v14 = vpack.c.bf16 %v17259_v37, %v17258_v34  ;;  %8100 = vmatprep.subr.bf16.mxu1 %v9833_v59  ;;  %v9836_v32 = vld [vmem:[%s16612_s6 + $0x8c] ss:$16 sps:$4 sm:$0xff]   ;;  %v4439_v46 = vmul.f32 %v4183_v10, %v13952_v25  ;;  %10294 = verf.f32 %v3686_v2 }
 0x367   : > { %v17261_v0 = vld [vmem:[#allocation28_spill] sm:$0xff]  ;;  %v17262_v30 = vld [vmem:[#allocation10_spill] sm:$0xff]  ;;  %v10277_v42 = vpop.eup %10276  ;;  %v3689_v13 = vmul.f32 0.70710677, %v3145_v54  ;;  %v17264_v37 = vld [vmem:[#allocation97_spill] sm:$0xff]  ;;  %v4441_v20 = vmul.f32 %v4185_v12, %v13989_v60  ;;  %v14147_v50 = vmul.f32 0.5, %v13994_v6 }
 0x368   : > { %17260 = vst [vmem:[#allocation42_spill] sm:$0xff] %v14124_v14  ;;  %v14128_v3 = vpack.c.bf16 %v17262_v30, %v17261_v0  ;;  %v9839_v19 = vld [vmem:[%s16612_s6 + $0x28c] ss:$16 sps:$4 sm:$0xff]   ;;  %v3147_v49 = vadd.f32 %v17264_v37, %v12561_v5  ;;  %v14141_v30 = vpop.f32.mrf.mxu1  ;;  %v17266_v34 = vld [vmem:[#allocation25_spill] sm:$0xff]  ;;  %v10279_v0 = vpop.eup %10278  ;;  %v14150_v25 = vmul.f32 0.5, %v14032_v43  ;;  %v14155_v37 = vmul.f32 %v4184_v26, %v13997_v45  ;;  %7748 = vmatpush1.bf16.msra.mxu0 %v9828_v41 }
 0x369   : > { %v17265_v59 = vld [vmem:[#allocation22_spill] sm:$0xff]  ;;  %7433 = vmatmul.mubr.bf16.gmra.mxu1 %v17266_v34  ;;  %v3688_v10 = vmul.f32 0.70710677, %v2794_v36  ;;  %v10281_v2 = vpop.eup %10280  ;;  %v4443_v34 = vmul.f32 %v4187_v15, %v14007_v18  ;;  %v14160_v60 = vmul.f32 0.5, %v14046_v27  ;;  %v14169_v45 = vmul.f32 %v4186_v23, %v14000_v7  ;;  %7749 = vmatprep.subr.bf16.mxu0 %v9836_v32 }
 0x36a   : > { %17263 = vst [vmem:[#allocation55_spill] sm:$0xff] %v14128_v3  ;;  %7080 = vmatmul.mubr.bf16.gmra.mxu0 %v17265_v59  ;;  %7442 = vmatprep.mubr.bf16.mxu1 %v14128_v3  ;;  %17267 = vst [vmem:[#allocation94_spill] sm:$0xff] %v14155_v37  ;;  %v4445_v59 = vmul.f32 %v4189_v58, %v14028_v52  ;;  %v9834_v6 = vld [vmem:[%s16612_s6 + $0x88] ss:$16 sps:$4 sm:$0xff]   ;;  %v10283_v12 = vpop.eup %10282  ;;  %v14171_v15 = vmul.f32 0.5, %v2792_v21  ;;  %10296 = verf.f32 %v3687_v40  ;;  %v17269_v58 = vld [vmem:[#allocation5_spill] sm:$0xff]  ;;  %v14185_v21 = vpop.f32.mrf.mxu0 }
 0x36b   : > { %7089 = vmatprep.mubr.bf16.mxu0 %v14124_v14  ;;  %8101 = vmatpush1.bf16.msra.mxu1 %v9831_v35  ;;  %v9837_v43 = vld [vmem:[%s16612_s6 + $0x288] ss:$16 sps:$4 sm:$0xff]   ;;  %17268 = vst [vmem:[#allocation95_spill] sm:$0xff] %v14169_v45  ;;  %v2796_v18 = vadd.f32 %v17269_v58, %v12291_v1  ;;  %v9842_v52 = vld [vmem:[%s16612_s6 + $0x6c] ss:$16 sps:$4 sm:$0xff]   ;;  %v10285_v41 = vpop.eup %10284  ;;  %v14181_v26 = vmul.f32 0.5, %v3145_v54  ;;  %10298 = verf.f32 %v3689_v13  ;;  %v14187_v35 = vpop.f32.mrf.mxu1  ;;  %v14191_v45 = vpack.c.bf16 %v4443_v34, %v4439_v46 }
 0x36c   : > { %8102 = vmatprep.subr.bf16.mxu1 %v9839_v19  ;;  %v9845_v27 = vld [vmem:[%s16612_s6 + $0x26c] ss:$16 sps:$4 sm:$0xff]   ;;  %v14183_v7 = vmul.f32 0.5, %v2794_v36  ;;  %v3690_v23 = vmul.f32 0.70710677, %v3147_v49  ;;  %v10287_v40 = vpop.eup %10286  ;;  %v4188_v32 = vadd.f32 1.0, %v10277_v42  ;;  %10300 = verf.f32 %v3688_v10  ;;  %7750 = vmatpush1.bf16.msra.mxu0 %v9834_v6  ;;  %v14223_v44 = vpop.f32.mrf.mxu0 }
 0x36d   : > { %v4190_v19 = vadd.f32 1.0, %v10279_v0  ;;  %v17270_v58 = vld [vmem:[#allocation99_spill] sm:$0xff]  ;;  %v10289_v14 = vpop.eup %10288  ;;  %17271 = vst [vmem:[#allocation60_spill] sm:$0xff] %v14191_v45  ;;  %v14193_v54 = vpack.c.bf16 %v4445_v59, %v4441_v20  ;;  %v4191_v13 = vadd.f32 1.0, %v10281_v2  ;;  %v14195_v36 = vmul.f32 0.5, %v3147_v49  ;;  %v17273_v46 = vld [vmem:[#allocation101_spill] sm:$0xff]  ;;  %7751 = vmatprep.subr.bf16.mxu0 %v9842_v52 }
 0x36e   : > { %v3149_v3 = vadd.f32 %v17270_v58, %v12297_v56  ;;  %v9840_v37 = vld [vmem:[%s16612_s6 + $0x68] ss:$16 sps:$4 sm:$0xff]   ;;  %v10291_v0 = vpop.eup %10290  ;;  %v3691_v10 = vmul.f32 0.70710677, %v2796_v18  ;;  %v2798_v34 = vadd.f32 %v17273_v46, %v12556_v31  ;;  %v17274_v20 = vld [vmem:[#allocation41_spill] sm:$0xff]  ;;  %v17277_v49 = vld [vmem:[#allocation39_spill] sm:$0xff]  ;;  %10302 = verf.f32 %v3690_v23 }
 0x36f   : > { %17272 = vst [vmem:[#allocation73_spill] sm:$0xff] %v14193_v54  ;;  %8103 = vmatpush1.bf16.msra.mxu1 %v9837_v43  ;;  %v9843_v42 = vld [vmem:[%s16612_s6 + $0x268] ss:$16 sps:$4 sm:$0xff]   ;;  %v17278_v6 = vld [vmem:[#allocation69_spill] sm:$0xff]  ;;  %v9848_v58 = vld [vmem:[%s16612_s6 + $0x4c] ss:$16 sps:$4 sm:$0xff]  }
 0x370   : > { %v17275_v59 = vld [vmem:[#allocation68_spill] sm:$0xff]  ;;  %v14211_v43 = vpack.c.bf16 %v17278_v6, %v17277_v49  ;;  %8104 = vmatprep.subr.bf16.mxu1 %v9845_v27  ;;  %v4193_v45 = vadd.f32 1.0, %v10283_v12  ;;  %v14219_v46 = vmul.f32 0.5, %v2796_v18  ;;  %v14225_v49 = vpop.f32.mrf.mxu1  ;;  %v17281_v52 = vld [vmem:[#allocation11_spill] sm:$0xff]  ;;  %v4192_v6 = vadd.f32 1.0, %v10285_v41  ;;  %7752 = vmatpush1.bf16.msra.mxu0 %v9840_v37 }
 0x371   : > { %v14207_v2 = vpack.c.bf16 %v17275_v59, %v17274_v20  ;;  %v9851_v54 = vld [vmem:[%s16612_s6 + $0x24c] ss:$16 sps:$4 sm:$0xff]   ;;  %v17282_v27 = vld [vmem:[#allocation31_spill] sm:$0xff]  ;;  %v4194_v63 = vadd.f32 1.0, %v10287_v40  ;;  %v14229_v28 = vmul.f32 0.5, %v3149_v3  ;;  %v14234_v12 = vmul.f32 %v4188_v32, %v14064_v39  ;;  %7753 = vmatprep.subr.bf16.mxu0 %v9848_v58 }
 0x372   : > { %17279 = vst [vmem:[#allocation28_spill] sm:$0xff] %v14211_v43  ;;  %v17280_v20 = vld [vmem:[#allocation102_spill] sm:$0xff]  ;;  %7090 = vmatmul.mubr.bf16.gmra.mxu0 %v17281_v52  ;;  %7443 = vmatmul.mubr.bf16.gmra.mxu1 %v17282_v27  ;;  %v3693_v53 = vmul.f32 0.70710677, %v3149_v3  ;;  %v14237_v18 = vmul.f32 %v4190_v19, %v14074_v57  ;;  %v4195_v23 = vadd.f32 1.0, %v10289_v14  ;;  %v14239_v52 = vpop.f32.mrf.mxu0  ;;  %v14241_v27 = vpop.f32.mrf.mxu1  ;;  %v4447_v41 = vmul.f32 %v4191_v13, %v14077_v29  ;;  %v17285_v14 = vld [vmem:[#allocation75_spill] sm:$0xff] }
 0x373   : > { %17276 = vst [vmem:[#allocation13_spill] sm:$0xff] %v14207_v2  ;;  %v3151_v59 = vadd.f32 %v17280_v20, %v12561_v5  ;;  %7099 = vmatprep.mubr.bf16.mxu0 %v14207_v2  ;;  %7452 = vmatprep.mubr.bf16.mxu1 %v14211_v43  ;;  %17283 = vst [vmem:[#allocation10_spill] sm:$0xff] %v14234_v12  ;;  %v4197_v20 = vadd.f32 1.0, %v10291_v0  ;;  %v9846_v3 = vld [vmem:[%s16612_s6 + $0x48] ss:$16 sps:$4 sm:$0xff]   ;;  %10304 = verf.f32 %v3691_v10  ;;  %v10293_v19 = vpop.eup %10292  ;;  %v14259_v0 = vmul.f32 0.5, %v2798_v34 }
 0x374   : > { %17284 = vst [vmem:[#allocation97_spill] sm:$0xff] %v14237_v18  ;;  %8105 = vmatpush1.bf16.msra.mxu1 %v9843_v42  ;;  %v9849_v39 = vld [vmem:[%s16612_s6 + $0x248] ss:$16 sps:$4 sm:$0xff]   ;;  %v3692_v57 = vmul.f32 0.70710677, %v2798_v34  ;;  %v2802_v40 = vadd.f32 %v17285_v14, %v12291_v1  ;;  %v4449_v42 = vmul.f32 %v4193_v45, %v14087_v22  ;;  %v17286_v13 = vld [vmem:[#allocation57_spill] sm:$0xff]  ;;  %v10295_v14 = vpop.eup %10294  ;;  %v14267_v58 = vmul.f32 %v4194_v63, %v14109_v17  ;;  %v14277_v12 = vpop.f32.mrf.mxu0 }
 0x375   : > { %8106 = vmatprep.subr.bf16.mxu1 %v9851_v54  ;;  %v9854_v37 = vld [vmem:[%s16612_s6 + $0x2c] ss:$16 sps:$4 sm:$0xff]   ;;  %v3694_v29 = vmul.f32 0.70710677, %v3151_v59  ;;  %v3155_v10 = vadd.f32 %v17286_v13, %v12297_v56  ;;  %v14264_v54 = vmul.f32 %v4192_v6, %v14090_v33  ;;  %10306 = verf.f32 %v3693_v53  ;;  %v17289_v43 = vld [vmem:[#allocation63_spill] sm:$0xff]  ;;  %v17290_v34 = vld [vmem:[#allocation61_spill] sm:$0xff]  ;;  %v14279_v33 = vpop.f32.mrf.mxu1  ;;  %7754 = vmatpush1.bf16.msra.mxu0 %v9846_v3 }
 0x376   : > { %v9857_v32 = vld [vmem:[%s16612_s6 + $0x22c] ss:$16 sps:$4 sm:$0xff]   ;;  %17288 = vst [vmem:[#allocation99_spill] sm:$0xff] %v14267_v58  ;;  %v2804_v2 = vadd.f32 %v17289_v43, %v12556_v31  ;;  %v4451_v18 = vmul.f32 %v4195_v23, %v14112_v8  ;;  %v4453_v22 = vmul.f32 %v4197_v20, %v14147_v50  ;;  %v14273_v45 = vmul.f32 0.5, %v3151_v59  ;;  %17291 = vst [vmem:[#allocation101_spill] sm:$0xff] %v14279_v33  ;;  %v17292_v17 = vld [vmem:[#allocation71_spill] sm:$0xff]  ;;  %v14319_v33 = vpop.f32.mrf.mxu0 }
 0x377   : > { %17287 = vst [vmem:[#allocation5_spill] sm:$0xff] %v14264_v54  ;;  %v3157_v13 = vadd.f32 %v17290_v34, %v12561_v5  ;;  %v9852_v53 = vld [vmem:[%s16612_s6 + $0x28] ss:$16 sps:$4 sm:$0xff]   ;;  %10308 = verf.f32 %v3692_v57  ;;  %v3695_v50 = vmul.f32 0.70710677, %v2802_v40  ;;  %7755 = vmatprep.subr.bf16.mxu0 %v9854_v37  ;;  %v4196_v57 = vadd.f32 1.0, %v10293_v19 }
 0x378   : > { %8107 = vmatpush1.bf16.msra.mxu1 %v9849_v39  ;;  %v9855_v63 = vld [vmem:[%s16612_s6 + $0x228] ss:$16 sps:$4 sm:$0xff]   ;;  %v9860_v20 = vld [vmem:[%s16612_s6 + $0xc] ss:$16 sps:$4 sm:$0xff]   ;;  %v10297_v39 = vpop.eup %10296  ;;  %v14301_v34 = vadd.f32 1.0, %v10295_v14  ;;  %10310 = verf.f32 %v3694_v29  ;;  %v2806_v54 = vadd.f32 %v13887_v47, %v12291_v1  ;;  %v14313_v29 = vpack.c.bf16 %v4451_v18, %v4447_v41 }
 0x379   : > { %v17293_v8 = vld [vmem:[#allocation8_spill] sm:$0xff]  ;;  %v17295_v59 = vld [vmem:[#allocation74_spill] sm:$0xff]  ;;  %8108 = vmatprep.subr.bf16.mxu1 %v9857_v32  ;;  %v10299_v37 = vpop.eup %10298  ;;  %v14305_v32 = vmul.f32 0.5, %v2802_v40  ;;  %v3696_v58 = vmul.f32 0.70710677, %v2804_v2  ;;  %v14315_v14 = vpack.c.bf16 %v4453_v22, %v4449_v42  ;;  %7756 = vmatpush1.bf16.msra.mxu0 %v9852_v53  ;;  %v4199_v41 = vadd.f32 1.0, %v10297_v39 }
 0x37a   : > { %v14289_v43 = vpack.c.bf16 %v17293_v8, %v17292_v17  ;;  %v17296_v6 = vld [vmem:[#allocation48_spill] sm:$0xff]  ;;  %v3697_v17 = vmul.f32 0.70710677, %v3155_v10  ;;  %v17298_v8 = vld [vmem:[#allocation67_spill] sm:$0xff]  ;;  %v10301_v19 = vpop.eup %10300  ;;  %17300 = vst [vmem:[#allocation39_spill] sm:$0xff] %v14313_v29  ;;  %10312 = verf.f32 %v3695_v50  ;;  %v14329_v42 = vmul.f32 0.5, %v2804_v2  ;;  %7757 = vmatprep.subr.bf16.mxu0 %v9860_v20 }
 0x37b   : > { %v14293_v23 = vpack.c.bf16 %v17296_v6, %v17295_v59  ;;  %v9863_v3 = vld [vmem:[%s16612_s6 + $0x20c] ss:$16 sps:$4 sm:$0xff]   ;;  %7100 = vmatmul.mubr.bf16.gmra.mxu0 %v17298_v8  ;;  %v14307_v6 = vmul.f32 0.5, %v3155_v10  ;;  %17301 = vst [vmem:[#allocation69_spill] sm:$0xff] %v14315_v14  ;;  %v3698_v8 = vmul.f32 0.70710677, %v3157_v13  ;;  %v14321_v10 = vpop.f32.mrf.mxu1  ;;  %v14354_v14 = vmul.f32 %v4196_v57, %v14150_v25 }
 0x37c   : > { %17294 = vst [vmem:[#allocation41_spill] sm:$0xff] %v14289_v43  ;;  %v17299_v59 = vld [vmem:[#allocation70_spill] sm:$0xff]  ;;  %7109 = vmatprep.mubr.bf16.mxu0 %v14289_v43  ;;  %17303 = vst [vmem:[#allocation102_spill] sm:$0xff] %v14321_v10  ;;  %8109 = vmatpush1.bf16.msra.mxu1 %v9855_v63  ;;  %v17304_v22 = vld [vmem:[#allocation7_spill] sm:$0xff]  ;;  %10314 = verf.f32 %v3697_v17  ;;  %v14341_v39 = vmul.f32 0.5, %v3157_v13  ;;  %v14347_v43 = vadd.f32 1.0, %v10301_v19  ;;  %v14358_v13 = vadd.f32 %v13936_v11, %v12297_v56 }
 0x37d   : > { %17297 = vst [vmem:[#allocation68_spill] sm:$0xff] %v14293_v23  ;;  %7453 = vmatmul.mubr.bf16.gmra.mxu1 %v17299_v59  ;;  %v17302_v59 = vld [vmem:[#allocation59_spill] sm:$0xff]  ;;  %v9858_v47 = vld [vmem:[%s16612_s6 + $0x8] ss:$16 sps:$4 sm:$0xff]   ;;  %8110 = vmatprep.subr.bf16.mxu1 %v9863_v3  ;;  %v9866_v53 = vld [vmem:[%s16612_s6 + $0x1ec] ss:$16 sps:$4 sm:$0xff]   ;;  %10316 = verf.f32 %v3696_v58  ;;  %v14351_v3 = vadd.f32 %v13934_v16, %v12291_v1  ;;  %v14373_v11 = vadd.f32 %v13977_v4, %v12556_v31 }
 0x37e   : > { %7462 = vmatprep.mubr.bf16.mxu1 %v14293_v23  ;;  %v3159_v40 = vadd.f32 %v17302_v59, %v12297_v56  ;;  %v9861_v18 = vld [vmem:[%s16612_s6 + $0x208] ss:$16 sps:$4 sm:$0xff]   ;;  %v14333_v59 = vadd.f32 %v17304_v22, %v12556_v31  ;;  %v9869_v63 = vld [vmem:[%s16612_s6 + $0x3ec] ss:$16 sps:$4 sm:$0xff]   ;;  %v4201_v23 = vadd.f32 1.0, %v10299_v37  ;;  %v17305_v2 = vld [vmem:[#allocation77_spill] sm:$0xff]  ;;  %v10303_v22 = vpop.eup %10302  ;;  %10318 = verf.f32 %v3698_v8  ;;  %v14360_v37 = vpop.f32.mrf.mxu0  ;;  %7758 = vmatpush1.bf16.msra.mxu0 %v9858_v47 }
 0x37f   : > { %v14345_v50 = vadd.f32 %v17305_v2, %v12561_v5  ;;  %v3699_v20 = vmul.f32 0.70710677, %v2806_v54  ;;  %17306 = vst [vmem:[#allocation75_spill] sm:$0xff] %v14354_v14  ;;  %17307 = vst [vmem:[#allocation57_spill] sm:$0xff] %v14360_v37  ;;  %v14362_v2 = vpop.f32.mrf.mxu1  ;;  %v9864_v16 = vld [vmem:[%s16612_s6 + $0x1e8] ss:$16 sps:$4 sm:$0xff]   ;;  %7759 = vmatprep.subr.bf16.mxu0 %v9866_v53 }
 0x380   : > { %v3701_v17 = vmul.f32 0.70710677, %v3159_v40  ;;  %17308 = vst [vmem:[#allocation63_spill] sm:$0xff] %v14362_v2  ;;  %8111 = vmatpush1.bf16.msra.mxu1 %v9861_v18  ;;  %v9867_v25 = vld [vmem:[%s16612_s6 + $0x3e8] ss:$16 sps:$4 sm:$0xff]   ;;  %v17310_v8 = vld [vmem:[#allocation21_spill] sm:$0xff]  ;;  %v10305_v4 = vpop.eup %10304 }
 0x381   : > { %v3700_v58 = vmul.f32 0.70710677, %v14333_v59  ;;  %v17309_v57 = vld [vmem:[#allocation24_spill] sm:$0xff]  ;;  %v17312_v47 = vld [vmem:[#allocation45_spill] sm:$0xff]  ;;  %v17313_v18 = vld [vmem:[#allocation19_spill] sm:$0xff]  ;;  %8112 = vmatprep.subr.bf16.mxu1 %v9869_v63  ;;  %v14389_v37 = vadd.f32 1.0, %v10303_v22  ;;  %10320 = verf.f32 %v3699_v20  ;;  %v14405_v22 = vadd.f32 %v13979_v24, %v12561_v5  ;;  %v14420_v24 = vpop.f32.mrf.mxu1 }
 0x382   : > { %v14377_v19 = vpack.c.bf16 %v17310_v8, %v17309_v57  ;;  %v14381_v29 = vpack.c.bf16 %v17313_v18, %v17312_v47  ;;  %v9872_v14 = vld [vmem:[%s16612_s6 + $0x1cc] ss:$16 sps:$4 sm:$0xff]   ;;  %v14391_v10 = vmul.f32 0.5, %v2806_v54  ;;  %v3702_v57 = vmul.f32 0.70710677, %v14345_v50  ;;  %v17315_v53 = vld [vmem:[#allocation9_spill] sm:$0xff]  ;;  %v10307_v54 = vpop.eup %10306  ;;  %7760 = vmatpush2.bf16.msra.mxu0 %v9864_v16 }
 0x383   : > { %v9875_v2 = vld [vmem:[%s16612_s6 + $0x3cc] ss:$16 sps:$4 sm:$0xff]   ;;  %v14396_v8 = vadd.f32 %v14010_v61, %v12291_v1  ;;  %7110 = vmatmul.mubr.bf16.gmra.mxu0 %v17315_v53  ;;  %v14400_v47 = vmul.f32 0.5, %v3159_v40  ;;  %v3703_v18 = vmul.f32 0.70710677, %v14351_v3  ;;  %v14411_v61 = vmul.f32 %v14301_v34, %v14160_v60  ;;  %17318 = vst [vmem:[#allocation74_spill] sm:$0xff] %v14420_v24  ;;  %7761 = vmatprep.subr.bf16.mxu0 %v9872_v14 }
 0x384   : > { %17311 = vst [vmem:[#allocation61_spill] sm:$0xff] %v14377_v19  ;;  %17314 = vst [vmem:[#allocation71_spill] sm:$0xff] %v14381_v29  ;;  %v17316_v63 = vld [vmem:[#allocation46_spill] sm:$0xff]  ;;  %7119 = vmatprep.mubr.bf16.mxu0 %v14377_v19  ;;  %10322 = verf.f32 %v3701_v17  ;;  %v3705_v20 = vmul.f32 0.70710677, %v14358_v13  ;;  %v14416_v40 = vadd.f32 %v14012_v38, %v12297_v56  ;;  %8113 = vmatpush2.bf16.msra.mxu1 %v9867_v25  ;;  %v10309_v19 = vpop.eup %10308  ;;  %v4203_v53 = vadd.f32 1.0, %v10305_v4 }
 0x385   : > { %7463 = vmatmul.mubr.bf16.gmra.mxu1 %v17316_v63  ;;  %17317 = vst [vmem:[#allocation8_spill] sm:$0xff] %v14411_v61  ;;  %v14418_v63 = vpop.f32.mrf.mxu0  ;;  %v9873_v60 = vld [vmem:[%s16612_s6 + $0x3c8] ss:$16 sps:$4 sm:$0xff]   ;;  %v14429_v34 = vmul.f32 %v4199_v41, %v14171_v15  ;;  %v14432_v38 = vmul.f32 %v4201_v23, %v14181_v26  ;;  %10324 = verf.f32 %v3700_v58  ;;  %v3704_v17 = vmul.f32 0.70710677, %v14373_v11  ;;  %8114 = vmatprep.subr.bf16.mxu1 %v9875_v2  ;;  %v10311_v23 = vpop.eup %10310 }
 0x386   : > { %7472 = vmatprep.mubr.bf16.mxu1 %v14381_v29  ;;  %v9870_v29 = vld [vmem:[%s16612_s6 + $0x1c8] ss:$16 sps:$4 sm:$0xff]   ;;  %v9878_v16 = vld [vmem:[%s16612_s6 + $0x1ac] ss:$16 sps:$4 sm:$0xff]   ;;  %10326 = verf.f32 %v3702_v57  ;;  %v3707_v15 = vmul.f32 0.70710677, %v14396_v8  ;;  %v14444_v26 = vadd.f32 %v14048_v9, %v12556_v31  ;;  %v14452_v2 = vadd.f32 %v14050_v62, %v12561_v5  ;;  %v14465_v57 = vpop.f32.mrf.mxu1 }
 0x387   : > { %v9881_v25 = vld [vmem:[%s16612_s6 + $0x3ac] ss:$16 sps:$4 sm:$0xff]   ;;  %v14447_v14 = vmul.f32 0.5, %v14333_v59  ;;  %10328 = verf.f32 %v3703_v18  ;;  %v3706_v41 = vmul.f32 0.70710677, %v14405_v22  ;;  %v14456_v58 = vmul.f32 %v14347_v43, %v14183_v7  ;;  %v14463_v59 = vpop.f32.mrf.mxu0  ;;  %17321 = vst [vmem:[#allocation7_spill] sm:$0xff] %v14465_v57  ;;  %7762 = vmatpush2.bf16.msra.mxu0 %v9870_v29  ;;  %v10313_v61 = vpop.eup %10312 }
 0x388   : > { %10330 = verf.f32 %v3705_v20  ;;  %v3709_v4 = vmul.f32 0.70710677, %v14416_v40  ;;  %v14461_v9 = vadd.f32 %v14104_v51, %v12291_v1  ;;  %17320 = vst [vmem:[#allocation59_spill] sm:$0xff] %v14463_v59  ;;  %8115 = vmatpush2.bf16.msra.mxu1 %v9873_v60  ;;  %v9876_v62 = vld [vmem:[%s16612_s6 + $0x1a8] ss:$16 sps:$4 sm:$0xff]   ;;  %v14475_v43 = vadd.f32 %v14106_v48, %v12297_v56  ;;  %7763 = vmatprep.subr.bf16.mxu0 %v9878_v16  ;;  %v17328_v59 = vld [vmem:[#allocation47_spill] sm:$0xff] }
 0x389   : > { %17319 = vst [vmem:[#allocation48_spill] sm:$0xff] %v14456_v58  ;;  %v9879_v7 = vld [vmem:[%s16612_s6 + $0x3a8] ss:$16 sps:$4 sm:$0xff]   ;;  %10332 = verf.f32 %v3704_v17  ;;  %v17325_v58 = vld [vmem:[#allocation27_spill] sm:$0xff]  ;;  %8116 = vmatprep.subr.bf16.mxu1 %v9881_v25  ;;  %v4459_v57 = vmul.f32 %v4203_v53, %v14219_v46  ;;  %v3708_v17 = vmul.f32 0.70710677, %v14444_v26  ;;  %v14489_v48 = vadd.f32 %v14139_v55, %v12556_v31 }
 0x38a   : > { %v17322_v51 = vld [vmem:[#allocation18_spill] sm:$0xff]  ;;  %v17323_v18 = vld [vmem:[#allocation36_spill] sm:$0xff]  ;;  %10334 = verf.f32 %v3707_v15  ;;  %v4205_v24 = vadd.f32 1.0, %v10307_v54  ;;  %v3710_v16 = vmul.f32 0.70710677, %v14452_v2  ;;  %v14496_v25 = vadd.f32 %v14141_v30, %v12561_v5  ;;  %v14505_v54 = vpop.f32.mrf.mxu0 }
 0x38b   : > { %v14479_v20 = vpack.c.bf16 %v17323_v18, %v17322_v51  ;;  %v17326_v29 = vld [vmem:[#allocation40_spill] sm:$0xff]  ;;  %7120 = vmatmul.mubr.bf16.gmra.mxu0 %v17328_v59  ;;  %v10315_v18 = vpop.eup %10314  ;;  %10336 = verf.f32 %v3706_v41  ;;  %v4204_v55 = vadd.f32 1.0, %v10309_v19  ;;  %v3711_v53 = vmul.f32 0.70710677, %v14461_v9  ;;  %v14507_v41 = vpop.f32.mrf.mxu1  ;;  %v17336_v59 = vld [vmem:[#allocation62_spill] sm:$0xff] }
 0x38c   : > { %v14483_v60 = vpack.c.bf16 %v17326_v29, %v17325_v58  ;;  %v17329_v51 = vld [vmem:[#allocation20_spill] sm:$0xff]  ;;  %v10317_v46 = vpop.eup %10316  ;;  %10338 = verf.f32 %v3709_v4  ;;  %v14503_v15 = vadd.f32 %v14185_v21, %v12291_v1  ;;  %7764 = vmatpush2.bf16.msra.mxu0 %v9876_v62  ;;  %8117 = vmatpush2.bf16.msra.mxu1 %v9879_v7  ;;  %v14514_v19 = vmul.f32 %v14389_v37, %v14195_v36 }
 0x38d   : > { %17324 = vst [vmem:[#allocation77_spill] sm:$0xff] %v14479_v20  ;;  %7473 = vmatmul.mubr.bf16.gmra.mxu1 %v17329_v51  ;;  %7129 = vmatprep.mubr.bf16.mxu0 %v14479_v20  ;;  %v9882_v30 = vld [vmem:[%s16612_s6 + $0x188] ss:$16 sps:$4 sm:$0xff]   ;;  %v10319_v58 = vpop.eup %10318  ;;  %v14517_v4 = vmul.f32 0.5, %v14345_v50  ;;  %v3713_v21 = vmul.f32 0.70710677, %v14475_v43  ;;  %v14522_v29 = vadd.f32 %v14187_v35, %v12297_v56  ;;  %v14528_v7 = vpack.c.bf16 %v4459_v57, %v14429_v34  ;;  %v14543_v57 = vpop.f32.mrf.mxu0 }
 0x38e   : > { %17327 = vst [vmem:[#allocation24_spill] sm:$0xff] %v14483_v60  ;;  %7482 = vmatprep.mubr.bf16.mxu1 %v14483_v60  ;;  %17330 = vst [vmem:[#allocation21_spill] sm:$0xff] %v14514_v19  ;;  %v9884_v62 = vld [vmem:[%s16612_s6 + $0x18c] ss:$16 sps:$4 sm:$0xff]   ;;  %v14531_v60 = vmul.f32 0.5, %v14351_v3  ;;  %10340 = verf.f32 %v3708_v17  ;;  %v4461_v50 = vmul.f32 %v4205_v24, %v14229_v28  ;;  %v14536_v37 = vmul.f32 0.5, %v14358_v13  ;;  %v10321_v20 = vpop.eup %10320  ;;  %v14545_v17 = vpop.f32.mrf.mxu1 }
 0x38f   : > { %17331 = vst [vmem:[#allocation45_spill] sm:$0xff] %v14528_v7  ;;  %v3712_v36 = vmul.f32 0.70710677, %v14489_v48  ;;  %10342 = verf.f32 %v3710_v16  ;;  %v3714_v35 = vmul.f32 0.70710677, %v14496_v25  ;;  %7765 = vmatprep.subr.bf16.mxu0 %v9884_v62  ;;  %v14540_v51 = vmul.f32 %v4204_v55, %v14259_v0  ;;  %v17333_v24 = vld [vmem:[#allocation43_spill] sm:$0xff] }
 0x390   : > { %v4206_v34 = vadd.f32 1.0, %v10311_v23  ;;  %10344 = verf.f32 %v3711_v53  ;;  %v3715_v3 = vmul.f32 0.70710677, %v14503_v15  ;;  %7766 = vmatpush2.bf16.msra.mxu0 %v9882_v30  ;;  %v3717_v13 = vmul.f32 0.70710677, %v14522_v29  ;;  %v17334_v16 = vld [vmem:[#allocation6_spill] sm:$0xff] }
 0x391   : > { %17332 = vst [vmem:[#allocation19_spill] sm:$0xff] %v14540_v51  ;;  %v10323_v28 = vpop.eup %10322  ;;  %10346 = verf.f32 %v3713_v21  ;;  %v14550_v62 = vpack.c.bf16 %v17334_v16, %v17333_v24  ;;  %v17337_v0 = vld [vmem:[#allocation15_spill] sm:$0xff]  ;;  %v4207_v53 = vadd.f32 1.0, %v10313_v61  ;;  %v4209_v7 = vadd.f32 1.0, %v10315_v18  ;;  %v17339_v30 = vld [vmem:[#allocation32_spill] sm:$0xff] }
 0x392   : > { %v14554_v55 = vpack.c.bf16 %v17337_v0, %v17336_v59  ;;  %v10325_v23 = vpop.eup %10324  ;;  %10348 = verf.f32 %v3712_v36  ;;  %v14558_v19 = vadd.f32 %v14223_v44, %v12556_v31  ;;  %v17340_v21 = vld [vmem:[#allocation35_spill] sm:$0xff]  ;;  %v14563_v24 = vpack.c.bf16 %v4461_v50, %v14432_v38  ;;  %v14574_v0 = vpop.f32.mrf.mxu0 }
 0x393   : > { %17335 = vst [vmem:[#allocation18_spill] sm:$0xff] %v14550_v62  ;;  %7130 = vmatmul.mubr.bf16.gmra.mxu0 %v17339_v30  ;;  %v10327_v51 = vpop.eup %10326  ;;  %v4208_v16 = vadd.f32 1.0, %v10317_v46  ;;  %10350 = verf.f32 %v3714_v35  ;;  %v14567_v59 = vadd.f32 %v14225_v49, %v12561_v5  ;;  %v14572_v61 = vmul.f32 %v4206_v34, %v14273_v45  ;;  %v14576_v38 = vpop.f32.mrf.mxu1  ;;  %v17347_v30 = vld [vmem:[#allocation79_spill] sm:$0xff] }
 0x394   : > { %17338 = vst [vmem:[#allocation36_spill] sm:$0xff] %v14554_v55  ;;  %17341 = vst [vmem:[#allocation27_spill] sm:$0xff] %v14563_v24  ;;  %7139 = vmatprep.mubr.bf16.mxu0 %v14550_v62  ;;  %v10329_v44 = vpop.eup %10328  ;;  %v4210_v18 = vadd.f32 1.0, %v10319_v58  ;;  %v4211_v36 = vadd.f32 1.0, %v10321_v20  ;;  %10352 = verf.f32 %v3715_v3  ;;  %v4213_v50 = vadd.f32 1.0, %v10323_v28 }
 0x395   : > { %7483 = vmatmul.mubr.bf16.gmra.mxu1 %v17340_v21  ;;  %17342 = vst [vmem:[#allocation40_spill] sm:$0xff] %v14572_v61  ;;  %v10331_v46 = vpop.eup %10330  ;;  %v3448_v49 = vmul.f32 0.5, %v14373_v11  ;;  %v3450_v35 = vmul.f32 0.5, %v14405_v22  ;;  %10354 = verf.f32 %v3717_v13  ;;  %v4465_v45 = vmul.f32 %v4209_v7, %v14307_v6  ;;  %v17346_v21 = vld [vmem:[#allocation72_spill] sm:$0xff] }
 0x396   : > { %7492 = vmatprep.mubr.bf16.mxu1 %v14554_v55  ;;  %v10333_v62 = vpop.eup %10332  ;;  %v4463_v55 = vmul.f32 %v4207_v53, %v14305_v32  ;;  %v3451_v58 = vmul.f32 0.5, %v14396_v8  ;;  %v3716_v20 = vmul.f32 0.70710677, %v14558_v19  ;;  %v14585_v3 = vmul.f32 %v4208_v16, %v14329_v42  ;;  %v14599_v53 = vpop.f32.mrf.mxu0 }
 0x397   : > { %v10335_v34 = vpop.eup %10334  ;;  %v3453_v28 = vmul.f32 0.5, %v14416_v40  ;;  %v14589_v11 = vmul.f32 0.5, %v14444_v26  ;;  %v3718_v22 = vmul.f32 0.70710677, %v14567_v59  ;;  %v14593_v32 = vmul.f32 %v4210_v18, %v14341_v39  ;;  %v14601_v42 = vpop.f32.mrf.mxu1  ;;  %v17349_v39 = vld [vmem:[#allocation14_spill] sm:$0xff]  ;;  %v17350_v18 = vld [vmem:[#allocation81_spill] sm:$0xff] }
 0x398   : > { %17343 = vst [vmem:[#allocation43_spill] sm:$0xff] %v14585_v3  ;;  %v10337_v13 = vpop.eup %10336  ;;  %v4467_v6 = vmul.f32 %v4211_v36, %v14391_v10  ;;  %v4212_v8 = vadd.f32 1.0, %v10325_v23  ;;  %v14597_v7 = vmul.f32 0.5, %v14452_v2  ;;  %17345 = vst [vmem:[#allocation62_spill] sm:$0xff] %v14601_v42  ;;  %v4469_v26 = vmul.f32 %v4213_v50, %v14400_v47  ;;  %v17352_v36 = vld [vmem:[#allocation17_spill] sm:$0xff]  ;;  %v17353_v3 = vld [vmem:[#allocation16_spill] sm:$0xff] }
 0x399   : > { %17344 = vst [vmem:[#allocation6_spill] sm:$0xff] %v14593_v32  ;;  %v10339_v40 = vpop.eup %10338  ;;  %v4214_v16 = vadd.f32 1.0, %v10327_v51  ;;  %v14606_v24 = vpack.c.bf16 %v17347_v30, %v17346_v21  ;;  %v14610_v32 = vpack.c.bf16 %v17350_v18, %v17349_v39  ;;  %v4215_v10 = vadd.f32 1.0, %v10329_v44 }
 0x39a   : > { %v4217_v23 = vadd.f32 1.0, %v10331_v46  ;;  %v4219_v2 = vadd.f32 1.0, %v10335_v34  ;;  %10356 = verf.f32 %v3716_v20  ;;  %v4216_v42 = vadd.f32 1.0, %v10333_v62  ;;  %v14623_v20 = vpop.f32.mrf.mxu0  ;;  %v14625_v62 = vpop.f32.mrf.mxu1 }
 0x39b   : > { %17348 = vst [vmem:[#allocation15_spill] sm:$0xff] %v14606_v24  ;;  %17351 = vst [vmem:[#allocation72_spill] sm:$0xff] %v14610_v32  ;;  %7140 = vmatmul.mubr.bf16.gmra.mxu0 %v17352_v36  ;;  %v10341_v61 = vpop.eup %10340  ;;  %v4218_v47 = vadd.f32 1.0, %v10337_v13  ;;  %v3455_v51 = vmul.f32 0.5, %v14461_v9  ;;  %10358 = verf.f32 %v3718_v22  ;;  %v14617_v21 = vpack.c.bf16 %v4467_v6, %v4463_v55 }
 0x39c   : > { %7149 = vmatprep.mubr.bf16.mxu0 %v14606_v24  ;;  %v10343_v30 = vpop.eup %10342  ;;  %v14620_v44 = vmul.f32 %v4212_v8, %v14447_v14  ;;  %v4221_v46 = vadd.f32 1.0, %v10339_v40  ;;  %v3457_v50 = vmul.f32 0.5, %v14475_v43  ;;  %v14627_v9 = vpack.c.bf16 %v4469_v26, %v4465_v45  ;;  %v17382_v24 = vld [vmem:[#allocation92_spill] sm:$0xff] }
 0x39d   : > { %7493 = vmatmul.mubr.bf16.gmra.mxu1 %v17353_v3  ;;  %17354 = vst [vmem:[#allocation79_spill] sm:$0xff] %v14617_v21  ;;  %v10345_v34 = vpop.eup %10344  ;;  %v14630_v22 = vmul.f32 %v4214_v16, %v14517_v4  ;;  %v3456_v13 = vmul.f32 0.5, %v14489_v48  ;;  %v3458_v55 = vmul.f32 0.5, %v14496_v25  ;;  %v4471_v14 = vmul.f32 %v4215_v10, %v14531_v60 }
 0x39e   : > { %7502 = vmatprep.mubr.bf16.mxu1 %v14610_v32  ;;  %17355 = vst [vmem:[#allocation14_spill] sm:$0xff] %v14620_v44  ;;  %17356 = vst [vmem:[#allocation81_spill] sm:$0xff] %v14627_v9  ;;  %v10347_v6 = vpop.eup %10346  ;;  %v4473_v8 = vmul.f32 %v4217_v23, %v14536_v37  ;;  %v4475_v43 = vmul.f32 %v4219_v2, %v3451_v58  ;;  %v3459_v40 = vmul.f32 0.5, %v14503_v15  ;;  %v4220_v26 = vadd.f32 1.0, %v10341_v61  ;;  %v14649_v37 = vpop.f32.mrf.mxu0  ;;  %v17361_v58 = vld [vmem:[#allocation86_spill] sm:$0xff]  ;;  %v17424_v44 = vld [vmem:[#allocation64_spill] sm:$0xff] }
 0x39f   : > { %17357 = vst [vmem:[#allocation103_spill] sm:$0xff] %v14630_v22  ;;  %v10349_v39 = vpop.eup %10348  ;;  %v14637_v18 = vmul.f32 %v4216_v42, %v3448_v49  ;;  %v14639_v45 = vmul.f32 %v4218_v47, %v3450_v35  ;;  %v3461_v4 = vmul.f32 0.5, %v14522_v29  ;;  %v4477_v48 = vmul.f32 %v4221_v46, %v3453_v28  ;;  %v14651_v15 = vpop.f32.mrf.mxu1  ;;  %v17360_v29 = vld [vmem:[#allocation82_spill] sm:$0xff]  ;;  %v17364_v42 = vld [vmem:[#allocation87_spill] sm:$0xff]  ;;  %v17367_v46 = vld [vmem:[#allocation76_spill] sm:$0xff] }
 0x3a0   : > { %v10351_v16 = vpop.eup %10350  ;;  %v4222_v32 = vadd.f32 1.0, %v10343_v30  ;;  %v14643_v25 = vmul.f32 0.5, %v14558_v19  ;;  %v14647_v60 = vadd.f32 %v14239_v52, %v12291_v1  ;;  %v4223_v35 = vadd.f32 1.0, %v10345_v34  ;;  %v17363_v19 = vld [vmem:[#allocation83_spill] sm:$0xff]  ;;  %v17422_v22 = vld [vmem:[#allocation62_spill] sm:$0xff] }
 0x3a1   : > { %17358 = vst [vmem:[#allocation104_spill] sm:$0xff] %v14637_v18  ;;  %17359 = vst [vmem:[#allocation105_spill] sm:$0xff] %v14639_v45  ;;  %v10353_v49 = vpop.eup %10352  ;;  %v14655_v61 = vadd.f32 %v14241_v27, %v12297_v56  ;;  %v14659_v28 = vpack.c.bf16 %v17361_v58, %v17360_v29  ;;  %v14663_v10 = vpack.c.bf16 %v17364_v42, %v17363_v19  ;;  %v4225_v2 = vadd.f32 1.0, %v10347_v6  ;;  %v17368_v27 = vld [vmem:[#allocation80_spill] sm:$0xff] }
 0x3a2   : > { %v10355_v52 = vpop.eup %10354  ;;  %v14665_v23 = vpack.c.bf16 %v4475_v43, %v4471_v14  ;;  %v4224_v47 = vadd.f32 1.0, %v10349_v39  ;;  %v14669_v30 = vadd.f32 %v14277_v12, %v12556_v31  ;;  %v14674_v34 = vmul.f32 %v4220_v26, %v14589_v11  ;;  %v17372_v43 = vld [vmem:[#allocation101_spill] sm:$0xff]  ;;  %v14697_v26 = vpop.f32.mrf.mxu1  ;;  %v9890_v45 = vld [vmem:[%s16612_s6 + $0x16c] ss:$16 sps:$4 sm:$0xff]  }
 0x3a3   : > { %17362 = vst [vmem:[#allocation82_spill] sm:$0xff] %v14659_v28  ;;  %17365 = vst [vmem:[#allocation86_spill] sm:$0xff] %v14663_v10  ;;  %7150 = vmatmul.mubr.bf16.gmra.mxu0 %v17367_v46  ;;  %v4226_v29 = vadd.f32 1.0, %v10351_v16  ;;  %v14677_v58 = vmul.f32 0.5, %v14567_v59  ;;  %v14681_v14 = vadd.f32 %v14319_v33, %v12291_v1  ;;  %v14685_v12 = vpack.c.bf16 %v4477_v48, %v4473_v8  ;;  %v14695_v59 = vpop.f32.mrf.mxu0  ;;  %v17381_v46 = vld [vmem:[#allocation89_spill] sm:$0xff] }
 0x3a4   : > { %17366 = vst [vmem:[#allocation83_spill] sm:$0xff] %v14665_v23  ;;  %17369 = vst [vmem:[#allocation87_spill] sm:$0xff] %v14674_v34  ;;  %7159 = vmatprep.mubr.bf16.mxu0 %v14659_v28  ;;  %v14688_v6 = vmul.f32 %v4222_v32, %v14597_v7  ;;  %v3719_v11 = vmul.f32 0.70710677, %v14647_v60  ;;  %v14693_v39 = vadd.f32 %v17372_v43, %v12561_v5  ;;  %v4227_v16 = vadd.f32 1.0, %v10353_v49  ;;  %v17374_v7 = vld [vmem:[#allocation102_spill] sm:$0xff] }
 0x3a5   : > { %7503 = vmatmul.mubr.bf16.gmra.mxu1 %v17368_v27  ;;  %17370 = vst [vmem:[#allocation106_spill] sm:$0xff] %v14685_v12  ;;  %v4479_v33 = vmul.f32 %v4223_v35, %v3455_v51  ;;  %v4229_v19 = vadd.f32 1.0, %v10355_v52  ;;  %v3721_v42 = vmul.f32 0.70710677, %v14655_v61  ;;  %v4481_v8 = vmul.f32 %v4225_v2, %v3457_v50  ;;  %v17376_v51 = vld [vmem:[#allocation57_spill] sm:$0xff]  ;;  %v17377_v35 = vld [vmem:[#allocation88_spill] sm:$0xff]  ;;  %7767 = vmatprep.subr.bf16.mxu0 %v9890_v45 }
 0x3a6   : > { %7512 = vmatprep.mubr.bf16.mxu1 %v14663_v10  ;;  %17371 = vst [vmem:[#allocation107_spill] sm:$0xff] %v14688_v6  ;;  %v14700_v48 = vmul.f32 %v4224_v47, %v3456_v13  ;;  %v3720_v32 = vmul.f32 0.70710677, %v14669_v30  ;;  %v14705_v10 = vadd.f32 %v17374_v7, %v12297_v56  ;;  %v14707_v28 = vmul.f32 %v4226_v29, %v3458_v55  ;;  %v17378_v52 = vld [vmem:[#allocation90_spill] sm:$0xff]  ;;  %v17380_v47 = vld [vmem:[#allocation63_spill] sm:$0xff]  ;;  %v14723_v55 = vpop.f32.mrf.mxu0  ;;  %v14725_v29 = vpop.f32.mrf.mxu1  ;;  %v17385_v23 = vld [vmem:[#allocation84_spill] sm:$0xff] }
 0x3a7   : > { %v10357_v43 = vpop.eup %10356  ;;  %v3723_v27 = vmul.f32 0.70710677, %v14681_v14  ;;  %v14712_v49 = vadd.f32 %v17376_v51, %v12556_v31  ;;  %v14716_v50 = vpack.c.bf16 %v17378_v52, %v17377_v35  ;;  %10360 = verf.f32 %v3719_v11  ;;  %v9887_v35 = vld [vmem:[%s16612_s6 + $0x38c] ss:$16 sps:$4 sm:$0xff]   ;;  %v17419_v6 = vld [vmem:[#allocation95_spill] sm:$0xff] }
 0x3a8   : > { %17373 = vst [vmem:[#allocation101_spill] sm:$0xff] %v14700_v48  ;;  %17375 = vst [vmem:[#allocation102_spill] sm:$0xff] %v14707_v28  ;;  %v10359_v13 = vpop.eup %10358  ;;  %v3722_v2 = vmul.f32 0.70710677, %v14693_v39  ;;  %v14721_v7 = vadd.f32 %v17380_v47, %v12561_v5  ;;  %v14729_v51 = vpack.c.bf16 %v17382_v24, %v17381_v46  ;;  %v4483_v52 = vmul.f32 %v4227_v16, %v3459_v40  ;;  %v9885_v47 = vld [vmem:[%s16612_s6 + $0x388] ss:$16 sps:$4 sm:$0xff]  }
 0x3a9   : > { %17379 = vst [vmem:[#allocation57_spill] sm:$0xff] %v14716_v50  ;;  %v4485_v11 = vmul.f32 %v4229_v19, %v3461_v4  ;;  %10362 = verf.f32 %v3721_v42  ;;  %v14736_v3 = vadd.f32 %v14418_v63, %v12291_v1  ;;  %v4228_v36 = vadd.f32 1.0, %v10357_v43  ;;  %v17384_v46 = vld [vmem:[#allocation74_spill] sm:$0xff]  ;;  %v17386_v40 = vld [vmem:[#allocation85_spill] sm:$0xff]  ;;  %v17387_v16 = vld [vmem:[#allocation59_spill] sm:$0xff]  ;;  %v14756_v43 = vpop.f32.mrf.mxu0  ;;  %8118 = vmatprep.subr.bf16.mxu1 %v9887_v35 }
 0x3aa   : > { %17383 = vst [vmem:[#allocation88_spill] sm:$0xff] %v14729_v51  ;;  %10364 = verf.f32 %v3720_v32  ;;  %v3725_v24 = vmul.f32 0.70710677, %v14705_v10  ;;  %v14744_v12 = vadd.f32 %v17384_v46, %v12297_v56  ;;  %v4230_v4 = vadd.f32 1.0, %v10359_v13  ;;  %v14758_v46 = vpop.f32.mrf.mxu1  ;;  %v17389_v13 = vld [vmem:[#allocation98_spill] sm:$0xff]  ;;  %8119 = vmatpush2.bf16.msra.mxu1 %v9885_v47 }
 0x3ab   : > { %7160 = vmatmul.mubr.bf16.gmra.mxu0 %v17385_v23  ;;  %10366 = verf.f32 %v3723_v27  ;;  %v3724_v63 = vmul.f32 0.70710677, %v14712_v49  ;;  %v2844_v19 = vadd.f32 %v17387_v16, %v12556_v31  ;;  %v3726_v42 = vmul.f32 0.70710677, %v14721_v7  ;;  %v17388_v27 = vld [vmem:[#allocation93_spill] sm:$0xff]  ;;  %v17393_v23 = vld [vmem:[#allocation100_spill] sm:$0xff] }
 0x3ac   : > { %7169 = vmatprep.mubr.bf16.mxu0 %v14716_v50  ;;  %10368 = verf.f32 %v3722_v2  ;;  %v2846_v32 = vadd.f32 %v14505_v54, %v12291_v1  ;;  %v14764_v16 = vpack.c.bf16 %v4483_v52, %v4479_v33  ;;  %v3727_v50 = vmul.f32 0.70710677, %v14736_v3  ;;  %v17400_v47 = vld [vmem:[#allocation78_spill] sm:$0xff] }
 0x3ad   : > { %7513 = vmatmul.mubr.bf16.gmra.mxu1 %v17386_v40  ;;  %v14762_v40 = vpack.c.bf16 %v17389_v13, %v17388_v27  ;;  %v3199_v2 = vadd.f32 %v14507_v41, %v12297_v56  ;;  %v14773_v54 = vpack.c.bf16 %v4485_v11, %v4481_v8  ;;  %10370 = verf.f32 %v3725_v24  ;;  %v17396_v27 = vld [vmem:[#allocation7_spill] sm:$0xff]  ;;  %v14786_v8 = vpop.f32.mrf.mxu1  ;;  %v17399_v11 = vld [vmem:[#allocation54_spill] sm:$0xff] }
 0x3ae   : > { %7522 = vmatprep.mubr.bf16.mxu1 %v14729_v51  ;;  %17391 = vst [vmem:[#allocation63_spill] sm:$0xff] %v14764_v16  ;;  %v17392_v51 = vld [vmem:[#allocation96_spill] sm:$0xff]  ;;  %v3729_v48 = vmul.f32 0.70710677, %v14744_v12  ;;  %v3197_v35 = vadd.f32 %v17396_v27, %v12561_v5  ;;  %v14779_v33 = vmul.f32 %v4228_v36, %v14643_v25  ;;  %v14782_v52 = vmul.f32 %v4230_v4, %v14677_v58  ;;  %v17402_v13 = vld [vmem:[#allocation50_spill] sm:$0xff]  ;;  %v17403_v27 = vld [vmem:[#allocation3_spill] sm:$0xff] }
 0x3af   : > { %17390 = vst [vmem:[#allocation90_spill] sm:$0xff] %v14762_v40  ;;  %v14771_v28 = vpack.c.bf16 %v17393_v23, %v17392_v51  ;;  %17395 = vst [vmem:[#allocation92_spill] sm:$0xff] %v14773_v54  ;;  %10372 = verf.f32 %v3724_v63  ;;  %v3728_v41 = vmul.f32 0.70710677, %v2844_v19  ;;  %v3731_v23 = vmul.f32 0.70710677, %v2846_v32  ;;  %v14784_v51 = vpop.f32.mrf.mxu0 }
 0x3b0   : > { %17397 = vst [vmem:[#allocation74_spill] sm:$0xff] %v14779_v33  ;;  %17398 = vst [vmem:[#allocation59_spill] sm:$0xff] %v14782_v52  ;;  %10374 = verf.f32 %v3726_v42  ;;  %v14790_v24 = vpack.c.bf16 %v17400_v47, %v17399_v11  ;;  %v14794_v54 = vpack.c.bf16 %v17403_v27, %v17402_v13  ;;  %v3733_v36 = vmul.f32 0.70710677, %v3199_v2  ;;  %v17405_v25 = vld [vmem:[#allocation66_spill] sm:$0xff]  ;;  %v17406_v58 = vld [vmem:[#allocation37_spill] sm:$0xff] }
 0x3b1   : > { %17394 = vst [vmem:[#allocation89_spill] sm:$0xff] %v14771_v28  ;;  %10376 = verf.f32 %v3727_v50  ;;  %v14798_v4 = vpack.c.bf16 %v17406_v58, %v17405_v25  ;;  %v17408_v63 = vld [vmem:[#allocation30_spill] sm:$0xff]  ;;  %v17409_v42 = vld [vmem:[#allocation91_spill] sm:$0xff]  ;;  %v14805_v52 = vmul.f32 0.5, %v14647_v60  ;;  %v14808_v11 = vmul.f32 0.5, %v14655_v61  ;;  %v17411_v13 = vld [vmem:[#allocation12_spill] sm:$0xff] }
 0x3b2   : > { %17401 = vst [vmem:[#allocation93_spill] sm:$0xff] %v14790_v24  ;;  %17404 = vst [vmem:[#allocation98_spill] sm:$0xff] %v14794_v54  ;;  %v14802_v16 = vpack.c.bf16 %v17409_v42, %v17408_v63  ;;  %10378 = verf.f32 %v3729_v48  ;;  %v3730_v47 = vmul.f32 0.70710677, %v3197_v35  ;;  %v17412_v50 = vld [vmem:[#allocation44_spill] sm:$0xff]  ;;  %v14813_v27 = vmul.f32 0.5, %v14669_v30 }
 0x3b3   : > { %17407 = vst [vmem:[#allocation96_spill] sm:$0xff] %v14798_v4  ;;  %7170 = vmatmul.mubr.bf16.gmra.mxu0 %v17411_v13  ;;  %v14816_v25 = vmul.f32 0.5, %v14693_v39  ;;  %10380 = verf.f32 %v3728_v41  ;;  %v2848_v60 = vadd.f32 %v14543_v57, %v12556_v31  ;;  %v14823_v61 = vmul.f32 0.5, %v14681_v14  ;;  %v14830_v39 = vpop.f32.mrf.mxu0  ;;  %v14832_v41 = vpop.f32.mrf.mxu1  ;;  %v9899_v45 = vld [vmem:[%s16612_s6 + $0x34c] ss:$16 sps:$4 sm:$0xff]  }
 0x3b4   : > { %17410 = vst [vmem:[#allocation100_spill] sm:$0xff] %v14802_v16  ;;  %7179 = vmatprep.mubr.bf16.mxu0 %v14762_v40  ;;  %v14826_v48 = vmul.f32 0.5, %v14705_v10  ;;  %10382 = verf.f32 %v3731_v23  ;;  %v3201_v30 = vadd.f32 %v14545_v17, %v12561_v5  ;;  %17413 = vst [vmem:[#allocation7_spill] sm:$0xff] %v14832_v41  ;;  %v10361_v58 = vpop.eup %10360  ;;  %v14835_v57 = vmul.f32 0.5, %v14712_v49 }
 0x3b5   : > { %7523 = vmatmul.mubr.bf16.gmra.mxu1 %v17412_v50  ;;  %v14838_v63 = vmul.f32 0.5, %v14721_v7  ;;  %10384 = verf.f32 %v3733_v36  ;;  %v2852_v10 = vadd.f32 %v14574_v0, %v12291_v1  ;;  %v14843_v23 = vmul.f32 0.5, %v14736_v3  ;;  %v14860_v33 = vpop.f32.mrf.mxu0 }
 0x3b6   : > { %7532 = vmatprep.mubr.bf16.mxu1 %v14771_v28  ;;  %v10363_v14 = vpop.eup %10362  ;;  %v14846_v17 = vmul.f32 0.5, %v14744_v12  ;;  %10386 = verf.f32 %v3730_v47  ;;  %v3205_v42 = vadd.f32 %v14576_v38, %v12297_v56  ;;  %v14850_v28 = vmul.f32 0.5, %v2844_v19  ;;  %17414 = vst [vmem:[#allocation54_spill] sm:$0xff] %v14860_v33  ;;  %v14862_v47 = vpop.f32.mrf.mxu1 }
 0x3b7   : > { %v10365_v49 = vpop.eup %10364  ;;  %v14852_v7 = vmul.f32 0.5, %v3197_v35  ;;  %v14854_v36 = vmul.f32 0.5, %v2846_v32  ;;  %v3732_v40 = vmul.f32 0.70710677, %v2848_v60  ;;  %v4231_v50 = vadd.f32 1.0, %v10361_v58  ;;  %17415 = vst [vmem:[#allocation78_spill] sm:$0xff] %v14862_v47 }
 0x3b8   : > { %v10367_v0 = vpop.eup %10366  ;;  %v14856_v13 = vmul.f32 0.5, %v3199_v2  ;;  %v14858_v3 = vmul.f32 0.5, %v2848_v60  ;;  %v3734_v12 = vmul.f32 0.70710677, %v3201_v30  ;;  %v3735_v9 = vmul.f32 0.70710677, %v2852_v10 }
 0x3b9   : > { %v10369_v38 = vpop.eup %10368  ;;  %v2854_v19 = vadd.f32 %v14599_v53, %v12556_v31  ;;  %v17416_v35 = vld [vmem:[#allocation94_spill] sm:$0xff]  ;;  %v17420_v58 = vld [vmem:[#allocation97_spill] sm:$0xff]  ;;  %v4233_v34 = vadd.f32 1.0, %v10363_v14  ;;  %v14880_v18 = vmul.f32 0.5, %v3201_v30  ;;  %v3737_v53 = vmul.f32 0.70710677, %v3205_v42 }
 0x3ba   : > { %v17417_v32 = vld [vmem:[#allocation10_spill] sm:$0xff]  ;;  %v14872_v2 = vpack.c.bf16 %v17420_v58, %v17419_v6  ;;  %v10371_v6 = vpop.eup %10370  ;;  %v4235_v58 = vadd.f32 1.0, %v10367_v0  ;;  %10388 = verf.f32 %v3732_v40  ;;  %v14886_v47 = vmul.f32 0.5, %v2852_v10 }
 0x3bb   : > { %v14868_v21 = vpack.c.bf16 %v17417_v32, %v17416_v35  ;;  %v9888_v60 = vld [vmem:[%s16612_s6 + $0x168] ss:$16 sps:$4 sm:$0xff]   ;;  %v3207_v35 = vadd.f32 %v17422_v22, %v12561_v5  ;;  %v17423_v32 = vld [vmem:[#allocation51_spill] sm:$0xff]  ;;  %v2856_v33 = vadd.f32 %v14623_v20, %v12291_v1  ;;  %v9893_v30 = vld [vmem:[%s16612_s6 + $0x36c] ss:$16 sps:$4 sm:$0xff]   ;;  %v4232_v0 = vadd.f32 1.0, %v10365_v49  ;;  %v14902_v20 = vpop.f32.mrf.mxu0 }
 0x3bc   : > { %17421 = vst [vmem:[#allocation3_spill] sm:$0xff] %v14872_v2  ;;  %7180 = vmatmul.mubr.bf16.gmra.mxu0 %v17423_v32  ;;  %17425 = vst [vmem:[#allocation66_spill] sm:$0xff] %v14886_v47  ;;  %v9891_v22 = vld [vmem:[%s16612_s6 + $0x368] ss:$16 sps:$4 sm:$0xff]   ;;  %v10373_v14 = vpop.eup %10372  ;;  %v4234_v40 = vadd.f32 1.0, %v10369_v38  ;;  %10390 = verf.f32 %v3734_v12  ;;  %v14900_v10 = vadd.f32 %v14625_v62, %v12297_v56  ;;  %v4487_v32 = vmul.f32 %v4231_v50, %v14805_v52  ;;  %v17428_v38 = vld [vmem:[#allocation5_spill] sm:$0xff] }
 0x3bd   : > { %17418 = vst [vmem:[#allocation50_spill] sm:$0xff] %v14868_v21  ;;  %7533 = vmatmul.mubr.bf16.gmra.mxu1 %v17424_v44  ;;  %7189 = vmatprep.mubr.bf16.mxu0 %v14790_v24  ;;  %17426 = vst [vmem:[#allocation37_spill] sm:$0xff] %v14902_v20  ;;  %v14904_v24 = vpop.f32.mrf.mxu1  ;;  %v10375_v44 = vpop.eup %10374  ;;  %10392 = verf.f32 %v3735_v9  ;;  %v3736_v49 = vmul.f32 0.70710677, %v2854_v19  ;;  %v17429_v12 = vld [vmem:[#allocation75_spill] sm:$0xff]  ;;  %v4237_v20 = vadd.f32 1.0, %v10371_v6  ;;  %v4489_v50 = vmul.f32 %v4233_v34, %v14808_v11 }
 0x3be   : > { %7542 = vmatprep.mubr.bf16.mxu1 %v14794_v54  ;;  %17427 = vst [vmem:[#allocation30_spill] sm:$0xff] %v14904_v24  ;;  %v9896_v54 = vld [vmem:[%s16612_s6 + $0x14c] ss:$16 sps:$4 sm:$0xff]   ;;  %v14912_v47 = vpack.c.bf16 %v17429_v12, %v17428_v38  ;;  %7768 = vmatpush2.bf16.msra.mxu0 %v9888_v60  ;;  %v9894_v62 = vld [vmem:[%s16612_s6 + $0x148] ss:$16 sps:$4 sm:$0xff]   ;;  %v10377_v24 = vpop.eup %10376  ;;  %v14920_v41 = vmul.f32 0.5, %v3205_v42  ;;  %10394 = verf.f32 %v3737_v53  ;;  %v4491_v60 = vmul.f32 %v4235_v58, %v14823_v61  ;;  %v14939_v11 = vpop.f32.mrf.mxu0 }
 0x3bf   : > { %v3738_v9 = vmul.f32 0.70710677, %v3207_v35  ;;  %8120 = vmatprep.subr.bf16.mxu1 %v9893_v30  ;;  %7769 = vmatprep.subr.bf16.mxu0 %v9896_v54  ;;  %v10379_v52 = vpop.eup %10378  ;;  %v3739_v38 = vmul.f32 0.70710677, %v2856_v33  ;;  %v14926_v12 = vadd.f32 %v14649_v37, %v12556_v31  ;;  %v14929_v6 = vmul.f32 %v4232_v0, %v14813_v27  ;;  %v14941_v61 = vpop.f32.mrf.mxu1  ;;  %v9897_v37 = vld [vmem:[%s16612_s6 + $0x348] ss:$16 sps:$4 sm:$0xff]  }
 0x3c0   : > { %17430 = vst [vmem:[#allocation91_spill] sm:$0xff] %v14912_v47  ;;  %8121 = vmatpush2.bf16.msra.mxu1 %v9891_v22  ;;  %v10381_v47 = vpop.eup %10380  ;;  %v14932_v42 = vmul.f32 %v4234_v40, %v14816_v25  ;;  %v3741_v54 = vmul.f32 0.70710677, %v14900_v10  ;;  %v14937_v34 = vadd.f32 %v14651_v15, %v12561_v5  ;;  %v4236_v53 = vadd.f32 1.0, %v10373_v14  ;;  %v17433_v40 = vld [vmem:[#allocation56_spill] sm:$0xff]  ;;  %v14965_v14 = vpop.f32.mrf.mxu0 }
 0x3c1   : > { %17431 = vst [vmem:[#allocation94_spill] sm:$0xff] %v14929_v6  ;;  %8122 = vmatprep.subr.bf16.mxu1 %v9899_v45  ;;  %v10383_v27 = vpop.eup %10382  ;;  %v14946_v58 = vmul.f32 0.5, %v2854_v19  ;;  %10396 = verf.f32 %v3736_v49  ;;  %v14948_v25 = vmul.f32 0.5, %v3207_v35  ;;  %v4493_v15 = vmul.f32 %v4237_v20, %v14826_v48 }
 0x3c2   : > { %17432 = vst [vmem:[#allocation10_spill] sm:$0xff] %v14932_v42  ;;  %7770 = vmatpush2.bf16.msra.mxu0 %v9894_v62  ;;  %v10385_v22 = vpop.eup %10384  ;;  %v4238_v30 = vadd.f32 1.0, %v10375_v44  ;;  %10398 = verf.f32 %v3738_v9  ;;  %v14951_v0 = vmul.f32 0.5, %v2856_v33  ;;  %v17434_v42 = vld [vmem:[#allocation58_spill] sm:$0xff]  ;;  %v14955_v6 = vpack.c.bf16 %v4491_v60, %v4487_v32  ;;  %v14967_v32 = vpop.f32.mrf.mxu1 }
 0x3c3   : > { %v10387_v45 = vpop.eup %10386  ;;  %10400 = verf.f32 %v3739_v38  ;;  %v3740_v19 = vmul.f32 0.70710677, %v14926_v12  ;;  %v14960_v35 = vadd.f32 %v14695_v59, %v12291_v1  ;;  %v4239_v44 = vadd.f32 1.0, %v10377_v24  ;;  %v9900_v24 = vld [vmem:[%s16612_s6 + $0x128] ss:$16 sps:$4 sm:$0xff]  }
 0x3c4   : > { %7190 = vmatmul.mubr.bf16.gmra.mxu0 %v17433_v40  ;;  %17435 = vst [vmem:[#allocation95_spill] sm:$0xff] %v14955_v6  ;;  %v4243_v33 = vadd.f32 1.0, %v10383_v27  ;;  %10402 = verf.f32 %v3741_v54  ;;  %v3742_v48 = vmul.f32 0.70710677, %v14937_v34  ;;  %8123 = vmatpush2.bf16.msra.mxu1 %v9897_v37  ;;  %v4241_v20 = vadd.f32 1.0, %v10379_v52 }
 0x3c5   : > { %7543 = vmatmul.mubr.bf16.gmra.mxu1 %v17434_v42  ;;  %7199 = vmatprep.mubr.bf16.mxu0 %v14798_v4  ;;  %v4240_v49 = vadd.f32 1.0, %v10381_v47  ;;  %v4245_v62 = vadd.f32 1.0, %v10385_v22  ;;  %v14971_v59 = vadd.f32 %v14697_v26, %v12297_v56  ;;  %v14976_v9 = vpack.c.bf16 %v4493_v15, %v4489_v50  ;;  %v9902_v47 = vld [vmem:[%s16612_s6 + $0x12c] ss:$16 sps:$4 sm:$0xff]   ;;  %v15007_v22 = vpop.f32.mrf.mxu1 }
 0x3c6   : > { %7552 = vmatprep.mubr.bf16.mxu1 %v14802_v16  ;;  %v14979_v60 = vmul.f32 %v4236_v53, %v14835_v57  ;;  %v4242_v38 = vadd.f32 1.0, %v10387_v45  ;;  %v14983_v54 = vadd.f32 %v14756_v43, %v12291_v1  ;;  %v14989_v26 = vmul.f32 %v4238_v30, %v14838_v63  ;;  %v9905_v57 = vld [vmem:[%s16612_s6 + $0x32c] ss:$16 sps:$4 sm:$0xff]   ;;  %v15005_v53 = vpop.f32.mrf.mxu0  ;;  %7771 = vmatprep.subr.bf16.mxu0 %v9902_v47 }
 0x3c7   : > { %17436 = vst [vmem:[#allocation97_spill] sm:$0xff] %v14976_v9  ;;  %10404 = verf.f32 %v3740_v19  ;;  %v3743_v52 = vmul.f32 0.70710677, %v14960_v35  ;;  %v14994_v50 = vadd.f32 %v14723_v55, %v12556_v31  ;;  %v10389_v43 = vpop.eup %10388  ;;  %v4495_v37 = vmul.f32 %v4239_v44, %v14843_v23  ;;  %v9903_v55 = vld [vmem:[%s16612_s6 + $0x328] ss:$16 sps:$4 sm:$0xff]   ;;  %7772 = vmatpush2.bf16.msra.mxu0 %v9900_v24  ;;  %8124 = vmatprep.subr.bf16.mxu1 %v9905_v57  ;;  %v15043_v47 = vpop.f32.mrf.mxu1 }
 0x3c8   : > { %v4499_v27 = vmul.f32 %v4243_v33, %v14854_v36  ;;  %10406 = verf.f32 %v3742_v48  ;;  %v15003_v63 = vadd.f32 %v14758_v46, %v12297_v56  ;;  %v4497_v30 = vmul.f32 %v4241_v20, %v14846_v17  ;;  %v17438_v48 = vld [vmem:[#allocation38_spill] sm:$0xff]  ;;  %8125 = vmatpush2.bf16.msra.mxu1 %v9903_v55 }
 0x3c9   : > { %v10391_v15 = vpop.eup %10390  ;;  %v15014_v23 = vmul.f32 %v4240_v49, %v14850_v28  ;;  %v4501_v36 = vmul.f32 %v4245_v62, %v14856_v13  ;;  %v3745_v46 = vmul.f32 0.70710677, %v14971_v59  ;;  %v15019_v19 = vmul.f32 %v4242_v38, %v14852_v7  ;;  %v17437_v28 = vld [vmem:[#allocation33_spill] sm:$0xff]  ;;  %v15041_v38 = vpop.f32.mrf.mxu0 }
 0x3ca   : > { %v10393_v45 = vpop.eup %10392  ;;  %v15022_v44 = vmul.f32 0.5, %v14900_v10  ;;  %v3217_v33 = vadd.f32 %v14725_v29, %v12561_v5  ;;  %v3747_v17 = vmul.f32 0.70710677, %v14983_v54  ;;  %v4244_v20 = vadd.f32 1.0, %v10389_v43 }
 0x3cb   : > { %v10395_v13 = vpop.eup %10394  ;;  %v15030_v49 = vmul.f32 0.5, %v14926_v12  ;;  %10408 = verf.f32 %v3743_v52  ;;  %v3744_v7 = vmul.f32 0.70710677, %v14994_v50  ;;  %v15035_v10 = vpack.c.bf16 %v4499_v27, %v4495_v37 }
 0x3cc   : > { %7200 = vmatmul.mubr.bf16.gmra.mxu0 %v17437_v28  ;;  %v4246_v29 = vadd.f32 1.0, %v10391_v15  ;;  %v15038_v62 = vmul.f32 0.5, %v14937_v34  ;;  %v3749_v24 = vmul.f32 0.70710677, %v15003_v63  ;;  %v15045_v12 = vpack.c.bf16 %v4501_v36, %v4497_v30  ;;  %v17447_v28 = vld [vmem:[#allocation73_spill] sm:$0xff] }
 0x3cd   : > { %7553 = vmatmul.mubr.bf16.gmra.mxu1 %v17438_v48  ;;  %7209 = vmatprep.mubr.bf16.mxu0 %v14868_v21  ;;  %17439 = vst [vmem:[#allocation62_spill] sm:$0xff] %v15035_v10  ;;  %v4247_v52 = vadd.f32 1.0, %v10393_v45  ;;  %10410 = verf.f32 %v3745_v46  ;;  %v15049_v57 = vadd.f32 %v14784_v51, %v12556_v31  ;;  %v4249_v37 = vadd.f32 1.0, %v10395_v13  ;;  %v15075_v45 = vpop.f32.mrf.mxu0  ;;  %v17442_v13 = vld [vmem:[#allocation66_spill] sm:$0xff]  ;;  %v17446_v48 = vld [vmem:[#allocation60_spill] sm:$0xff] }
 0x3ce   : > { %7562 = vmatprep.mubr.bf16.mxu1 %v14872_v2  ;;  %17440 = vst [vmem:[#allocation5_spill] sm:$0xff] %v15045_v12  ;;  %v10397_v43 = vpop.eup %10396  ;;  %v3746_v27 = vmul.f32 0.70710677, %v3217_v33  ;;  %10412 = verf.f32 %v3747_v17  ;;  %v15053_v34 = vadd.f32 %v14786_v8, %v12561_v5  ;;  %v15056_v2 = vmul.f32 %v4244_v20, %v14858_v3  ;;  %v17441_v8 = vld [vmem:[#allocation7_spill] sm:$0xff] }
 0x3cf   : > { %v10399_v15 = vpop.eup %10398  ;;  %v15059_v55 = vmul.f32 0.5, %v14960_v35  ;;  %10414 = verf.f32 %v3744_v7  ;;  %v15063_v51 = vadd.f32 %v14830_v39, %v12291_v1  ;;  %v15066_v36 = vmul.f32 %v4246_v29, %v14880_v18  ;;  %v15077_v35 = vpop.f32.mrf.mxu1  ;;  %v17443_v7 = vld [vmem:[#allocation99_spill] sm:$0xff]  ;;  %v17444_v29 = vld [vmem:[#allocation8_spill] sm:$0xff] }
 0x3d0   : > { %v10401_v30 = vpop.eup %10400  ;;  %v15069_v46 = vmul.f32 0.5, %v14971_v59  ;;  %10416 = verf.f32 %v3749_v24  ;;  %v15073_v3 = vadd.f32 %v17441_v8, %v12297_v56  ;;  %v15080_v39 = vmul.f32 %v4247_v52, %v17442_v13 }
 0x3d1   : > { %v10403_v17 = vpop.eup %10402  ;;  %v4248_v20 = vadd.f32 1.0, %v10397_v43  ;;  %v3748_v18 = vmul.f32 0.70710677, %v15049_v57  ;;  %v15085_v59 = vpack.c.bf16 %v17444_v29, %v17443_v7  ;;  %v15088_v24 = vmul.f32 %v4249_v37, %v14920_v41  ;;  %v17448_v7 = vld [vmem:[#allocation54_spill] sm:$0xff]  ;;  %v17449_v41 = vld [vmem:[#allocation91_spill] sm:$0xff]  ;;  %v15112_v16 = vpop.f32.mrf.mxu1 }
 0x3d2   : > { %v4250_v8 = vadd.f32 1.0, %v10399_v15  ;;  %10418 = verf.f32 %v3746_v27  ;;  %v3750_v21 = vmul.f32 0.70710677, %v15053_v34  ;;  %v4251_v52 = vadd.f32 1.0, %v10401_v30  ;;  %v17450_v30 = vld [vmem:[#allocation37_spill] sm:$0xff] }
 0x3d3   : > { %17445 = vst [vmem:[#allocation75_spill] sm:$0xff] %v15085_v59  ;;  %v15094_v43 = vmul.f32 0.5, %v14994_v50  ;;  %v3751_v13 = vmul.f32 0.70710677, %v15063_v51  ;;  %v15099_v29 = vadd.f32 %v17448_v7, %v12556_v31  ;;  %v4253_v27 = vadd.f32 1.0, %v10403_v17  ;;  %v15147_v10 = vpop.f32.mrf.mxu1 }
 0x3d4   : > { %7210 = vmatmul.mubr.bf16.gmra.mxu0 %v17446_v48  ;;  %v10405_v37 = vpop.eup %10404  ;;  %v15103_v15 = vmul.f32 0.5, %v3217_v33  ;;  %v15108_v50 = vadd.f32 %v17450_v30, %v12291_v1  ;;  %v15110_v48 = vpop.f32.mrf.mxu0  ;;  %v15115_v4 = vmul.f32 %v4248_v20, %v14946_v58  ;;  %10420 = verf.f32 %v3748_v18  ;;  %v17452_v33 = vld [vmem:[#allocation78_spill] sm:$0xff] }
 0x3d5   : > { %7563 = vmatmul.mubr.bf16.gmra.mxu1 %v17447_v28  ;;  %7219 = vmatprep.mubr.bf16.mxu0 %v17449_v41  ;;  %v3753_v28 = vmul.f32 0.70710677, %v15073_v3  ;;  %v10407_v7 = vpop.eup %10406  ;;  %v3227_v17 = vadd.f32 %v17452_v33, %v12561_v5  ;;  %v9906_v30 = vld [vmem:[%s16612_s6 + $0x108] ss:$16 sps:$4 sm:$0xff]   ;;  %v9908_v41 = vld [vmem:[%s16612_s6 + $0x10c] ss:$16 sps:$4 sm:$0xff]   ;;  %v15129_v42 = vmul.f32 %v4250_v8, %v14948_v25  ;;  %10422 = verf.f32 %v3750_v21 }
 0x3d6   : > { %7572 = vmatprep.mubr.bf16.mxu1 %v15085_v59  ;;  %17451 = vst [vmem:[#allocation7_spill] sm:$0xff] %v15115_v4  ;;  %v15118_v59 = vmul.f32 0.5, %v14983_v54  ;;  %v15132_v58 = vmul.f32 0.5, %v15003_v63  ;;  %v17454_v54 = vld [vmem:[#allocation30_spill] sm:$0xff]  ;;  %v4507_v18 = vmul.f32 %v4251_v52, %v14951_v0  ;;  %v4252_v33 = vadd.f32 1.0, %v10405_v37  ;;  %7773 = vmatprep.subr.bf16.mxu0 %v9908_v41  ;;  %v17455_v41 = vld [vmem:[#allocation48_spill] sm:$0xff] }
 0x3d7   : > { %17453 = vst [vmem:[#allocation66_spill] sm:$0xff] %v15129_v42  ;;  %v15136_v20 = vadd.f32 %v17454_v54, %v12297_v56  ;;  %10424 = verf.f32 %v3751_v13  ;;  %v3752_v40 = vmul.f32 0.70710677, %v15099_v29  ;;  %v9911_v25 = vld [vmem:[%s16612_s6 + $0x30c] ss:$16 sps:$4 sm:$0xff]   ;;  %v4509_v63 = vmul.f32 %v4253_v27, %v15022_v44  ;;  %v15145_v54 = vpop.f32.mrf.mxu0  ;;  %7774 = vmatpush2.bf16.msra.mxu0 %v9906_v30  ;;  %v17456_v37 = vld [vmem:[#allocation19_spill] sm:$0xff] }
 0x3d8   : > { %v10409_v8 = vpop.eup %10408  ;;  %v4254_v12 = vadd.f32 1.0, %v10407_v7  ;;  %10426 = verf.f32 %v3753_v28  ;;  %v3755_v21 = vmul.f32 0.70710677, %v15108_v50  ;;  %v9909_v0 = vld [vmem:[%s16612_s6 + $0x308] ss:$16 sps:$4 sm:$0xff]   ;;  %v2878_v13 = vadd.f32 %v14939_v11, %v12556_v31  ;;  %v17458_v28 = vld [vmem:[#allocation21_spill] sm:$0xff]  ;;  %8126 = vmatprep.subr.bf16.mxu1 %v9911_v25 }
 0x3d9   : > { %v3754_v52 = vmul.f32 0.70710677, %v3227_v17  ;;  %v15156_v44 = vpack.c.bf16 %v17456_v37, %v17455_v41  ;;  %v17459_v27 = vld [vmem:[#allocation40_spill] sm:$0xff]  ;;  %v15163_v30 = vmul.f32 0.5, %v15049_v57  ;;  %v15166_v4 = vmul.f32 0.5, %v15053_v34  ;;  %v17461_v41 = vld [vmem:[#allocation39_spill] sm:$0xff]  ;;  %8127 = vmatpush2.bf16.msra.mxu1 %v9909_v0 }
 0x3da   : > { %v15160_v7 = vpack.c.bf16 %v17459_v27, %v17458_v28  ;;  %v10411_v42 = vpop.eup %10410  ;;  %v3757_v9 = vmul.f32 0.70710677, %v15136_v20  ;;  %v15171_v11 = vadd.f32 %v14941_v61, %v12561_v5  ;;  %v17462_v37 = vld [vmem:[#allocation69_spill] sm:$0xff]  ;;  %v4255_v27 = vadd.f32 1.0, %v10409_v8  ;;  %v15191_v8 = vpop.f32.mrf.mxu0 }
 0x3db   : > { %17457 = vst [vmem:[#allocation99_spill] sm:$0xff] %v15156_v44  ;;  %v10413_v28 = vpop.eup %10412  ;;  %v15176_v25 = vmul.f32 0.5, %v15063_v51  ;;  %v15179_v57 = vmul.f32 0.5, %v15073_v3  ;;  %10428 = verf.f32 %v3752_v40  ;;  %v15184_v61 = vpack.c.bf16 %v4507_v18, %v15080_v39  ;;  %v15193_v3 = vpop.f32.mrf.mxu1 }
 0x3dc   : > { %17460 = vst [vmem:[#allocation8_spill] sm:$0xff] %v15160_v7  ;;  %7220 = vmatmul.mubr.bf16.gmra.mxu0 %v17461_v41  ;;  %v10415_v34 = vpop.eup %10414  ;;  %v15187_v41 = vmul.f32 %v4252_v33, %v15030_v49  ;;  %10430 = verf.f32 %v3755_v21  ;;  %v2882_v51 = vadd.f32 %v14965_v14, %v12291_v1  ;;  %v3756_v39 = vmul.f32 0.70710677, %v2878_v13 }
 0x3dd   : > { %7573 = vmatmul.mubr.bf16.gmra.mxu1 %v17462_v37  ;;  %7229 = vmatprep.mubr.bf16.mxu0 %v15156_v44  ;;  %17463 = vst [vmem:[#allocation54_spill] sm:$0xff] %v15184_v61  ;;  %v10417_v40 = vpop.eup %10416  ;;  %v15196_v44 = vpack.c.bf16 %v4509_v63, %v15088_v24  ;;  %10432 = verf.f32 %v3754_v52  ;;  %v4259_v49 = vadd.f32 1.0, %v10413_v28  ;;  %v15202_v18 = vmul.f32 0.5, %v15099_v29  ;;  %v15213_v29 = vpop.f32.mrf.mxu0 }
 0x3de   : > { %7582 = vmatprep.mubr.bf16.mxu1 %v15160_v7  ;;  %v15199_v7 = vmul.f32 %v4254_v12, %v15038_v62  ;;  %10434 = verf.f32 %v3757_v9  ;;  %v3758_v14 = vmul.f32 0.70710677, %v15171_v11  ;;  %v4511_v21 = vmul.f32 %v4255_v27, %v15059_v55  ;;  %v15215_v9 = vpop.f32.mrf.mxu1  ;;  %v17470_v27 = vld [vmem:[#allocation103_spill] sm:$0xff] }
 0x3df   : > { %17464 = vst [vmem:[#allocation37_spill] sm:$0xff] %v15196_v44  ;;  %v10419_v33 = vpop.eup %10418  ;;  %v4257_v0 = vadd.f32 1.0, %v10411_v42  ;;  %v15206_v37 = vmul.f32 0.5, %v3227_v17  ;;  %v15209_v24 = vmul.f32 0.5, %v15108_v50  ;;  %v4256_v62 = vadd.f32 1.0, %v10415_v34  ;;  %v17466_v42 = vld [vmem:[#allocation43_spill] sm:$0xff] }
 0x3e0   : > { %17465 = vst [vmem:[#allocation78_spill] sm:$0xff] %v15199_v7  ;;  %v4261_v12 = vadd.f32 1.0, %v10417_v40  ;;  %v3759_v63 = vmul.f32 0.70710677, %v2882_v51  ;;  %v3235_v52 = vadd.f32 %v14967_v32, %v12297_v56  ;;  %10436 = verf.f32 %v3756_v39  ;;  %v17467_v17 = vld [vmem:[#allocation14_spill] sm:$0xff]  ;;  %v17472_v39 = vld [vmem:[#allocation45_spill] sm:$0xff] }
 0x3e1   : > { %v2884_v55 = vadd.f32 %v15005_v53, %v12556_v31  ;;  %v15221_v28 = vpack.c.bf16 %v17467_v17, %v17466_v42  ;;  %v17469_v50 = vld [vmem:[#allocation6_spill] sm:$0xff]  ;;  %v10421_v40 = vpop.eup %10420  ;;  %v4258_v44 = vadd.f32 1.0, %v10419_v33  ;;  %v4515_v32 = vmul.f32 %v4259_v49, %v15118_v59  ;;  %v17473_v53 = vld [vmem:[#allocation27_spill] sm:$0xff]  ;;  %v15247_v33 = vpop.f32.mrf.mxu0 }
 0x3e2   : > { %v15225_v34 = vpack.c.bf16 %v17470_v27, %v17469_v50  ;;  %10438 = verf.f32 %v3758_v14  ;;  %v15230_v61 = vadd.f32 %v15007_v22, %v12561_v5  ;;  %v10423_v7 = vpop.eup %10422  ;;  %v4513_v42 = vmul.f32 %v4257_v0, %v15069_v46 }
 0x3e3   : > { %17468 = vst [vmem:[#allocation30_spill] sm:$0xff] %v15221_v28  ;;  %v15236_v17 = vmul.f32 0.5, %v15136_v20  ;;  %v15238_v50 = vmul.f32 0.5, %v2878_v13  ;;  %v2886_v59 = vadd.f32 %v15041_v38, %v12291_v1  ;;  %v4517_v49 = vmul.f32 %v4261_v12, %v15132_v58  ;;  %v15249_v20 = vpop.f32.mrf.mxu1 }
 0x3e4   : > { %17471 = vst [vmem:[#allocation48_spill] sm:$0xff] %v15225_v34  ;;  %7230 = vmatmul.mubr.bf16.gmra.mxu0 %v17472_v39  ;;  %v10425_v22 = vpop.eup %10424  ;;  %10440 = verf.f32 %v3759_v63  ;;  %v3761_v14 = vmul.f32 0.70710677, %v3235_v52  ;;  %v3239_v46 = vadd.f32 %v15043_v47, %v12297_v56  ;;  %v15252_v0 = vmul.f32 %v4256_v62, %v15094_v43 }
 0x3e5   : > { %7583 = vmatmul.mubr.bf16.gmra.mxu1 %v17473_v53  ;;  %7239 = vmatprep.mubr.bf16.mxu0 %v15221_v28  ;;  %v10427_v13 = vpop.eup %10426  ;;  %v15255_v38 = vmul.f32 0.5, %v15171_v11  ;;  %v15257_v27 = vmul.f32 0.5, %v2882_v51  ;;  %v15260_v58 = vmul.f32 %v4258_v44, %v15103_v15  ;;  %v15262_v12 = vpack.c.bf16 %v4515_v32, %v4511_v21  ;;  %v15271_v15 = vpop.f32.mrf.mxu0 }
 0x3e6   : > { %7592 = vmatprep.mubr.bf16.mxu1 %v15225_v34  ;;  %17474 = vst [vmem:[#allocation19_spill] sm:$0xff] %v15252_v0  ;;  %v3760_v34 = vmul.f32 0.70710677, %v2884_v55  ;;  %v4260_v47 = vadd.f32 1.0, %v10421_v40  ;;  %v3762_v63 = vmul.f32 0.70710677, %v15230_v61  ;;  %v2888_v43 = vadd.f32 %v15075_v45, %v12556_v31  ;;  %v15273_v44 = vpop.f32.mrf.mxu1 }
 0x3e7   : > { %17475 = vst [vmem:[#allocation21_spill] sm:$0xff] %v15260_v58  ;;  %17476 = vst [vmem:[#allocation40_spill] sm:$0xff] %v15262_v12  ;;  %v4262_v28 = vadd.f32 1.0, %v10423_v7  ;;  %v15265_v53 = vmul.f32 0.5, %v3235_v52  ;;  %v3763_v39 = vmul.f32 0.70710677, %v2886_v59  ;;  %v15269_v62 = vpack.c.bf16 %v4517_v49, %v4513_v42 }
 0x3e8   : > { %v10429_v11 = vpop.eup %10428  ;;  %v4263_v51 = vadd.f32 1.0, %v10425_v22  ;;  %10442 = verf.f32 %v3761_v14  ;;  %v3765_v0 = vmul.f32 0.70710677, %v3239_v46  ;;  %v4265_v40 = vadd.f32 1.0, %v10427_v13  ;;  %v17478_v7 = vld [vmem:[#allocation104_spill] sm:$0xff]  ;;  %v17479_v52 = vld [vmem:[#allocation87_spill] sm:$0xff] }
 0x3e9   : > { %17477 = vst [vmem:[#allocation43_spill] sm:$0xff] %v15269_v62  ;;  %v10431_v21 = vpop.eup %10430  ;;  %10444 = verf.f32 %v3760_v34  ;;  %v15277_v32 = vpack.c.bf16 %v17479_v52, %v17478_v7  ;;  %v17481_v12 = vld [vmem:[#allocation105_spill] sm:$0xff]  ;;  %v17482_v58 = vld [vmem:[#allocation107_spill] sm:$0xff]  ;;  %v15284_v22 = vmul.f32 %v4260_v47, %v15163_v30  ;;  %v15286_v49 = vmul.f32 0.5, %v2884_v55  ;;  %v15300_v47 = vpop.f32.mrf.mxu0 }
 0x3ea   : > { %v15281_v45 = vpack.c.bf16 %v17482_v58, %v17481_v12  ;;  %v10433_v42 = vpop.eup %10432  ;;  %10446 = verf.f32 %v3762_v63  ;;  %v3241_v14 = vadd.f32 %v15077_v35, %v12561_v5  ;;  %v17485_v13 = vld [vmem:[#allocation79_spill] sm:$0xff]  ;;  %v17486_v34 = vld [vmem:[#allocation81_spill] sm:$0xff]  ;;  %v15293_v52 = vmul.f32 %v4262_v28, %v15166_v4  ;;  %v15302_v63 = vpop.f32.mrf.mxu1 }
 0x3eb   : > { %17480 = vst [vmem:[#allocation14_spill] sm:$0xff] %v15277_v32  ;;  %17484 = vst [vmem:[#allocation103_spill] sm:$0xff] %v15284_v22  ;;  %v10435_v7 = vpop.eup %10434  ;;  %v4264_v58 = vadd.f32 1.0, %v10429_v11  ;;  %10448 = verf.f32 %v3763_v39  ;;  %v3764_v12 = vmul.f32 0.70710677, %v2888_v43  ;;  %v4519_v30 = vmul.f32 %v4263_v51, %v15176_v25  ;;  %v17493_v62 = vld [vmem:[#allocation59_spill] sm:$0xff] }
 0x3ec   : > { %17483 = vst [vmem:[#allocation6_spill] sm:$0xff] %v15281_v45  ;;  %7240 = vmatmul.mubr.bf16.gmra.mxu0 %v17485_v13  ;;  %17487 = vst [vmem:[#allocation104_spill] sm:$0xff] %v15293_v52  ;;  %v4267_v55 = vadd.f32 1.0, %v10431_v21  ;;  %10450 = verf.f32 %v3765_v0  ;;  %v2892_v35 = vadd.f32 %v15110_v48, %v12291_v1  ;;  %v4521_v4 = vmul.f32 %v4265_v40, %v15179_v57  ;;  %v17496_v52 = vld [vmem:[#allocation106_spill] sm:$0xff] }
 0x3ed   : > { %7593 = vmatmul.mubr.bf16.gmra.mxu1 %v17486_v34  ;;  %7249 = vmatprep.mubr.bf16.mxu0 %v15277_v32  ;;  %v15306_v28 = vmul.f32 0.5, %v15230_v61  ;;  %v15308_v39 = vmul.f32 0.5, %v2886_v59  ;;  %v3245_v11 = vadd.f32 %v15112_v16, %v12297_v56  ;;  %v10437_v25 = vpop.eup %10436  ;;  %v4266_v51 = vadd.f32 1.0, %v10433_v42  ;;  %v17489_v34 = vld [vmem:[#allocation101_spill] sm:$0xff] }
 0x3ee   : > { %7602 = vmatprep.mubr.bf16.mxu1 %v15281_v45  ;;  %v4269_v0 = vadd.f32 1.0, %v10435_v7  ;;  %v3766_v21 = vmul.f32 0.70710677, %v3241_v14  ;;  %v2894_v48 = vadd.f32 %v15145_v54, %v12556_v31  ;;  %v15315_v32 = vmul.f32 %v4264_v58, %v15202_v18  ;;  %v15326_v7 = vpop.f32.mrf.mxu0  ;;  %v15328_v54 = vpop.f32.mrf.mxu1 }
 0x3ef   : > { %v10439_v45 = vpop.eup %10438  ;;  %v15317_v57 = vmul.f32 0.5, %v3239_v46  ;;  %10452 = verf.f32 %v3764_v12  ;;  %v3247_v61 = vadd.f32 %v15147_v10, %v12561_v5  ;;  %v4523_v59 = vmul.f32 %v4267_v55, %v15209_v24  ;;  %v17490_v12 = vld [vmem:[#allocation74_spill] sm:$0xff] }
 0x3f0   : > { %17488 = vst [vmem:[#allocation87_spill] sm:$0xff] %v15315_v32  ;;  %v15322_v16 = vmul.f32 0.5, %v2888_v43  ;;  %v3767_v40 = vmul.f32 0.70710677, %v2892_v35  ;;  %v2896_v42 = vadd.f32 %v15191_v8, %v12291_v1  ;;  %v4268_v58 = vadd.f32 1.0, %v10437_v25  ;;  %v17492_v10 = vld [vmem:[#allocation102_spill] sm:$0xff] }
 0x3f1   : > { %v10441_v18 = vpop.eup %10440  ;;  %v3769_v46 = vmul.f32 0.70710677, %v3245_v11  ;;  %v15332_v13 = vpack.c.bf16 %v17490_v12, %v17489_v34  ;;  %v15336_v24 = vpack.c.bf16 %v17493_v62, %v17492_v10  ;;  %v4525_v43 = vmul.f32 %v4269_v0, %v15236_v17  ;;  %v17495_v32 = vld [vmem:[#allocation83_spill] sm:$0xff]  ;;  %v15352_v0 = vpop.f32.mrf.mxu0 }
 0x3f2   : > { %v4270_v55 = vadd.f32 1.0, %v10439_v45  ;;  %10454 = verf.f32 %v3766_v21  ;;  %v3768_v8 = vmul.f32 0.70710677, %v2894_v48  ;;  %v15342_v25 = vmul.f32 %v4266_v51, %v15206_v37  ;;  %v15354_v21 = vpop.f32.mrf.mxu1 }
 0x3f3   : > { %17491 = vst [vmem:[#allocation105_spill] sm:$0xff] %v15332_v13  ;;  %17494 = vst [vmem:[#allocation107_spill] sm:$0xff] %v15336_v24  ;;  %v15344_v22 = vmul.f32 0.5, %v3241_v14  ;;  %v3770_v34 = vmul.f32 0.70710677, %v3247_v61  ;;  %v3249_v12 = vadd.f32 %v15193_v3, %v12297_v56  ;;  %v15350_v17 = vpack.c.bf16 %v4523_v59, %v4519_v30 }
 0x3f4   : > { %7250 = vmatmul.mubr.bf16.gmra.mxu0 %v17495_v32  ;;  %v4271_v62 = vadd.f32 1.0, %v10441_v18  ;;  %10456 = verf.f32 %v3767_v40  ;;  %v3771_v45 = vmul.f32 0.70710677, %v2896_v42  ;;  %v15357_v14 = vmul.f32 %v4268_v58, %v15238_v50 }
 0x3f5   : > { %7603 = vmatmul.mubr.bf16.gmra.mxu1 %v17496_v52  ;;  %7259 = vmatprep.mubr.bf16.mxu0 %v15332_v13  ;;  %17497 = vst [vmem:[#allocation101_spill] sm:$0xff] %v15350_v17  ;;  %v10443_v37 = vpop.eup %10442  ;;  %v15359_v51 = vmul.f32 0.5, %v2892_v35  ;;  %v15361_v3 = vmul.f32 0.5, %v3245_v11  ;;  %10458 = verf.f32 %v3769_v46  ;;  %v15366_v30 = vmul.f32 %v4270_v55, %v15255_v38  ;;  %v15377_v46 = vpop.f32.mrf.mxu0  ;;  %v17503_v13 = vld [vmem:[#allocation63_spill] sm:$0xff] }
 0x3f6   : > { %7612 = vmatprep.mubr.bf16.mxu1 %v15336_v24  ;;  %v10445_v10 = vpop.eup %10444  ;;  %v15363_v24 = vpack.c.bf16 %v4525_v43, %v4521_v4  ;;  %10460 = verf.f32 %v3768_v8  ;;  %v2898_v59 = vadd.f32 %v15213_v29, %v12556_v31  ;;  %v15370_v18 = vmul.f32 0.5, %v2894_v48  ;;  %v15379_v43 = vpop.f32.mrf.mxu1  ;;  %v17499_v8 = vld [vmem:[#allocation94_spill] sm:$0xff] }
 0x3f7   : > { %v10447_v40 = vpop.eup %10446  ;;  %10462 = verf.f32 %v3770_v34  ;;  %v3773_v50 = vmul.f32 0.70710677, %v3249_v12  ;;  %v3251_v35 = vadd.f32 %v15215_v9, %v12561_v5  ;;  %v4527_v58 = vmul.f32 %v4271_v62, %v15257_v27  ;;  %v17501_v9 = vld [vmem:[#allocation10_spill] sm:$0xff] }
 0x3f8   : > { %17498 = vst [vmem:[#allocation74_spill] sm:$0xff] %v15363_v24  ;;  %v10449_v11 = vpop.eup %10448  ;;  %v4273_v4 = vadd.f32 1.0, %v10443_v37  ;;  %10464 = verf.f32 %v3771_v45  ;;  %v2902_v38 = vadd.f32 %v15247_v33, %v12291_v1  ;;  %v4272_v48 = vadd.f32 1.0, %v10445_v10  ;;  %v17504_v10 = vld [vmem:[#allocation92_spill] sm:$0xff] }
 0x3f9   : > { %v10451_v29 = vpop.eup %10450  ;;  %v15381_v55 = vmul.f32 0.5, %v3247_v61  ;;  %v15385_v34 = vpack.c.bf16 %v14979_v60, %v17499_v8  ;;  %v15389_v27 = vpack.c.bf16 %v14989_v26, %v17501_v9  ;;  %v4274_v62 = vadd.f32 1.0, %v10447_v40 }
 0x3fa   : > { %v15391_v45 = vmul.f32 0.5, %v2896_v42  ;;  %v3772_v33 = vmul.f32 0.70710677, %v2898_v59  ;;  %v3255_v37 = vadd.f32 %v15249_v20, %v12297_v56  ;;  %v4275_v61 = vadd.f32 1.0, %v10449_v11  ;;  %v2915_v11 = vpop.f32.mrf.mxu0 }
 0x3fb   : > { %17500 = vst [vmem:[#allocation102_spill] sm:$0xff] %v15385_v34  ;;  %17502 = vst [vmem:[#allocation59_spill] sm:$0xff] %v15389_v27  ;;  %10466 = verf.f32 %v3773_v50  ;;  %v3774_v52 = vmul.f32 0.70710677, %v3251_v35  ;;  %v15399_v60 = vadd.f32 %v15300_v47, %v12291_v1  ;;  %v4277_v42 = vadd.f32 1.0, %v10451_v29  ;;  %v15409_v50 = vpop.f32.mrf.mxu1 }
 0x3fc   : > { %7260 = vmatmul.mubr.bf16.gmra.mxu0 %v17503_v13  ;;  %v10453_v26 = vpop.eup %10452  ;;  %v15403_v40 = vmul.f32 0.5, %v3249_v12  ;;  %v3775_v20 = vmul.f32 0.70710677, %v2902_v38  ;;  %v15407_v8 = vadd.f32 %v15302_v63, %v12297_v56  ;;  %v4529_v9 = vmul.f32 %v4273_v4, %v15265_v53  ;;  %v15432_v4 = vpop.f32.mrf.mxu0 }
 0x3fd   : > { %7613 = vmatmul.mubr.bf16.gmra.mxu1 %v17504_v10  ;;  %7269 = vmatprep.mubr.bf16.mxu0 %v15385_v34  ;;  %v15413_v47 = vmul.f32 %v4272_v48, %v15286_v49  ;;  %v15415_v34 = vmul.f32 0.5, %v2898_v59  ;;  %v2904_v29 = vadd.f32 %v15271_v15, %v12556_v31  ;;  %v15420_v12 = vmul.f32 %v4274_v62, %v15306_v28  ;;  %v15434_v48 = vpop.f32.mrf.mxu1 }
 0x3fe   : > { %7622 = vmatprep.mubr.bf16.mxu1 %v15389_v27  ;;  %10468 = verf.f32 %v3772_v33  ;;  %v3777_v27 = vmul.f32 0.70710677, %v3255_v37  ;;  %v3257_v63 = vadd.f32 %v15273_v44, %v12561_v5  ;;  %v4531_v13 = vmul.f32 %v4275_v61, %v15308_v39 }
 0x3ff   : > { %v10455_v10 = vpop.eup %10454  ;;  %v4276_v53 = vadd.f32 1.0, %v10453_v26  ;;  %10470 = verf.f32 %v3774_v52  ;;  %v3779_v49 = vmul.f32 0.70710677, %v15399_v60  ;;  %v4533_v59 = vmul.f32 %v4277_v42, %v15317_v57  ;;  %v17507_v42 = vld [vmem:[#allocation97_spill] sm:$0xff] }
 0x400   : > { %10472 = verf.f32 %v3775_v20  ;;  %v3781_v15 = vmul.f32 0.70710677, %v15407_v8  ;;  %v15430_v28 = vadd.f32 %v15326_v7, %v12556_v31  ;;  %v3776_v62 = vmul.f32 0.70710677, %v2904_v29 }
 0x401   : > { %v10457_v44 = vpop.eup %10456  ;;  %v15438_v52 = vadd.f32 %v15328_v54, %v12561_v5  ;;  %v15442_v39 = vpack.c.bf16 %v15056_v2, %v15014_v23  ;;  %v15446_v57 = vpack.c.bf16 %v15066_v36, %v15019_v19  ;;  %v4278_v33 = vadd.f32 1.0, %v10455_v10 }
 0x402   : > { %v10459_v7 = vpop.eup %10458  ;;  %v15448_v61 = vmul.f32 0.5, %v3251_v35  ;;  %10474 = verf.f32 %v3777_v27  ;;  %v3778_v26 = vmul.f32 0.70710677, %v3257_v63  ;;  %v15452_v20 = vpack.c.bf16 %v4531_v13, %v4527_v58  ;;  %v15468_v35 = vpop.f32.mrf.mxu0 }
 0x403   : > { %17505 = vst [vmem:[#allocation94_spill] sm:$0xff] %v15442_v39  ;;  %17506 = vst [vmem:[#allocation10_spill] sm:$0xff] %v15446_v57  ;;  %v10461_v54 = vpop.eup %10460  ;;  %v15454_v32 = vmul.f32 0.5, %v2902_v38  ;;  %10476 = verf.f32 %v3779_v49  ;;  %v15458_v2 = vadd.f32 %v15352_v0, %v12291_v1  ;;  %v15463_v19 = vmul.f32 %v4276_v53, %v15322_v16  ;;  %v15470_v58 = vpop.f32.mrf.mxu1 }
 0x404   : > { %7270 = vmatmul.mubr.bf16.gmra.mxu0 %v14955_v6  ;;  %17508 = vst [vmem:[#allocation108_spill] sm:$0xff] %v15452_v20  ;;  %v10463_v23 = vpop.eup %10462  ;;  %v15465_v36 = vmul.f32 0.5, %v3255_v37  ;;  %10478 = verf.f32 %v3781_v15  ;;  %v3780_v13 = vmul.f32 0.70710677, %v15430_v28  ;;  %v15472_v0 = vpack.c.bf16 %v4533_v59, %v4529_v9 }
 0x405   : > { %7623 = vmatmul.mubr.bf16.gmra.mxu1 %v17507_v42  ;;  %7279 = vmatprep.mubr.bf16.mxu0 %v15442_v39  ;;  %v10465_v38 = vpop.eup %10464  ;;  %v15474_v27 = vmul.f32 0.5, %v2904_v29  ;;  %10480 = verf.f32 %v3776_v62  ;;  %v3782_v10 = vmul.f32 0.70710677, %v15438_v52  ;;  %v15478_v16 = vmul.f32 %v4278_v33, %v15344_v22  ;;  %v15492_v33 = vpop.f32.mrf.mxu1  ;;  %v17516_v39 = vld [vmem:[#allocation5_spill] sm:$0xff] }
 0x406   : > { %7632 = vmatprep.mubr.bf16.mxu1 %v15446_v57  ;;  %17509 = vst [vmem:[#allocation109_spill] sm:$0xff] %v15472_v0  ;;  %v4279_v37 = vadd.f32 1.0, %v10457_v44  ;;  %10482 = verf.f32 %v3778_v26  ;;  %v3265_v53 = vadd.f32 %v15354_v21, %v12297_v56  ;;  %v4281_v49 = vadd.f32 1.0, %v10459_v7  ;;  %v15490_v44 = vpop.f32.mrf.mxu0  ;;  %v17510_v7 = vld [vmem:[#allocation7_spill] sm:$0xff]  ;;  %v17512_v26 = vld [vmem:[#allocation66_spill] sm:$0xff] }
 0x407   : > { %v4280_v15 = vadd.f32 1.0, %v10461_v54  ;;  %v3783_v57 = vmul.f32 0.70710677, %v15458_v2  ;;  %v15484_v9 = vadd.f32 %v2915_v11, %v12291_v1  ;;  %v4282_v59 = vadd.f32 1.0, %v10463_v23  ;;  %v17513_v54 = vld [vmem:[#allocation78_spill] sm:$0xff] }
 0x408   : > { %v10467_v29 = vpop.eup %10466  ;;  %v4283_v62 = vadd.f32 1.0, %v10465_v38  ;;  %10484 = verf.f32 %v3780_v13  ;;  %v15488_v22 = vadd.f32 %v15377_v46, %v12556_v31  ;;  %v15496_v21 = vadd.f32 %v15379_v43, %v12561_v5  ;;  %v17515_v43 = vld [vmem:[#allocation62_spill] sm:$0xff] }
 0x409   : > { %10486 = verf.f32 %v3782_v10  ;;  %v15500_v11 = vpack.c.bf16 %v15187_v41, %v17510_v7  ;;  %v15504_v23 = vpack.c.bf16 %v17513_v54, %v17512_v26  ;;  %v15506_v13 = vmul.f32 0.5, %v3257_v63 }
 0x40a   : > { %v15509_v46 = vmul.f32 0.5, %v15399_v60  ;;  %v3785_v38 = vmul.f32 0.70710677, %v3265_v53  ;;  %v15513_v10 = vadd.f32 %v15409_v50, %v12297_v56  ;;  %v4285_v7 = vadd.f32 1.0, %v10467_v29 }
 0x40b   : > { %17511 = vst [vmem:[#allocation7_spill] sm:$0xff] %v15500_v11  ;;  %17514 = vst [vmem:[#allocation66_spill] sm:$0xff] %v15504_v23  ;;  %v10469_v41 = vpop.eup %10468  ;;  %v15518_v42 = vmul.f32 0.5, %v15407_v8  ;;  %10488 = verf.f32 %v3783_v57  ;;  %v3787_v63 = vmul.f32 0.70710677, %v15484_v9  ;;  %v4535_v50 = vmul.f32 %v4279_v37, %v15359_v51  ;;  %v15531_v8 = vpop.f32.mrf.mxu1 }
 0x40c   : > { %7280 = vmatmul.mubr.bf16.gmra.mxu0 %v17515_v43  ;;  %v10471_v60 = vpop.eup %10470  ;;  %v4537_v26 = vmul.f32 %v4281_v49, %v15361_v3  ;;  %v15526_v54 = vmul.f32 0.5, %v15430_v28  ;;  %v3784_v29 = vmul.f32 0.70710677, %v15488_v22  ;;  %v15534_v43 = vmul.f32 %v4280_v15, %v15370_v18 }
 0x40d   : > { %7633 = vmatmul.mubr.bf16.gmra.mxu1 %v17516_v39  ;;  %7289 = vmatprep.mubr.bf16.mxu0 %v15500_v11  ;;  %v15529_v39 = vpop.f32.mrf.mxu0  ;;  %v10473_v57 = vpop.eup %10472  ;;  %v4539_v51 = vmul.f32 %v4283_v62, %v15391_v45  ;;  %v3786_v3 = vmul.f32 0.70710677, %v15496_v21  ;;  %v4284_v37 = vadd.f32 1.0, %v10469_v41  ;;  %10490 = verf.f32 %v3785_v38  ;;  %v17520_v41 = vld [vmem:[#allocation103_spill] sm:$0xff] }
 0x40e   : > { %7642 = vmatprep.mubr.bf16.mxu1 %v15504_v23  ;;  %17517 = vst [vmem:[#allocation78_spill] sm:$0xff] %v15534_v43  ;;  %v15537_v23 = vmul.f32 %v4282_v59, %v15381_v55  ;;  %v3789_v28 = vmul.f32 0.70710677, %v15513_v10  ;;  %v2918_v49 = vadd.f32 %v15432_v4, %v12556_v31  ;;  %v4541_v6 = vmul.f32 %v4285_v7, %v15403_v40  ;;  %v15555_v4 = vpop.f32.mrf.mxu1 }
 0x40f   : > { %v10475_v11 = vpop.eup %10474  ;;  %v4286_v0 = vadd.f32 1.0, %v10471_v60  ;;  %v15546_v18 = vmul.f32 0.5, %v15438_v52  ;;  %10492 = verf.f32 %v3787_v63  ;;  %v4287_v15 = vadd.f32 1.0, %v10473_v57  ;;  %v15553_v62 = vpop.f32.mrf.mxu0  ;;  %v17519_v52 = vld [vmem:[#allocation19_spill] sm:$0xff]  ;;  %v17522_v63 = vld [vmem:[#allocation21_spill] sm:$0xff]  ;;  %v17523_v60 = vld [vmem:[#allocation104_spill] sm:$0xff] }
 0x410   : > { %17518 = vst [vmem:[#allocation110_spill] sm:$0xff] %v15537_v23  ;;  %v10477_v55 = vpop.eup %10476  ;;  %v15549_v45 = vmul.f32 0.5, %v15458_v2  ;;  %10494 = verf.f32 %v3784_v29  ;;  %v3271_v59 = vadd.f32 %v15434_v48, %v12561_v5  ;;  %v15557_v40 = vmul.f32 0.5, %v3265_v53  ;;  %v15574_v53 = vpop.f32.mrf.mxu1 }
 0x411   : > { %v10479_v38 = vpop.eup %10478  ;;  %10496 = verf.f32 %v3786_v3  ;;  %v15561_v7 = vpack.c.bf16 %v17520_v41, %v17519_v52  ;;  %v15565_v2 = vpack.c.bf16 %v17523_v60, %v17522_v63  ;;  %v15567_v57 = vpack.c.bf16 %v4539_v51, %v4535_v50  ;;  %v15572_v23 = vpop.f32.mrf.mxu0  ;;  %v17526_v3 = vld [vmem:[#allocation54_spill] sm:$0xff]  ;;  %v17527_v52 = vld [vmem:[#allocation37_spill] sm:$0xff] }
 0x412   : > { %v10481_v29 = vpop.eup %10480  ;;  %v15570_v48 = vmul.f32 %v4284_v37, %v15415_v34  ;;  %10498 = verf.f32 %v3789_v28  ;;  %v3788_v20 = vmul.f32 0.70710677, %v2918_v49  ;;  %v15578_v43 = vpack.c.bf16 %v4541_v6, %v4537_v26  ;;  %v15590_v6 = vpop.f32.mrf.mxu1 }
 0x413   : > { %17521 = vst [vmem:[#allocation19_spill] sm:$0xff] %v15561_v7  ;;  %17524 = vst [vmem:[#allocation103_spill] sm:$0xff] %v15565_v2  ;;  %v10483_v41 = vpop.eup %10482  ;;  %v15581_v63 = vmul.f32 %v4286_v0, %v15448_v61  ;;  %v4289_v50 = vadd.f32 1.0, %v10475_v11  ;;  %v4291_v51 = vadd.f32 1.0, %v10477_v55  ;;  %v4543_v34 = vmul.f32 %v4287_v15, %v15454_v32 }
 0x414   : > { %17525 = vst [vmem:[#allocation21_spill] sm:$0xff] %v15567_v57  ;;  %7290 = vmatmul.mubr.bf16.gmra.mxu0 %v17526_v3  ;;  %17528 = vst [vmem:[#allocation104_spill] sm:$0xff] %v15578_v43  ;;  %v4293_v37 = vadd.f32 1.0, %v10479_v38  ;;  %v3790_v28 = vmul.f32 0.70710677, %v3271_v59  ;;  %v2922_v60 = vadd.f32 %v15468_v35, %v12291_v1  ;;  %v15593_v61 = vmul.f32 0.5, %v15488_v22  ;;  %v15607_v22 = vpop.f32.mrf.mxu1 }
 0x415   : > { %7643 = vmatmul.mubr.bf16.gmra.mxu1 %v17527_v52  ;;  %7299 = vmatprep.mubr.bf16.mxu0 %v15561_v7  ;;  %v15588_v52 = vpop.f32.mrf.mxu0  ;;  %v10485_v26 = vpop.eup %10484  ;;  %v15596_v0 = vmul.f32 0.5, %v15496_v21  ;;  %v15599_v11 = vmul.f32 0.5, %v15484_v9  ;;  %v3275_v32 = vadd.f32 %v15470_v58, %v12297_v56  ;;  %v4288_v15 = vadd.f32 1.0, %v10481_v29  ;;  %17529 = vst [vmem:[#allocation111_spill] sm:$0xff] %v15607_v22 }
 0x416   : > { %7652 = vmatprep.mubr.bf16.mxu1 %v15565_v2  ;;  %v10487_v55 = vpop.eup %10486  ;;  %v4290_v35 = vadd.f32 1.0, %v10483_v41  ;;  %10500 = verf.f32 %v3788_v20  ;;  %v2924_v38 = vadd.f32 %v15490_v44, %v12556_v31  ;;  %v4545_v21 = vmul.f32 %v4289_v50, %v15465_v36  ;;  %v15619_v43 = vpop.f32.mrf.mxu1  ;;  %v17530_v36 = vld [vmem:[#allocation87_spill] sm:$0xff] }
 0x417   : > { %v15605_v2 = vpop.f32.mrf.mxu0  ;;  %v4547_v7 = vmul.f32 %v4291_v51, %v15509_v46  ;;  %v15612_v9 = vmul.f32 0.5, %v15513_v10  ;;  %v15614_v3 = vmul.f32 0.5, %v2918_v49  ;;  %v4549_v29 = vmul.f32 %v4293_v37, %v15518_v42 }
 0x418   : > { %v10489_v58 = vpop.eup %10488  ;;  %v4292_v20 = vadd.f32 1.0, %v10485_v26  ;;  %10502 = verf.f32 %v3790_v28  ;;  %v3791_v41 = vmul.f32 0.70710677, %v2922_v60  ;;  %v4294_v57 = vadd.f32 1.0, %v10487_v55  ;;  %v15639_v28 = vpop.f32.mrf.mxu1  ;;  %v17534_v26 = vld [vmem:[#allocation43_spill] sm:$0xff] }
 0x419   : > { %v15617_v44 = vpop.f32.mrf.mxu0  ;;  %v3793_v22 = vmul.f32 0.70710677, %v3275_v32  ;;  %v15623_v46 = vpack.c.bf16 %v15357_v14, %v17530_v36  ;;  %v15627_v10 = vpack.c.bf16 %v15366_v30, %v15342_v25  ;;  %v15630_v49 = vmul.f32 %v4288_v15, %v15474_v27  ;;  %v17533_v14 = vld [vmem:[#allocation40_spill] sm:$0xff] }
 0x41a   : > { %v15633_v42 = vmul.f32 %v4290_v35, %v15506_v13  ;;  %v15635_v50 = vmul.f32 0.5, %v3271_v59  ;;  %v3792_v51 = vmul.f32 0.70710677, %v2924_v38  ;;  %v10491_v25 = vpop.eup %10490  ;;  %v4295_v30 = vadd.f32 1.0, %v10489_v58  ;;  %v15662_v58 = vpop.f32.mrf.mxu1 }
 0x41b   : > { %17531 = vst [vmem:[#allocation87_spill] sm:$0xff] %v15623_v46  ;;  %17532 = vst [vmem:[#allocation112_spill] sm:$0xff] %v15627_v10  ;;  %v15637_v37 = vpop.f32.mrf.mxu0  ;;  %v15643_v27 = vmul.f32 0.5, %v2922_v60  ;;  %v15645_v55 = vmul.f32 0.5, %v3275_v32  ;;  %v3277_v13 = vadd.f32 %v15492_v33, %v12561_v5  ;;  %v15653_v15 = vpack.c.bf16 %v4547_v7, %v4543_v34  ;;  %v5735_v33 = vld [vmem:[%s16613_s7] sm:$0xf] }
 0x41c   : > { %7300 = vmatmul.mubr.bf16.gmra.mxu0 %v17533_v14  ;;  %v10493_v59 = vpop.eup %10492  ;;  %v15656_v35 = vmul.f32 %v4292_v20, %v15526_v54  ;;  %10504 = verf.f32 %v3791_v41  ;;  %v2926_v60 = vadd.f32 %v15529_v39, %v12291_v1  ;;  %v15670_v7 = vmul.f32 %v4294_v57, %v15546_v18 }
 0x41d   : > { %7653 = vmatmul.mubr.bf16.gmra.mxu1 %v17534_v26  ;;  %17535 = vst [vmem:[#allocation113_spill] sm:$0xff] %v15643_v27  ;;  %17536 = vst [vmem:[#allocation114_spill] sm:$0xff] %v15645_v55  ;;  %7309 = vmatprep.mubr.bf16.mxu0 %v15623_v46  ;;  %v15660_v32 = vpop.f32.mrf.mxu0  ;;  %v10495_v36 = vpop.eup %10494  ;;  %10506 = verf.f32 %v3793_v22  ;;  %v2928_v54 = vadd.f32 %v15553_v62, %v12556_v31  ;;  %v4297_v39 = vadd.f32 1.0, %v10491_v25  ;;  %v15674_v20 = vmul.f32 0.5, %v2924_v38  ;;  %v17538_v22 = vld [vmem:[#allocation52_spill] sm:$0xff] }
 0x41e   : > { %7662 = vmatprep.mubr.bf16.mxu1 %v15627_v10  ;;  %v15667_v10 = vpack.c.bf16 %v4549_v29, %v4545_v21  ;;  %v10497_v34 = vpop.eup %10496  ;;  %10508 = verf.f32 %v3792_v51  ;;  %v3281_v41 = vadd.f32 %v15555_v4, %v12561_v5  ;;  %v15680_v26 = vpop.f32.mrf.mxu1  ;;  %v4551_v18 = vmul.f32 %v4295_v30, %v15549_v45 }
 0x41f   : > { %17537 = vst [vmem:[#allocation115_spill] sm:$0xff] %v15674_v20  ;;  %v15678_v46 = vpop.f32.mrf.mxu0  ;;  %v10499_v21 = vpop.eup %10498  ;;  %v4299_v57 = vadd.f32 1.0, %v10493_v59  ;;  %v3794_v62 = vmul.f32 0.70710677, %v3277_v13  ;;  %v15686_v29 = vrot.slane %v5735_v33, %v17538_v22  ;;  %v4296_v38 = vadd.f32 1.0, %v10495_v36 }
 0x420   : > { %v15688_v51 = vmul.f32 0.5, %v3277_v13  ;;  %v3795_v25 = vmul.f32 0.70710677, %v2926_v60  ;;  %v3279_v4 = vadd.f32 %v15531_v8, %v12297_v56  ;;  %v15694_v55 = vpop.f32.mrf.mxu1  ;;  %v4298_v20 = vadd.f32 1.0, %v10497_v34 }
 0x421   : > { %v15692_v14 = vpop.f32.mrf.mxu0  ;;  %v3796_v27 = vmul.f32 0.70710677, %v2928_v54  ;;  %v15698_v45 = vpack.c.bf16 %v15463_v19, %v15413_v47  ;;  %v15702_v30 = vpack.c.bf16 %v15478_v16, %v15420_v12  ;;  %v4553_v13 = vmul.f32 %v4297_v39, %v15557_v40  ;;  %v17540_v19 = vld [vmem:[#allocation53_spill] sm:$0xff] }
 0x422   : > { %17539 = vst [vmem:[#allocation52_spill] sm:$0xff] %v15688_v51  ;;  %v4301_v59 = vadd.f32 1.0, %v10499_v21  ;;  %v15706_v36 = vmul.f32 0.5, %v2926_v60  ;;  %v3798_v8 = vmul.f32 0.70710677, %v3281_v41  ;;  %v7424_v34 = vpop.f32.mrf.mxu1  ;;  %v4555_v47 = vmul.f32 %v4299_v57, %v15599_v11 }
 0x423   : > { %v7071_v22 = vpop.f32.mrf.mxu0  ;;  %v10501_v51 = vpop.eup %10500  ;;  %10510 = verf.f32 %v3794_v62  ;;  %v15715_v16 = vrot.slane %v5735_v33, %v17540_v19  ;;  %v15717_v40 = vmul.f32 0.5, %v3279_v4  ;;  %v3797_v60 = vmul.f32 0.70710677, %v3279_v4 }
 0x424   : > { %7310 = vmatmul.mubr.bf16.gmra.mxu0 %v15350_v17  ;;  %v7072_v12 = vadd.f32 %v7071_v22, %v15686_v29  ;;  %10512 = verf.f32 %v3795_v25  ;;  %v15719_v39 = vmul.f32 0.5, %v2928_v54  ;;  %v15727_v11 = vmul.f32 %v4296_v38, %v15593_v61 }
 0x425   : > { %7663 = vmatmul.mubr.bf16.gmra.mxu1 %v15363_v24  ;;  %7319 = vmatprep.mubr.bf16.mxu0 %v15698_v45  ;;  %v7073_v21 = vpop.f32.mrf.mxu0  ;;  %v7426_v24 = vpop.f32.mrf.mxu1  ;;  %v15730_v33 = vmul.f32 %v4298_v20, %v15596_v0  ;;  %10514 = verf.f32 %v3796_v27  ;;  %v15732_v57 = vmul.f32 0.5, %v3281_v41  ;;  %v4557_v54 = vmul.f32 %v4301_v59, %v15612_v9  ;;  %v17543_v59 = vld [vmem:[#allocation110_spill] sm:$0xff] }
 0x426   : > { %7672 = vmatprep.mubr.bf16.mxu1 %v15702_v30  ;;  %v10503_v17 = vpop.eup %10502  ;;  %v4300_v62 = vadd.f32 1.0, %v10501_v51  ;;  %10516 = verf.f32 %v3798_v8  ;;  %v7425_v25 = vadd.f32 %v7424_v34, %v7072_v12  ;;  %v15735_v19 = vpack.c.bf16 %v4555_v47, %v4551_v18  ;;  %v17541_v51 = vld [vmem:[#allocation78_spill] sm:$0xff] }
 0x427   : > { %v7075_v4 = vpop.f32.mrf.mxu0  ;;  %v7428_v22 = vpop.f32.mrf.mxu1  ;;  %v15739_v61 = vadd.f32 %v15617_v44, %v12556_v31  ;;  %v7074_v38 = vadd.f32 %v7073_v21, %v15715_v16  ;;  %v4302_v27 = vadd.f32 1.0, %v10503_v17  ;;  %v15745_v20 = vadd.f32 %v15619_v43, %v12561_v5 }
 0x428   : > { %v7076_v0 = vadd.f32 %v7075_v4, %v15686_v29  ;;  %8449 = vst [vmem:[%s15724_s25] sm:$0xff] %v7425_v25  ;;  %v15750_v18 = vpack.c.bf16 %v15570_v48, %v17541_v51  ;;  %v15754_v44 = vpack.c.bf16 %v15581_v63, %v17543_v59  ;;  %v15758_v34 = vadd.f32 %v15588_v52, %v12556_v31  ;;  %v17545_v25 = vld [vmem:[#allocation108_spill] sm:$0xff]  ;;  %v17546_v4 = vld [vmem:[#allocation109_spill] sm:$0xff] }
 0x429   : > { %v7077_v9 = vpop.f32.mrf.mxu0  ;;  %v7430_v41 = vpop.f32.mrf.mxu1  ;;  %v7427_v17 = vadd.f32 %v7426_v24, %v7074_v38  ;;  %v15763_v21 = vpack.c.bf16 %v4557_v54, %v4553_v13  ;;  %v15766_v48 = vmul.f32 %v4300_v62, %v15614_v3  ;;  %10518 = verf.f32 %v3797_v60 }
 0x42a   : > { %17542 = vst [vmem:[#allocation53_spill] sm:$0xff] %v15750_v18  ;;  %17544 = vst [vmem:[#allocation78_spill] sm:$0xff] %v15754_v44  ;;  %v10505_v8 = vpop.eup %10504  ;;  %v7429_v43 = vadd.f32 %v7428_v22, %v7076_v0  ;;  %v7078_v47 = vadd.f32 %v7077_v9, %v15715_v16  ;;  %v15770_v63 = vadd.f32 %v15590_v6, %v12561_v5  ;;  %v3804_v3 = vmul.f32 0.70710677, %v15739_v61 }
 0x42b   : > { %v15761_v12 = vpop.eup %10506  ;;  %v7081_v52 = vpop.f32.mrf.mxu0  ;;  %v15776_v38 = vadd.f32 %v15572_v23, %v12291_v1  ;;  %8450 = vst [vmem:[%s15724_s25 + $0x8] sm:$0xff] %v7427_v17  ;;  %v15785_v60 = vmul.f32 %v4302_v27, %v15635_v50  ;;  %v15787_v54 = vadd.f32 1.0, %v10505_v8  ;;  %v15791_v23 = vadd.f32 %v15574_v53, %v12297_v56  ;;  %v17547_v8 = vld [vmem:[#allocation111_spill] sm:$0xff] }
 0x42c   : > { %7320 = vmatmul.mubr.bf16.gmra.mxu0 %v17545_v25  ;;  %v7434_v24 = vpop.f32.mrf.mxu1  ;;  %v10509_v22 = vpop.eup %10508  ;;  %8453 = vst [vmem:[%s15724_s25 + $0x20] sm:$0xff] %v7429_v43  ;;  %v7431_v13 = vadd.f32 %v7430_v41, %v7078_v47  ;;  %v7082_v6 = vadd.f32 %v7081_v52, %v15686_v29  ;;  %v3806_v62 = vmul.f32 0.70710677, %v15745_v20  ;;  %v3800_v41 = vmul.f32 0.70710677, %v15758_v34 }
 0x42d   : > { %7673 = vmatmul.mubr.bf16.gmra.mxu1 %v17546_v4  ;;  %7329 = vmatprep.mubr.bf16.mxu0 %v15750_v18  ;;  %v7083_v0 = vpop.f32.mrf.mxu0  ;;  %v15797_v51 = vadd.f32 %v15605_v2, %v12291_v1  ;;  %v15801_v59 = vadd.f32 1.0, %v10509_v22  ;;  %v3802_v53 = vmul.f32 0.70710677, %v15770_v63  ;;  %v15806_v17 = vadd.f32 %v17547_v8, %v12297_v56  ;;  %v17549_v18 = vld [vmem:[#allocation104_spill] sm:$0xff] }
 0x42e   : > { %7682 = vmatprep.mubr.bf16.mxu1 %v15754_v44  ;;  %v7436_v9 = vpop.f32.mrf.mxu1  ;;  %8454 = vst [vmem:[%s15724_s25 + $0x28] sm:$0xff] %v7431_v13  ;;  %v7435_v50 = vadd.f32 %v7434_v24, %v7082_v6  ;;  %v7084_v27 = vadd.f32 %v7083_v0, %v15715_v16  ;;  %v15810_v52 = vpack.c.bf16 %v15656_v35, %v15630_v49  ;;  %v3799_v2 = vmul.f32 0.70710677, %v15776_v38 }
 0x42f   : > { %v7085_v43 = vpop.f32.mrf.mxu0  ;;  %10520 = verf.f32 %v3804_v3  ;;  %v15816_v22 = vpack.c.bf16 %v15670_v7, %v15633_v42  ;;  %v3801_v6 = vmul.f32 0.70710677, %v15791_v23  ;;  %v15821_v0 = vadd.f32 %v15692_v14, %v12556_v31 }
 0x430   : > { %v7438_v47 = vpop.f32.mrf.mxu1  ;;  %8457 = vst [vmem:[%s15724_s25 + $0x40] sm:$0xff] %v7435_v50  ;;  %v7437_v24 = vadd.f32 %v7436_v9, %v7084_v27  ;;  %v10511_v13 = vpop.eup %10510  ;;  %10522 = verf.f32 %v3806_v62  ;;  %v7086_v49 = vadd.f32 %v7085_v43, %v15686_v29  ;;  %v3803_v3 = vmul.f32 0.70710677, %v15797_v51  ;;  %v17548_v27 = vld [vmem:[#allocation21_spill] sm:$0xff] }
 0x431   : > { %v7087_v35 = vpop.f32.mrf.mxu0  ;;  %v10513_v44 = vpop.eup %10512  ;;  %10524 = verf.f32 %v3800_v41  ;;  %v15827_v42 = vadd.f32 %v15694_v55, %v12561_v5  ;;  %v3805_v14 = vmul.f32 0.70710677, %v15806_v17  ;;  %v15834_v9 = vadd.f32 %v15660_v32, %v12556_v31 }
 0x432   : > { %v7440_v8 = vpop.f32.mrf.mxu1  ;;  %8458 = vst [vmem:[%s15724_s25 + $0x48] sm:$0xff] %v7437_v24  ;;  %v7088_v7 = vadd.f32 %v7087_v35, %v15715_v16  ;;  %v10515_v62 = vpop.eup %10514  ;;  %10526 = verf.f32 %v3802_v53  ;;  %v7439_v50 = vadd.f32 %v7438_v47, %v7086_v49  ;;  %v15840_v53 = vadd.f32 %v15662_v58, %v12561_v5 }
 0x433   : > { %v7091_v41 = vpop.f32.mrf.mxu0  ;;  %v10517_v55 = vpop.eup %10516  ;;  %10528 = verf.f32 %v3799_v2  ;;  %v15845_v31 = vadd.f32 1.0, %v10511_v13  ;;  %v15847_v32 = vadd.f32 1.0, %v10513_v44  ;;  %v3812_v47 = vmul.f32 0.70710677, %v15821_v0 }
 0x434   : > { %7330 = vmatmul.mubr.bf16.gmra.mxu0 %v17548_v27  ;;  %v7444_v43 = vpop.f32.mrf.mxu1  ;;  %v7441_v24 = vadd.f32 %v7440_v8, %v7088_v7  ;;  %v7092_v35 = vadd.f32 %v7091_v41, %v15686_v29  ;;  %10530 = verf.f32 %v3801_v6  ;;  %8461 = vst [vmem:[%s15724_s25 + $0x60] sm:$0xff] %v7439_v50  ;;  %v3814_v5 = vmul.f32 0.70710677, %v15827_v42 }
 0x435   : > { %7683 = vmatmul.mubr.bf16.gmra.mxu1 %v17549_v18  ;;  %7339 = vmatprep.mubr.bf16.mxu0 %v15810_v52  ;;  %v7093_v2 = vpop.f32.mrf.mxu0  ;;  %10532 = verf.f32 %v3803_v3  ;;  %v4308_v7 = vadd.f32 1.0, %v10515_v62  ;;  %v3808_v13 = vmul.f32 0.70710677, %v15834_v9  ;;  %v15857_v6 = vpack.c.bf16 %v15766_v48, %v15727_v11 }
 0x436   : > { %7692 = vmatprep.mubr.bf16.mxu1 %v15816_v22  ;;  %v7446_v49 = vpop.f32.mrf.mxu1  ;;  %8462 = vst [vmem:[%s15724_s25 + $0x68] sm:$0xff] %v7441_v24  ;;  %v7445_v58 = vadd.f32 %v7444_v43, %v7092_v35  ;;  %v7094_v8 = vadd.f32 %v7093_v2, %v15715_v16  ;;  %10534 = verf.f32 %v3805_v14  ;;  %v10519_v50 = vpop.eup %10518  ;;  %v3810_v3 = vmul.f32 0.70710677, %v15840_v53 }
 0x437   : > { %v7095_v44 = vpop.f32.mrf.mxu0  ;;  %v15862_v24 = vadd.f32 %v15678_v46, %v12291_v1  ;;  %v4310_v14 = vadd.f32 1.0, %v10517_v55  ;;  %v15868_v35 = vadd.f32 %v15680_v26, %v12297_v56  ;;  %10536 = verf.f32 %v3812_v47 }
 0x438   : > { %v7448_v41 = vpop.f32.mrf.mxu1  ;;  %8465 = vst [vmem:[%s15724_s25 + $0x80] sm:$0xff] %v7445_v58  ;;  %v7447_v43 = vadd.f32 %v7446_v49, %v7094_v8  ;;  %v7096_v62 = vadd.f32 %v7095_v44, %v15686_v29  ;;  %v15872_v48 = vpack.c.bf16 %v15785_v60, %v15730_v33  ;;  %v15876_v46 = vadd.f32 %v15637_v37, %v12291_v1 }
 0x439   : > { %v7097_v2 = vpop.f32.mrf.mxu0  ;;  %10538 = verf.f32 %v3814_v5  ;;  %v4309_v58 = vadd.f32 1.0, %v10519_v50  ;;  %v4564_v26 = vmul.f32 %v4308_v7, %v15719_v39  ;;  %v15883_v47 = vadd.f32 %v15639_v28, %v12297_v56  ;;  %v17550_v28 = vld [vmem:[#allocation113_spill] sm:$0xff] }
 0x43a   : > { %v7450_v11 = vpop.f32.mrf.mxu1  ;;  %8466 = vst [vmem:[%s15724_s25 + $0x88] sm:$0xff] %v7447_v43  ;;  %v7449_v49 = vadd.f32 %v7448_v41, %v7096_v62  ;;  %v7098_v55 = vadd.f32 %v7097_v2, %v15715_v16  ;;  %10540 = verf.f32 %v3808_v13  ;;  %v3811_v1 = vmul.f32 0.70710677, %v15862_v24 }
 0x43b   : > { %v7101_v33 = vpop.f32.mrf.mxu0  ;;  %10542 = verf.f32 %v3810_v3  ;;  %v4559_v39 = vmul.f32 %v15787_v54, %v17550_v28  ;;  %v4305_v8 = vadd.f32 1.0, %v15761_v12  ;;  %v4566_v7 = vmul.f32 %v4310_v14, %v15732_v57  ;;  %v17551_v3 = vld [vmem:[#allocation115_spill] sm:$0xff] }
 0x43c   : > { %7340 = vmatmul.mubr.bf16.gmra.mxu0 %v15653_v15  ;;  %8469 = vst [vmem:[%s15724_s25 + $0xa0] sm:$0xff] %v7449_v49  ;;  %v7451_v37 = vadd.f32 %v7450_v11, %v7098_v55  ;;  %v7102_v5 = vadd.f32 %v7101_v33, %v15686_v29  ;;  %v10521_v56 = vpop.eup %10520  ;;  %v3813_v13 = vmul.f32 0.70710677, %v15868_v35  ;;  %v4560_v43 = vmul.f32 %v15801_v59, %v17551_v3  ;;  %v17552_v49 = vld [vmem:[#allocation52_spill] sm:$0xff] }
 0x43d   : > { %v7454_v60 = vpop.f32.mrf.mxu1  ;;  %7693 = vmatmul.mubr.bf16.gmra.mxu1 %v15667_v10  ;;  %7349 = vmatprep.mubr.bf16.mxu0 %v15857_v6  ;;  %v7103_v44 = vpop.f32.mrf.mxu0  ;;  %v3807_v62 = vmul.f32 0.70710677, %v15876_v46  ;;  %v4562_v12 = vmul.f32 %v15845_v31, %v17552_v49  ;;  %v4563_v57 = vmul.f32 %v15847_v32, %v15706_v36  ;;  %v4565_v14 = vmul.f32 %v4309_v58, %v15717_v40 }
 0x43e   : > { %7702 = vmatprep.mubr.bf16.mxu1 %v15872_v48  ;;  %v10523_v50 = vpop.eup %10522  ;;  %8470 = vst [vmem:[%s15724_s25 + $0xa8] sm:$0xff] %v7451_v37  ;;  %v7455_v2 = vadd.f32 %v7454_v60, %v7102_v5  ;;  %v7104_v11 = vadd.f32 %v7103_v44, %v15715_v16  ;;  %v3809_v55 = vmul.f32 0.70710677, %v15883_v47  ;;  %10544 = verf.f32 %v3811_v1 }
 0x43f   : > { %v7456_v41 = vpop.f32.mrf.mxu1  ;;  %v10525_v54 = vpop.eup %10524  ;;  %v15910_v5 = vpack.c.bf16 %v4564_v26, %v4560_v43  ;;  %v4316_v31 = vadd.f32 1.0, %v10521_v56  ;;  %v4318_v3 = vadd.f32 1.0, %v10523_v50  ;;  %10546 = verf.f32 %v3813_v13 }
 0x440   : > { %v7105_v33 = vpop.f32.mrf.mxu0  ;;  %v10527_v59 = vpop.eup %10526  ;;  %8473 = vst [vmem:[%s15724_s25 + $0xc0] sm:$0xff] %v7455_v2  ;;  %v7457_v60 = vadd.f32 %v7456_v41, %v7104_v11  ;;  %v15914_v32 = vpack.c.bf16 %v4566_v7, %v4562_v12  ;;  %v3548_v49 = vmul.f32 0.5, %v15739_v61  ;;  %10548 = verf.f32 %v3807_v62  ;;  %v17553_v61 = vld [vmem:[#allocation114_spill] sm:$0xff] }
 0x441   : > { %v7458_v28 = vpop.f32.mrf.mxu1  ;;  %v7106_v37 = vadd.f32 %v7105_v33, %v15686_v29  ;;  %v15912_v44 = vpop.eup %10528  ;;  %v4312_v43 = vadd.f32 1.0, %v10525_v54  ;;  %v4314_v2 = vadd.f32 1.0, %v10527_v59  ;;  %v3550_v56 = vmul.f32 0.5, %v15745_v20 }
 0x442   : > { %v7107_v36 = vpop.f32.mrf.mxu0  ;;  %v10531_v58 = vpop.eup %10530  ;;  %8474 = vst [vmem:[%s15724_s25 + $0xc8] sm:$0xff] %v7457_v60  ;;  %10550 = verf.f32 %v3809_v55  ;;  %v4561_v62 = vmul.f32 %v4305_v8, %v17553_v61  ;;  %v3544_v20 = vmul.f32 0.5, %v15758_v34  ;;  %v3546_v54 = vmul.f32 0.5, %v15770_v63 }
 0x443   : > { %v7460_v40 = vpop.f32.mrf.mxu1  ;;  %v7459_v1 = vadd.f32 %v7458_v28, %v7106_v37  ;;  %v7108_v41 = vadd.f32 %v7107_v36, %v15715_v16  ;;  %v10533_v26 = vpop.eup %10532  ;;  %v4572_v55 = vmul.f32 %v4316_v31, %v3548_v49  ;;  %v4574_v33 = vmul.f32 %v4318_v3, %v3550_v56 }
 0x444   : > { %v7111_v13 = vpop.f32.mrf.mxu0  ;;  %7350 = vmatmul.mubr.bf16.gmra.mxu0 %v15735_v19  ;;  %v10535_v50 = vpop.eup %10534  ;;  %v15929_v37 = vpack.c.bf16 %v4563_v57, %v4559_v39  ;;  %v15931_v8 = vpack.c.bf16 %v4565_v14, %v4561_v62  ;;  %v3545_v34 = vmul.f32 0.5, %v15791_v23  ;;  %v4568_v63 = vmul.f32 %v4312_v43, %v3544_v20 }
 0x445   : > { %v7464_v7 = vpop.f32.mrf.mxu1  ;;  %7703 = vmatmul.mubr.bf16.gmra.mxu1 %v15763_v21  ;;  %8477 = vst [vmem:[%s15724_s25 + $0xe0] sm:$0xff] %v7459_v1  ;;  %v7461_v11 = vadd.f32 %v7460_v40, %v7108_v41  ;;  %v7112_v12 = vadd.f32 %v7111_v13, %v15686_v29  ;;  %7359 = vmatprep.mubr.bf16.mxu0 %v15910_v5  ;;  %v10537_v60 = vpop.eup %10536  ;;  %v3543_v41 = vmul.f32 0.5, %v15776_v38  ;;  %v3547_v39 = vmul.f32 0.5, %v15797_v51 }
 0x446   : > { %7712 = vmatprep.mubr.bf16.mxu1 %v15914_v32  ;;  %v7113_v28 = vpop.f32.mrf.mxu0  ;;  %v10539_v1 = vpop.eup %10538  ;;  %v4570_v31 = vmul.f32 %v4314_v2, %v3546_v54  ;;  %v3549_v57 = vmul.f32 0.5, %v15806_v17  ;;  %v4315_v61 = vadd.f32 1.0, %v10533_v26  ;;  %v4317_v62 = vadd.f32 1.0, %v10535_v50 }
 0x447   : > { %v7466_v59 = vpop.f32.mrf.mxu1  ;;  %8478 = vst [vmem:[%s15724_s25 + $0xe8] sm:$0xff] %v7461_v11  ;;  %v7465_v36 = vadd.f32 %v7464_v7, %v7112_v12  ;;  %v7114_v40 = vadd.f32 %v7113_v28, %v15715_v16  ;;  %v10541_v56 = vpop.eup %10540  ;;  %v15941_v23 = vpack.c.bf16 %v4572_v55, %v4568_v63  ;;  %v4324_v2 = vadd.f32 1.0, %v10537_v60 }
 0x448   : > { %v7115_v3 = vpop.f32.mrf.mxu0  ;;  %v10543_v7 = vpop.eup %10542  ;;  %v15943_v43 = vpack.c.bf16 %v4574_v33, %v4570_v31  ;;  %v4326_v12 = vadd.f32 1.0, %v10539_v1  ;;  %v4311_v20 = vadd.f32 1.0, %v15912_v44  ;;  %v4313_v54 = vadd.f32 1.0, %v10531_v58 }
 0x449   : > { %v7468_v49 = vpop.f32.mrf.mxu1  ;;  %8481 = vst [vmem:[%s15724_s25 + $0x100] sm:$0xff] %v7465_v36  ;;  %v7467_v14 = vadd.f32 %v7466_v59, %v7114_v40  ;;  %v7116_v13 = vadd.f32 %v7115_v3, %v15686_v29  ;;  %v3556_v28 = vmul.f32 0.5, %v15821_v0  ;;  %v3558_v26 = vmul.f32 0.5, %v15827_v42 }
 0x44a   : > { %v7117_v38 = vpop.f32.mrf.mxu0  ;;  %v4320_v33 = vadd.f32 1.0, %v10541_v56  ;;  %v4322_v59 = vadd.f32 1.0, %v10543_v7  ;;  %v4571_v44 = vmul.f32 %v4315_v61, %v3547_v39  ;;  %v4573_v42 = vmul.f32 %v4317_v62, %v3549_v57 }
 0x44b   : > { %v7470_v11 = vpop.f32.mrf.mxu1  ;;  %8482 = vst [vmem:[%s15724_s25 + $0x108] sm:$0xff] %v7467_v14  ;;  %v7469_v51 = vadd.f32 %v7468_v49, %v7116_v13  ;;  %v7118_v17 = vadd.f32 %v7117_v38, %v15715_v16  ;;  %v10545_v0 = vpop.eup %10544  ;;  %v3552_v58 = vmul.f32 0.5, %v15834_v9  ;;  %v3554_v40 = vmul.f32 0.5, %v15840_v53 }
 0x44c   : > { %v7121_v50 = vpop.f32.mrf.mxu0  ;;  %7360 = vmatmul.mubr.bf16.gmra.mxu0 %v15929_v37  ;;  %v10547_v31 = vpop.eup %10546  ;;  %v4580_v3 = vmul.f32 %v4324_v2, %v3556_v28  ;;  %v4582_v49 = vmul.f32 %v4326_v12, %v3558_v26  ;;  %v4567_v7 = vmul.f32 %v4311_v20, %v3543_v41  ;;  %v4569_v38 = vmul.f32 %v4313_v54, %v3545_v34 }
 0x44d   : > { %v7474_v55 = vpop.f32.mrf.mxu1  ;;  %7713 = vmatmul.mubr.bf16.gmra.mxu1 %v15931_v8  ;;  %8485 = vst [vmem:[%s15724_s25 + $0x120] sm:$0xff] %v7469_v51  ;;  %v7471_v60 = vadd.f32 %v7470_v11, %v7118_v17  ;;  %v7122_v36 = vadd.f32 %v7121_v50, %v15686_v29  ;;  %7369 = vmatprep.mubr.bf16.mxu0 %v15941_v23  ;;  %v10549_v13 = vpop.eup %10548  ;;  %v4323_v12 = vadd.f32 1.0, %v10545_v0  ;;  %v4325_v17 = vadd.f32 1.0, %v10547_v31 }
 0x44e   : > { %7722 = vmatprep.mubr.bf16.mxu1 %v15943_v43  ;;  %v7123_v1 = vpop.f32.mrf.mxu0  ;;  %v4576_v9 = vmul.f32 %v4320_v33, %v3552_v58  ;;  %v4578_v62 = vmul.f32 %v4322_v59, %v3554_v40  ;;  %v15962_v51 = vpack.c.bf16 %v4571_v44, %v4567_v7  ;;  %v15964_v2 = vpack.c.bf16 %v4573_v42, %v4569_v38 }
 0x44f   : > { %v7476_v63 = vpop.f32.mrf.mxu1  ;;  %8486 = vst [vmem:[%s15724_s25 + $0x128] sm:$0xff] %v7471_v60  ;;  %v7475_v56 = vadd.f32 %v7474_v55, %v7122_v36  ;;  %v7124_v14 = vadd.f32 %v7123_v1, %v15715_v16  ;;  %v10551_v61 = vpop.eup %10550  ;;  %v4319_v50 = vadd.f32 1.0, %v10549_v13  ;;  %v3555_v33 = vmul.f32 0.5, %v15862_v24 }
 0x450   : > { %v7125_v39 = vpop.f32.mrf.mxu0  ;;  %v15968_v54 = vpack.c.bf16 %v4580_v3, %v4576_v9  ;;  %v15970_v26 = vpack.c.bf16 %v4582_v49, %v4578_v62  ;;  %v4321_v55 = vadd.f32 1.0, %v10551_v61  ;;  %v3557_v59 = vmul.f32 0.5, %v15868_v35 }
 0x451   : > { %v7478_v57 = vpop.f32.mrf.mxu1  ;;  %8489 = vst [vmem:[%s15724_s25 + $0x140] sm:$0xff] %v7475_v56  ;;  %v7477_v53 = vadd.f32 %v7476_v63, %v7124_v14  ;;  %v7126_v11 = vadd.f32 %v7125_v39, %v15686_v29  ;;  %v3551_v24 = vmul.f32 0.5, %v15876_v46  ;;  %v3553_v35 = vmul.f32 0.5, %v15883_v47 }
 0x452   : > { %v7127_v28 = vpop.f32.mrf.mxu0  ;;  %v4579_v42 = vmul.f32 %v4323_v12, %v3555_v33  ;;  %v4581_v58 = vmul.f32 %v4325_v17, %v3557_v59  ;;  %v17554_v12 = vld [vmem:[#allocation4_spill] sm:$0xff]  ;;  %v17555_v17 = vld [vmem:[#allocation65_spill] sm:$0xff] }
 0x453   : > { %v7480_v41 = vpop.f32.mrf.mxu1  ;;  %8490 = vst [vmem:[%s15724_s25 + $0x148] sm:$0xff] %v7477_v53  ;;  %v7479_v34 = vadd.f32 %v7478_v57, %v7126_v11  ;;  %v7128_v20 = vadd.f32 %v7127_v28, %v15715_v16  ;;  %v4575_v3 = vmul.f32 %v4319_v50, %v3551_v24  ;;  %v4577_v49 = vmul.f32 %v4321_v55, %v3553_v35 }
 0x454   : > { %v7131_v60 = vpop.f32.mrf.mxu0  ;;  %7370 = vmatmul.mubr.bf16.gmra.mxu0 %v15962_v51 }
 0x455   : > { %v7484_v36 = vpop.f32.mrf.mxu1  ;;  %7723 = vmatmul.mubr.bf16.gmra.mxu1 %v15964_v2  ;;  %8493 = vst [vmem:[%s15724_s25 + $0x160] sm:$0xff] %v7479_v34  ;;  %v7481_v0 = vadd.f32 %v7480_v41, %v7128_v20  ;;  %v7132_v44 = vadd.f32 %v7131_v60, %v15686_v29  ;;  %7379 = vmatprep.mubr.bf16.mxu0 %v15968_v54 }
 0x456   : > { %7732 = vmatprep.mubr.bf16.mxu1 %v15970_v26  ;;  %v7133_v40 = vpop.f32.mrf.mxu0  ;;  %v15986_v7 = vpack.c.bf16 %v4579_v42, %v4575_v3  ;;  %v15988_v47 = vpack.c.bf16 %v4581_v58, %v4577_v49  ;;  %v17556_v42 = vld [vmem:[#allocation23_spill] sm:$0xff]  ;;  %v17557_v58 = vld [vmem:[#allocation26_spill] sm:$0xff] }
 0x457   : > { %v7486_v1 = vpop.f32.mrf.mxu1  ;;  %8494 = vst [vmem:[%s15724_s25 + $0x168] sm:$0xff] %v7481_v0  ;;  %v7485_v63 = vadd.f32 %v7484_v36, %v7132_v44  ;;  %v7134_v31 = vadd.f32 %v7133_v40, %v15715_v16 }
 0x458   : > { %v7135_v56 = vpop.f32.mrf.mxu0 }
 0x459   : > { %v7488_v14 = vpop.f32.mrf.mxu1  ;;  %8497 = vst [vmem:[%s15724_s25 + $0x180] sm:$0xff] %v7485_v63  ;;  %v7487_v13 = vadd.f32 %v7486_v1, %v7134_v31  ;;  %v7136_v46 = vadd.f32 %v7135_v56, %v15686_v29  ;;  %v17558_v63 = vld [vmem:[#allocation29_spill] sm:$0xff]  ;;  %v17559_v31 = vld [vmem:[#allocation34_spill] sm:$0xff] }
 0x45a   : > { %v7137_v38 = vpop.f32.mrf.mxu0 }
 0x45b   : > { %v7490_v39 = vpop.f32.mrf.mxu1  ;;  %8498 = vst [vmem:[%s15724_s25 + $0x188] sm:$0xff] %v7487_v13  ;;  %v7489_v57 = vadd.f32 %v7488_v14, %v7136_v46  ;;  %v7138_v61 = vadd.f32 %v7137_v38, %v15715_v16 }
 0x45c   : > { %v7141_v9 = vpop.f32.mrf.mxu0  ;;  %7380 = vmatmul.mubr.bf16.gmra.mxu0 %v15986_v7 }
 0x45d   : > { %v7494_v62 = vpop.f32.mrf.mxu1  ;;  %7733 = vmatmul.mubr.bf16.gmra.mxu1 %v15988_v47  ;;  %8501 = vst [vmem:[%s15724_s25 + $0x1a0] sm:$0xff] %v7489_v57  ;;  %v7491_v53 = vadd.f32 %v7490_v39, %v7138_v61  ;;  %v7142_v11 = vadd.f32 %v7141_v9, %v15686_v29  ;;  %7775 = vmatprep.mubr.bf16.mxu0 %v17554_v12  ;;  %v17560_v12 = vld [vmem:[#allocation22_spill] sm:$0xff] }
 0x45e   : > { %8128 = vmatprep.mubr.bf16.mxu1 %v17555_v17  ;;  %v7143_v28 = vpop.f32.mrf.mxu0  ;;  %v17561_v17 = vld [vmem:[#allocation25_spill] sm:$0xff] }
 0x45f   : > { %v7496_v41 = vpop.f32.mrf.mxu1  ;;  %8502 = vst [vmem:[%s15724_s25 + $0x1a8] sm:$0xff] %v7491_v53  ;;  %v7495_v34 = vadd.f32 %v7494_v62, %v7142_v11  ;;  %v7144_v20 = vadd.f32 %v7143_v28, %v15715_v16 }
 0x460   : > { %v7145_v50 = vpop.f32.mrf.mxu0 }
 0x461   : > { %v7498_v55 = vpop.f32.mrf.mxu1  ;;  %8505 = vst [vmem:[%s15724_s25 + $0x1c0] sm:$0xff] %v7495_v34  ;;  %v7497_v33 = vadd.f32 %v7496_v41, %v7144_v20  ;;  %v7146_v59 = vadd.f32 %v7145_v50, %v15686_v29  ;;  %v17562_v34 = vld [vmem:[#allocation42_spill] sm:$0xff]  ;;  %v17563_v20 = vld [vmem:[#allocation55_spill] sm:$0xff] }
 0x462   : > { %v7147_v60 = vpop.f32.mrf.mxu0 }
 0x463   : > { %v7500_v36 = vpop.f32.mrf.mxu1  ;;  %8506 = vst [vmem:[%s15724_s25 + $0x1c8] sm:$0xff] %v7497_v33  ;;  %v7499_v0 = vadd.f32 %v7498_v55, %v7146_v59  ;;  %v7148_v44 = vadd.f32 %v7147_v60, %v15715_v16 }
 0x464   : > { %v7151_v24 = vpop.f32.mrf.mxu0  ;;  %7776 = vmatmul.mubr.bf16.vlgmr.msra.gmra.mxu0 %v17556_v42 }
 0x465   : > { %v7504_v35 = vpop.f32.mrf.mxu1  ;;  %8129 = vmatmul.mubr.bf16.vlgmr.msra.gmra.mxu1 %v17557_v58  ;;  %8509 = vst [vmem:[%s15724_s25 + $0x1e0] sm:$0xff] %v7499_v0  ;;  %v7501_v40 = vadd.f32 %v7500_v36, %v7148_v44  ;;  %v7152_v1 = vadd.f32 %v7151_v24, %v15686_v29  ;;  %7785 = vmatprep.mubr.bf16.mxu0 %v17558_v63  ;;  %v17564_v63 = vld [vmem:[#allocation11_spill] sm:$0xff] }
 0x466   : > { %8138 = vmatprep.mubr.bf16.mxu1 %v17559_v31  ;;  %v7153_v3 = vpop.f32.mrf.mxu0  ;;  %v17565_v31 = vld [vmem:[#allocation31_spill] sm:$0xff] }
 0x467   : > { %v7506_v49 = vpop.f32.mrf.mxu1  ;;  %8510 = vst [vmem:[%s15724_s25 + $0x1e8] sm:$0xff] %v7501_v40  ;;  %v7505_v56 = vadd.f32 %v7504_v35, %v7152_v1  ;;  %v7154_v14 = vadd.f32 %v7153_v3, %v15715_v16 }
 0x468   : > { %v7155_v13 = vpop.f32.mrf.mxu0 }
 0x469   : > { %v7508_v46 = vpop.f32.mrf.mxu1  ;;  %8513 = vst [vmem:[%s15724_s25 + $0x200] sm:$0xff] %v7505_v56  ;;  %v7507_v38 = vadd.f32 %v7506_v49, %v7154_v14  ;;  %v7156_v39 = vadd.f32 %v7155_v13, %v15686_v29  ;;  %v17566_v56 = vld [vmem:[#allocation13_spill] sm:$0xff]  ;;  %v17567_v14 = vld [vmem:[#allocation28_spill] sm:$0xff] }
 0x46a   : > { %v7157_v57 = vpop.f32.mrf.mxu0 }
 0x46b   : > { %v7510_v61 = vpop.f32.mrf.mxu1  ;;  %8514 = vst [vmem:[%s15724_s25 + $0x208] sm:$0xff] %v7507_v38  ;;  %v7509_v9 = vadd.f32 %v7508_v46, %v7156_v39  ;;  %v7158_v62 = vadd.f32 %v7157_v57, %v15715_v16 }
 0x46c   : > { %v7161_v53 = vpop.f32.mrf.mxu0  ;;  %7786 = vmatmul.mubr.bf16.gmra.mxu0 %v17560_v12 }
 0x46d   : > { %v7514_v11 = vpop.f32.mrf.mxu1  ;;  %8139 = vmatmul.mubr.bf16.gmra.mxu1 %v17561_v17  ;;  %8517 = vst [vmem:[%s15724_s25 + $0x220] sm:$0xff] %v7509_v9  ;;  %v7511_v28 = vadd.f32 %v7510_v61, %v7158_v62  ;;  %v7162_v41 = vadd.f32 %v7161_v53, %v15686_v29  ;;  %7795 = vmatprep.mubr.bf16.mxu0 %v17562_v34  ;;  %v17568_v34 = vld [vmem:[#allocation67_spill] sm:$0xff] }
 0x46e   : > { %8148 = vmatprep.mubr.bf16.mxu1 %v17563_v20  ;;  %v7163_v50 = vpop.f32.mrf.mxu0  ;;  %v17569_v20 = vld [vmem:[#allocation70_spill] sm:$0xff] }
 0x46f   : > { %v7516_v55 = vpop.f32.mrf.mxu1  ;;  %8518 = vst [vmem:[%s15724_s25 + $0x228] sm:$0xff] %v7511_v28  ;;  %v7515_v33 = vadd.f32 %v7514_v11, %v7162_v41  ;;  %v7164_v59 = vadd.f32 %v7163_v50, %v15715_v16 }
 0x470   : > { %v7165_v60 = vpop.f32.mrf.mxu0 }
 0x471   : > { %v7518_v36 = vpop.f32.mrf.mxu1  ;;  %8521 = vst [vmem:[%s15724_s25 + $0x240] sm:$0xff] %v7515_v33  ;;  %v7517_v0 = vadd.f32 %v7516_v55, %v7164_v59  ;;  %v7166_v44 = vadd.f32 %v7165_v60, %v15686_v29  ;;  %v17570_v33 = vld [vmem:[#allocation41_spill] sm:$0xff]  ;;  %v17571_v59 = vld [vmem:[#allocation68_spill] sm:$0xff] }
 0x472   : > { %v7167_v24 = vpop.f32.mrf.mxu0 }
 0x473   : > { %v7520_v35 = vpop.f32.mrf.mxu1  ;;  %8522 = vst [vmem:[%s15724_s25 + $0x248] sm:$0xff] %v7517_v0  ;;  %v7519_v42 = vadd.f32 %v7518_v36, %v7166_v44  ;;  %v7168_v58 = vadd.f32 %v7167_v24, %v15715_v16 }
 0x474   : > { %v7171_v40 = vpop.f32.mrf.mxu0  ;;  %7796 = vmatmul.mubr.bf16.gmra.mxu0 %v17564_v63 }
 0x475   : > { %v7524_v1 = vpop.f32.mrf.mxu1  ;;  %8149 = vmatmul.mubr.bf16.gmra.mxu1 %v17565_v31  ;;  %8525 = vst [vmem:[%s15724_s25 + $0x260] sm:$0xff] %v7519_v42  ;;  %v7521_v3 = vadd.f32 %v7520_v35, %v7168_v58  ;;  %v7172_v49 = vadd.f32 %v7171_v40, %v15686_v29  ;;  %7805 = vmatprep.mubr.bf16.mxu0 %v17566_v56  ;;  %v17572_v56 = vld [vmem:[#allocation9_spill] sm:$0xff] }
 0x476   : > { %8158 = vmatprep.mubr.bf16.mxu1 %v17567_v14  ;;  %v7173_v13 = vpop.f32.mrf.mxu0  ;;  %v17573_v14 = vld [vmem:[#allocation46_spill] sm:$0xff] }
 0x477   : > { %v7526_v46 = vpop.f32.mrf.mxu1  ;;  %8526 = vst [vmem:[%s15724_s25 + $0x268] sm:$0xff] %v7521_v3  ;;  %v7525_v38 = vadd.f32 %v7524_v1, %v7172_v49  ;;  %v7174_v39 = vadd.f32 %v7173_v13, %v15715_v16 }
 0x478   : > { %v7175_v57 = vpop.f32.mrf.mxu0 }
 0x479   : > { %v7528_v61 = vpop.f32.mrf.mxu1  ;;  %8529 = vst [vmem:[%s15724_s25 + $0x280] sm:$0xff] %v7525_v38  ;;  %v7527_v9 = vadd.f32 %v7526_v46, %v7174_v39  ;;  %v7176_v62 = vadd.f32 %v7175_v57, %v15686_v29  ;;  %v17574_v38 = vld [vmem:[#allocation61_spill] sm:$0xff]  ;;  %v17575_v39 = vld [vmem:[#allocation71_spill] sm:$0xff] }
 0x47a   : > { %v7177_v53 = vpop.f32.mrf.mxu0 }
 0x47b   : > { %v7530_v11 = vpop.f32.mrf.mxu1  ;;  %8530 = vst [vmem:[%s15724_s25 + $0x288] sm:$0xff] %v7527_v9  ;;  %v7529_v12 = vadd.f32 %v7528_v61, %v7176_v62  ;;  %v7178_v17 = vadd.f32 %v7177_v53, %v15715_v16 }
 0x47c   : > { %v7181_v28 = vpop.f32.mrf.mxu0  ;;  %7806 = vmatmul.mubr.bf16.gmra.mxu0 %v17568_v34 }
 0x47d   : > { %v7534_v41 = vpop.f32.mrf.mxu1  ;;  %8159 = vmatmul.mubr.bf16.gmra.mxu1 %v17569_v20  ;;  %8533 = vst [vmem:[%s15724_s25 + $0x2a0] sm:$0xff] %v7529_v12  ;;  %v7531_v50 = vadd.f32 %v7530_v11, %v7178_v17  ;;  %v7182_v55 = vadd.f32 %v7181_v28, %v15686_v29  ;;  %7815 = vmatprep.mubr.bf16.mxu0 %v17570_v33  ;;  %v17576_v33 = vld [vmem:[#allocation47_spill] sm:$0xff] }
 0x47e   : > { %8168 = vmatprep.mubr.bf16.mxu1 %v17571_v59  ;;  %v7183_v60 = vpop.f32.mrf.mxu0  ;;  %v17577_v59 = vld [vmem:[#allocation20_spill] sm:$0xff] }
 0x47f   : > { %v7536_v36 = vpop.f32.mrf.mxu1  ;;  %8534 = vst [vmem:[%s15724_s25 + $0x2a8] sm:$0xff] %v7531_v50  ;;  %v7535_v0 = vadd.f32 %v7534_v41, %v7182_v55  ;;  %v7184_v44 = vadd.f32 %v7183_v60, %v15715_v16 }
 0x480   : > { %v7185_v24 = vpop.f32.mrf.mxu0 }
 0x481   : > { %v7538_v35 = vpop.f32.mrf.mxu1  ;;  %8537 = vst [vmem:[%s15724_s25 + $0x2c0] sm:$0xff] %v7535_v0  ;;  %v7537_v42 = vadd.f32 %v7536_v36, %v7184_v44  ;;  %v7186_v58 = vadd.f32 %v7185_v24, %v15686_v29  ;;  %v17578_v0 = vld [vmem:[#allocation77_spill] sm:$0xff]  ;;  %v17579_v44 = vld [vmem:[#allocation24_spill] sm:$0xff] }
 0x482   : > { %v7187_v40 = vpop.f32.mrf.mxu0 }
 0x483   : > { %v7540_v1 = vpop.f32.mrf.mxu1  ;;  %8538 = vst [vmem:[%s15724_s25 + $0x2c8] sm:$0xff] %v7537_v42  ;;  %v7539_v63 = vadd.f32 %v7538_v35, %v7186_v58  ;;  %v7188_v31 = vadd.f32 %v7187_v40, %v15715_v16 }
 0x484   : > { %v7191_v3 = vpop.f32.mrf.mxu0  ;;  %7816 = vmatmul.mubr.bf16.gmra.mxu0 %v17572_v56 }
 0x485   : > { %v7544_v49 = vpop.f32.mrf.mxu1  ;;  %8169 = vmatmul.mubr.bf16.gmra.mxu1 %v17573_v14  ;;  %8541 = vst [vmem:[%s15724_s25 + $0x2e0] sm:$0xff] %v7539_v63  ;;  %v7541_v13 = vadd.f32 %v7540_v1, %v7188_v31  ;;  %v7192_v46 = vadd.f32 %v7191_v3, %v15686_v29  ;;  %7825 = vmatprep.mubr.bf16.mxu0 %v17574_v38  ;;  %v17580_v38 = vld [vmem:[#allocation32_spill] sm:$0xff] }
 0x486   : > { %8178 = vmatprep.mubr.bf16.mxu1 %v17575_v39  ;;  %v7193_v57 = vpop.f32.mrf.mxu0  ;;  %v17581_v39 = vld [vmem:[#allocation35_spill] sm:$0xff] }
 0x487   : > { %v7546_v61 = vpop.f32.mrf.mxu1  ;;  %8542 = vst [vmem:[%s15724_s25 + $0x2e8] sm:$0xff] %v7541_v13  ;;  %v7545_v9 = vadd.f32 %v7544_v49, %v7192_v46  ;;  %v7194_v62 = vadd.f32 %v7193_v57, %v15715_v16 }
 0x488   : > { %v7195_v53 = vpop.f32.mrf.mxu0 }
 0x489   : > { %v7548_v11 = vpop.f32.mrf.mxu1  ;;  %8545 = vst [vmem:[%s15724_s25 + $0x300] sm:$0xff] %v7545_v9  ;;  %v7547_v12 = vadd.f32 %v7546_v61, %v7194_v62  ;;  %v7196_v17 = vadd.f32 %v7195_v53, %v15686_v29  ;;  %v17582_v9 = vld [vmem:[#allocation18_spill] sm:$0xff]  ;;  %v17583_v62 = vld [vmem:[#allocation36_spill] sm:$0xff] }
 0x48a   : > { %v7197_v28 = vpop.f32.mrf.mxu0 }
 0x48b   : > { %v7550_v41 = vpop.f32.mrf.mxu1  ;;  %8546 = vst [vmem:[%s15724_s25 + $0x308] sm:$0xff] %v7547_v12  ;;  %v7549_v34 = vadd.f32 %v7548_v11, %v7196_v17  ;;  %v7198_v20 = vadd.f32 %v7197_v28, %v15715_v16 }
 0x48c   : > { %v7201_v50 = vpop.f32.mrf.mxu0  ;;  %7826 = vmatmul.mubr.bf16.gmra.mxu0 %v17576_v33 }
 0x48d   : > { %v7554_v55 = vpop.f32.mrf.mxu1  ;;  %8179 = vmatmul.mubr.bf16.gmra.mxu1 %v17577_v59  ;;  %8549 = vst [vmem:[%s15724_s25 + $0x320] sm:$0xff] %v7549_v34  ;;  %v7551_v60 = vadd.f32 %v7550_v41, %v7198_v20  ;;  %v7202_v36 = vadd.f32 %v7201_v50, %v15686_v29  ;;  %7835 = vmatprep.mubr.bf16.mxu0 %v17578_v0  ;;  %v17584_v0 = vld [vmem:[#allocation17_spill] sm:$0xff] }
 0x48e   : > { %8188 = vmatprep.mubr.bf16.mxu1 %v17579_v44  ;;  %v7203_v24 = vpop.f32.mrf.mxu0  ;;  %v17585_v44 = vld [vmem:[#allocation16_spill] sm:$0xff] }
 0x48f   : > { %v7556_v35 = vpop.f32.mrf.mxu1  ;;  %8550 = vst [vmem:[%s15724_s25 + $0x328] sm:$0xff] %v7551_v60  ;;  %v7555_v42 = vadd.f32 %v7554_v55, %v7202_v36  ;;  %v7204_v58 = vadd.f32 %v7203_v24, %v15715_v16 }
 0x490   : > { %v7205_v40 = vpop.f32.mrf.mxu0 }
 0x491   : > { %v7558_v1 = vpop.f32.mrf.mxu1  ;;  %8553 = vst [vmem:[%s15724_s25 + $0x340] sm:$0xff] %v7555_v42  ;;  %v7557_v63 = vadd.f32 %v7556_v35, %v7204_v58  ;;  %v7206_v31 = vadd.f32 %v7205_v40, %v15686_v29  ;;  %v17586_v42 = vld [vmem:[#allocation15_spill] sm:$0xff]  ;;  %v17587_v58 = vld [vmem:[#allocation72_spill] sm:$0xff] }
 0x492   : > { %v7207_v3 = vpop.f32.mrf.mxu0 }
 0x493   : > { %v7560_v49 = vpop.f32.mrf.mxu1  ;;  %8554 = vst [vmem:[%s15724_s25 + $0x348] sm:$0xff] %v7557_v63  ;;  %v7559_v56 = vadd.f32 %v7558_v1, %v7206_v31  ;;  %v7208_v14 = vadd.f32 %v7207_v3, %v15715_v16 }
 0x494   : > { %v7211_v13 = vpop.f32.mrf.mxu0  ;;  %7836 = vmatmul.mubr.bf16.gmra.mxu0 %v17580_v38 }
 0x495   : > { %v7564_v46 = vpop.f32.mrf.mxu1  ;;  %8189 = vmatmul.mubr.bf16.gmra.mxu1 %v17581_v39  ;;  %8557 = vst [vmem:[%s15724_s25 + $0x360] sm:$0xff] %v7559_v56  ;;  %v7561_v57 = vadd.f32 %v7560_v49, %v7208_v14  ;;  %v7212_v61 = vadd.f32 %v7211_v13, %v15686_v29  ;;  %7845 = vmatprep.mubr.bf16.mxu0 %v17582_v9  ;;  %v17588_v9 = vld [vmem:[#allocation76_spill] sm:$0xff] }
 0x496   : > { %8198 = vmatprep.mubr.bf16.mxu1 %v17583_v62  ;;  %v7213_v53 = vpop.f32.mrf.mxu0  ;;  %v17589_v62 = vld [vmem:[#allocation80_spill] sm:$0xff] }
 0x497   : > { %v7566_v11 = vpop.f32.mrf.mxu1  ;;  %8558 = vst [vmem:[%s15724_s25 + $0x368] sm:$0xff] %v7561_v57  ;;  %v7565_v12 = vadd.f32 %v7564_v46, %v7212_v61  ;;  %v7214_v17 = vadd.f32 %v7213_v53, %v15715_v16 }
 0x498   : > { %v7215_v28 = vpop.f32.mrf.mxu0 }
 0x499   : > { %v7568_v41 = vpop.f32.mrf.mxu1  ;;  %8561 = vst [vmem:[%s15724_s25 + $0x380] sm:$0xff] %v7565_v12  ;;  %v7567_v34 = vadd.f32 %v7566_v11, %v7214_v17  ;;  %v7216_v20 = vadd.f32 %v7215_v28, %v15686_v29  ;;  %v17590_v12 = vld [vmem:[#allocation82_spill] sm:$0xff] }
 0x49a   : > { %v7217_v50 = vpop.f32.mrf.mxu0  ;;  %v17591_v17 = vld [vmem:[#allocation86_spill] sm:$0xff] }
 0x49b   : > { %v7570_v55 = vpop.f32.mrf.mxu1  ;;  %8562 = vst [vmem:[%s15724_s25 + $0x388] sm:$0xff] %v7567_v34  ;;  %v7569_v33 = vadd.f32 %v7568_v41, %v7216_v20  ;;  %v7218_v59 = vadd.f32 %v7217_v50, %v15715_v16 }
 0x49c   : > { %v7221_v60 = vpop.f32.mrf.mxu0  ;;  %7846 = vmatmul.mubr.bf16.gmra.mxu0 %v17584_v0 }
 0x49d   : > { %v7574_v36 = vpop.f32.mrf.mxu1  ;;  %8199 = vmatmul.mubr.bf16.gmra.mxu1 %v17585_v44  ;;  %8565 = vst [vmem:[%s15724_s25 + $0x3a0] sm:$0xff] %v7569_v33  ;;  %v7571_v24 = vadd.f32 %v7570_v55, %v7218_v59  ;;  %v7222_v35 = vadd.f32 %v7221_v60, %v15686_v29  ;;  %7855 = vmatprep.mubr.bf16.mxu0 %v17586_v42  ;;  %v17592_v42 = vld [vmem:[#allocation84_spill] sm:$0xff] }
 0x49e   : > { %8208 = vmatprep.mubr.bf16.mxu1 %v17587_v58  ;;  %v7223_v40 = vpop.f32.mrf.mxu0  ;;  %v17593_v58 = vld [vmem:[#allocation85_spill] sm:$0xff] }
 0x49f   : > { %v7576_v1 = vpop.f32.mrf.mxu1  ;;  %8566 = vst [vmem:[%s15724_s25 + $0x3a8] sm:$0xff] %v7571_v24  ;;  %v7575_v63 = vadd.f32 %v7574_v36, %v7222_v35  ;;  %v7224_v31 = vadd.f32 %v7223_v40, %v15715_v16 }
 0x4a0   : > { %v7225_v3 = vpop.f32.mrf.mxu0 }
 0x4a1   : > { %v7578_v49 = vpop.f32.mrf.mxu1  ;;  %8569 = vst [vmem:[%s15724_s25 + $0x3c0] sm:$0xff] %v7575_v63  ;;  %v7577_v56 = vadd.f32 %v7576_v1, %v7224_v31  ;;  %v7226_v14 = vadd.f32 %v7225_v3, %v15686_v29  ;;  %v17594_v63 = vld [vmem:[#allocation57_spill] sm:$0xff]  ;;  %v17595_v31 = vld [vmem:[#allocation88_spill] sm:$0xff] }
 0x4a2   : > { %v7227_v13 = vpop.f32.mrf.mxu0 }
 0x4a3   : > { %v7580_v46 = vpop.f32.mrf.mxu1  ;;  %8570 = vst [vmem:[%s15724_s25 + $0x3c8] sm:$0xff] %v7577_v56  ;;  %v7579_v38 = vadd.f32 %v7578_v49, %v7226_v14  ;;  %v7228_v39 = vadd.f32 %v7227_v13, %v15715_v16 }
 0x4a4   : > { %v7231_v57 = vpop.f32.mrf.mxu0  ;;  %7856 = vmatmul.mubr.bf16.gmra.mxu0 %v17588_v9 }
 0x4a5   : > { %v7584_v61 = vpop.f32.mrf.mxu1  ;;  %8209 = vmatmul.mubr.bf16.gmra.mxu1 %v17589_v62  ;;  %8573 = vst [vmem:[%s15724_s25 + $0x3e0] sm:$0xff] %v7579_v38  ;;  %v7581_v53 = vadd.f32 %v7580_v46, %v7228_v39  ;;  %v7232_v11 = vadd.f32 %v7231_v57, %v15686_v29  ;;  %7865 = vmatprep.mubr.bf16.mxu0 %v17590_v12  ;;  %v17596_v12 = vld [vmem:[#allocation12_spill] sm:$0xff] }
 0x4a6   : > { %8218 = vmatprep.mubr.bf16.mxu1 %v17591_v17  ;;  %v7233_v28 = vpop.f32.mrf.mxu0  ;;  %v17597_v17 = vld [vmem:[#allocation44_spill] sm:$0xff] }
 0x4a7   : > { %v7586_v41 = vpop.f32.mrf.mxu1  ;;  %8574 = vst [vmem:[%s15724_s25 + $0x3e8] sm:$0xff] %v7581_v53  ;;  %v7585_v34 = vadd.f32 %v7584_v61, %v7232_v11  ;;  %v7234_v20 = vadd.f32 %v7233_v28, %v15715_v16 }
 0x4a8   : > { %v7235_v50 = vpop.f32.mrf.mxu0 }
 0x4a9   : > { %v7588_v55 = vpop.f32.mrf.mxu1  ;;  %8577 = vst [vmem:[%s15724_s25 + $0x400] sm:$0xff] %v7585_v34  ;;  %v7587_v33 = vadd.f32 %v7586_v41, %v7234_v20  ;;  %v7236_v59 = vadd.f32 %v7235_v50, %v15686_v29  ;;  %v17598_v34 = vld [vmem:[#allocation90_spill] sm:$0xff]  ;;  %v17599_v20 = vld [vmem:[#allocation89_spill] sm:$0xff] }
 0x4aa   : > { %v7237_v60 = vpop.f32.mrf.mxu0 }
 0x4ab   : > { %v7590_v36 = vpop.f32.mrf.mxu1  ;;  %8578 = vst [vmem:[%s15724_s25 + $0x408] sm:$0xff] %v7587_v33  ;;  %v7589_v0 = vadd.f32 %v7588_v55, %v7236_v59  ;;  %v7238_v44 = vadd.f32 %v7237_v60, %v15715_v16 }
 0x4ac   : > { %v7241_v24 = vpop.f32.mrf.mxu0  ;;  %7866 = vmatmul.mubr.bf16.gmra.mxu0 %v17592_v42 }
 0x4ad   : > { %v7594_v35 = vpop.f32.mrf.mxu1  ;;  %8219 = vmatmul.mubr.bf16.gmra.mxu1 %v17593_v58  ;;  %8581 = vst [vmem:[%s15724_s25 + $0x420] sm:$0xff] %v7589_v0  ;;  %v7591_v40 = vadd.f32 %v7590_v36, %v7238_v44  ;;  %v7242_v1 = vadd.f32 %v7241_v24, %v15686_v29  ;;  %7875 = vmatprep.mubr.bf16.mxu0 %v17594_v63  ;;  %v17600_v63 = vld [vmem:[#allocation51_spill] sm:$0xff] }
 0x4ae   : > { %8228 = vmatprep.mubr.bf16.mxu1 %v17595_v31  ;;  %v7243_v3 = vpop.f32.mrf.mxu0  ;;  %v17601_v31 = vld [vmem:[#allocation64_spill] sm:$0xff] }
 0x4af   : > { %v7596_v49 = vpop.f32.mrf.mxu1  ;;  %8582 = vst [vmem:[%s15724_s25 + $0x428] sm:$0xff] %v7591_v40  ;;  %v7595_v56 = vadd.f32 %v7594_v35, %v7242_v1  ;;  %v7244_v14 = vadd.f32 %v7243_v3, %v15715_v16 }
 0x4b0   : > { %v7245_v13 = vpop.f32.mrf.mxu0 }
 0x4b1   : > { %v7598_v46 = vpop.f32.mrf.mxu1  ;;  %8585 = vst [vmem:[%s15724_s25 + $0x440] sm:$0xff] %v7595_v56  ;;  %v7597_v38 = vadd.f32 %v7596_v49, %v7244_v14  ;;  %v7246_v39 = vadd.f32 %v7245_v13, %v15686_v29  ;;  %v17602_v56 = vld [vmem:[#allocation93_spill] sm:$0xff]  ;;  %v17603_v14 = vld [vmem:[#allocation98_spill] sm:$0xff] }
 0x4b2   : > { %v7247_v57 = vpop.f32.mrf.mxu0 }
 0x4b3   : > { %v7600_v61 = vpop.f32.mrf.mxu1  ;;  %8586 = vst [vmem:[%s15724_s25 + $0x448] sm:$0xff] %v7597_v38  ;;  %v7599_v9 = vadd.f32 %v7598_v46, %v7246_v39  ;;  %v7248_v62 = vadd.f32 %v7247_v57, %v15715_v16 }
 0x4b4   : > { %v7251_v53 = vpop.f32.mrf.mxu0  ;;  %7876 = vmatmul.mubr.bf16.gmra.mxu0 %v17596_v12 }
 0x4b5   : > { %v7604_v11 = vpop.f32.mrf.mxu1  ;;  %8229 = vmatmul.mubr.bf16.gmra.mxu1 %v17597_v17  ;;  %8589 = vst [vmem:[%s15724_s25 + $0x460] sm:$0xff] %v7599_v9  ;;  %v7601_v28 = vadd.f32 %v7600_v61, %v7248_v62  ;;  %v7252_v41 = vadd.f32 %v7251_v53, %v15686_v29  ;;  %7885 = vmatprep.mubr.bf16.mxu0 %v17598_v34  ;;  %v17604_v34 = vld [vmem:[#allocation56_spill] sm:$0xff] }
 0x4b6   : > { %8238 = vmatprep.mubr.bf16.mxu1 %v17599_v20  ;;  %v7253_v50 = vpop.f32.mrf.mxu0  ;;  %v17605_v20 = vld [vmem:[#allocation58_spill] sm:$0xff] }
 0x4b7   : > { %v7606_v55 = vpop.f32.mrf.mxu1  ;;  %8590 = vst [vmem:[%s15724_s25 + $0x468] sm:$0xff] %v7601_v28  ;;  %v7605_v33 = vadd.f32 %v7604_v11, %v7252_v41  ;;  %v7254_v59 = vadd.f32 %v7253_v50, %v15715_v16 }
 0x4b8   : > { %v7255_v60 = vpop.f32.mrf.mxu0 }
 0x4b9   : > { %v7608_v36 = vpop.f32.mrf.mxu1  ;;  %8593 = vst [vmem:[%s15724_s25 + $0x480] sm:$0xff] %v7605_v33  ;;  %v7607_v0 = vadd.f32 %v7606_v55, %v7254_v59  ;;  %v7256_v44 = vadd.f32 %v7255_v60, %v15686_v29  ;;  %v17606_v33 = vld [vmem:[#allocation96_spill] sm:$0xff] }
 0x4ba   : > { %v7257_v24 = vpop.f32.mrf.mxu0  ;;  %v17607_v59 = vld [vmem:[#allocation100_spill] sm:$0xff] }
 0x4bb   : > { %v7610_v35 = vpop.f32.mrf.mxu1  ;;  %8594 = vst [vmem:[%s15724_s25 + $0x488] sm:$0xff] %v7607_v0  ;;  %v7609_v42 = vadd.f32 %v7608_v36, %v7256_v44  ;;  %v7258_v58 = vadd.f32 %v7257_v24, %v15715_v16 }
 0x4bc   : > { %v7261_v40 = vpop.f32.mrf.mxu0  ;;  %7886 = vmatmul.mubr.bf16.gmra.mxu0 %v17600_v63 }
 0x4bd   : > { %v7614_v1 = vpop.f32.mrf.mxu1  ;;  %8239 = vmatmul.mubr.bf16.gmra.mxu1 %v17601_v31  ;;  %8597 = vst [vmem:[%s15724_s25 + $0x4a0] sm:$0xff] %v7609_v42  ;;  %v7611_v3 = vadd.f32 %v7610_v35, %v7258_v58  ;;  %v7262_v49 = vadd.f32 %v7261_v40, %v15686_v29  ;;  %7895 = vmatprep.mubr.bf16.mxu0 %v17602_v56  ;;  %v17608_v56 = vld [vmem:[#allocation33_spill] sm:$0xff] }
 0x4be   : > { %8248 = vmatprep.mubr.bf16.mxu1 %v17603_v14  ;;  %v7263_v13 = vpop.f32.mrf.mxu0  ;;  %v17609_v14 = vld [vmem:[#allocation38_spill] sm:$0xff] }
 0x4bf   : > { %v7616_v46 = vpop.f32.mrf.mxu1  ;;  %8598 = vst [vmem:[%s15724_s25 + $0x4a8] sm:$0xff] %v7611_v3  ;;  %v7615_v38 = vadd.f32 %v7614_v1, %v7262_v49  ;;  %v7264_v39 = vadd.f32 %v7263_v13, %v15715_v16 }
 0x4c0   : > { %v7265_v57 = vpop.f32.mrf.mxu0 }
 0x4c1   : > { %v7618_v61 = vpop.f32.mrf.mxu1  ;;  %8601 = vst [vmem:[%s15724_s25 + $0x4c0] sm:$0xff] %v7615_v38  ;;  %v7617_v9 = vadd.f32 %v7616_v46, %v7264_v39  ;;  %v7266_v62 = vadd.f32 %v7265_v57, %v15686_v29  ;;  %v17610_v38 = vld [vmem:[#allocation50_spill] sm:$0xff]  ;;  %v17611_v39 = vld [vmem:[#allocation3_spill] sm:$0xff] }
 0x4c2   : > { %v7267_v53 = vpop.f32.mrf.mxu0 }
 0x4c3   : > { %v7620_v11 = vpop.f32.mrf.mxu1  ;;  %8602 = vst [vmem:[%s15724_s25 + $0x4c8] sm:$0xff] %v7617_v9  ;;  %v7619_v12 = vadd.f32 %v7618_v61, %v7266_v62  ;;  %v7268_v17 = vadd.f32 %v7267_v53, %v15715_v16 }
 0x4c4   : > { %v7271_v28 = vpop.f32.mrf.mxu0  ;;  %7896 = vmatmul.mubr.bf16.gmra.mxu0 %v17604_v34 }
 0x4c5   : > { %v7624_v41 = vpop.f32.mrf.mxu1  ;;  %8249 = vmatmul.mubr.bf16.gmra.mxu1 %v17605_v20  ;;  %8605 = vst [vmem:[%s15724_s25 + $0x4e0] sm:$0xff] %v7619_v12  ;;  %v7621_v50 = vadd.f32 %v7620_v11, %v7268_v17  ;;  %v7272_v55 = vadd.f32 %v7271_v28, %v15686_v29  ;;  %7905 = vmatprep.mubr.bf16.mxu0 %v17606_v33  ;;  %v17612_v33 = vld [vmem:[#allocation60_spill] sm:$0xff] }
 0x4c6   : > { %8258 = vmatprep.mubr.bf16.mxu1 %v17607_v59  ;;  %v7273_v60 = vpop.f32.mrf.mxu0  ;;  %v17613_v59 = vld [vmem:[#allocation73_spill] sm:$0xff] }
 0x4c7   : > { %v7626_v36 = vpop.f32.mrf.mxu1  ;;  %8606 = vst [vmem:[%s15724_s25 + $0x4e8] sm:$0xff] %v7621_v50  ;;  %v7625_v0 = vadd.f32 %v7624_v41, %v7272_v55  ;;  %v7274_v44 = vadd.f32 %v7273_v60, %v15715_v16 }
 0x4c8   : > { %v7275_v24 = vpop.f32.mrf.mxu0 }
 0x4c9   : > { %v7628_v35 = vpop.f32.mrf.mxu1  ;;  %8609 = vst [vmem:[%s15724_s25 + $0x500] sm:$0xff] %v7625_v0  ;;  %v7627_v42 = vadd.f32 %v7626_v36, %v7274_v44  ;;  %v7276_v58 = vadd.f32 %v7275_v24, %v15686_v29  ;;  %v17614_v0 = vld [vmem:[#allocation91_spill] sm:$0xff] }
 0x4ca   : > { %v7277_v40 = vpop.f32.mrf.mxu0  ;;  %v17615_v44 = vld [vmem:[#allocation75_spill] sm:$0xff] }
 0x4cb   : > { %v7630_v1 = vpop.f32.mrf.mxu1  ;;  %8610 = vst [vmem:[%s15724_s25 + $0x508] sm:$0xff] %v7627_v42  ;;  %v7629_v63 = vadd.f32 %v7628_v35, %v7276_v58  ;;  %v7278_v31 = vadd.f32 %v7277_v40, %v15715_v16 }
 0x4cc   : > { %v7281_v3 = vpop.f32.mrf.mxu0  ;;  %7906 = vmatmul.mubr.bf16.gmra.mxu0 %v17608_v56 }
 0x4cd   : > { %v7634_v49 = vpop.f32.mrf.mxu1  ;;  %8259 = vmatmul.mubr.bf16.gmra.mxu1 %v17609_v14  ;;  %8613 = vst [vmem:[%s15724_s25 + $0x520] sm:$0xff] %v7629_v63  ;;  %v7631_v13 = vadd.f32 %v7630_v1, %v7278_v31  ;;  %v7282_v46 = vadd.f32 %v7281_v3, %v15686_v29  ;;  %7915 = vmatprep.mubr.bf16.mxu0 %v17610_v38  ;;  %v17616_v38 = vld [vmem:[#allocation39_spill] sm:$0xff] }
 0x4ce   : > { %8268 = vmatprep.mubr.bf16.mxu1 %v17611_v39  ;;  %v7283_v57 = vpop.f32.mrf.mxu0  ;;  %v17617_v39 = vld [vmem:[#allocation69_spill] sm:$0xff] }
 0x4cf   : > { %v7636_v61 = vpop.f32.mrf.mxu1  ;;  %8614 = vst [vmem:[%s15724_s25 + $0x528] sm:$0xff] %v7631_v13  ;;  %v7635_v9 = vadd.f32 %v7634_v49, %v7282_v46  ;;  %v7284_v62 = vadd.f32 %v7283_v57, %v15715_v16 }
 0x4d0   : > { %v7285_v53 = vpop.f32.mrf.mxu0 }
 0x4d1   : > { %v7638_v11 = vpop.f32.mrf.mxu1  ;;  %8617 = vst [vmem:[%s15724_s25 + $0x540] sm:$0xff] %v7635_v9  ;;  %v7637_v12 = vadd.f32 %v7636_v61, %v7284_v62  ;;  %v7286_v17 = vadd.f32 %v7285_v53, %v15686_v29  ;;  %v17618_v9 = vld [vmem:[#allocation99_spill] sm:$0xff]  ;;  %v17619_v62 = vld [vmem:[#allocation8_spill] sm:$0xff] }
 0x4d2   : > { %v7287_v28 = vpop.f32.mrf.mxu0 }
 0x4d3   : > { %v7640_v41 = vpop.f32.mrf.mxu1  ;;  %8618 = vst [vmem:[%s15724_s25 + $0x548] sm:$0xff] %v7637_v12  ;;  %v7639_v34 = vadd.f32 %v7638_v11, %v7286_v17  ;;  %v7288_v20 = vadd.f32 %v7287_v28, %v15715_v16 }
 0x4d4   : > { %v7291_v50 = vpop.f32.mrf.mxu0  ;;  %7916 = vmatmul.mubr.bf16.gmra.mxu0 %v17612_v33 }
 0x4d5   : > { %v7644_v55 = vpop.f32.mrf.mxu1  ;;  %8269 = vmatmul.mubr.bf16.gmra.mxu1 %v17613_v59  ;;  %8621 = vst [vmem:[%s15724_s25 + $0x560] sm:$0xff] %v7639_v34  ;;  %v7641_v60 = vadd.f32 %v7640_v41, %v7288_v20  ;;  %v7292_v36 = vadd.f32 %v7291_v50, %v15686_v29  ;;  %7925 = vmatprep.mubr.bf16.mxu0 %v17614_v0  ;;  %v17620_v0 = vld [vmem:[#allocation45_spill] sm:$0xff] }
 0x4d6   : > { %8278 = vmatprep.mubr.bf16.mxu1 %v17615_v44  ;;  %v7293_v24 = vpop.f32.mrf.mxu0  ;;  %v17621_v44 = vld [vmem:[#allocation27_spill] sm:$0xff] }
 0x4d7   : > { %v7646_v35 = vpop.f32.mrf.mxu1  ;;  %8622 = vst [vmem:[%s15724_s25 + $0x568] sm:$0xff] %v7641_v60  ;;  %v7645_v42 = vadd.f32 %v7644_v55, %v7292_v36  ;;  %v7294_v58 = vadd.f32 %v7293_v24, %v15715_v16 }
 0x4d8   : > { %v7295_v40 = vpop.f32.mrf.mxu0 }
 0x4d9   : > { %v7648_v1 = vpop.f32.mrf.mxu1  ;;  %8625 = vst [vmem:[%s15724_s25 + $0x580] sm:$0xff] %v7645_v42  ;;  %v7647_v63 = vadd.f32 %v7646_v35, %v7294_v58  ;;  %v7296_v31 = vadd.f32 %v7295_v40, %v15686_v29  ;;  %v17622_v42 = vld [vmem:[#allocation30_spill] sm:$0xff]  ;;  %v17623_v58 = vld [vmem:[#allocation48_spill] sm:$0xff] }
 0x4da   : > { %v7297_v3 = vpop.f32.mrf.mxu0 }
 0x4db   : > { %v7650_v49 = vpop.f32.mrf.mxu1  ;;  %8626 = vst [vmem:[%s15724_s25 + $0x588] sm:$0xff] %v7647_v63  ;;  %v7649_v56 = vadd.f32 %v7648_v1, %v7296_v31  ;;  %v7298_v14 = vadd.f32 %v7297_v3, %v15715_v16 }
 0x4dc   : > { %v7301_v13 = vpop.f32.mrf.mxu0  ;;  %7926 = vmatmul.mubr.bf16.gmra.mxu0 %v17616_v38 }
 0x4dd   : > { %v7654_v46 = vpop.f32.mrf.mxu1  ;;  %8279 = vmatmul.mubr.bf16.gmra.mxu1 %v17617_v39  ;;  %8629 = vst [vmem:[%s15724_s25 + $0x5a0] sm:$0xff] %v7649_v56  ;;  %v7651_v57 = vadd.f32 %v7650_v49, %v7298_v14  ;;  %v7302_v61 = vadd.f32 %v7301_v13, %v15686_v29  ;;  %7935 = vmatprep.mubr.bf16.mxu0 %v17618_v9  ;;  %v17624_v9 = vld [vmem:[#allocation79_spill] sm:$0xff] }
 0x4de   : > { %8288 = vmatprep.mubr.bf16.mxu1 %v17619_v62  ;;  %v7303_v53 = vpop.f32.mrf.mxu0  ;;  %v17625_v62 = vld [vmem:[#allocation81_spill] sm:$0xff] }
 0x4df   : > { %v7656_v11 = vpop.f32.mrf.mxu1  ;;  %8630 = vst [vmem:[%s15724_s25 + $0x5a8] sm:$0xff] %v7651_v57  ;;  %v7655_v12 = vadd.f32 %v7654_v46, %v7302_v61  ;;  %v7304_v17 = vadd.f32 %v7303_v53, %v15715_v16 }
 0x4e0   : > { %v7305_v28 = vpop.f32.mrf.mxu0 }
 0x4e1   : > { %v7658_v41 = vpop.f32.mrf.mxu1  ;;  %8633 = vst [vmem:[%s15724_s25 + $0x5c0] sm:$0xff] %v7655_v12  ;;  %v7657_v34 = vadd.f32 %v7656_v11, %v7304_v17  ;;  %v7306_v20 = vadd.f32 %v7305_v28, %v15686_v29  ;;  %v17626_v12 = vld [vmem:[#allocation14_spill] sm:$0xff] }
 0x4e2   : > { %v7307_v50 = vpop.f32.mrf.mxu0  ;;  %v17627_v17 = vld [vmem:[#allocation6_spill] sm:$0xff] }
 0x4e3   : > { %v7660_v55 = vpop.f32.mrf.mxu1  ;;  %8634 = vst [vmem:[%s15724_s25 + $0x5c8] sm:$0xff] %v7657_v34  ;;  %v7659_v33 = vadd.f32 %v7658_v41, %v7306_v20  ;;  %v7308_v59 = vadd.f32 %v7307_v50, %v15715_v16 }
 0x4e4   : > { %v7311_v60 = vpop.f32.mrf.mxu0  ;;  %7936 = vmatmul.mubr.bf16.gmra.mxu0 %v17620_v0 }
 0x4e5   : > { %v7664_v36 = vpop.f32.mrf.mxu1  ;;  %8289 = vmatmul.mubr.bf16.gmra.mxu1 %v17621_v44  ;;  %8637 = vst [vmem:[%s15724_s25 + $0x5e0] sm:$0xff] %v7659_v33  ;;  %v7661_v24 = vadd.f32 %v7660_v55, %v7308_v59  ;;  %v7312_v35 = vadd.f32 %v7311_v60, %v15686_v29  ;;  %7945 = vmatprep.mubr.bf16.mxu0 %v17622_v42  ;;  %v17628_v42 = vld [vmem:[#allocation83_spill] sm:$0xff] }
 0x4e6   : > { %8298 = vmatprep.mubr.bf16.mxu1 %v17623_v58  ;;  %v7313_v40 = vpop.f32.mrf.mxu0  ;;  %v17629_v58 = vld [vmem:[#allocation106_spill] sm:$0xff] }
 0x4e7   : > { %v7666_v1 = vpop.f32.mrf.mxu1  ;;  %8638 = vst [vmem:[%s15724_s25 + $0x5e8] sm:$0xff] %v7661_v24  ;;  %v7665_v63 = vadd.f32 %v7664_v36, %v7312_v35  ;;  %v7314_v31 = vadd.f32 %v7313_v40, %v15715_v16 }
 0x4e8   : > { %v7315_v3 = vpop.f32.mrf.mxu0 }
 0x4e9   : > { %v7668_v49 = vpop.f32.mrf.mxu1  ;;  %8641 = vst [vmem:[%s15724_s25 + $0x600] sm:$0xff] %v7665_v63  ;;  %v7667_v56 = vadd.f32 %v7666_v1, %v7314_v31  ;;  %v7316_v14 = vadd.f32 %v7315_v3, %v15686_v29  ;;  %v17630_v63 = vld [vmem:[#allocation105_spill] sm:$0xff]  ;;  %v17631_v31 = vld [vmem:[#allocation107_spill] sm:$0xff] }
 0x4ea   : > { %v7317_v13 = vpop.f32.mrf.mxu0 }
 0x4eb   : > { %v7670_v46 = vpop.f32.mrf.mxu1  ;;  %8642 = vst [vmem:[%s15724_s25 + $0x608] sm:$0xff] %v7667_v56  ;;  %v7669_v38 = vadd.f32 %v7668_v49, %v7316_v14  ;;  %v7318_v39 = vadd.f32 %v7317_v13, %v15715_v16 }
 0x4ec   : > { %v7321_v57 = vpop.f32.mrf.mxu0  ;;  %7946 = vmatmul.mubr.bf16.gmra.mxu0 %v17624_v9 }
 0x4ed   : > { %v7674_v61 = vpop.f32.mrf.mxu1  ;;  %8299 = vmatmul.mubr.bf16.gmra.mxu1 %v17625_v62  ;;  %8645 = vst [vmem:[%s15724_s25 + $0x620] sm:$0xff] %v7669_v38  ;;  %v7671_v53 = vadd.f32 %v7670_v46, %v7318_v39  ;;  %v7322_v11 = vadd.f32 %v7321_v57, %v15686_v29  ;;  %7955 = vmatprep.mubr.bf16.mxu0 %v17626_v12  ;;  %v17632_v12 = vld [vmem:[#allocation63_spill] sm:$0xff] }
 0x4ee   : > { %8308 = vmatprep.mubr.bf16.mxu1 %v17627_v17  ;;  %v7323_v28 = vpop.f32.mrf.mxu0  ;;  %v17633_v17 = vld [vmem:[#allocation92_spill] sm:$0xff] }
 0x4ef   : > { %v7676_v41 = vpop.f32.mrf.mxu1  ;;  %8646 = vst [vmem:[%s15724_s25 + $0x628] sm:$0xff] %v7671_v53  ;;  %v7675_v34 = vadd.f32 %v7674_v61, %v7322_v11  ;;  %v7324_v20 = vadd.f32 %v7323_v28, %v15715_v16 }
 0x4f0   : > { %v7325_v50 = vpop.f32.mrf.mxu0 }
 0x4f1   : > { %v7678_v55 = vpop.f32.mrf.mxu1  ;;  %8649 = vst [vmem:[%s15724_s25 + $0x640] sm:$0xff] %v7675_v34  ;;  %v7677_v33 = vadd.f32 %v7676_v41, %v7324_v20  ;;  %v7326_v59 = vadd.f32 %v7325_v50, %v15686_v29  ;;  %v17634_v34 = vld [vmem:[#allocation102_spill] sm:$0xff]  ;;  %v17635_v20 = vld [vmem:[#allocation59_spill] sm:$0xff] }
 0x4f2   : > { %v7327_v60 = vpop.f32.mrf.mxu0 }
 0x4f3   : > { %v7680_v36 = vpop.f32.mrf.mxu1  ;;  %8650 = vst [vmem:[%s15724_s25 + $0x648] sm:$0xff] %v7677_v33  ;;  %v7679_v0 = vadd.f32 %v7678_v55, %v7326_v59  ;;  %v7328_v44 = vadd.f32 %v7327_v60, %v15715_v16 }
 0x4f4   : > { %v7331_v24 = vpop.f32.mrf.mxu0  ;;  %7956 = vmatmul.mubr.bf16.gmra.mxu0 %v17628_v42 }
 0x4f5   : > { %v7684_v35 = vpop.f32.mrf.mxu1  ;;  %8309 = vmatmul.mubr.bf16.gmra.mxu1 %v17629_v58  ;;  %8653 = vst [vmem:[%s15724_s25 + $0x660] sm:$0xff] %v7679_v0  ;;  %v7681_v40 = vadd.f32 %v7680_v36, %v7328_v44  ;;  %v7332_v1 = vadd.f32 %v7331_v24, %v15686_v29  ;;  %7965 = vmatprep.mubr.bf16.mxu0 %v17630_v63  ;;  %v17636_v63 = vld [vmem:[#allocation95_spill] sm:$0xff] }
 0x4f6   : > { %8318 = vmatprep.mubr.bf16.mxu1 %v17631_v31  ;;  %v7333_v3 = vpop.f32.mrf.mxu0  ;;  %v17637_v31 = vld [vmem:[#allocation97_spill] sm:$0xff] }
 0x4f7   : > { %v7686_v49 = vpop.f32.mrf.mxu1  ;;  %8654 = vst [vmem:[%s15724_s25 + $0x668] sm:$0xff] %v7681_v40  ;;  %v7685_v56 = vadd.f32 %v7684_v35, %v7332_v1  ;;  %v7334_v14 = vadd.f32 %v7333_v3, %v15715_v16 }
 0x4f8   : > { %v7335_v13 = vpop.f32.mrf.mxu0 }
 0x4f9   : > { %v7688_v46 = vpop.f32.mrf.mxu1  ;;  %8657 = vst [vmem:[%s15724_s25 + $0x680] sm:$0xff] %v7685_v56  ;;  %v7687_v38 = vadd.f32 %v7686_v49, %v7334_v14  ;;  %v7336_v39 = vadd.f32 %v7335_v13, %v15686_v29  ;;  %v17638_v56 = vld [vmem:[#allocation94_spill] sm:$0xff] }
 0x4fa   : > { %v7337_v57 = vpop.f32.mrf.mxu0  ;;  %v17639_v14 = vld [vmem:[#allocation10_spill] sm:$0xff] }
 0x4fb   : > { %v7690_v61 = vpop.f32.mrf.mxu1  ;;  %8658 = vst [vmem:[%s15724_s25 + $0x688] sm:$0xff] %v7687_v38  ;;  %v7689_v9 = vadd.f32 %v7688_v46, %v7336_v39  ;;  %v7338_v62 = vadd.f32 %v7337_v57, %v15715_v16 }
 0x4fc   : > { %v7341_v53 = vpop.f32.mrf.mxu0  ;;  %7966 = vmatmul.mubr.bf16.gmra.mxu0 %v17632_v12 }
 0x4fd   : > { %v7694_v11 = vpop.f32.mrf.mxu1  ;;  %8319 = vmatmul.mubr.bf16.gmra.mxu1 %v17633_v17  ;;  %8661 = vst [vmem:[%s15724_s25 + $0x6a0] sm:$0xff] %v7689_v9  ;;  %v7691_v28 = vadd.f32 %v7690_v61, %v7338_v62  ;;  %v7342_v41 = vadd.f32 %v7341_v53, %v15686_v29  ;;  %7975 = vmatprep.mubr.bf16.mxu0 %v17634_v34  ;;  %v17640_v34 = vld [vmem:[#allocation62_spill] sm:$0xff] }
 0x4fe   : > { %8328 = vmatprep.mubr.bf16.mxu1 %v17635_v20  ;;  %v7343_v50 = vpop.f32.mrf.mxu0  ;;  %v17641_v20 = vld [vmem:[#allocation5_spill] sm:$0xff] }
 0x4ff   : > { %v7696_v55 = vpop.f32.mrf.mxu1  ;;  %8662 = vst [vmem:[%s15724_s25 + $0x6a8] sm:$0xff] %v7691_v28  ;;  %v7695_v33 = vadd.f32 %v7694_v11, %v7342_v41  ;;  %v7344_v59 = vadd.f32 %v7343_v50, %v15715_v16 }
 0x500   : > { %v7345_v60 = vpop.f32.mrf.mxu0 }
 0x501   : > { %v7698_v36 = vpop.f32.mrf.mxu1  ;;  %8665 = vst [vmem:[%s15724_s25 + $0x6c0] sm:$0xff] %v7695_v33  ;;  %v7697_v0 = vadd.f32 %v7696_v55, %v7344_v59  ;;  %v7346_v44 = vadd.f32 %v7345_v60, %v15686_v29  ;;  %v17642_v33 = vld [vmem:[#allocation7_spill] sm:$0xff]  ;;  %v17643_v59 = vld [vmem:[#allocation66_spill] sm:$0xff] }
 0x502   : > { %v7347_v24 = vpop.f32.mrf.mxu0 }
 0x503   : > { %v7700_v35 = vpop.f32.mrf.mxu1  ;;  %8666 = vst [vmem:[%s15724_s25 + $0x6c8] sm:$0xff] %v7697_v0  ;;  %v7699_v42 = vadd.f32 %v7698_v36, %v7346_v44  ;;  %v7348_v58 = vadd.f32 %v7347_v24, %v15715_v16 }
 0x504   : > { %v7351_v40 = vpop.f32.mrf.mxu0  ;;  %7976 = vmatmul.mubr.bf16.gmra.mxu0 %v17636_v63 }
 0x505   : > { %v7704_v1 = vpop.f32.mrf.mxu1  ;;  %8329 = vmatmul.mubr.bf16.gmra.mxu1 %v17637_v31  ;;  %8669 = vst [vmem:[%s15724_s25 + $0x6e0] sm:$0xff] %v7699_v42  ;;  %v7701_v3 = vadd.f32 %v7700_v35, %v7348_v58  ;;  %v7352_v49 = vadd.f32 %v7351_v40, %v15686_v29  ;;  %7985 = vmatprep.mubr.bf16.mxu0 %v17638_v56  ;;  %v17644_v56 = vld [vmem:[#allocation54_spill] sm:$0xff] }
 0x506   : > { %8338 = vmatprep.mubr.bf16.mxu1 %v17639_v14  ;;  %v7353_v13 = vpop.f32.mrf.mxu0  ;;  %v17645_v14 = vld [vmem:[#allocation37_spill] sm:$0xff] }
 0x507   : > { %v7706_v46 = vpop.f32.mrf.mxu1  ;;  %8670 = vst [vmem:[%s15724_s25 + $0x6e8] sm:$0xff] %v7701_v3  ;;  %v7705_v38 = vadd.f32 %v7704_v1, %v7352_v49  ;;  %v7354_v39 = vadd.f32 %v7353_v13, %v15715_v16 }
 0x508   : > { %v7355_v57 = vpop.f32.mrf.mxu0 }
 0x509   : > { %v7708_v61 = vpop.f32.mrf.mxu1  ;;  %8673 = vst [vmem:[%s15724_s25 + $0x700] sm:$0xff] %v7705_v38  ;;  %v7707_v9 = vadd.f32 %v7706_v46, %v7354_v39  ;;  %v7356_v62 = vadd.f32 %v7355_v57, %v15686_v29  ;;  %v17646_v38 = vld [vmem:[#allocation19_spill] sm:$0xff] }
 0x50a   : > { %v7357_v53 = vpop.f32.mrf.mxu0  ;;  %v17647_v39 = vld [vmem:[#allocation103_spill] sm:$0xff] }
 0x50b   : > { %v7710_v11 = vpop.f32.mrf.mxu1  ;;  %8674 = vst [vmem:[%s15724_s25 + $0x708] sm:$0xff] %v7707_v9  ;;  %v7709_v12 = vadd.f32 %v7708_v61, %v7356_v62  ;;  %v7358_v17 = vadd.f32 %v7357_v53, %v15715_v16 }
 0x50c   : > { %v7361_v28 = vpop.f32.mrf.mxu0  ;;  %7986 = vmatmul.mubr.bf16.gmra.mxu0 %v17640_v34 }
 0x50d   : > { %v7714_v41 = vpop.f32.mrf.mxu1  ;;  %8339 = vmatmul.mubr.bf16.gmra.mxu1 %v17641_v20  ;;  %8677 = vst [vmem:[%s15724_s25 + $0x720] sm:$0xff] %v7709_v12  ;;  %v7711_v50 = vadd.f32 %v7710_v11, %v7358_v17  ;;  %v7362_v55 = vadd.f32 %v7361_v28, %v15686_v29  ;;  %7995 = vmatprep.mubr.bf16.mxu0 %v17642_v33  ;;  %v17648_v33 = vld [vmem:[#allocation40_spill] sm:$0xff] }
 0x50e   : > { %8348 = vmatprep.mubr.bf16.mxu1 %v17643_v59  ;;  %v7363_v60 = vpop.f32.mrf.mxu0  ;;  %v17649_v59 = vld [vmem:[#allocation43_spill] sm:$0xff] }
 0x50f   : > { %v7716_v36 = vpop.f32.mrf.mxu1  ;;  %8678 = vst [vmem:[%s15724_s25 + $0x728] sm:$0xff] %v7711_v50  ;;  %v7715_v0 = vadd.f32 %v7714_v41, %v7362_v55  ;;  %v7364_v44 = vadd.f32 %v7363_v60, %v15715_v16 }
 0x510   : > { %v7365_v24 = vpop.f32.mrf.mxu0 }
 0x511   : > { %v7718_v35 = vpop.f32.mrf.mxu1  ;;  %8681 = vst [vmem:[%s15724_s25 + $0x740] sm:$0xff] %v7715_v0  ;;  %v7717_v42 = vadd.f32 %v7716_v36, %v7364_v44  ;;  %v7366_v58 = vadd.f32 %v7365_v24, %v15686_v29  ;;  %v17650_v0 = vld [vmem:[#allocation87_spill] sm:$0xff]  ;;  %v17651_v44 = vld [vmem:[#allocation112_spill] sm:$0xff] }
 0x512   : > { %v7367_v40 = vpop.f32.mrf.mxu0 }
 0x513   : > { %v7720_v1 = vpop.f32.mrf.mxu1  ;;  %8682 = vst [vmem:[%s15724_s25 + $0x748] sm:$0xff] %v7717_v42  ;;  %v7719_v63 = vadd.f32 %v7718_v35, %v7366_v58  ;;  %v7368_v31 = vadd.f32 %v7367_v40, %v15715_v16 }
 0x514   : > { %v7371_v3 = vpop.f32.mrf.mxu0  ;;  %7996 = vmatmul.mubr.bf16.gmra.mxu0 %v17644_v56 }
 0x515   : > { %v7724_v49 = vpop.f32.mrf.mxu1  ;;  %8349 = vmatmul.mubr.bf16.gmra.mxu1 %v17645_v14  ;;  %8685 = vst [vmem:[%s15724_s25 + $0x760] sm:$0xff] %v7719_v63  ;;  %v7721_v13 = vadd.f32 %v7720_v1, %v7368_v31  ;;  %v7372_v46 = vadd.f32 %v7371_v3, %v15686_v29  ;;  %8005 = vmatprep.mubr.bf16.mxu0 %v17646_v38  ;;  %v10600_v3 = vld [vmem:[%s16613_s7] sm:$0xf] }
 0x516   : > { %8358 = vmatprep.mubr.bf16.mxu1 %v17647_v39  ;;  %v7373_v57 = vpop.f32.mrf.mxu0 }
 0x517   : > { %v7726_v61 = vpop.f32.mrf.mxu1  ;;  %8686 = vst [vmem:[%s15724_s25 + $0x768] sm:$0xff] %v7721_v13  ;;  %v7725_v9 = vadd.f32 %v7724_v49, %v7372_v46  ;;  %v7374_v62 = vadd.f32 %v7373_v57, %v15715_v16  ;;  %v17652_v49 = vld [vmem:[#allocation49_spill] sm:$0xff] }
 0x518   : > { %v7375_v53 = vpop.f32.mrf.mxu0  ;;  %v17653_v56 = vsub.s32 2, %v17652_v49  ;;  %v17654_v57 = vsub.s32 3, %v17652_v49 }
 0x519   : > { %v7728_v11 = vpop.f32.mrf.mxu1  ;;  %8689 = vst [vmem:[%s15724_s25 + $0x780] sm:$0xff] %v7725_v9  ;;  %v7727_v12 = vadd.f32 %v7726_v61, %v7374_v62  ;;  %v7376_v17 = vadd.f32 %v7375_v53, %v15686_v29  ;;  %v17655_v9 = vld [vmem:[#allocation101_spill] sm:$0xff]  ;;  %v17656_v53 = vld [vmem:[#allocation74_spill] sm:$0xff] }
 0x51a   : > { %v7377_v28 = vpop.f32.mrf.mxu0  ;;  %v16295_v14 = vrot.slane %v10600_v3, %v17653_v56  ;;  %v16301_v61 = vrot.slane %v10600_v3, %v17654_v57 }
 0x51b   : > { %v7730_v41 = vpop.f32.mrf.mxu1  ;;  %8690 = vst [vmem:[%s15724_s25 + $0x788] sm:$0xff] %v7727_v12  ;;  %v7729_v34 = vadd.f32 %v7728_v11, %v7376_v17  ;;  %v7378_v20 = vadd.f32 %v7377_v28, %v15715_v16 }
 0x51c   : > { %v7381_v50 = vpop.f32.mrf.mxu0  ;;  %8006 = vmatmul.mubr.bf16.gmra.mxu0 %v17648_v33 }
 0x51d   : > { %v7734_v55 = vpop.f32.mrf.mxu1  ;;  %8359 = vmatmul.mubr.bf16.gmra.mxu1 %v17649_v59  ;;  %8693 = vst [vmem:[%s15724_s25 + $0x7a0] sm:$0xff] %v7729_v34  ;;  %v7731_v60 = vadd.f32 %v7730_v41, %v7378_v20  ;;  %v7382_v36 = vadd.f32 %v7381_v50, %v15686_v29  ;;  %8015 = vmatprep.mubr.bf16.mxu0 %v17650_v0 }
 0x51e   : > { %8368 = vmatprep.mubr.bf16.mxu1 %v17651_v44  ;;  %v7383_v24 = vpop.f32.mrf.mxu0 }
 0x51f   : > { %v7736_v35 = vpop.f32.mrf.mxu1  ;;  %8694 = vst [vmem:[%s15724_s25 + $0x7a8] sm:$0xff] %v7731_v60  ;;  %v7735_v42 = vadd.f32 %v7734_v55, %v7382_v36  ;;  %v7384_v58 = vadd.f32 %v7383_v24, %v15715_v16  ;;  %v17657_v24 = vld [vmem:[#allocation53_spill] sm:$0xff] }
 0x520   : > { %v7385_v40 = vpop.f32.mrf.mxu0 }
 0x521   : > { %v7738_v1 = vpop.f32.mrf.mxu1  ;;  %8697 = vst [vmem:[%s15724_s25 + $0x7c0] sm:$0xff] %v7735_v42  ;;  %v7737_v63 = vadd.f32 %v7736_v35, %v7384_v58  ;;  %v7386_v31 = vadd.f32 %v7385_v40, %v15686_v29  ;;  %v17658_v35 = vld [vmem:[#allocation78_spill] sm:$0xff] }
 0x522   : > { %v7387_v13 = vpop.f32.mrf.mxu0 }
 0x523   : > { %v7740_v46 = vpop.f32.mrf.mxu1  ;;  %8698 = vst [vmem:[%s15724_s25 + $0x7c8] sm:$0xff] %v7737_v63  ;;  %v7739_v38 = vadd.f32 %v7738_v1, %v7386_v31  ;;  %v7388_v39 = vadd.f32 %v7387_v13, %v15715_v16 }
 0x524   : > { %v7777_v29 = vpop.f32.mrf.mxu0  ;;  %8016 = vmatmul.mubr.bf16.gmra.mxu0 %v17655_v9 }
 0x525   : > { %v8130_v62 = vpop.f32.mrf.mxu1  ;;  %8369 = vmatmul.mubr.bf16.gmra.mxu1 %v17656_v53  ;;  %8701 = vst [vmem:[%s15724_s25 + $0x7e0] sm:$0xff] %v7739_v38  ;;  %v7741_v11 = vadd.f32 %v7740_v46, %v7388_v39  ;;  %v7778_v12 = vadd.f32 %v7777_v29, %v16295_v14  ;;  %8025 = vmatprep.mubr.bf16.mxu0 %v15698_v45 }
 0x526   : > { %8378 = vmatprep.mubr.bf16.mxu1 %v15702_v30  ;;  %v7779_v16 = vpop.f32.mrf.mxu0 }
 0x527   : > { %v8132_v17 = vpop.f32.mrf.mxu1  ;;  %8702 = vst [vmem:[%s15724_s25 + $0x7e8] sm:$0xff] %v7741_v11  ;;  %v8131_v28 = vadd.f32 %v8130_v62, %v7778_v12  ;;  %v7780_v41 = vadd.f32 %v7779_v16, %v16301_v61 }
 0x528   : > { %v7781_v34 = vpop.f32.mrf.mxu0 }
 0x529   : > { %v8134_v20 = vpop.f32.mrf.mxu1  ;;  %8451 = vst [vmem:[%s15724_s25 + $0x10] sm:$0xff] %v8131_v28  ;;  %v8133_v50 = vadd.f32 %v8132_v17, %v7780_v41  ;;  %v7782_v55 = vadd.f32 %v7781_v34, %v16295_v14 }
 0x52a   : > { %v7783_v33 = vpop.f32.mrf.mxu0 }
 0x52b   : > { %v8136_v59 = vpop.f32.mrf.mxu1  ;;  %8452 = vst [vmem:[%s15724_s25 + $0x18] sm:$0xff] %v8133_v50  ;;  %v8135_v45 = vadd.f32 %v8134_v20, %v7782_v55  ;;  %v7784_v30 = vadd.f32 %v7783_v33, %v16301_v61 }
 0x52c   : > { %v7787_v60 = vpop.f32.mrf.mxu0  ;;  %8026 = vmatmul.mubr.bf16.gmra.mxu0 %v17545_v25 }
 0x52d   : > { %v8140_v36 = vpop.f32.mrf.mxu1  ;;  %8379 = vmatmul.mubr.bf16.gmra.mxu1 %v17546_v4  ;;  %8455 = vst [vmem:[%s15724_s25 + $0x30] sm:$0xff] %v8135_v45  ;;  %v8137_v0 = vadd.f32 %v8136_v59, %v7784_v30  ;;  %v7788_v44 = vadd.f32 %v7787_v60, %v16295_v14  ;;  %8035 = vmatprep.mubr.bf16.mxu0 %v17657_v24 }
 0x52e   : > { %8388 = vmatprep.mubr.bf16.mxu1 %v17658_v35  ;;  %v7789_v42 = vpop.f32.mrf.mxu0 }
 0x52f   : > { %v8142_v58 = vpop.f32.mrf.mxu1  ;;  %8456 = vst [vmem:[%s15724_s25 + $0x38] sm:$0xff] %v8137_v0  ;;  %v8141_v40 = vadd.f32 %v8140_v36, %v7788_v44  ;;  %v7790_v1 = vadd.f32 %v7789_v42, %v16301_v61 }
 0x530   : > { %v7791_v25 = vpop.f32.mrf.mxu0 }
 0x531   : > { %v8144_v63 = vpop.f32.mrf.mxu1  ;;  %8459 = vst [vmem:[%s15724_s25 + $0x50] sm:$0xff] %v8141_v40  ;;  %v8143_v4 = vadd.f32 %v8142_v58, %v7790_v1  ;;  %v7792_v31 = vadd.f32 %v7791_v25, %v16295_v14 }
 0x532   : > { %v7793_v3 = vpop.f32.mrf.mxu0 }
 0x533   : > { %v8146_v49 = vpop.f32.mrf.mxu1  ;;  %8460 = vst [vmem:[%s15724_s25 + $0x58] sm:$0xff] %v8143_v4  ;;  %v8145_v56 = vadd.f32 %v8144_v63, %v7792_v31  ;;  %v7794_v13 = vadd.f32 %v7793_v3, %v16301_v61 }
 0x534   : > { %v7797_v46 = vpop.f32.mrf.mxu0  ;;  %8036 = vmatmul.mubr.bf16.gmra.mxu0 %v17548_v27 }
 0x535   : > { %v8150_v38 = vpop.f32.mrf.mxu1  ;;  %8389 = vmatmul.mubr.bf16.gmra.mxu1 %v17549_v18  ;;  %8463 = vst [vmem:[%s15724_s25 + $0x70] sm:$0xff] %v8145_v56  ;;  %v8147_v39 = vadd.f32 %v8146_v49, %v7794_v13  ;;  %v7798_v57 = vadd.f32 %v7797_v46, %v16295_v14  ;;  %8045 = vmatprep.mubr.bf16.mxu0 %v15810_v52 }
 0x536   : > { %8398 = vmatprep.mubr.bf16.mxu1 %v15816_v22  ;;  %v7799_v29 = vpop.f32.mrf.mxu0 }
 0x537   : > { %v8152_v9 = vpop.f32.mrf.mxu1  ;;  %8464 = vst [vmem:[%s15724_s25 + $0x78] sm:$0xff] %v8147_v39  ;;  %v8151_v62 = vadd.f32 %v8150_v38, %v7798_v57  ;;  %v7800_v53 = vadd.f32 %v7799_v29, %v16301_v61 }
 0x538   : > { %v7801_v27 = vpop.f32.mrf.mxu0 }
 0x539   : > { %v8154_v11 = vpop.f32.mrf.mxu1  ;;  %8467 = vst [vmem:[%s15724_s25 + $0x90] sm:$0xff] %v8151_v62  ;;  %v8153_v18 = vadd.f32 %v8152_v9, %v7800_v53  ;;  %v7802_v12 = vadd.f32 %v7801_v27, %v16295_v14 }
 0x53a   : > { %v7803_v16 = vpop.f32.mrf.mxu0 }
 0x53b   : > { %v8156_v17 = vpop.f32.mrf.mxu1  ;;  %8468 = vst [vmem:[%s15724_s25 + $0x98] sm:$0xff] %v8153_v18  ;;  %v8155_v52 = vadd.f32 %v8154_v11, %v7802_v12  ;;  %v7804_v22 = vadd.f32 %v7803_v16, %v16301_v61 }
 0x53c   : > { %v7807_v28 = vpop.f32.mrf.mxu0  ;;  %8046 = vmatmul.mubr.bf16.gmra.mxu0 %v15653_v15 }
 0x53d   : > { %v8160_v41 = vpop.f32.mrf.mxu1  ;;  %8399 = vmatmul.mubr.bf16.gmra.mxu1 %v15667_v10  ;;  %8471 = vst [vmem:[%s15724_s25 + $0xb0] sm:$0xff] %v8155_v52  ;;  %v8157_v34 = vadd.f32 %v8156_v17, %v7804_v22  ;;  %v7808_v20 = vadd.f32 %v7807_v28, %v16295_v14  ;;  %8055 = vmatprep.mubr.bf16.mxu0 %v15857_v6 }
 0x53e   : > { %8408 = vmatprep.mubr.bf16.mxu1 %v15872_v48  ;;  %v7809_v50 = vpop.f32.mrf.mxu0 }
 0x53f   : > { %v8162_v55 = vpop.f32.mrf.mxu1  ;;  %8472 = vst [vmem:[%s15724_s25 + $0xb8] sm:$0xff] %v8157_v34  ;;  %v8161_v33 = vadd.f32 %v8160_v41, %v7808_v20  ;;  %v7810_v59 = vadd.f32 %v7809_v50, %v16301_v61 }
 0x540   : > { %v7811_v15 = vpop.f32.mrf.mxu0 }
 0x541   : > { %v8164_v45 = vpop.f32.mrf.mxu1  ;;  %8475 = vst [vmem:[%s15724_s25 + $0xd0] sm:$0xff] %v8161_v33  ;;  %v8163_v10 = vadd.f32 %v8162_v55, %v7810_v59  ;;  %v7812_v30 = vadd.f32 %v7811_v15, %v16295_v14 }
 0x542   : > { %v7813_v60 = vpop.f32.mrf.mxu0 }
 0x543   : > { %v8166_v36 = vpop.f32.mrf.mxu1  ;;  %8476 = vst [vmem:[%s15724_s25 + $0xd8] sm:$0xff] %v8163_v10  ;;  %v8165_v6 = vadd.f32 %v8164_v45, %v7812_v30  ;;  %v7814_v48 = vadd.f32 %v7813_v60, %v16301_v61 }
 0x544   : > { %v7817_v0 = vpop.f32.mrf.mxu0  ;;  %8056 = vmatmul.mubr.bf16.gmra.mxu0 %v15735_v19 }
 0x545   : > { %v8170_v44 = vpop.f32.mrf.mxu1  ;;  %8409 = vmatmul.mubr.bf16.gmra.mxu1 %v15763_v21  ;;  %8479 = vst [vmem:[%s15724_s25 + $0xf0] sm:$0xff] %v8165_v6  ;;  %v8167_v24 = vadd.f32 %v8166_v36, %v7814_v48  ;;  %v7818_v35 = vadd.f32 %v7817_v0, %v16295_v14  ;;  %8065 = vmatprep.mubr.bf16.mxu0 %v15910_v5 }
 0x546   : > { %8418 = vmatprep.mubr.bf16.mxu1 %v15914_v32  ;;  %v7819_v42 = vpop.f32.mrf.mxu0 }
 0x547   : > { %v8172_v58 = vpop.f32.mrf.mxu1  ;;  %8480 = vst [vmem:[%s15724_s25 + $0xf8] sm:$0xff] %v8167_v24  ;;  %v8171_v40 = vadd.f32 %v8170_v44, %v7818_v35  ;;  %v7820_v1 = vadd.f32 %v7819_v42, %v16301_v61 }
 0x548   : > { %v7821_v19 = vpop.f32.mrf.mxu0 }
 0x549   : > { %v8174_v25 = vpop.f32.mrf.mxu1  ;;  %8483 = vst [vmem:[%s15724_s25 + $0x110] sm:$0xff] %v8171_v40  ;;  %v8173_v21 = vadd.f32 %v8172_v58, %v7820_v1  ;;  %v7822_v63 = vadd.f32 %v7821_v19, %v16295_v14 }
 0x54a   : > { %v7823_v4 = vpop.f32.mrf.mxu0 }
 0x54b   : > { %v8176_v31 = vpop.f32.mrf.mxu1  ;;  %8484 = vst [vmem:[%s15724_s25 + $0x118] sm:$0xff] %v8173_v21  ;;  %v8175_v5 = vadd.f32 %v8174_v25, %v7822_v63  ;;  %v7824_v32 = vadd.f32 %v7823_v4, %v16301_v61 }
 0x54c   : > { %v7827_v3 = vpop.f32.mrf.mxu0  ;;  %8066 = vmatmul.mubr.bf16.gmra.mxu0 %v15929_v37 }
 0x54d   : > { %v8180_v49 = vpop.f32.mrf.mxu1  ;;  %8419 = vmatmul.mubr.bf16.gmra.mxu1 %v15931_v8  ;;  %8487 = vst [vmem:[%s15724_s25 + $0x130] sm:$0xff] %v8175_v5  ;;  %v8177_v56 = vadd.f32 %v8176_v31, %v7824_v32  ;;  %v7828_v13 = vadd.f32 %v7827_v3, %v16295_v14  ;;  %8075 = vmatprep.mubr.bf16.mxu0 %v15941_v23 }
 0x54e   : > { %8428 = vmatprep.mubr.bf16.mxu1 %v15943_v43  ;;  %v7829_v46 = vpop.f32.mrf.mxu0 }
 0x54f   : > { %v8182_v38 = vpop.f32.mrf.mxu1  ;;  %8488 = vst [vmem:[%s15724_s25 + $0x138] sm:$0xff] %v8177_v56  ;;  %v8181_v39 = vadd.f32 %v8180_v49, %v7828_v13  ;;  %v7830_v57 = vadd.f32 %v7829_v46, %v16301_v61 }
 0x550   : > { %v7831_v37 = vpop.f32.mrf.mxu0 }
 0x551   : > { %v8184_v29 = vpop.f32.mrf.mxu1  ;;  %8491 = vst [vmem:[%s15724_s25 + $0x150] sm:$0xff] %v8181_v39  ;;  %v8183_v8 = vadd.f32 %v8182_v38, %v7830_v57  ;;  %v7832_v9 = vadd.f32 %v7831_v37, %v16295_v14 }
 0x552   : > { %v7833_v62 = vpop.f32.mrf.mxu0 }
 0x553   : > { %v8186_v53 = vpop.f32.mrf.mxu1  ;;  %8492 = vst [vmem:[%s15724_s25 + $0x158] sm:$0xff] %v8183_v8  ;;  %v8185_v23 = vadd.f32 %v8184_v29, %v7832_v9  ;;  %v7834_v43 = vadd.f32 %v7833_v62, %v16301_v61 }
 0x554   : > { %v7837_v27 = vpop.f32.mrf.mxu0  ;;  %8076 = vmatmul.mubr.bf16.gmra.mxu0 %v15962_v51 }
 0x555   : > { %v8190_v11 = vpop.f32.mrf.mxu1  ;;  %8429 = vmatmul.mubr.bf16.gmra.mxu1 %v15964_v2  ;;  %8495 = vst [vmem:[%s15724_s25 + $0x170] sm:$0xff] %v8185_v23  ;;  %v8187_v18 = vadd.f32 %v8186_v53, %v7834_v43  ;;  %v7838_v12 = vadd.f32 %v7837_v27, %v16295_v14  ;;  %8085 = vmatprep.mubr.bf16.mxu0 %v15968_v54 }
 0x556   : > { %8438 = vmatprep.mubr.bf16.mxu1 %v15970_v26  ;;  %v7839_v16 = vpop.f32.mrf.mxu0 }
 0x557   : > { %v8192_v17 = vpop.f32.mrf.mxu1  ;;  %8496 = vst [vmem:[%s15724_s25 + $0x178] sm:$0xff] %v8187_v18  ;;  %v8191_v52 = vadd.f32 %v8190_v11, %v7838_v12  ;;  %v7840_v22 = vadd.f32 %v7839_v16, %v16301_v61 }
 0x558   : > { %v7841_v51 = vpop.f32.mrf.mxu0 }
 0x559   : > { %v8194_v28 = vpop.f32.mrf.mxu1  ;;  %8499 = vst [vmem:[%s15724_s25 + $0x190] sm:$0xff] %v8191_v52  ;;  %v8193_v2 = vadd.f32 %v8192_v17, %v7840_v22  ;;  %v7842_v41 = vadd.f32 %v7841_v51, %v16295_v14 }
 0x55a   : > { %v7843_v34 = vpop.f32.mrf.mxu0 }
 0x55b   : > { %v8196_v20 = vpop.f32.mrf.mxu1  ;;  %8500 = vst [vmem:[%s15724_s25 + $0x198] sm:$0xff] %v8193_v2  ;;  %v8195_v54 = vadd.f32 %v8194_v28, %v7842_v41  ;;  %v7844_v26 = vadd.f32 %v7843_v34, %v16301_v61 }
 0x55c   : > { %v7847_v50 = vpop.f32.mrf.mxu0  ;;  %8086 = vmatmul.mubr.bf16.gmra.mxu0 %v15986_v7 }
 0x55d   : > { %v8200_v55 = vpop.f32.mrf.mxu1  ;;  %8439 = vmatmul.mubr.bf16.gmra.mxu1 %v15988_v47  ;;  %8503 = vst [vmem:[%s15724_s25 + $0x1b0] sm:$0xff] %v8195_v54  ;;  %v8197_v33 = vadd.f32 %v8196_v20, %v7844_v26  ;;  %v7848_v59 = vadd.f32 %v7847_v50, %v16295_v14 }
 0x55e   : > { %v7849_v15 = vpop.f32.mrf.mxu0 }
 0x55f   : > { %v8202_v45 = vpop.f32.mrf.mxu1  ;;  %8504 = vst [vmem:[%s15724_s25 + $0x1b8] sm:$0xff] %v8197_v33  ;;  %v8201_v10 = vadd.f32 %v8200_v55, %v7848_v59  ;;  %v7850_v30 = vadd.f32 %v7849_v15, %v16301_v61 }
 0x560   : > { %v7851_v60 = vpop.f32.mrf.mxu0 }
 0x561   : > { %v8204_v36 = vpop.f32.mrf.mxu1  ;;  %8507 = vst [vmem:[%s15724_s25 + $0x1d0] sm:$0xff] %v8201_v10  ;;  %v8203_v7 = vadd.f32 %v8202_v45, %v7850_v30  ;;  %v7852_v6 = vadd.f32 %v7851_v60, %v16295_v14 }
 0x562   : > { %v7853_v47 = vpop.f32.mrf.mxu0 }
 0x563   : > { %v8206_v48 = vpop.f32.mrf.mxu1  ;;  %8508 = vst [vmem:[%s15724_s25 + $0x1d8] sm:$0xff] %v8203_v7  ;;  %v8205_v0 = vadd.f32 %v8204_v36, %v7852_v6  ;;  %v7854_v44 = vadd.f32 %v7853_v47, %v16301_v61 }
 0x564   : > { %v7857_v24 = vpop.f32.mrf.mxu0 }
 0x565   : > { %v8210_v35 = vpop.f32.mrf.mxu1  ;;  %8511 = vst [vmem:[%s15724_s25 + $0x1f0] sm:$0xff] %v8205_v0  ;;  %v8207_v42 = vadd.f32 %v8206_v48, %v7854_v44  ;;  %v7858_v58 = vadd.f32 %v7857_v24, %v16295_v14 }
 0x566   : > { %v7859_v40 = vpop.f32.mrf.mxu0 }
 0x567   : > { %v8212_v1 = vpop.f32.mrf.mxu1  ;;  %8512 = vst [vmem:[%s15724_s25 + $0x1f8] sm:$0xff] %v8207_v42  ;;  %v8211_v19 = vadd.f32 %v8210_v35, %v7858_v58  ;;  %v7860_v25 = vadd.f32 %v7859_v40, %v16301_v61 }
 0x568   : > { %v7861_v21 = vpop.f32.mrf.mxu0 }
 0x569   : > { %v8214_v63 = vpop.f32.mrf.mxu1  ;;  %8515 = vst [vmem:[%s15724_s25 + $0x210] sm:$0xff] %v8211_v19  ;;  %v8213_v4 = vadd.f32 %v8212_v1, %v7860_v25  ;;  %v7862_v31 = vadd.f32 %v7861_v21, %v16295_v14 }
 0x56a   : > { %v7863_v5 = vpop.f32.mrf.mxu0 }
 0x56b   : > { %v8216_v32 = vpop.f32.mrf.mxu1  ;;  %8516 = vst [vmem:[%s15724_s25 + $0x218] sm:$0xff] %v8213_v4  ;;  %v8215_v3 = vadd.f32 %v8214_v63, %v7862_v31  ;;  %v7864_v49 = vadd.f32 %v7863_v5, %v16301_v61 }
 0x56c   : > { %v7867_v56 = vpop.f32.mrf.mxu0 }
 0x56d   : > { %v8220_v13 = vpop.f32.mrf.mxu1  ;;  %8519 = vst [vmem:[%s15724_s25 + $0x230] sm:$0xff] %v8215_v3  ;;  %v8217_v46 = vadd.f32 %v8216_v32, %v7864_v49  ;;  %v7868_v38 = vadd.f32 %v7867_v56, %v16295_v14 }
 0x56e   : > { %v7869_v39 = vpop.f32.mrf.mxu0 }
 0x56f   : > { %v8222_v57 = vpop.f32.mrf.mxu1  ;;  %8520 = vst [vmem:[%s15724_s25 + $0x238] sm:$0xff] %v8217_v46  ;;  %v8221_v37 = vadd.f32 %v8220_v13, %v7868_v38  ;;  %v7870_v29 = vadd.f32 %v7869_v39, %v16301_v61 }
 0x570   : > { %v7871_v8 = vpop.f32.mrf.mxu0 }
 0x571   : > { %v8224_v9 = vpop.f32.mrf.mxu1  ;;  %8523 = vst [vmem:[%s15724_s25 + $0x250] sm:$0xff] %v8221_v37  ;;  %v8223_v62 = vadd.f32 %v8222_v57, %v7870_v29  ;;  %v7872_v53 = vadd.f32 %v7871_v8, %v16295_v14 }
 0x572   : > { %v7873_v23 = vpop.f32.mrf.mxu0 }
 0x573   : > { %v8226_v43 = vpop.f32.mrf.mxu1  ;;  %8524 = vst [vmem:[%s15724_s25 + $0x258] sm:$0xff] %v8223_v62  ;;  %v8225_v27 = vadd.f32 %v8224_v9, %v7872_v53  ;;  %v7874_v11 = vadd.f32 %v7873_v23, %v16301_v61 }
 0x574   : > { %v7877_v18 = vpop.f32.mrf.mxu0 }
 0x575   : > { %v8230_v12 = vpop.f32.mrf.mxu1  ;;  %8527 = vst [vmem:[%s15724_s25 + $0x270] sm:$0xff] %v8225_v27  ;;  %v8227_v16 = vadd.f32 %v8226_v43, %v7874_v11  ;;  %v7878_v17 = vadd.f32 %v7877_v18, %v16295_v14 }
 0x576   : > { %v7879_v52 = vpop.f32.mrf.mxu0 }
 0x577   : > { %v8232_v22 = vpop.f32.mrf.mxu1  ;;  %8528 = vst [vmem:[%s15724_s25 + $0x278] sm:$0xff] %v8227_v16  ;;  %v8231_v51 = vadd.f32 %v8230_v12, %v7878_v17  ;;  %v7880_v28 = vadd.f32 %v7879_v52, %v16301_v61 }
 0x578   : > { %v7881_v2 = vpop.f32.mrf.mxu0 }
 0x579   : > { %v8234_v41 = vpop.f32.mrf.mxu1  ;;  %8531 = vst [vmem:[%s15724_s25 + $0x290] sm:$0xff] %v8231_v51  ;;  %v8233_v34 = vadd.f32 %v8232_v22, %v7880_v28  ;;  %v7882_v20 = vadd.f32 %v7881_v2, %v16295_v14 }
 0x57a   : > { %v7883_v54 = vpop.f32.mrf.mxu0 }
 0x57b   : > { %v8236_v26 = vpop.f32.mrf.mxu1  ;;  %8532 = vst [vmem:[%s15724_s25 + $0x298] sm:$0xff] %v8233_v34  ;;  %v8235_v50 = vadd.f32 %v8234_v41, %v7882_v20  ;;  %v7884_v55 = vadd.f32 %v7883_v54, %v16301_v61 }
 0x57c   : > { %v7887_v33 = vpop.f32.mrf.mxu0 }
 0x57d   : > { %v8240_v59 = vpop.f32.mrf.mxu1  ;;  %8535 = vst [vmem:[%s15724_s25 + $0x2b0] sm:$0xff] %v8235_v50  ;;  %v8237_v15 = vadd.f32 %v8236_v26, %v7884_v55  ;;  %v7888_v45 = vadd.f32 %v7887_v33, %v16295_v14 }
 0x57e   : > { %v7889_v10 = vpop.f32.mrf.mxu0 }
 0x57f   : > { %v8242_v30 = vpop.f32.mrf.mxu1  ;;  %8536 = vst [vmem:[%s15724_s25 + $0x2b8] sm:$0xff] %v8237_v15  ;;  %v8241_v60 = vadd.f32 %v8240_v59, %v7888_v45  ;;  %v7890_v36 = vadd.f32 %v7889_v10, %v16301_v61 }
 0x580   : > { %v7891_v7 = vpop.f32.mrf.mxu0 }
 0x581   : > { %v8244_v6 = vpop.f32.mrf.mxu1  ;;  %8539 = vst [vmem:[%s15724_s25 + $0x2d0] sm:$0xff] %v8241_v60  ;;  %v8243_v47 = vadd.f32 %v8242_v30, %v7890_v36  ;;  %v7892_v48 = vadd.f32 %v7891_v7, %v16295_v14 }
 0x582   : > { %v7893_v0 = vpop.f32.mrf.mxu0 }
 0x583   : > { %v8246_v44 = vpop.f32.mrf.mxu1  ;;  %8540 = vst [vmem:[%s15724_s25 + $0x2d8] sm:$0xff] %v8243_v47  ;;  %v8245_v24 = vadd.f32 %v8244_v6, %v7892_v48  ;;  %v7894_v35 = vadd.f32 %v7893_v0, %v16301_v61 }
 0x584   : > { %v7897_v42 = vpop.f32.mrf.mxu0 }
 0x585   : > { %v8250_v58 = vpop.f32.mrf.mxu1  ;;  %8543 = vst [vmem:[%s15724_s25 + $0x2f0] sm:$0xff] %v8245_v24  ;;  %v8247_v40 = vadd.f32 %v8246_v44, %v7894_v35  ;;  %v7898_v1 = vadd.f32 %v7897_v42, %v16295_v14 }
 0x586   : > { %v7899_v19 = vpop.f32.mrf.mxu0 }
 0x587   : > { %v8252_v25 = vpop.f32.mrf.mxu1  ;;  %8544 = vst [vmem:[%s15724_s25 + $0x2f8] sm:$0xff] %v8247_v40  ;;  %v8251_v21 = vadd.f32 %v8250_v58, %v7898_v1  ;;  %v7900_v63 = vadd.f32 %v7899_v19, %v16301_v61 }
 0x588   : > { %v7901_v4 = vpop.f32.mrf.mxu0 }
 0x589   : > { %v8254_v31 = vpop.f32.mrf.mxu1  ;;  %8547 = vst [vmem:[%s15724_s25 + $0x310] sm:$0xff] %v8251_v21  ;;  %v8253_v5 = vadd.f32 %v8252_v25, %v7900_v63  ;;  %v7902_v32 = vadd.f32 %v7901_v4, %v16295_v14 }
 0x58a   : > { %v7903_v3 = vpop.f32.mrf.mxu0 }
 0x58b   : > { %v8256_v49 = vpop.f32.mrf.mxu1  ;;  %8548 = vst [vmem:[%s15724_s25 + $0x318] sm:$0xff] %v8253_v5  ;;  %v8255_v56 = vadd.f32 %v8254_v31, %v7902_v32  ;;  %v7904_v13 = vadd.f32 %v7903_v3, %v16301_v61 }
 0x58c   : > { %v7907_v46 = vpop.f32.mrf.mxu0 }
 0x58d   : > { %v8260_v38 = vpop.f32.mrf.mxu1  ;;  %8551 = vst [vmem:[%s15724_s25 + $0x330] sm:$0xff] %v8255_v56  ;;  %v8257_v39 = vadd.f32 %v8256_v49, %v7904_v13  ;;  %v7908_v57 = vadd.f32 %v7907_v46, %v16295_v14 }
 0x58e   : > { %v7909_v37 = vpop.f32.mrf.mxu0 }
 0x58f   : > { %v8262_v29 = vpop.f32.mrf.mxu1  ;;  %8552 = vst [vmem:[%s15724_s25 + $0x338] sm:$0xff] %v8257_v39  ;;  %v8261_v8 = vadd.f32 %v8260_v38, %v7908_v57  ;;  %v7910_v9 = vadd.f32 %v7909_v37, %v16301_v61 }
 0x590   : > { %v7911_v62 = vpop.f32.mrf.mxu0 }
 0x591   : > { %v8264_v53 = vpop.f32.mrf.mxu1  ;;  %8555 = vst [vmem:[%s15724_s25 + $0x350] sm:$0xff] %v8261_v8  ;;  %v8263_v23 = vadd.f32 %v8262_v29, %v7910_v9  ;;  %v7912_v43 = vadd.f32 %v7911_v62, %v16295_v14 }
 0x592   : > { %v7913_v27 = vpop.f32.mrf.mxu0 }
 0x593   : > { %v8266_v11 = vpop.f32.mrf.mxu1  ;;  %8556 = vst [vmem:[%s15724_s25 + $0x358] sm:$0xff] %v8263_v23  ;;  %v8265_v18 = vadd.f32 %v8264_v53, %v7912_v43  ;;  %v7914_v12 = vadd.f32 %v7913_v27, %v16301_v61 }
 0x594   : > { %v7917_v16 = vpop.f32.mrf.mxu0 }
 0x595   : > { %v8270_v17 = vpop.f32.mrf.mxu1  ;;  %8559 = vst [vmem:[%s15724_s25 + $0x370] sm:$0xff] %v8265_v18  ;;  %v8267_v52 = vadd.f32 %v8266_v11, %v7914_v12  ;;  %v7918_v22 = vadd.f32 %v7917_v16, %v16295_v14 }
 0x596   : > { %v7919_v51 = vpop.f32.mrf.mxu0 }
 0x597   : > { %v8272_v28 = vpop.f32.mrf.mxu1  ;;  %8560 = vst [vmem:[%s15724_s25 + $0x378] sm:$0xff] %v8267_v52  ;;  %v8271_v2 = vadd.f32 %v8270_v17, %v7918_v22  ;;  %v7920_v41 = vadd.f32 %v7919_v51, %v16301_v61 }
 0x598   : > { %v7921_v34 = vpop.f32.mrf.mxu0 }
 0x599   : > { %v8274_v20 = vpop.f32.mrf.mxu1  ;;  %8563 = vst [vmem:[%s15724_s25 + $0x390] sm:$0xff] %v8271_v2  ;;  %v8273_v54 = vadd.f32 %v8272_v28, %v7920_v41  ;;  %v7922_v26 = vadd.f32 %v7921_v34, %v16295_v14 }
 0x59a   : > { %v7923_v50 = vpop.f32.mrf.mxu0 }
 0x59b   : > { %v8276_v55 = vpop.f32.mrf.mxu1  ;;  %8564 = vst [vmem:[%s15724_s25 + $0x398] sm:$0xff] %v8273_v54  ;;  %v8275_v33 = vadd.f32 %v8274_v20, %v7922_v26  ;;  %v7924_v59 = vadd.f32 %v7923_v50, %v16301_v61 }
 0x59c   : > { %v7927_v15 = vpop.f32.mrf.mxu0 }
 0x59d   : > { %v8280_v45 = vpop.f32.mrf.mxu1  ;;  %8567 = vst [vmem:[%s15724_s25 + $0x3b0] sm:$0xff] %v8275_v33  ;;  %v8277_v10 = vadd.f32 %v8276_v55, %v7924_v59  ;;  %v7928_v30 = vadd.f32 %v7927_v15, %v16295_v14 }
 0x59e   : > { %v7929_v60 = vpop.f32.mrf.mxu0 }
 0x59f   : > { %v8282_v36 = vpop.f32.mrf.mxu1  ;;  %8568 = vst [vmem:[%s15724_s25 + $0x3b8] sm:$0xff] %v8277_v10  ;;  %v8281_v7 = vadd.f32 %v8280_v45, %v7928_v30  ;;  %v7930_v6 = vadd.f32 %v7929_v60, %v16301_v61 }
 0x5a0   : > { %v7931_v47 = vpop.f32.mrf.mxu0 }
 0x5a1   : > { %v8284_v48 = vpop.f32.mrf.mxu1  ;;  %8571 = vst [vmem:[%s15724_s25 + $0x3d0] sm:$0xff] %v8281_v7  ;;  %v8283_v0 = vadd.f32 %v8282_v36, %v7930_v6  ;;  %v7932_v44 = vadd.f32 %v7931_v47, %v16295_v14 }
 0x5a2   : > { %v7933_v24 = vpop.f32.mrf.mxu0 }
 0x5a3   : > { %v8286_v35 = vpop.f32.mrf.mxu1  ;;  %8572 = vst [vmem:[%s15724_s25 + $0x3d8] sm:$0xff] %v8283_v0  ;;  %v8285_v42 = vadd.f32 %v8284_v48, %v7932_v44  ;;  %v7934_v58 = vadd.f32 %v7933_v24, %v16301_v61 }
 0x5a4   : > { %v7937_v40 = vpop.f32.mrf.mxu0 }
 0x5a5   : > { %v8290_v1 = vpop.f32.mrf.mxu1  ;;  %8575 = vst [vmem:[%s15724_s25 + $0x3f0] sm:$0xff] %v8285_v42  ;;  %v8287_v19 = vadd.f32 %v8286_v35, %v7934_v58  ;;  %v7938_v25 = vadd.f32 %v7937_v40, %v16295_v14 }
 0x5a6   : > { %v7939_v21 = vpop.f32.mrf.mxu0 }
 0x5a7   : > { %v8292_v63 = vpop.f32.mrf.mxu1  ;;  %8576 = vst [vmem:[%s15724_s25 + $0x3f8] sm:$0xff] %v8287_v19  ;;  %v8291_v4 = vadd.f32 %v8290_v1, %v7938_v25  ;;  %v7940_v31 = vadd.f32 %v7939_v21, %v16301_v61 }
 0x5a8   : > { %v7941_v5 = vpop.f32.mrf.mxu0 }
 0x5a9   : > { %v8294_v32 = vpop.f32.mrf.mxu1  ;;  %8579 = vst [vmem:[%s15724_s25 + $0x410] sm:$0xff] %v8291_v4  ;;  %v8293_v3 = vadd.f32 %v8292_v63, %v7940_v31  ;;  %v7942_v49 = vadd.f32 %v7941_v5, %v16295_v14 }
 0x5aa   : > { %v7943_v56 = vpop.f32.mrf.mxu0 }
 0x5ab   : > { %v8296_v13 = vpop.f32.mrf.mxu1  ;;  %8580 = vst [vmem:[%s15724_s25 + $0x418] sm:$0xff] %v8293_v3  ;;  %v8295_v46 = vadd.f32 %v8294_v32, %v7942_v49  ;;  %v7944_v38 = vadd.f32 %v7943_v56, %v16301_v61 }
 0x5ac   : > { %v7947_v39 = vpop.f32.mrf.mxu0 }
 0x5ad   : > { %v8300_v57 = vpop.f32.mrf.mxu1  ;;  %8583 = vst [vmem:[%s15724_s25 + $0x430] sm:$0xff] %v8295_v46  ;;  %v8297_v37 = vadd.f32 %v8296_v13, %v7944_v38  ;;  %v7948_v29 = vadd.f32 %v7947_v39, %v16295_v14 }
 0x5ae   : > { %v7949_v8 = vpop.f32.mrf.mxu0 }
 0x5af   : > { %v8302_v9 = vpop.f32.mrf.mxu1  ;;  %8584 = vst [vmem:[%s15724_s25 + $0x438] sm:$0xff] %v8297_v37  ;;  %v8301_v62 = vadd.f32 %v8300_v57, %v7948_v29  ;;  %v7950_v53 = vadd.f32 %v7949_v8, %v16301_v61 }
 0x5b0   : > { %v7951_v23 = vpop.f32.mrf.mxu0 }
 0x5b1   : > { %v8304_v43 = vpop.f32.mrf.mxu1  ;;  %8587 = vst [vmem:[%s15724_s25 + $0x450] sm:$0xff] %v8301_v62  ;;  %v8303_v27 = vadd.f32 %v8302_v9, %v7950_v53  ;;  %v7952_v11 = vadd.f32 %v7951_v23, %v16295_v14 }
 0x5b2   : > { %v7953_v18 = vpop.f32.mrf.mxu0 }
 0x5b3   : > { %v8306_v12 = vpop.f32.mrf.mxu1  ;;  %8588 = vst [vmem:[%s15724_s25 + $0x458] sm:$0xff] %v8303_v27  ;;  %v8305_v16 = vadd.f32 %v8304_v43, %v7952_v11  ;;  %v7954_v17 = vadd.f32 %v7953_v18, %v16301_v61 }
 0x5b4   : > { %v7957_v52 = vpop.f32.mrf.mxu0 }
 0x5b5   : > { %v8310_v22 = vpop.f32.mrf.mxu1  ;;  %8591 = vst [vmem:[%s15724_s25 + $0x470] sm:$0xff] %v8305_v16  ;;  %v8307_v51 = vadd.f32 %v8306_v12, %v7954_v17  ;;  %v7958_v28 = vadd.f32 %v7957_v52, %v16295_v14 }
 0x5b6   : > { %v7959_v2 = vpop.f32.mrf.mxu0 }
 0x5b7   : > { %v8312_v41 = vpop.f32.mrf.mxu1  ;;  %8592 = vst [vmem:[%s15724_s25 + $0x478] sm:$0xff] %v8307_v51  ;;  %v8311_v34 = vadd.f32 %v8310_v22, %v7958_v28  ;;  %v7960_v20 = vadd.f32 %v7959_v2, %v16301_v61 }
 0x5b8   : > { %v7961_v54 = vpop.f32.mrf.mxu0 }
 0x5b9   : > { %v8314_v26 = vpop.f32.mrf.mxu1  ;;  %8595 = vst [vmem:[%s15724_s25 + $0x490] sm:$0xff] %v8311_v34  ;;  %v8313_v50 = vadd.f32 %v8312_v41, %v7960_v20  ;;  %v7962_v55 = vadd.f32 %v7961_v54, %v16295_v14 }
 0x5ba   : > { %v7963_v33 = vpop.f32.mrf.mxu0 }
 0x5bb   : > { %v8316_v59 = vpop.f32.mrf.mxu1  ;;  %8596 = vst [vmem:[%s15724_s25 + $0x498] sm:$0xff] %v8313_v50  ;;  %v8315_v15 = vadd.f32 %v8314_v26, %v7962_v55  ;;  %v7964_v45 = vadd.f32 %v7963_v33, %v16301_v61 }
 0x5bc   : > { %v7967_v10 = vpop.f32.mrf.mxu0 }
 0x5bd   : > { %v8320_v30 = vpop.f32.mrf.mxu1  ;;  %8599 = vst [vmem:[%s15724_s25 + $0x4b0] sm:$0xff] %v8315_v15  ;;  %v8317_v60 = vadd.f32 %v8316_v59, %v7964_v45  ;;  %v7968_v36 = vadd.f32 %v7967_v10, %v16295_v14 }
 0x5be   : > { %v7969_v7 = vpop.f32.mrf.mxu0 }
 0x5bf   : > { %v8322_v6 = vpop.f32.mrf.mxu1  ;;  %8600 = vst [vmem:[%s15724_s25 + $0x4b8] sm:$0xff] %v8317_v60  ;;  %v8321_v47 = vadd.f32 %v8320_v30, %v7968_v36  ;;  %v7970_v48 = vadd.f32 %v7969_v7, %v16301_v61 }
 0x5c0   : > { %v7971_v0 = vpop.f32.mrf.mxu0 }
 0x5c1   : > { %v8324_v44 = vpop.f32.mrf.mxu1  ;;  %8603 = vst [vmem:[%s15724_s25 + $0x4d0] sm:$0xff] %v8321_v47  ;;  %v8323_v24 = vadd.f32 %v8322_v6, %v7970_v48  ;;  %v7972_v35 = vadd.f32 %v7971_v0, %v16295_v14 }
 0x5c2   : > { %v7973_v42 = vpop.f32.mrf.mxu0 }
 0x5c3   : > { %v8326_v58 = vpop.f32.mrf.mxu1  ;;  %8604 = vst [vmem:[%s15724_s25 + $0x4d8] sm:$0xff] %v8323_v24  ;;  %v8325_v40 = vadd.f32 %v8324_v44, %v7972_v35  ;;  %v7974_v1 = vadd.f32 %v7973_v42, %v16301_v61 }
 0x5c4   : > { %v7977_v19 = vpop.f32.mrf.mxu0 }
 0x5c5   : > { %v8330_v25 = vpop.f32.mrf.mxu1  ;;  %8607 = vst [vmem:[%s15724_s25 + $0x4f0] sm:$0xff] %v8325_v40  ;;  %v8327_v21 = vadd.f32 %v8326_v58, %v7974_v1  ;;  %v7978_v63 = vadd.f32 %v7977_v19, %v16295_v14 }
 0x5c6   : > { %v7979_v4 = vpop.f32.mrf.mxu0 }
 0x5c7   : > { %v8332_v31 = vpop.f32.mrf.mxu1  ;;  %8608 = vst [vmem:[%s15724_s25 + $0x4f8] sm:$0xff] %v8327_v21  ;;  %v8331_v5 = vadd.f32 %v8330_v25, %v7978_v63  ;;  %v7980_v32 = vadd.f32 %v7979_v4, %v16301_v61 }
 0x5c8   : > { %v7981_v3 = vpop.f32.mrf.mxu0 }
 0x5c9   : > { %v8334_v49 = vpop.f32.mrf.mxu1  ;;  %8611 = vst [vmem:[%s15724_s25 + $0x510] sm:$0xff] %v8331_v5  ;;  %v8333_v56 = vadd.f32 %v8332_v31, %v7980_v32  ;;  %v7982_v13 = vadd.f32 %v7981_v3, %v16295_v14 }
 0x5ca   : > { %v7983_v46 = vpop.f32.mrf.mxu0 }
 0x5cb   : > { %v8336_v38 = vpop.f32.mrf.mxu1  ;;  %8612 = vst [vmem:[%s15724_s25 + $0x518] sm:$0xff] %v8333_v56  ;;  %v8335_v39 = vadd.f32 %v8334_v49, %v7982_v13  ;;  %v7984_v57 = vadd.f32 %v7983_v46, %v16301_v61 }
 0x5cc   : > { %v7987_v37 = vpop.f32.mrf.mxu0 }
 0x5cd   : > { %v8340_v29 = vpop.f32.mrf.mxu1  ;;  %8615 = vst [vmem:[%s15724_s25 + $0x530] sm:$0xff] %v8335_v39  ;;  %v8337_v8 = vadd.f32 %v8336_v38, %v7984_v57  ;;  %v7988_v9 = vadd.f32 %v7987_v37, %v16295_v14 }
 0x5ce   : > { %v7989_v62 = vpop.f32.mrf.mxu0 }
 0x5cf   : > { %v8342_v53 = vpop.f32.mrf.mxu1  ;;  %8616 = vst [vmem:[%s15724_s25 + $0x538] sm:$0xff] %v8337_v8  ;;  %v8341_v23 = vadd.f32 %v8340_v29, %v7988_v9  ;;  %v7990_v43 = vadd.f32 %v7989_v62, %v16301_v61 }
 0x5d0   : > { %v7991_v27 = vpop.f32.mrf.mxu0 }
 0x5d1   : > { %v8344_v11 = vpop.f32.mrf.mxu1  ;;  %8619 = vst [vmem:[%s15724_s25 + $0x550] sm:$0xff] %v8341_v23  ;;  %v8343_v18 = vadd.f32 %v8342_v53, %v7990_v43  ;;  %v7992_v12 = vadd.f32 %v7991_v27, %v16295_v14 }
 0x5d2   : > { %v7993_v16 = vpop.f32.mrf.mxu0 }
 0x5d3   : > { %v8346_v17 = vpop.f32.mrf.mxu1  ;;  %8620 = vst [vmem:[%s15724_s25 + $0x558] sm:$0xff] %v8343_v18  ;;  %v8345_v52 = vadd.f32 %v8344_v11, %v7992_v12  ;;  %v7994_v22 = vadd.f32 %v7993_v16, %v16301_v61 }
 0x5d4   : > { %v7997_v51 = vpop.f32.mrf.mxu0 }
 0x5d5   : > { %v8350_v28 = vpop.f32.mrf.mxu1  ;;  %8623 = vst [vmem:[%s15724_s25 + $0x570] sm:$0xff] %v8345_v52  ;;  %v8347_v2 = vadd.f32 %v8346_v17, %v7994_v22  ;;  %v7998_v41 = vadd.f32 %v7997_v51, %v16295_v14 }
 0x5d6   : > { %v7999_v34 = vpop.f32.mrf.mxu0 }
 0x5d7   : > { %v8352_v20 = vpop.f32.mrf.mxu1  ;;  %8624 = vst [vmem:[%s15724_s25 + $0x578] sm:$0xff] %v8347_v2  ;;  %v8351_v54 = vadd.f32 %v8350_v28, %v7998_v41  ;;  %v8000_v26 = vadd.f32 %v7999_v34, %v16301_v61 }
 0x5d8   : > { %v8001_v50 = vpop.f32.mrf.mxu0 }
 0x5d9   : > { %v8354_v55 = vpop.f32.mrf.mxu1  ;;  %8627 = vst [vmem:[%s15724_s25 + $0x590] sm:$0xff] %v8351_v54  ;;  %v8353_v33 = vadd.f32 %v8352_v20, %v8000_v26  ;;  %v8002_v59 = vadd.f32 %v8001_v50, %v16295_v14 }
 0x5da   : > { %v8003_v15 = vpop.f32.mrf.mxu0 }
 0x5db   : > { %v8356_v45 = vpop.f32.mrf.mxu1  ;;  %8628 = vst [vmem:[%s15724_s25 + $0x598] sm:$0xff] %v8353_v33  ;;  %v8355_v10 = vadd.f32 %v8354_v55, %v8002_v59  ;;  %v8004_v30 = vadd.f32 %v8003_v15, %v16301_v61 }
 0x5dc   : > { %v8007_v60 = vpop.f32.mrf.mxu0 }
 0x5dd   : > { %v8360_v36 = vpop.f32.mrf.mxu1  ;;  %8631 = vst [vmem:[%s15724_s25 + $0x5b0] sm:$0xff] %v8355_v10  ;;  %v8357_v7 = vadd.f32 %v8356_v45, %v8004_v30  ;;  %v8008_v6 = vadd.f32 %v8007_v60, %v16295_v14 }
 0x5de   : > { %v8009_v47 = vpop.f32.mrf.mxu0 }
 0x5df   : > { %v8362_v48 = vpop.f32.mrf.mxu1  ;;  %8632 = vst [vmem:[%s15724_s25 + $0x5b8] sm:$0xff] %v8357_v7  ;;  %v8361_v0 = vadd.f32 %v8360_v36, %v8008_v6  ;;  %v8010_v44 = vadd.f32 %v8009_v47, %v16301_v61 }
 0x5e0   : > { %v8011_v24 = vpop.f32.mrf.mxu0 }
 0x5e1   : > { %v8364_v35 = vpop.f32.mrf.mxu1  ;;  %8635 = vst [vmem:[%s15724_s25 + $0x5d0] sm:$0xff] %v8361_v0  ;;  %v8363_v42 = vadd.f32 %v8362_v48, %v8010_v44  ;;  %v8012_v58 = vadd.f32 %v8011_v24, %v16295_v14 }
 0x5e2   : > { %v8013_v40 = vpop.f32.mrf.mxu0 }
 0x5e3   : > { %v8366_v1 = vpop.f32.mrf.mxu1  ;;  %8636 = vst [vmem:[%s15724_s25 + $0x5d8] sm:$0xff] %v8363_v42  ;;  %v8365_v19 = vadd.f32 %v8364_v35, %v8012_v58  ;;  %v8014_v25 = vadd.f32 %v8013_v40, %v16301_v61 }
 0x5e4   : > { %v8017_v21 = vpop.f32.mrf.mxu0 }
 0x5e5   : > { %v8370_v63 = vpop.f32.mrf.mxu1  ;;  %8639 = vst [vmem:[%s15724_s25 + $0x5f0] sm:$0xff] %v8365_v19  ;;  %v8367_v4 = vadd.f32 %v8366_v1, %v8014_v25  ;;  %v8018_v31 = vadd.f32 %v8017_v21, %v16295_v14 }
 0x5e6   : > { %v8019_v5 = vpop.f32.mrf.mxu0 }
 0x5e7   : > { %v8372_v32 = vpop.f32.mrf.mxu1  ;;  %8640 = vst [vmem:[%s15724_s25 + $0x5f8] sm:$0xff] %v8367_v4  ;;  %v8371_v3 = vadd.f32 %v8370_v63, %v8018_v31  ;;  %v8020_v49 = vadd.f32 %v8019_v5, %v16301_v61 }
 0x5e8   : > { %v8021_v56 = vpop.f32.mrf.mxu0 }
 0x5e9   : > { %v8374_v13 = vpop.f32.mrf.mxu1  ;;  %8643 = vst [vmem:[%s15724_s25 + $0x610] sm:$0xff] %v8371_v3  ;;  %v8373_v46 = vadd.f32 %v8372_v32, %v8020_v49  ;;  %v8022_v38 = vadd.f32 %v8021_v56, %v16295_v14 }
 0x5ea   : > { %v8023_v39 = vpop.f32.mrf.mxu0 }
 0x5eb   : > { %v8376_v57 = vpop.f32.mrf.mxu1  ;;  %8644 = vst [vmem:[%s15724_s25 + $0x618] sm:$0xff] %v8373_v46  ;;  %v8375_v37 = vadd.f32 %v8374_v13, %v8022_v38  ;;  %v8024_v29 = vadd.f32 %v8023_v39, %v16301_v61 }
 0x5ec   : > { %v8027_v8 = vpop.f32.mrf.mxu0 }
 0x5ed   : > { %v8380_v9 = vpop.f32.mrf.mxu1  ;;  %8647 = vst [vmem:[%s15724_s25 + $0x630] sm:$0xff] %v8375_v37  ;;  %v8377_v62 = vadd.f32 %v8376_v57, %v8024_v29  ;;  %v8028_v53 = vadd.f32 %v8027_v8, %v16295_v14 }
 0x5ee   : > { %v8029_v23 = vpop.f32.mrf.mxu0 }
 0x5ef   : > { %v8382_v43 = vpop.f32.mrf.mxu1  ;;  %8648 = vst [vmem:[%s15724_s25 + $0x638] sm:$0xff] %v8377_v62  ;;  %v8381_v27 = vadd.f32 %v8380_v9, %v8028_v53  ;;  %v8030_v11 = vadd.f32 %v8029_v23, %v16301_v61 }
 0x5f0   : > { %v8031_v18 = vpop.f32.mrf.mxu0 }
 0x5f1   : > { %v8384_v12 = vpop.f32.mrf.mxu1  ;;  %8651 = vst [vmem:[%s15724_s25 + $0x650] sm:$0xff] %v8381_v27  ;;  %v8383_v16 = vadd.f32 %v8382_v43, %v8030_v11  ;;  %v8032_v17 = vadd.f32 %v8031_v18, %v16295_v14 }
 0x5f2   : > { %v8033_v52 = vpop.f32.mrf.mxu0 }
 0x5f3   : > { %v8386_v22 = vpop.f32.mrf.mxu1  ;;  %8652 = vst [vmem:[%s15724_s25 + $0x658] sm:$0xff] %v8383_v16  ;;  %v8385_v51 = vadd.f32 %v8384_v12, %v8032_v17  ;;  %v8034_v28 = vadd.f32 %v8033_v52, %v16301_v61 }
 0x5f4   : > { %v8037_v2 = vpop.f32.mrf.mxu0 }
 0x5f5   : > { %v8390_v41 = vpop.f32.mrf.mxu1  ;;  %8655 = vst [vmem:[%s15724_s25 + $0x670] sm:$0xff] %v8385_v51  ;;  %v8387_v34 = vadd.f32 %v8386_v22, %v8034_v28  ;;  %v8038_v20 = vadd.f32 %v8037_v2, %v16295_v14 }
 0x5f6   : > { %v8039_v54 = vpop.f32.mrf.mxu0 }
 0x5f7   : > { %v8392_v26 = vpop.f32.mrf.mxu1  ;;  %8656 = vst [vmem:[%s15724_s25 + $0x678] sm:$0xff] %v8387_v34  ;;  %v8391_v50 = vadd.f32 %v8390_v41, %v8038_v20  ;;  %v8040_v55 = vadd.f32 %v8039_v54, %v16301_v61 }
 0x5f8   : > { %v8041_v33 = vpop.f32.mrf.mxu0 }
 0x5f9   : > { %v8394_v59 = vpop.f32.mrf.mxu1  ;;  %8659 = vst [vmem:[%s15724_s25 + $0x690] sm:$0xff] %v8391_v50  ;;  %v8393_v15 = vadd.f32 %v8392_v26, %v8040_v55  ;;  %v8042_v45 = vadd.f32 %v8041_v33, %v16295_v14 }
 0x5fa   : > { %v8043_v10 = vpop.f32.mrf.mxu0 }
 0x5fb   : > { %v8396_v30 = vpop.f32.mrf.mxu1  ;;  %8660 = vst [vmem:[%s15724_s25 + $0x698] sm:$0xff] %v8393_v15  ;;  %v8395_v60 = vadd.f32 %v8394_v59, %v8042_v45  ;;  %v8044_v36 = vadd.f32 %v8043_v10, %v16301_v61 }
 0x5fc   : > { %v8047_v7 = vpop.f32.mrf.mxu0 }
 0x5fd   : > { %v8400_v6 = vpop.f32.mrf.mxu1  ;;  %8663 = vst [vmem:[%s15724_s25 + $0x6b0] sm:$0xff] %v8395_v60  ;;  %v8397_v47 = vadd.f32 %v8396_v30, %v8044_v36  ;;  %v8048_v48 = vadd.f32 %v8047_v7, %v16295_v14 }
 0x5fe   : > { %v8049_v0 = vpop.f32.mrf.mxu0 }
 0x5ff   : > { %v8402_v44 = vpop.f32.mrf.mxu1  ;;  %8664 = vst [vmem:[%s15724_s25 + $0x6b8] sm:$0xff] %v8397_v47  ;;  %v8401_v24 = vadd.f32 %v8400_v6, %v8048_v48  ;;  %v8050_v35 = vadd.f32 %v8049_v0, %v16301_v61 }
 0x600   : > { %v8051_v42 = vpop.f32.mrf.mxu0 }
 0x601   : > { %v8404_v58 = vpop.f32.mrf.mxu1  ;;  %8667 = vst [vmem:[%s15724_s25 + $0x6d0] sm:$0xff] %v8401_v24  ;;  %v8403_v40 = vadd.f32 %v8402_v44, %v8050_v35  ;;  %v8052_v1 = vadd.f32 %v8051_v42, %v16295_v14 }
 0x602   : > { %v8053_v19 = vpop.f32.mrf.mxu0 }
 0x603   : > { %v8406_v25 = vpop.f32.mrf.mxu1  ;;  %8668 = vst [vmem:[%s15724_s25 + $0x6d8] sm:$0xff] %v8403_v40  ;;  %v8405_v21 = vadd.f32 %v8404_v58, %v8052_v1  ;;  %v8054_v63 = vadd.f32 %v8053_v19, %v16301_v61 }
 0x604   : > { %v8057_v4 = vpop.f32.mrf.mxu0 }
 0x605   : > { %v8410_v31 = vpop.f32.mrf.mxu1  ;;  %8671 = vst [vmem:[%s15724_s25 + $0x6f0] sm:$0xff] %v8405_v21  ;;  %v8407_v5 = vadd.f32 %v8406_v25, %v8054_v63  ;;  %v8058_v32 = vadd.f32 %v8057_v4, %v16295_v14 }
 0x606   : > { %v8059_v3 = vpop.f32.mrf.mxu0 }
 0x607   : > { %v8412_v49 = vpop.f32.mrf.mxu1  ;;  %8672 = vst [vmem:[%s15724_s25 + $0x6f8] sm:$0xff] %v8407_v5  ;;  %v8411_v56 = vadd.f32 %v8410_v31, %v8058_v32  ;;  %v8060_v13 = vadd.f32 %v8059_v3, %v16301_v61 }
 0x608   : > { %v8061_v46 = vpop.f32.mrf.mxu0 }
 0x609   : > { %v8414_v38 = vpop.f32.mrf.mxu1  ;;  %8675 = vst [vmem:[%s15724_s25 + $0x710] sm:$0xff] %v8411_v56  ;;  %v8413_v39 = vadd.f32 %v8412_v49, %v8060_v13  ;;  %v8062_v57 = vadd.f32 %v8061_v46, %v16295_v14 }
 0x60a   : > { %v8063_v37 = vpop.f32.mrf.mxu0 }
 0x60b   : > { %v8416_v29 = vpop.f32.mrf.mxu1  ;;  %8676 = vst [vmem:[%s15724_s25 + $0x718] sm:$0xff] %v8413_v39  ;;  %v8415_v8 = vadd.f32 %v8414_v38, %v8062_v57  ;;  %v8064_v9 = vadd.f32 %v8063_v37, %v16301_v61 }
 0x60c   : > { %v8067_v62 = vpop.f32.mrf.mxu0 }
 0x60d   : > { %v8420_v53 = vpop.f32.mrf.mxu1  ;;  %8679 = vst [vmem:[%s15724_s25 + $0x730] sm:$0xff] %v8415_v8  ;;  %v8417_v23 = vadd.f32 %v8416_v29, %v8064_v9  ;;  %v8068_v43 = vadd.f32 %v8067_v62, %v16295_v14 }
 0x60e   : > { %v8069_v27 = vpop.f32.mrf.mxu0 }
 0x60f   : > { %v8422_v11 = vpop.f32.mrf.mxu1  ;;  %8680 = vst [vmem:[%s15724_s25 + $0x738] sm:$0xff] %v8417_v23  ;;  %v8421_v18 = vadd.f32 %v8420_v53, %v8068_v43  ;;  %v8070_v12 = vadd.f32 %v8069_v27, %v16301_v61 }
 0x610   : > { %v8071_v16 = vpop.f32.mrf.mxu0 }
 0x611   : > { %v8424_v17 = vpop.f32.mrf.mxu1  ;;  %8683 = vst [vmem:[%s15724_s25 + $0x750] sm:$0xff] %v8421_v18  ;;  %v8423_v52 = vadd.f32 %v8422_v11, %v8070_v12  ;;  %v8072_v22 = vadd.f32 %v8071_v16, %v16295_v14 }
 0x612   : > { %v8073_v51 = vpop.f32.mrf.mxu0 }
 0x613   : > { %v8426_v28 = vpop.f32.mrf.mxu1  ;;  %8684 = vst [vmem:[%s15724_s25 + $0x758] sm:$0xff] %v8423_v52  ;;  %v8425_v2 = vadd.f32 %v8424_v17, %v8072_v22  ;;  %v8074_v41 = vadd.f32 %v8073_v51, %v16301_v61 }
 0x614   : > { %v8077_v34 = vpop.f32.mrf.mxu0 }
 0x615   : > { %v8430_v20 = vpop.f32.mrf.mxu1  ;;  %8687 = vst [vmem:[%s15724_s25 + $0x770] sm:$0xff] %v8425_v2  ;;  %v8427_v54 = vadd.f32 %v8426_v28, %v8074_v41  ;;  %v8078_v26 = vadd.f32 %v8077_v34, %v16295_v14 }
 0x616   : > { %v8079_v50 = vpop.f32.mrf.mxu0 }
 0x617   : > { %v8432_v55 = vpop.f32.mrf.mxu1  ;;  %8688 = vst [vmem:[%s15724_s25 + $0x778] sm:$0xff] %v8427_v54  ;;  %v8431_v33 = vadd.f32 %v8430_v20, %v8078_v26  ;;  %v8080_v59 = vadd.f32 %v8079_v50, %v16301_v61 }
 0x618   : > { %v8081_v15 = vpop.f32.mrf.mxu0 }
 0x619   : > { %v8434_v45 = vpop.f32.mrf.mxu1  ;;  %8691 = vst [vmem:[%s15724_s25 + $0x790] sm:$0xff] %v8431_v33  ;;  %v8433_v10 = vadd.f32 %v8432_v55, %v8080_v59  ;;  %v8082_v30 = vadd.f32 %v8081_v15, %v16295_v14 }
 0x61a   : > { %v8083_v60 = vpop.f32.mrf.mxu0 }
 0x61b   : > { %v8436_v36 = vpop.f32.mrf.mxu1  ;;  %8692 = vst [vmem:[%s15724_s25 + $0x798] sm:$0xff] %v8433_v10  ;;  %v8435_v7 = vadd.f32 %v8434_v45, %v8082_v30  ;;  %v8084_v6 = vadd.f32 %v8083_v60, %v16301_v61 }
 0x61c   : > { %v8087_v47 = vpop.f32.mrf.mxu0 }
 0x61d   : > { %v8440_v48 = vpop.f32.mrf.mxu1  ;;  %8695 = vst [vmem:[%s15724_s25 + $0x7b0] sm:$0xff] %v8435_v7  ;;  %v8437_v0 = vadd.f32 %v8436_v36, %v8084_v6  ;;  %v8088_v44 = vadd.f32 %v8087_v47, %v16295_v14 }
 0x61e   : > { %v8089_v24 = vpop.f32.mrf.mxu0 }
 0x61f   : > { %v8442_v35 = vpop.f32.mrf.mxu1  ;;  %8696 = vst [vmem:[%s15724_s25 + $0x7b8] sm:$0xff] %v8437_v0  ;;  %v8441_v42 = vadd.f32 %v8440_v48, %v8088_v44  ;;  %v8090_v58 = vadd.f32 %v8089_v24, %v16301_v61 }
 0x620   : > { %v8091_v40 = vpop.f32.mrf.mxu0 }
 0x621   : > { %v8444_v1 = vpop.f32.mrf.mxu1  ;;  %8699 = vst [vmem:[%s15724_s25 + $0x7d0] sm:$0xff] %v8441_v42  ;;  %v8443_v19 = vadd.f32 %v8442_v35, %v8090_v58  ;;  %v8092_v25 = vadd.f32 %v8091_v40, %v16295_v14 }
 0x622   : > { %v8093_v21 = vpop.f32.mrf.mxu0 }
 0x623   : > { %8700 = vst [vmem:[%s15724_s25 + $0x7d8] sm:$0xff] %v8443_v19  ;;  %v8445_v63 = vadd.f32 %v8444_v1, %v8092_v25  ;;  %v8094_v4 = vadd.f32 %v8093_v21, %v16301_v61  ;;  %v8446_v31 = vpop.f32.mrf.mxu1 }
 0x625   : > { %8703 = vst [vmem:[%s15724_s25 + $0x7f0] sm:$0xff] %v8445_v63  ;;  %v8447_v5 = vadd.f32 %v8446_v31, %v8094_v4 }
 0x627   : > { %8704 = vst [vmem:[%s15724_s25 + $0x7f8] sm:$0xff] %v8447_v5 }
 0x628 PF: > { %s18_s9 = sadd.s32 1, %s10639_s9   ;;  %s17659_s27 = smov %s10631_s29 }
 0x629   : > { %p15_p7 = scmp.ge.s32.totalorder %s18_s9, 6   ;;  %s17660_s28 = smov %s10635_s30 }
 0x62a   : > { %s17661_s29 = smov %s17664_s10  ;;  %s17662_s30 = smov %s17668_s11 }
 0x62b   :  { %17 = sbr.rel (!%p15_p7) target bundleno = 3 (0x3), region = 95 }

</bundles_post_ra>
